<compile_context>
chip_gen: v6e
topology: v6e:2x2x1
jax: 0.10.0
libtpu: 0.0.40
codegen_flags: <defaults>
</compile_context>

<pallas_src>
import functools
import math

import jax
import jax.numpy as jnp
from jax.experimental import pallas as pl
from jax.experimental.pallas import tpu as pltpu


# ---------------------------------------------------------------------------
# Fused kernel: 3 TransformerConv layers + per-graph mean pool + fc1/ReLU/fc2/
# sigmoid, for one tile of `batch_tile` graphs (R = batch_tile * n_nodes rows).
# ---------------------------------------------------------------------------
def _fused_gnn_kernel(x_ref, adj_ref, same_ref,
                      w0, b0, g0, be0,
                      w1, b1, g1, be1,
                      w2, b2, g2, be2,
                      fw1, fb1, fw2, fb2,
                      out_ref, *, heads, out_channels, n_nodes, batch_tile,
                      mxu_dtype):
  C = out_channels
  D = heads * C
  R = batch_tile * n_nodes
  scale = 1.0 / math.sqrt(C)

  x = x_ref[...]                                          # [R, Fin]

  # ---- Adjacency: build block-diagonal form + additive mask bias ONCE per
  # grid step (hoisted out of the layers, reused x3).  adj_ref holds the
  # compact same-graph adjacency rows [R, N] (bf16 in HBM, upcast here).
  adj_rn = adj_ref[...].astype(jnp.float32)               # [R, N]
  adj_bd = (jnp.concatenate([adj_rn] * batch_tile, axis=1)
            * same_ref[...])                              # [R, R] block-diag
  bias = jnp.where(adj_bd > 0.0, 0.0, -1e30)              # [R, R] additive mask

  def conv_layer(h2d, w_all, b_all, gamma, beta):
    """One TransformerConv(heads, concat=True) + skip + ReLU + LayerNorm.

    h2d: [R, Fin_l] node features (PyG concat order h*C + c for layers > 0).
    w_all: [Fin_l, 4D] packed [q_h* | k_h* | v_h* | skip_h*]; b_all: [1, 4D].
    gamma/beta: [1, D].  Returns [R, D].
    """
    # Single packed projection — one wide MXU pass.
    p2d = jnp.dot(h2d.astype(mxu_dtype), w_all.astype(mxu_dtype),
                  preferred_element_type=jnp.float32) + b_all        # [R, 4D]
    skip2d = p2d[:, 3 * D:4 * D]                                     # [R, D]

    head_outs = []
    for h in range(heads):                                # unrolled (heads=2)
      qh = p2d[:, h * C:(h + 1) * C]                                 # [R, C]
      kh = p2d[:, (heads + h) * C:(heads + h + 1) * C]               # [R, C]
      vh = p2d[:, (2 * heads + h) * C:(2 * heads + h + 1) * C]       # [R, C]
      s = jnp.einsum("rc,sc->rs", qh.astype(mxu_dtype), kh.astype(mxu_dtype),
                     preferred_element_type=jnp.float32) * scale + bias
      m = jnp.max(s, axis=-1, keepdims=True)
      e = adj_bd * jnp.exp(s - m)            # adj carries edge multiplicity
      z = jnp.sum(e, axis=-1, keepdims=True)
      # Zero in-degree rows -> all-zero attention (only the skip term remains),
      # matching PyG semantics.  Exact reciprocal keeps f32 parity.
      alpha = e * pl.reciprocal(jnp.where(z > 0.0, z, 1.0), approx=False)
      head_outs.append(jnp.dot(alpha.astype(mxu_dtype), vh.astype(mxu_dtype),
                               preferred_element_type=jnp.float32))  # [R, C]

    attn2d = jnp.concatenate(head_outs, axis=1)                      # [R, D]
    y = jnp.maximum(attn2d + skip2d, 0.0)                            # ReLU
    # LayerNorm over the D concatenated features (single lane-axis reduce).
    mu = jnp.mean(y, axis=-1, keepdims=True)
    d = y - mu
    var = jnp.mean(d * d, axis=-1, keepdims=True)
    return (d * jax.lax.rsqrt(var + 1e-5)) * gamma + beta            # [R, D]

  h = conv_layer(x, w0[...], b0[...], g0[...], be0[...])
  h = conv_layer(h, w1[...], b1[...], g1[...], be1[...])
  h = conv_layer(h, w2[...], b2[...], g2[...], be2[...])
  # TODO(synk): dropout layers are identity in eval mode; no op emitted.

  # Global mean pool per graph: reshape + sum over the node axis.
  pooled = jnp.sum(h.reshape(batch_tile, n_nodes, D), axis=1) * (1.0 / n_nodes)

  # MLP head: fc1 + ReLU, fc2 + sigmoid.
  hdn = jnp.maximum(
      jnp.dot(pooled.astype(mxu_dtype), fw1[...].astype(mxu_dtype),
              preferred_element_type=jnp.float32) + fb1[...], 0.0)   # [Bt, hid]
  yhat = jax.nn.sigmoid(
      jnp.sum(hdn * fw2[...], axis=-1, keepdims=True) + fb2[...])    # [Bt, 1]

  # Lane-dense store: broadcast the per-graph scalar across 128 lanes.
  out_ref[...] = jnp.broadcast_to(yhat, out_ref.shape)


# ---------------------------------------------------------------------------
# Wrapper
# ---------------------------------------------------------------------------
def _const_index_map(ndim):
  return lambda b: (0,) * ndim


def sirna_gnn_forward(x, adj, params, *, heads, hidden_dim, batch_tile,
                      mxu_dtype=jnp.float32):
  """x: [B, N, Fin] node features; adj: [B, N, N] with adj[b, i, j] = #edges j->i.

  Set mxu_dtype=jnp.bfloat16 on v6e/v7x for ~2x MXU throughput (f32 accumulation
  is kept); default f32 matches the PyTorch reference numerically.
  """
  B, N, Fin = x.shape
  C = hidden_dim
  D = heads * C
  assert B % batch_tile == 0
  nb = B // batch_tile
  R = batch_tile * N

  # Plain-JAX glue (free views): flatten nodes; compact adjacency rows in bf16
  # (edge counts are small integers -> bf16 is lossless).  NO block-diagonal
  # expansion in HBM — that happens in-kernel, once per grid step.
  x_flat = x.reshape(B * N, Fin)
  adj_flat = adj.reshape(B * N, N).astype(jnp.bfloat16)

  # Constant same-graph mask for one tile (resident in VMEM, DMA'd once).
  gid = jnp.repeat(jnp.arange(batch_tile, dtype=jnp.int32), N)       # [R]
  same = (gid[:, None] == gid[None, :]).astype(jnp.float32)          # [R, R]

  weight_args = []
  weight_specs = []
  for lp in params["layers"]:
    for name in ("w", "b", "gamma", "beta"):
      a = lp[name]
      weight_args.append(a)
      weight_specs.append(pl.BlockSpec(a.shape, _const_index_map(a.ndim)))
  for name in ("w1", "b1", "w2", "b2"):
    a = params["head"][name]
    weight_args.append(a)
    weight_specs.append(pl.BlockSpec(a.shape, _const_index_map(a.ndim)))

  kernel = functools.partial(_fused_gnn_kernel, heads=heads, out_channels=C,
                             n_nodes=N, batch_tile=batch_tile,
                             mxu_dtype=mxu_dtype)

  out = pl.pallas_call(
      kernel,
      out_shape=jax.ShapeDtypeStruct((B, 128), jnp.float32),
      grid=(nb,),
      in_specs=[
          pl.BlockSpec((R, Fin), lambda b: (b, 0)),        # node features
          pl.BlockSpec((R, N), lambda b: (b, 0)),          # compact adjacency
          pl.BlockSpec(same.shape, _const_index_map(2)),   # same-graph mask
          *weight_specs,
      ],
      out_specs=pl.BlockSpec((batch_tile, 128), lambda b: (b, 0)),
      compiler_params=pltpu.CompilerParams(
          dimension_semantics=("parallel",),       # v7x 2nd TensorCore
          vmem_limit_bytes=48 * 1024 * 1024),      # under v7x's 64 MiB VMEM
  )(x_flat, adj_flat, same, *weight_args)

  return out[:, 0]                                  # [B] per-graph predictions


# ---------------------------------------------------------------------------
# Deterministic parameter init (synthetic; packed column layout described above)
# ---------------------------------------------------------------------------
def init_params(key, in_channels, hidden_dim, heads):
  C = hidden_dim
  D = heads * C
  keys = iter(jax.random.split(key, 8))

  def rnd(shape, scale=0.1):
    return jax.random.normal(next(keys), shape, jnp.float32) * scale

  layers = []
  fin = in_channels
  for _ in range(3):
    layers.append({
        "w": rnd((fin, 4 * D)),   # columns: [q_h0..q_hH | k_h* | v_h* | skip_h*]
        "b": jnp.zeros((1, 4 * D), jnp.float32),
        "gamma": jnp.ones((1, D), jnp.float32),
        "beta": jnp.zeros((1, D), jnp.float32),
    })
    fin = D
  head = {
      "w1": rnd((D, hidden_dim)),              # fc1 weight (transposed torch)
      "b1": jnp.zeros((1, hidden_dim), jnp.float32),
      "w2": rnd((1, hidden_dim)),              # fc2 weight row
      "b2": jnp.zeros((1, 1), jnp.float32),
  }
  return {"layers": layers, "head": head}


# ---------------------------------------------------------------------------
if __name__ == "__main__":
  B, N, IN_CHANNELS, HIDDEN_DIM, HEADS = 32, 8, 4, 32, 2
  BATCH_TILE = 16                   # R = 128 rows per grid step, nb = 2 steps

  key = jax.random.PRNGKey(0)
  kx, kp = jax.random.split(key)

  # Node features for B small synthetic siRNA graphs.
  x = jax.random.normal(kx, (B, N, IN_CHANNELS), jnp.float32)

  # Bidirectional ring graph (same topology for every graph in the batch).
  src = jnp.array([0, 1, 2, 3, 4, 5, 6, 7, 1, 2, 3, 4, 5, 6, 7, 0], jnp.int32)
  dst = jnp.array([1, 2, 3, 4, 5, 6, 7, 0, 0, 1, 2, 3, 4, 5, 6, 7], jnp.int32)
  adj_single = jnp.zeros((N, N), jnp.float32).at[dst, src].add(1.0)  # adj[i,j]=#edges j->i
  adj = jnp.broadcast_to(adj_single, (B, N, N))

  params = init_params(kp, IN_CHANNELS, HIDDEN_DIM, HEADS)

  out = sirna_gnn_forward(x, adj, params, heads=HEADS, hidden_dim=HIDDEN_DIM,
                          batch_tile=BATCH_TILE)
  jax.block_until_ready(out)
  assert out.shape == (B,)
  assert bool(jnp.all(jnp.isfinite(out)))
  print("KERNEL_OK")
</pallas_src>

<mosaic_0001>
module attributes {stable_mosaic.version = 11 : i64} {
  func.func @_fused_gnn_kernel(%arg0: i32, %arg1: memref<128x4xf32, #tpu.memory_space<vmem>>, %arg2: memref<128x8xbf16, #tpu.memory_space<vmem>>, %arg3: memref<128x128xf32, #tpu.memory_space<vmem>>, %arg4: memref<4x256xf32, #tpu.memory_space<vmem>>, %arg5: memref<1x256xf32, #tpu.memory_space<vmem>>, %arg6: memref<1x64xf32, #tpu.memory_space<vmem>>, %arg7: memref<1x64xf32, #tpu.memory_space<vmem>>, %arg8: memref<64x256xf32, #tpu.memory_space<vmem>>, %arg9: memref<1x256xf32, #tpu.memory_space<vmem>>, %arg10: memref<1x64xf32, #tpu.memory_space<vmem>>, %arg11: memref<1x64xf32, #tpu.memory_space<vmem>>, %arg12: memref<64x256xf32, #tpu.memory_space<vmem>>, %arg13: memref<1x256xf32, #tpu.memory_space<vmem>>, %arg14: memref<1x64xf32, #tpu.memory_space<vmem>>, %arg15: memref<1x64xf32, #tpu.memory_space<vmem>>, %arg16: memref<64x32xf32, #tpu.memory_space<vmem>>, %arg17: memref<1x32xf32, #tpu.memory_space<vmem>>, %arg18: memref<1x32xf32, #tpu.memory_space<vmem>>, %arg19: memref<1x1xf32, #tpu.memory_space<vmem>>, %arg20: memref<16x128xf32, #tpu.memory_space<vmem>>) attributes {dimension_semantics = [#tpu.dimension_semantics<parallel>], iteration_bounds = array<i64: 2>, scalar_prefetch = 0 : i64, scratch_operands = 0 : i64, tpu.core_type = #tpu.core_type<tc>, window_params = [{transform_indices = @transform_0, window_bounds = array<i64: 128, 4>}, {transform_indices = @transform_1, window_bounds = array<i64: 128, 8>}, {pipeline_mode = #tpu.pipeline_mode<synchronous>, transform_indices = @transform_2, window_bounds = array<i64: 128, 128>}, {pipeline_mode = #tpu.pipeline_mode<synchronous>, transform_indices = @transform_3, window_bounds = array<i64: 4, 256>}, {pipeline_mode = #tpu.pipeline_mode<synchronous>, transform_indices = @transform_4, window_bounds = array<i64: 1, 256>}, {pipeline_mode = #tpu.pipeline_mode<synchronous>, transform_indices = @transform_5, window_bounds = array<i64: 1, 64>}, {pipeline_mode = #tpu.pipeline_mode<synchronous>, transform_indices = @transform_6, window_bounds = array<i64: 1, 64>}, {pipeline_mode = #tpu.pipeline_mode<synchronous>, transform_indices = @transform_7, window_bounds = array<i64: 64, 256>}, {pipeline_mode = #tpu.pipeline_mode<synchronous>, transform_indices = @transform_8, window_bounds = array<i64: 1, 256>}, {pipeline_mode = #tpu.pipeline_mode<synchronous>, transform_indices = @transform_9, window_bounds = array<i64: 1, 64>}, {pipeline_mode = #tpu.pipeline_mode<synchronous>, transform_indices = @transform_10, window_bounds = array<i64: 1, 64>}, {pipeline_mode = #tpu.pipeline_mode<synchronous>, transform_indices = @transform_11, window_bounds = array<i64: 64, 256>}, {pipeline_mode = #tpu.pipeline_mode<synchronous>, transform_indices = @transform_12, window_bounds = array<i64: 1, 256>}, {pipeline_mode = #tpu.pipeline_mode<synchronous>, transform_indices = @transform_13, window_bounds = array<i64: 1, 64>}, {pipeline_mode = #tpu.pipeline_mode<synchronous>, transform_indices = @transform_14, window_bounds = array<i64: 1, 64>}, {pipeline_mode = #tpu.pipeline_mode<synchronous>, transform_indices = @transform_15, window_bounds = array<i64: 64, 32>}, {pipeline_mode = #tpu.pipeline_mode<synchronous>, transform_indices = @transform_16, window_bounds = array<i64: 1, 32>}, {pipeline_mode = #tpu.pipeline_mode<synchronous>, transform_indices = @transform_17, window_bounds = array<i64: 1, 32>}, {pipeline_mode = #tpu.pipeline_mode<synchronous>, transform_indices = @transform_18, window_bounds = array<i64: 1, 1>}, {transform_indices = @transform_19, window_bounds = array<i64: 16, 128>}]} {
    %c0 = arith.constant 0 : index
    %c0_0 = arith.constant 0 : index
    %0 = vector.load %arg1[%c0, %c0_0] : memref<128x4xf32, #tpu.memory_space<vmem>>, vector<128x4xf32>
    %c0_1 = arith.constant 0 : index
    %c0_2 = arith.constant 0 : index
    %1 = vector.load %arg2[%c0_1, %c0_2] : memref<128x8xbf16, #tpu.memory_space<vmem>>, vector<128x8xbf16>
    %2 = arith.extf %1 : vector<128x8xbf16> to vector<128x8xf32>
    %3 = tpu.concatenate %2, %2, %2, %2, %2, %2, %2, %2, %2, %2, %2, %2, %2, %2, %2, %2 in 1 : vector<128x8xf32>, vector<128x8xf32>, vector<128x8xf32>, vector<128x8xf32>, vector<128x8xf32>, vector<128x8xf32>, vector<128x8xf32>, vector<128x8xf32>, vector<128x8xf32>, vector<128x8xf32>, vector<128x8xf32>, vector<128x8xf32>, vector<128x8xf32>, vector<128x8xf32>, vector<128x8xf32>, vector<128x8xf32> -> vector<128x128xf32>
    %c0_3 = arith.constant 0 : index
    %c0_4 = arith.constant 0 : index
    %4 = vector.load %arg3[%c0_3, %c0_4] : memref<128x128xf32, #tpu.memory_space<vmem>>, vector<128x128xf32>
    %5 = arith.mulf %3, %4 : vector<128x128xf32>
    %cst = arith.constant 0.000000e+00 : f32
    %6 = vector.broadcast %cst : f32 to vector<128x128xf32>
    %7 = arith.cmpf ogt, %5, %6 : vector<128x128xf32>
    %cst_5 = arith.constant 0.000000e+00 : f32
    %cst_6 = arith.constant -1.000000e+30 : f32
    %8 = vector.broadcast %cst_5 : f32 to vector<128x128xf32>
    %9 = vector.broadcast %cst_6 : f32 to vector<128x128xf32>
    %10 = arith.select %7, %8, %9 : vector<128x128xi1>, vector<128x128xf32>
    %c0_7 = arith.constant 0 : index
    %c0_8 = arith.constant 0 : index
    %11 = vector.load %arg4[%c0_7, %c0_8] : memref<4x256xf32, #tpu.memory_space<vmem>>, vector<4x256xf32>
    %c0_9 = arith.constant 0 : index
    %c0_10 = arith.constant 0 : index
    %12 = vector.load %arg5[%c0_9, %c0_10] : memref<1x256xf32, #tpu.memory_space<vmem>>, vector<1x256xf32>
    %c0_11 = arith.constant 0 : index
    %c0_12 = arith.constant 0 : index
    %13 = vector.load %arg6[%c0_11, %c0_12] : memref<1x64xf32, #tpu.memory_space<vmem>>, vector<1x64xf32>
    %c0_13 = arith.constant 0 : index
    %c0_14 = arith.constant 0 : index
    %14 = vector.load %arg7[%c0_13, %c0_14] : memref<1x64xf32, #tpu.memory_space<vmem>>, vector<1x64xf32>
    %cst_15 = arith.constant dense<0.000000e+00> : vector<128x256xf32>
    %15 = tpu.matmul %0, %11, %cst_15 {dimension_numbers = #tpu.dot_dimension_numbers<[1], [0], [0], [1], [0, 0, 1, 1], [], []>} : vector<128x4xf32>, vector<4x256xf32>, vector<128x256xf32> -> vector<128x256xf32>
    %16 = vector.broadcast %12 : vector<1x256xf32> to vector<128x256xf32>
    %17 = arith.addf %15, %16 : vector<128x256xf32>
    %18 = vector.extract_strided_slice %17 {offsets = [0, 192], sizes = [128, 64], strides = [1, 1]} : vector<128x256xf32> to vector<128x64xf32>
    %19 = vector.extract_strided_slice %17 {offsets = [0, 0], sizes = [128, 32], strides = [1, 1]} : vector<128x256xf32> to vector<128x32xf32>
    %20 = vector.extract_strided_slice %17 {offsets = [0, 64], sizes = [128, 32], strides = [1, 1]} : vector<128x256xf32> to vector<128x32xf32>
    %21 = vector.extract_strided_slice %17 {offsets = [0, 128], sizes = [128, 32], strides = [1, 1]} : vector<128x256xf32> to vector<128x32xf32>
    "tpu.trace_start"() <{level = 10 : i32, message = "rc,sc->rs"}> : () -> ()
    %cst_16 = arith.constant dense<0.000000e+00> : vector<128x128xf32>
    %22 = tpu.matmul %19, %20, %cst_16 {dimension_numbers = #tpu.dot_dimension_numbers<[1], [1], [0], [0], [0, 0, 1, 0], [], []>} : vector<128x32xf32>, vector<128x32xf32>, vector<128x128xf32> -> vector<128x128xf32>
    "tpu.trace_stop"() : () -> ()
    %cst_17 = arith.constant 0.176776692 : f32
    %23 = vector.broadcast %cst_17 : f32 to vector<128x128xf32>
    %24 = arith.mulf %22, %23 : vector<128x128xf32>
    %25 = arith.addf %24, %10 : vector<128x128xf32>
    %cst_18 = arith.constant dense<0xFF800000> : vector<128xf32>
    %26 = vector.multi_reduction <maximumf>, %25, %cst_18 [1] : vector<128x128xf32> to vector<128xf32>
    %27 = vector.shape_cast %26 : vector<128xf32> to vector<128x1xf32>
    %28 = vector.broadcast %27 : vector<128x1xf32> to vector<128x128xf32>
    %29 = arith.subf %25, %28 : vector<128x128xf32>
    %30 = math.exp %29 : vector<128x128xf32>
    %31 = arith.mulf %5, %30 : vector<128x128xf32>
    %cst_19 = arith.constant dense<0.000000e+00> : vector<128xf32>
    %32 = vector.multi_reduction <add>, %31, %cst_19 [1] : vector<128x128xf32> to vector<128xf32>
    %33 = vector.shape_cast %32 : vector<128xf32> to vector<128x1xf32>
    %cst_20 = arith.constant 0.000000e+00 : f32
    %34 = vector.broadcast %cst_20 : f32 to vector<128x1xf32>
    %35 = arith.cmpf ogt, %33, %34 : vector<128x1xf32>
    %cst_21 = arith.constant 1.000000e+00 : f32
    %36 = vector.broadcast %cst_21 : f32 to vector<128x1xf32>
    %37 = arith.select %35, %33, %36 : vector<128x1xi1>, vector<128x1xf32>
    %38 = tpu.reciprocal %37 : vector<128x1xf32> -> vector<128x1xf32>
    %39 = vector.broadcast %38 : vector<128x1xf32> to vector<128x128xf32>
    %40 = arith.mulf %31, %39 : vector<128x128xf32>
    %cst_22 = arith.constant dense<0.000000e+00> : vector<128x32xf32>
    %41 = tpu.matmul %40, %21, %cst_22 {dimension_numbers = #tpu.dot_dimension_numbers<[1], [0], [0], [1], [0, 0, 1, 1], [], []>} : vector<128x128xf32>, vector<128x32xf32>, vector<128x32xf32> -> vector<128x32xf32>
    %42 = vector.extract_strided_slice %17 {offsets = [0, 32], sizes = [128, 32], strides = [1, 1]} : vector<128x256xf32> to vector<128x32xf32>
    %43 = vector.extract_strided_slice %17 {offsets = [0, 96], sizes = [128, 32], strides = [1, 1]} : vector<128x256xf32> to vector<128x32xf32>
    %44 = vector.extract_strided_slice %17 {offsets = [0, 160], sizes = [128, 32], strides = [1, 1]} : vector<128x256xf32> to vector<128x32xf32>
    "tpu.trace_start"() <{level = 10 : i32, message = "rc,sc->rs"}> : () -> ()
    %cst_23 = arith.constant dense<0.000000e+00> : vector<128x128xf32>
    %45 = tpu.matmul %42, %43, %cst_23 {dimension_numbers = #tpu.dot_dimension_numbers<[1], [1], [0], [0], [0, 0, 1, 0], [], []>} : vector<128x32xf32>, vector<128x32xf32>, vector<128x128xf32> -> vector<128x128xf32>
    "tpu.trace_stop"() : () -> ()
    %cst_24 = arith.constant 0.176776692 : f32
    %46 = vector.broadcast %cst_24 : f32 to vector<128x128xf32>
    %47 = arith.mulf %45, %46 : vector<128x128xf32>
    %48 = arith.addf %47, %10 : vector<128x128xf32>
    %cst_25 = arith.constant dense<0xFF800000> : vector<128xf32>
    %49 = vector.multi_reduction <maximumf>, %48, %cst_25 [1] : vector<128x128xf32> to vector<128xf32>
    %50 = vector.shape_cast %49 : vector<128xf32> to vector<128x1xf32>
    %51 = vector.broadcast %50 : vector<128x1xf32> to vector<128x128xf32>
    %52 = arith.subf %48, %51 : vector<128x128xf32>
    %53 = math.exp %52 : vector<128x128xf32>
    %54 = arith.mulf %5, %53 : vector<128x128xf32>
    %cst_26 = arith.constant dense<0.000000e+00> : vector<128xf32>
    %55 = vector.multi_reduction <add>, %54, %cst_26 [1] : vector<128x128xf32> to vector<128xf32>
    %56 = vector.shape_cast %55 : vector<128xf32> to vector<128x1xf32>
    %cst_27 = arith.constant 0.000000e+00 : f32
    %57 = vector.broadcast %cst_27 : f32 to vector<128x1xf32>
    %58 = arith.cmpf ogt, %56, %57 : vector<128x1xf32>
    %cst_28 = arith.constant 1.000000e+00 : f32
    %59 = vector.broadcast %cst_28 : f32 to vector<128x1xf32>
    %60 = arith.select %58, %56, %59 : vector<128x1xi1>, vector<128x1xf32>
    %61 = tpu.reciprocal %60 : vector<128x1xf32> -> vector<128x1xf32>
    %62 = vector.broadcast %61 : vector<128x1xf32> to vector<128x128xf32>
    %63 = arith.mulf %54, %62 : vector<128x128xf32>
    %cst_29 = arith.constant dense<0.000000e+00> : vector<128x32xf32>
    %64 = tpu.matmul %63, %44, %cst_29 {dimension_numbers = #tpu.dot_dimension_numbers<[1], [0], [0], [1], [0, 0, 1, 1], [], []>} : vector<128x128xf32>, vector<128x32xf32>, vector<128x32xf32> -> vector<128x32xf32>
    %65 = tpu.concatenate %41, %64 in 1 : vector<128x32xf32>, vector<128x32xf32> -> vector<128x64xf32>
    %66 = arith.addf %65, %18 : vector<128x64xf32>
    %cst_30 = arith.constant 0.000000e+00 : f32
    %67 = vector.broadcast %cst_30 : f32 to vector<128x64xf32>
    %68 = arith.maximumf %66, %67 : vector<128x64xf32>
    %cst_31 = arith.constant dense<0.000000e+00> : vector<128xf32>
    %69 = vector.multi_reduction <add>, %68, %cst_31 [1] : vector<128x64xf32> to vector<128xf32>
    %70 = vector.shape_cast %69 : vector<128xf32> to vector<128x1xf32>
    %cst_32 = arith.constant 6.400000e+01 : f32
    %71 = vector.broadcast %cst_32 : f32 to vector<128x1xf32>
    %72 = arith.divf %70, %71 : vector<128x1xf32>
    %73 = vector.broadcast %72 : vector<128x1xf32> to vector<128x64xf32>
    %74 = arith.subf %68, %73 : vector<128x64xf32>
    %75 = arith.mulf %74, %74 : vector<128x64xf32>
    %cst_33 = arith.constant dense<0.000000e+00> : vector<128xf32>
    %76 = vector.multi_reduction <add>, %75, %cst_33 [1] : vector<128x64xf32> to vector<128xf32>
    %77 = vector.shape_cast %76 : vector<128xf32> to vector<128x1xf32>
    %cst_34 = arith.constant 6.400000e+01 : f32
    %78 = vector.broadcast %cst_34 : f32 to vector<128x1xf32>
    %79 = arith.divf %77, %78 : vector<128x1xf32>
    %cst_35 = arith.constant 9.99999974E-6 : f32
    %80 = vector.broadcast %cst_35 : f32 to vector<128x1xf32>
    %81 = arith.addf %79, %80 : vector<128x1xf32>
    %82 = math.rsqrt %81 : vector<128x1xf32>
    %83 = vector.broadcast %82 : vector<128x1xf32> to vector<128x64xf32>
    %84 = arith.mulf %74, %83 : vector<128x64xf32>
    %85 = vector.broadcast %13 : vector<1x64xf32> to vector<128x64xf32>
    %86 = arith.mulf %84, %85 : vector<128x64xf32>
    %87 = vector.broadcast %14 : vector<1x64xf32> to vector<128x64xf32>
    %88 = arith.addf %86, %87 : vector<128x64xf32>
    %c0_36 = arith.constant 0 : index
    %c0_37 = arith.constant 0 : index
    %89 = vector.load %arg8[%c0_36, %c0_37] : memref<64x256xf32, #tpu.memory_space<vmem>>, vector<64x256xf32>
    %c0_38 = arith.constant 0 : index
    %c0_39 = arith.constant 0 : index
    %90 = vector.load %arg9[%c0_38, %c0_39] : memref<1x256xf32, #tpu.memory_space<vmem>>, vector<1x256xf32>
    %c0_40 = arith.constant 0 : index
    %c0_41 = arith.constant 0 : index
    %91 = vector.load %arg10[%c0_40, %c0_41] : memref<1x64xf32, #tpu.memory_space<vmem>>, vector<1x64xf32>
    %c0_42 = arith.constant 0 : index
    %c0_43 = arith.constant 0 : index
    %92 = vector.load %arg11[%c0_42, %c0_43] : memref<1x64xf32, #tpu.memory_space<vmem>>, vector<1x64xf32>
    %cst_44 = arith.constant dense<0.000000e+00> : vector<128x256xf32>
    %93 = tpu.matmul %88, %89, %cst_44 {dimension_numbers = #tpu.dot_dimension_numbers<[1], [0], [0], [1], [0, 0, 1, 1], [], []>} : vector<128x64xf32>, vector<64x256xf32>, vector<128x256xf32> -> vector<128x256xf32>
    %94 = vector.broadcast %90 : vector<1x256xf32> to vector<128x256xf32>
    %95 = arith.addf %93, %94 : vector<128x256xf32>
    %96 = vector.extract_strided_slice %95 {offsets = [0, 192], sizes = [128, 64], strides = [1, 1]} : vector<128x256xf32> to vector<128x64xf32>
    %97 = vector.extract_strided_slice %95 {offsets = [0, 0], sizes = [128, 32], strides = [1, 1]} : vector<128x256xf32> to vector<128x32xf32>
    %98 = vector.extract_strided_slice %95 {offsets = [0, 64], sizes = [128, 32], strides = [1, 1]} : vector<128x256xf32> to vector<128x32xf32>
    %99 = vector.extract_strided_slice %95 {offsets = [0, 128], sizes = [128, 32], strides = [1, 1]} : vector<128x256xf32> to vector<128x32xf32>
    "tpu.trace_start"() <{level = 10 : i32, message = "rc,sc->rs"}> : () -> ()
    %cst_45 = arith.constant dense<0.000000e+00> : vector<128x128xf32>
    %100 = tpu.matmul %97, %98, %cst_45 {dimension_numbers = #tpu.dot_dimension_numbers<[1], [1], [0], [0], [0, 0, 1, 0], [], []>} : vector<128x32xf32>, vector<128x32xf32>, vector<128x128xf32> -> vector<128x128xf32>
    "tpu.trace_stop"() : () -> ()
    %cst_46 = arith.constant 0.176776692 : f32
    %101 = vector.broadcast %cst_46 : f32 to vector<128x128xf32>
    %102 = arith.mulf %100, %101 : vector<128x128xf32>
    %103 = arith.addf %102, %10 : vector<128x128xf32>
    %cst_47 = arith.constant dense<0xFF800000> : vector<128xf32>
    %104 = vector.multi_reduction <maximumf>, %103, %cst_47 [1] : vector<128x128xf32> to vector<128xf32>
    %105 = vector.shape_cast %104 : vector<128xf32> to vector<128x1xf32>
    %106 = vector.broadcast %105 : vector<128x1xf32> to vector<128x128xf32>
    %107 = arith.subf %103, %106 : vector<128x128xf32>
    %108 = math.exp %107 : vector<128x128xf32>
    %109 = arith.mulf %5, %108 : vector<128x128xf32>
    %cst_48 = arith.constant dense<0.000000e+00> : vector<128xf32>
    %110 = vector.multi_reduction <add>, %109, %cst_48 [1] : vector<128x128xf32> to vector<128xf32>
    %111 = vector.shape_cast %110 : vector<128xf32> to vector<128x1xf32>
    %cst_49 = arith.constant 0.000000e+00 : f32
    %112 = vector.broadcast %cst_49 : f32 to vector<128x1xf32>
    %113 = arith.cmpf ogt, %111, %112 : vector<128x1xf32>
    %cst_50 = arith.constant 1.000000e+00 : f32
    %114 = vector.broadcast %cst_50 : f32 to vector<128x1xf32>
    %115 = arith.select %113, %111, %114 : vector<128x1xi1>, vector<128x1xf32>
    %116 = tpu.reciprocal %115 : vector<128x1xf32> -> vector<128x1xf32>
    %117 = vector.broadcast %116 : vector<128x1xf32> to vector<128x128xf32>
    %118 = arith.mulf %109, %117 : vector<128x128xf32>
    %cst_51 = arith.constant dense<0.000000e+00> : vector<128x32xf32>
    %119 = tpu.matmul %118, %99, %cst_51 {dimension_numbers = #tpu.dot_dimension_numbers<[1], [0], [0], [1], [0, 0, 1, 1], [], []>} : vector<128x128xf32>, vector<128x32xf32>, vector<128x32xf32> -> vector<128x32xf32>
    %120 = vector.extract_strided_slice %95 {offsets = [0, 32], sizes = [128, 32], strides = [1, 1]} : vector<128x256xf32> to vector<128x32xf32>
    %121 = vector.extract_strided_slice %95 {offsets = [0, 96], sizes = [128, 32], strides = [1, 1]} : vector<128x256xf32> to vector<128x32xf32>
    %122 = vector.extract_strided_slice %95 {offsets = [0, 160], sizes = [128, 32], strides = [1, 1]} : vector<128x256xf32> to vector<128x32xf32>
    "tpu.trace_start"() <{level = 10 : i32, message = "rc,sc->rs"}> : () -> ()
    %cst_52 = arith.constant dense<0.000000e+00> : vector<128x128xf32>
    %123 = tpu.matmul %120, %121, %cst_52 {dimension_numbers = #tpu.dot_dimension_numbers<[1], [1], [0], [0], [0, 0, 1, 0], [], []>} : vector<128x32xf32>, vector<128x32xf32>, vector<128x128xf32> -> vector<128x128xf32>
    "tpu.trace_stop"() : () -> ()
    %cst_53 = arith.constant 0.176776692 : f32
    %124 = vector.broadcast %cst_53 : f32 to vector<128x128xf32>
    %125 = arith.mulf %123, %124 : vector<128x128xf32>
    %126 = arith.addf %125, %10 : vector<128x128xf32>
    %cst_54 = arith.constant dense<0xFF800000> : vector<128xf32>
    %127 = vector.multi_reduction <maximumf>, %126, %cst_54 [1] : vector<128x128xf32> to vector<128xf32>
    %128 = vector.shape_cast %127 : vector<128xf32> to vector<128x1xf32>
    %129 = vector.broadcast %128 : vector<128x1xf32> to vector<128x128xf32>
    %130 = arith.subf %126, %129 : vector<128x128xf32>
    %131 = math.exp %130 : vector<128x128xf32>
    %132 = arith.mulf %5, %131 : vector<128x128xf32>
    %cst_55 = arith.constant dense<0.000000e+00> : vector<128xf32>
    %133 = vector.multi_reduction <add>, %132, %cst_55 [1] : vector<128x128xf32> to vector<128xf32>
    %134 = vector.shape_cast %133 : vector<128xf32> to vector<128x1xf32>
    %cst_56 = arith.constant 0.000000e+00 : f32
    %135 = vector.broadcast %cst_56 : f32 to vector<128x1xf32>
    %136 = arith.cmpf ogt, %134, %135 : vector<128x1xf32>
    %cst_57 = arith.constant 1.000000e+00 : f32
    %137 = vector.broadcast %cst_57 : f32 to vector<128x1xf32>
    %138 = arith.select %136, %134, %137 : vector<128x1xi1>, vector<128x1xf32>
    %139 = tpu.reciprocal %138 : vector<128x1xf32> -> vector<128x1xf32>
    %140 = vector.broadcast %139 : vector<128x1xf32> to vector<128x128xf32>
    %141 = arith.mulf %132, %140 : vector<128x128xf32>
    %cst_58 = arith.constant dense<0.000000e+00> : vector<128x32xf32>
    %142 = tpu.matmul %141, %122, %cst_58 {dimension_numbers = #tpu.dot_dimension_numbers<[1], [0], [0], [1], [0, 0, 1, 1], [], []>} : vector<128x128xf32>, vector<128x32xf32>, vector<128x32xf32> -> vector<128x32xf32>
    %143 = tpu.concatenate %119, %142 in 1 : vector<128x32xf32>, vector<128x32xf32> -> vector<128x64xf32>
    %144 = arith.addf %143, %96 : vector<128x64xf32>
    %cst_59 = arith.constant 0.000000e+00 : f32
    %145 = vector.broadcast %cst_59 : f32 to vector<128x64xf32>
    %146 = arith.maximumf %144, %145 : vector<128x64xf32>
    %cst_60 = arith.constant dense<0.000000e+00> : vector<128xf32>
    %147 = vector.multi_reduction <add>, %146, %cst_60 [1] : vector<128x64xf32> to vector<128xf32>
    %148 = vector.shape_cast %147 : vector<128xf32> to vector<128x1xf32>
    %cst_61 = arith.constant 6.400000e+01 : f32
    %149 = vector.broadcast %cst_61 : f32 to vector<128x1xf32>
    %150 = arith.divf %148, %149 : vector<128x1xf32>
    %151 = vector.broadcast %150 : vector<128x1xf32> to vector<128x64xf32>
    %152 = arith.subf %146, %151 : vector<128x64xf32>
    %153 = arith.mulf %152, %152 : vector<128x64xf32>
    %cst_62 = arith.constant dense<0.000000e+00> : vector<128xf32>
    %154 = vector.multi_reduction <add>, %153, %cst_62 [1] : vector<128x64xf32> to vector<128xf32>
    %155 = vector.shape_cast %154 : vector<128xf32> to vector<128x1xf32>
    %cst_63 = arith.constant 6.400000e+01 : f32
    %156 = vector.broadcast %cst_63 : f32 to vector<128x1xf32>
    %157 = arith.divf %155, %156 : vector<128x1xf32>
    %cst_64 = arith.constant 9.99999974E-6 : f32
    %158 = vector.broadcast %cst_64 : f32 to vector<128x1xf32>
    %159 = arith.addf %157, %158 : vector<128x1xf32>
    %160 = math.rsqrt %159 : vector<128x1xf32>
    %161 = vector.broadcast %160 : vector<128x1xf32> to vector<128x64xf32>
    %162 = arith.mulf %152, %161 : vector<128x64xf32>
    %163 = vector.broadcast %91 : vector<1x64xf32> to vector<128x64xf32>
    %164 = arith.mulf %162, %163 : vector<128x64xf32>
    %165 = vector.broadcast %92 : vector<1x64xf32> to vector<128x64xf32>
    %166 = arith.addf %164, %165 : vector<128x64xf32>
    %c0_65 = arith.constant 0 : index
    %c0_66 = arith.constant 0 : index
    %167 = vector.load %arg12[%c0_65, %c0_66] : memref<64x256xf32, #tpu.memory_space<vmem>>, vector<64x256xf32>
    %c0_67 = arith.constant 0 : index
    %c0_68 = arith.constant 0 : index
    %168 = vector.load %arg13[%c0_67, %c0_68] : memref<1x256xf32, #tpu.memory_space<vmem>>, vector<1x256xf32>
    %c0_69 = arith.constant 0 : index
    %c0_70 = arith.constant 0 : index
    %169 = vector.load %arg14[%c0_69, %c0_70] : memref<1x64xf32, #tpu.memory_space<vmem>>, vector<1x64xf32>
    %c0_71 = arith.constant 0 : index
    %c0_72 = arith.constant 0 : index
    %170 = vector.load %arg15[%c0_71, %c0_72] : memref<1x64xf32, #tpu.memory_space<vmem>>, vector<1x64xf32>
    %cst_73 = arith.constant dense<0.000000e+00> : vector<128x256xf32>
    %171 = tpu.matmul %166, %167, %cst_73 {dimension_numbers = #tpu.dot_dimension_numbers<[1], [0], [0], [1], [0, 0, 1, 1], [], []>} : vector<128x64xf32>, vector<64x256xf32>, vector<128x256xf32> -> vector<128x256xf32>
    %172 = vector.broadcast %168 : vector<1x256xf32> to vector<128x256xf32>
    %173 = arith.addf %171, %172 : vector<128x256xf32>
    %174 = vector.extract_strided_slice %173 {offsets = [0, 192], sizes = [128, 64], strides = [1, 1]} : vector<128x256xf32> to vector<128x64xf32>
    %175 = vector.extract_strided_slice %173 {offsets = [0, 0], sizes = [128, 32], strides = [1, 1]} : vector<128x256xf32> to vector<128x32xf32>
    %176 = vector.extract_strided_slice %173 {offsets = [0, 64], sizes = [128, 32], strides = [1, 1]} : vector<128x256xf32> to vector<128x32xf32>
    %177 = vector.extract_strided_slice %173 {offsets = [0, 128], sizes = [128, 32], strides = [1, 1]} : vector<128x256xf32> to vector<128x32xf32>
    "tpu.trace_start"() <{level = 10 : i32, message = "rc,sc->rs"}> : () -> ()
    %cst_74 = arith.constant dense<0.000000e+00> : vector<128x128xf32>
    %178 = tpu.matmul %175, %176, %cst_74 {dimension_numbers = #tpu.dot_dimension_numbers<[1], [1], [0], [0], [0, 0, 1, 0], [], []>} : vector<128x32xf32>, vector<128x32xf32>, vector<128x128xf32> -> vector<128x128xf32>
    "tpu.trace_stop"() : () -> ()
    %cst_75 = arith.constant 0.176776692 : f32
    %179 = vector.broadcast %cst_75 : f32 to vector<128x128xf32>
    %180 = arith.mulf %178, %179 : vector<128x128xf32>
    %181 = arith.addf %180, %10 : vector<128x128xf32>
    %cst_76 = arith.constant dense<0xFF800000> : vector<128xf32>
    %182 = vector.multi_reduction <maximumf>, %181, %cst_76 [1] : vector<128x128xf32> to vector<128xf32>
    %183 = vector.shape_cast %182 : vector<128xf32> to vector<128x1xf32>
    %184 = vector.broadcast %183 : vector<128x1xf32> to vector<128x128xf32>
    %185 = arith.subf %181, %184 : vector<128x128xf32>
    %186 = math.exp %185 : vector<128x128xf32>
    %187 = arith.mulf %5, %186 : vector<128x128xf32>
    %cst_77 = arith.constant dense<0.000000e+00> : vector<128xf32>
    %188 = vector.multi_reduction <add>, %187, %cst_77 [1] : vector<128x128xf32> to vector<128xf32>
    %189 = vector.shape_cast %188 : vector<128xf32> to vector<128x1xf32>
    %cst_78 = arith.constant 0.000000e+00 : f32
    %190 = vector.broadcast %cst_78 : f32 to vector<128x1xf32>
    %191 = arith.cmpf ogt, %189, %190 : vector<128x1xf32>
    %cst_79 = arith.constant 1.000000e+00 : f32
    %192 = vector.broadcast %cst_79 : f32 to vector<128x1xf32>
    %193 = arith.select %191, %189, %192 : vector<128x1xi1>, vector<128x1xf32>
    %194 = tpu.reciprocal %193 : vector<128x1xf32> -> vector<128x1xf32>
    %195 = vector.broadcast %194 : vector<128x1xf32> to vector<128x128xf32>
    %196 = arith.mulf %187, %195 : vector<128x128xf32>
    %cst_80 = arith.constant dense<0.000000e+00> : vector<128x32xf32>
    %197 = tpu.matmul %196, %177, %cst_80 {dimension_numbers = #tpu.dot_dimension_numbers<[1], [0], [0], [1], [0, 0, 1, 1], [], []>} : vector<128x128xf32>, vector<128x32xf32>, vector<128x32xf32> -> vector<128x32xf32>
    %198 = vector.extract_strided_slice %173 {offsets = [0, 32], sizes = [128, 32], strides = [1, 1]} : vector<128x256xf32> to vector<128x32xf32>
    %199 = vector.extract_strided_slice %173 {offsets = [0, 96], sizes = [128, 32], strides = [1, 1]} : vector<128x256xf32> to vector<128x32xf32>
    %200 = vector.extract_strided_slice %173 {offsets = [0, 160], sizes = [128, 32], strides = [1, 1]} : vector<128x256xf32> to vector<128x32xf32>
    "tpu.trace_start"() <{level = 10 : i32, message = "rc,sc->rs"}> : () -> ()
    %cst_81 = arith.constant dense<0.000000e+00> : vector<128x128xf32>
    %201 = tpu.matmul %198, %199, %cst_81 {dimension_numbers = #tpu.dot_dimension_numbers<[1], [1], [0], [0], [0, 0, 1, 0], [], []>} : vector<128x32xf32>, vector<128x32xf32>, vector<128x128xf32> -> vector<128x128xf32>
    "tpu.trace_stop"() : () -> ()
    %cst_82 = arith.constant 0.176776692 : f32
    %202 = vector.broadcast %cst_82 : f32 to vector<128x128xf32>
    %203 = arith.mulf %201, %202 : vector<128x128xf32>
    %204 = arith.addf %203, %10 : vector<128x128xf32>
    %cst_83 = arith.constant dense<0xFF800000> : vector<128xf32>
    %205 = vector.multi_reduction <maximumf>, %204, %cst_83 [1] : vector<128x128xf32> to vector<128xf32>
    %206 = vector.shape_cast %205 : vector<128xf32> to vector<128x1xf32>
    %207 = vector.broadcast %206 : vector<128x1xf32> to vector<128x128xf32>
    %208 = arith.subf %204, %207 : vector<128x128xf32>
    %209 = math.exp %208 : vector<128x128xf32>
    %210 = arith.mulf %5, %209 : vector<128x128xf32>
    %cst_84 = arith.constant dense<0.000000e+00> : vector<128xf32>
    %211 = vector.multi_reduction <add>, %210, %cst_84 [1] : vector<128x128xf32> to vector<128xf32>
    %212 = vector.shape_cast %211 : vector<128xf32> to vector<128x1xf32>
    %cst_85 = arith.constant 0.000000e+00 : f32
    %213 = vector.broadcast %cst_85 : f32 to vector<128x1xf32>
    %214 = arith.cmpf ogt, %212, %213 : vector<128x1xf32>
    %cst_86 = arith.constant 1.000000e+00 : f32
    %215 = vector.broadcast %cst_86 : f32 to vector<128x1xf32>
    %216 = arith.select %214, %212, %215 : vector<128x1xi1>, vector<128x1xf32>
    %217 = tpu.reciprocal %216 : vector<128x1xf32> -> vector<128x1xf32>
    %218 = vector.broadcast %217 : vector<128x1xf32> to vector<128x128xf32>
    %219 = arith.mulf %210, %218 : vector<128x128xf32>
    %cst_87 = arith.constant dense<0.000000e+00> : vector<128x32xf32>
    %220 = tpu.matmul %219, %200, %cst_87 {dimension_numbers = #tpu.dot_dimension_numbers<[1], [0], [0], [1], [0, 0, 1, 1], [], []>} : vector<128x128xf32>, vector<128x32xf32>, vector<128x32xf32> -> vector<128x32xf32>
    %221 = tpu.concatenate %197, %220 in 1 : vector<128x32xf32>, vector<128x32xf32> -> vector<128x64xf32>
    %222 = arith.addf %221, %174 : vector<128x64xf32>
    %cst_88 = arith.constant 0.000000e+00 : f32
    %223 = vector.broadcast %cst_88 : f32 to vector<128x64xf32>
    %224 = arith.maximumf %222, %223 : vector<128x64xf32>
    %cst_89 = arith.constant dense<0.000000e+00> : vector<128xf32>
    %225 = vector.multi_reduction <add>, %224, %cst_89 [1] : vector<128x64xf32> to vector<128xf32>
    %226 = vector.shape_cast %225 : vector<128xf32> to vector<128x1xf32>
    %cst_90 = arith.constant 6.400000e+01 : f32
    %227 = vector.broadcast %cst_90 : f32 to vector<128x1xf32>
    %228 = arith.divf %226, %227 : vector<128x1xf32>
    %229 = vector.broadcast %228 : vector<128x1xf32> to vector<128x64xf32>
    %230 = arith.subf %224, %229 : vector<128x64xf32>
    %231 = arith.mulf %230, %230 : vector<128x64xf32>
    %cst_91 = arith.constant dense<0.000000e+00> : vector<128xf32>
    %232 = vector.multi_reduction <add>, %231, %cst_91 [1] : vector<128x64xf32> to vector<128xf32>
    %233 = vector.shape_cast %232 : vector<128xf32> to vector<128x1xf32>
    %cst_92 = arith.constant 6.400000e+01 : f32
    %234 = vector.broadcast %cst_92 : f32 to vector<128x1xf32>
    %235 = arith.divf %233, %234 : vector<128x1xf32>
    %cst_93 = arith.constant 9.99999974E-6 : f32
    %236 = vector.broadcast %cst_93 : f32 to vector<128x1xf32>
    %237 = arith.addf %235, %236 : vector<128x1xf32>
    %238 = math.rsqrt %237 : vector<128x1xf32>
    %239 = vector.broadcast %238 : vector<128x1xf32> to vector<128x64xf32>
    %240 = arith.mulf %230, %239 : vector<128x64xf32>
    %241 = vector.broadcast %169 : vector<1x64xf32> to vector<128x64xf32>
    %242 = arith.mulf %240, %241 : vector<128x64xf32>
    %243 = vector.broadcast %170 : vector<1x64xf32> to vector<128x64xf32>
    %244 = arith.addf %242, %243 : vector<128x64xf32>
    %245 = vector.shape_cast %244 : vector<128x64xf32> to vector<16x8x64xf32>
    %cst_94 = arith.constant dense<0.000000e+00> : vector<16x64xf32>
    %246 = vector.multi_reduction <add>, %245, %cst_94 [1] : vector<16x8x64xf32> to vector<16x64xf32>
    %cst_95 = arith.constant 1.250000e-01 : f32
    %247 = vector.broadcast %cst_95 : f32 to vector<16x64xf32>
    %248 = arith.mulf %246, %247 : vector<16x64xf32>
    %c0_96 = arith.constant 0 : index
    %c0_97 = arith.constant 0 : index
    %249 = vector.load %arg16[%c0_96, %c0_97] : memref<64x32xf32, #tpu.memory_space<vmem>>, vector<64x32xf32>
    %cst_98 = arith.constant dense<0.000000e+00> : vector<16x32xf32>
    %250 = tpu.matmul %248, %249, %cst_98 {dimension_numbers = #tpu.dot_dimension_numbers<[1], [0], [0], [1], [0, 0, 1, 1], [], []>} : vector<16x64xf32>, vector<64x32xf32>, vector<16x32xf32> -> vector<16x32xf32>
    %c0_99 = arith.constant 0 : index
    %c0_100 = arith.constant 0 : index
    %251 = vector.load %arg17[%c0_99, %c0_100] : memref<1x32xf32, #tpu.memory_space<vmem>>, vector<1x32xf32>
    %252 = vector.broadcast %251 : vector<1x32xf32> to vector<16x32xf32>
    %253 = arith.addf %250, %252 : vector<16x32xf32>
    %cst_101 = arith.constant 0.000000e+00 : f32
    %254 = vector.broadcast %cst_101 : f32 to vector<16x32xf32>
    %255 = arith.maximumf %253, %254 : vector<16x32xf32>
    %c0_102 = arith.constant 0 : index
    %c0_103 = arith.constant 0 : index
    %256 = vector.load %arg18[%c0_102, %c0_103] : memref<1x32xf32, #tpu.memory_space<vmem>>, vector<1x32xf32>
    %257 = vector.broadcast %256 : vector<1x32xf32> to vector<16x32xf32>
    %258 = arith.mulf %255, %257 : vector<16x32xf32>
    %cst_104 = arith.constant dense<0.000000e+00> : vector<16xf32>
    %259 = vector.multi_reduction <add>, %258, %cst_104 [1] : vector<16x32xf32> to vector<16xf32>
    %260 = vector.shape_cast %259 : vector<16xf32> to vector<16x1xf32>
    %c0_105 = arith.constant 0 : index
    %c0_106 = arith.constant 0 : index
    %261 = vector.load %arg19[%c0_105, %c0_106] : memref<1x1xf32, #tpu.memory_space<vmem>>, vector<1x1xf32>
    %262 = vector.broadcast %261 : vector<1x1xf32> to vector<16x1xf32>
    %263 = arith.addf %260, %262 : vector<16x1xf32>
    %264 = arith.negf %263 : vector<16x1xf32>
    %265 = math.exp %264 : vector<16x1xf32>
    %cst_107 = arith.constant 1.000000e+00 : f32
    %266 = vector.broadcast %cst_107 : f32 to vector<16x1xf32>
    %267 = arith.addf %266, %265 : vector<16x1xf32>
    %268 = arith.divf %266, %267 : vector<16x1xf32>
    %269 = vector.shape_cast %268 : vector<16x1xf32> to vector<16x1xf32>
    %270 = vector.broadcast %269 : vector<16x1xf32> to vector<16x128xf32>
    %c0_108 = arith.constant 0 : index
    %c0_109 = arith.constant 0 : index
    %271 = vector.load %arg20[%c0_108, %c0_109] : memref<16x128xf32, #tpu.memory_space<vmem>>, vector<16x128xf32>
    tpu.vector_store %arg20[%c0_108, %c0_109], %270 {strides = array<i32>} : memref<16x128xf32, #tpu.memory_space<vmem>>, vector<16x128xf32>,
    return
  }
  func.func @transform_0(%arg0: i32) -> (i32, i32) {
    %c0_i32 = arith.constant 0 : i32
    %c0_i32_0 = arith.constant 0 : i32
    return %arg0, %c0_i32 : i32, i32
  }
  func.func @transform_1(%arg0: i32) -> (i32, i32) {
    %c0_i32 = arith.constant 0 : i32
    %c0_i32_0 = arith.constant 0 : i32
    return %arg0, %c0_i32 : i32, i32
  }
  func.func @transform_2(%arg0: i32) -> (i32, i32) {
    %c0_i32 = arith.constant 0 : i32
    %c0_i32_0 = arith.constant 0 : i32
    %c0_i32_1 = arith.constant 0 : i32
    return %c0_i32, %c0_i32_0 : i32, i32
  }
  func.func @transform_3(%arg0: i32) -> (i32, i32) {
    %c0_i32 = arith.constant 0 : i32
    %c0_i32_0 = arith.constant 0 : i32
    %c0_i32_1 = arith.constant 0 : i32
    return %c0_i32, %c0_i32_0 : i32, i32
  }
  func.func @transform_4(%arg0: i32) -> (i32, i32) {
    %c0_i32 = arith.constant 0 : i32
    %c0_i32_0 = arith.constant 0 : i32
    %c0_i32_1 = arith.constant 0 : i32
    return %c0_i32, %c0_i32_0 : i32, i32
  }
  func.func @transform_5(%arg0: i32) -> (i32, i32) {
    %c0_i32 = arith.constant 0 : i32
    %c0_i32_0 = arith.constant 0 : i32
    %c0_i32_1 = arith.constant 0 : i32
    return %c0_i32, %c0_i32_0 : i32, i32
  }
  func.func @transform_6(%arg0: i32) -> (i32, i32) {
    %c0_i32 = arith.constant 0 : i32
    %c0_i32_0 = arith.constant 0 : i32
    %c0_i32_1 = arith.constant 0 : i32
    return %c0_i32, %c0_i32_0 : i32, i32
  }
  func.func @transform_7(%arg0: i32) -> (i32, i32) {
    %c0_i32 = arith.constant 0 : i32
    %c0_i32_0 = arith.constant 0 : i32
    %c0_i32_1 = arith.constant 0 : i32
    return %c0_i32, %c0_i32_0 : i32, i32
  }
  func.func @transform_8(%arg0: i32) -> (i32, i32) {
    %c0_i32 = arith.constant 0 : i32
    %c0_i32_0 = arith.constant 0 : i32
    %c0_i32_1 = arith.constant 0 : i32
    return %c0_i32, %c0_i32_0 : i32, i32
  }
  func.func @transform_9(%arg0: i32) -> (i32, i32) {
    %c0_i32 = arith.constant 0 : i32
    %c0_i32_0 = arith.constant 0 : i32
    %c0_i32_1 = arith.constant 0 : i32
    return %c0_i32, %c0_i32_0 : i32, i32
  }
  func.func @transform_10(%arg0: i32) -> (i32, i32) {
    %c0_i32 = arith.constant 0 : i32
    %c0_i32_0 = arith.constant 0 : i32
    %c0_i32_1 = arith.constant 0 : i32
    return %c0_i32, %c0_i32_0 : i32, i32
  }
  func.func @transform_11(%arg0: i32) -> (i32, i32) {
    %c0_i32 = arith.constant 0 : i32
    %c0_i32_0 = arith.constant 0 : i32
    %c0_i32_1 = arith.constant 0 : i32
    return %c0_i32, %c0_i32_0 : i32, i32
  }
  func.func @transform_12(%arg0: i32) -> (i32, i32) {
    %c0_i32 = arith.constant 0 : i32
    %c0_i32_0 = arith.constant 0 : i32
    %c0_i32_1 = arith.constant 0 : i32
    return %c0_i32, %c0_i32_0 : i32, i32
  }
  func.func @transform_13(%arg0: i32) -> (i32, i32) {
    %c0_i32 = arith.constant 0 : i32
    %c0_i32_0 = arith.constant 0 : i32
    %c0_i32_1 = arith.constant 0 : i32
    return %c0_i32, %c0_i32_0 : i32, i32
  }
  func.func @transform_14(%arg0: i32) -> (i32, i32) {
    %c0_i32 = arith.constant 0 : i32
    %c0_i32_0 = arith.constant 0 : i32
    %c0_i32_1 = arith.constant 0 : i32
    return %c0_i32, %c0_i32_0 : i32, i32
  }
  func.func @transform_15(%arg0: i32) -> (i32, i32) {
    %c0_i32 = arith.constant 0 : i32
    %c0_i32_0 = arith.constant 0 : i32
    %c0_i32_1 = arith.constant 0 : i32
    return %c0_i32, %c0_i32_0 : i32, i32
  }
  func.func @transform_16(%arg0: i32) -> (i32, i32) {
    %c0_i32 = arith.constant 0 : i32
    %c0_i32_0 = arith.constant 0 : i32
    %c0_i32_1 = arith.constant 0 : i32
    return %c0_i32, %c0_i32_0 : i32, i32
  }
  func.func @transform_17(%arg0: i32) -> (i32, i32) {
    %c0_i32 = arith.constant 0 : i32
    %c0_i32_0 = arith.constant 0 : i32
    %c0_i32_1 = arith.constant 0 : i32
    return %c0_i32, %c0_i32_0 : i32, i32
  }
  func.func @transform_18(%arg0: i32) -> (i32, i32) {
    %c0_i32 = arith.constant 0 : i32
    %c0_i32_0 = arith.constant 0 : i32
    %c0_i32_1 = arith.constant 0 : i32
    return %c0_i32, %c0_i32_0 : i32, i32
  }
  func.func @transform_19(%arg0: i32) -> (i32, i32) {
    %c0_i32 = arith.constant 0 : i32
    %c0_i32_0 = arith.constant 0 : i32
    return %arg0, %c0_i32 : i32, i32
  }
}

</mosaic_0001>

<bundles_post_ra>
// kernel: tpu_custom_call.1
= control target key start
LH: loop header
LB: loop body
LE: loop exit
PB: predicated region body
PF: predicated region fallthrough
CT: control target
= control target key end

     0   :  { %s16075_s0 = inlined_call_operand.vmem [shape: f32[256,4], index: 0, kind: input, shape index: {}]   ;;  %s16076_s1 = inlined_call_operand.vmem [shape: bf16[256,8], index: 1, kind: input, shape index: {}]   ;;  %s16077_s2 = inlined_call_operand.vmem [shape: f32[128,128], index: 2, kind: input, shape index: {}]   ;;  %s16078_s3 = inlined_call_operand.vmem [shape: f32[4,256], index: 3, kind: input, shape index: {}]   ;;  %s16079_s4 = inlined_call_operand.vmem [shape: f32[1,256], index: 4, kind: input, shape index: {}]   ;;  %s16080_s5 = inlined_call_operand.vmem [shape: f32[1,64], index: 5, kind: input, shape index: {}]   ;;  %s16081_s6 = inlined_call_operand.vmem [shape: f32[1,64], index: 6, kind: input, shape index: {}]   ;;  %s16082_s7 = inlined_call_operand.vmem [shape: f32[64,256], index: 7, kind: input, shape index: {}]   ;;  %s16083_s8 = inlined_call_operand.vmem [shape: f32[1,256], index: 8, kind: input, shape index: {}]   ;;  %s16084_s9 = inlined_call_operand.vmem [shape: f32[1,64], index: 9, kind: input, shape index: {}]   ;;  %s16085_s10 = inlined_call_operand.vmem [shape: f32[1,64], index: 10, kind: input, shape index: {}]   ;;  %s16086_s11 = inlined_call_operand.vmem [shape: f32[64,256], index: 11, kind: input, shape index: {}]   ;;  %s16087_s12 = inlined_call_operand.vmem [shape: f32[1,256], index: 12, kind: input, shape index: {}]   ;;  %s16088_s13 = inlined_call_operand.vmem [shape: f32[1,64], index: 13, kind: input, shape index: {}]   ;;  %s16089_s14 = inlined_call_operand.vmem [shape: f32[1,64], index: 14, kind: input, shape index: {}]   ;;  %s16090_s15 = inlined_call_operand.vmem [shape: f32[64,32], index: 15, kind: input, shape index: {}]   ;;  %s16091_s16 = inlined_call_operand.vmem [shape: f32[1,32], index: 16, kind: input, shape index: {}]   ;;  %s16092_s17 = inlined_call_operand.vmem [shape: f32[1,32], index: 17, kind: input, shape index: {}]   ;;  %s16093_s18 = inlined_call_operand.<no memory space> [shape: f32[1,1], index: 18, kind: input, shape index: {}]   ;;  %s16094_s19 = inlined_call_operand.hbm [shape: f32[32,128], index: 19, kind: output, shape index: {}]  }
   0x1   :  { %16347 = sst [smem:[#allocation66_spill]] %s16075_s0  ;;  %v24_v0 = vstv %s16093_s18 }
   0x2   :  { %16348 = sst [smem:[#allocation67_spill]] %s16076_s1  ;;  %25 = vst [vmem:[#allocation2] sm:$0x1] %v24_v0 }
   0x3   :  { %16349 = sst [smem:[#allocation68_spill]] %s16077_s2 }
   0x4   :  { %16350 = sst [smem:[#allocation69_spill]] %s16078_s3 }
   0x5   :  { %16351 = sst [smem:[#allocation70_spill]] %s16079_s4 }
   0x6   :  { %16352 = sst [smem:[#allocation71_spill]] %s16094_s19 }
   0x7   :  { %26 = vsyncpa [#allocation4], 0 }
   0x8   :  { %28 = vsyncpa [#allocation4 + $0x1], 0  ;;  %s10799_s20 = smov 0   ;;  %s10801_s21 = smov 0  }
   0x9   :  { %s10803_s1 = smov 0   ;;  %s10805_s22 = smov 0  }
   0xa LB: > { %16353 = sst [smem:[#allocation6_spill]] %s10662_s20  ;;  %s10820_s18 = sadd.s32 4294967295, %s10674_s22   ;;  %s10674_s22 = sphi %s10805_s22, %s16698_s22   ;;  %s10670_s1 = sphi %s10803_s1, %s16700_s1   ;;  %s10666_s21 = sphi %s10801_s21, %s16702_s21   ;;  %s10662_s20 = sphi %s10799_s20, %s16701_s20  }
   0xb   : > { %16354 = sst [smem:[#allocation7_spill]] %s10670_s1  ;;  %s8071_s2 = sadd.s32 4294967294, %s10674_s22  }
   0xc   : > { %16355 = sst [smem:[#allocation8_spill]] %s10674_s22  ;;  %s10824_s23 = sadd.s32 1, %s10674_s22  }
   0xd   : > { %16356 = sst [smem:[#allocation9_spill]] %s10824_s23  ;;  %s450_s24 = sadd.s32 1, %s10670_s1 }
   0xe   : > { %s447_s25 = ssub.s32 %s10674_s22, %s10824_s23  ;;  %p460_p0 = scmp.ne.s32.totalorder %s10670_s1, %s10666_s21 }
   0xf   : > { %p448_p1 = scmp.eq.s32.totalorder %s447_s25, 0  ;;  %p461_p2 = scmp.eq.s32.totalorder %s10820_s18, 1 }
  0x10   : > { %p466_p3 = scmp.ne.s32.totalorder %s10666_s21, %s10662_s20  ;;  %p467_p4 = scmp.eq.s32.totalorder %s8071_s2, 1 }
  0x11   : > { %s10835_s3 = scalar_select %p448_p1, %s10670_s1, %s450_s24  }
  0x12   : > { %p10837_p5 = por %p461_p2, %p460_p0  ;;  %p10841_p6 = por %p467_p4, %p466_p3 }
  0x13   : > { %16357 = sst [smem:[#allocation10_spill]] %s10835_s3  ;;  %p8074_p7 = scmp.ge.s32.totalorder %s10674_s22, 1 }
  0x14   : > { %s16358_s26 = scalar_select %p10837_p5, 1, 0 }
  0x15   : > { %s16360_s27 = scalar_select %p10841_p6, 1, 0 }
  0x16   : > { %16359 = sst [smem:[#allocation11_spill]] %s16358_s26  ;;  %p554_p8 = scmp.lt.s32.totalorder %s10674_s22, 3 }
  0x17   : > { %16361 = sst [smem:[#allocation12_spill]] %s16360_s27 }
  0x18   : > { %p555_p9 = pnand %p8074_p7, %p554_p8 }
  0x1a   : > { %558 = sbr.rel (%p555_p9) target bundleno = 5736 (0x1668), region = 96 }
  0x1f   : > { %s16362_s0 = sld [smem:[#allocation69_spill]]  ;;  %vm1797_vm0 = vcmask 1043456   ;;  %s8076_s30 = sshll.u32 %s10820_s18, 4  ;;  %v16118_v3 = vmov 0.0   ;;  %vm1748_vm1 = vcmask 31744   ;;  %v1736_v20 = vlaneseq }
  0x20   : > { %1866 = vmatprep.mubr.f32.mxu0 %v16118_v3  ;;  %p616_p10 = scmp.lt.s32.totalorder %s8076_s30, 31  ;;  %s16363_s3 = sld [smem:[#allocation66_spill]]  ;;  %vm1463_vm2 = vcmask 261120   ;;  %vm1412_vm3 = vcmask 64512   ;;  %vm1429_vm4 = vcmask 130048   ;;  %vm16210_vm5 = vcmask 195584  }
  0x21   : > { %v10907_v21 = vshrl.u32 %v1736_v20, 7  ;;  %s16365_s4 = sld [smem:[#allocation70_spill]]  ;;  %s16098_s24 = smov 96   ;;  %vm16209_vm6 = vcmask 326656   ;;  %vm16205_vm7 = vcmask 392192   ;;  %vm1514_vm8 = vcmask 457728  }
  0x22   : > { %s16704_s30 = smov (!%p616_p10, %s8076_s30), 31  ;;  %s16383_s29 = sld [smem:[#allocation67_spill]]  ;;  %vm1531_vm9 = vcmask 523264   ;;  %vm1548_vm10 = vcmask 588800   ;;  %vm1565_vm11 = vcmask 654336   ;;  %vm1582_vm12 = vcmask 719872  }
  0x23   : > { %s8077_s2 = sshll.u32 %s16704_s30, 3  ;;  %v10910_v22 = vsub.s32 0, %v10907_v21  ;;  %s8079_s25 = sshll.u32 %s16704_s30, 2  ;;  %vm1599_vm13 = vcmask 785408   ;;  %vm1616_vm14 = vcmask 850944   ;;  %vm1633_vm15 = vcmask 916480  }
  0x24   : > { %s16108_s30 = smov 16   ;;  %s16392_s1 = smov 72  }
  0x25   : > { %v1731_v1 = vld [vmem:[%s16362_s0] sm:$0xff]  ;;  %16364 = vst [vmem:[#allocation13_spill] sm:$0xff] %v10910_v22  ;;  %s16096_s0 = smov 64   ;;  %s16138_s23 = smov 112  }
  0x26   : > { %v1747_v2 = vcombine.high %v1731_v1, %v1731_v1  ;;  %s10858_s28 = scalar_lea.vmem %s16363_s3, %s8077_s2  ;;  %s16100_s2 = smov 32  }
  0x27   : > { %v628_v4 = vld [vmem:[%s10858_s28] sm:$0xff]  ;;  %v629_v5 = vld [vmem:[%s10858_s28 + $0x8] sm:$0xff]  ;;  %v630_v6 = vld [vmem:[%s10858_s28 + $0x10] sm:$0xff]  ;;  %s16104_s3 = smov 40   ;;  %s16394_s27 = smov 56  }
  0x28   : > { %8080 = vmatprep.subr.msk.mxu0 %vm1797_vm0, %v1747_v2  ;;  %v631_v7 = vld [vmem:[%s10858_s28 + $0x18] sm:$0xff]  ;;  %v632_v8 = vld [vmem:[%s10858_s28 + $0x20] sm:$0xff]  ;;  %v633_v9 = vld [vmem:[%s10858_s28 + $0x28] sm:$0xff]  ;;  %s16149_s20 = smov 120   ;;  %s16398_s22 = smov 104  }
  0x29   : > { %8081 = vmatpush1.msk.msra.mxu0 %vm1797_vm0, %v1731_v1  ;;  %v634_v10 = vld [vmem:[%s10858_s28 + $0x30] sm:$0xff]  ;;  %v635_v11 = vld [vmem:[%s10858_s28 + $0x38] sm:$0xff]  ;;  %v636_v12 = vld [vmem:[%s10858_s28 + $0x40] sm:$0xff]  ;;  %s16399_s19 = smov 112   ;;  %s16401_s26 = smov 120   ;;  %vm1650_vm0 = vcmask 982016  }
  0x2a   : > { %8082 = vmatmul.mubr.msk.f32.vlgmr.msra.gmra.mxu0 %vm1748_vm1, %v628_v4  ;;  %v637_v13 = vld [vmem:[%s10858_s28 + $0x48] sm:$0xff]  ;;  %v638_v14 = vld [vmem:[%s10858_s28 + $0x50] sm:$0xff]  ;;  %v639_v15 = vld [vmem:[%s10858_s28 + $0x58] sm:$0xff] }
  0x2b   : > { %1872 = vmatprep.mubr.f32.mxu0 %v16118_v3  ;;  %v640_v16 = vld [vmem:[%s10858_s28 + $0x60] sm:$0xff]  ;;  %v641_v17 = vld [vmem:[%s10858_s28 + $0x68] sm:$0xff]  ;;  %v642_v18 = vld [vmem:[%s10858_s28 + $0x70] sm:$0xff] }
  0x2c   : > { %v643_v19 = vld [vmem:[%s10858_s28 + $0x78] sm:$0xff]  ;;  %v10915_v23 = vld [vmem:[%s16365_s4] sm:$0x3]  ;;  %s16106_s28 = smov 24   ;;  %s16131_s4 = smov 104  }
  0x2d   : > { %v10919_v24 = vrot.slane %v10915_v23, %v10910_v22 }
  0x2e   : > { %8083 = vmatmul.mubr.msk.f32.gmra.mxu0 %vm1748_vm1, %v629_v5  ;;  %v11018_v5 = vsub.s32 1, %v10907_v21 }
  0x2f   : > { %1878 = vmatprep.mubr.f32.mxu0 %v16118_v3 }
  0x30   : > { %16366 = vst [vmem:[#allocation14_spill] sm:$0xff] %v11018_v5 }
  0x32   : > { %8084 = vmatmul.mubr.msk.f32.gmra.mxu0 %vm1748_vm1, %v630_v6 }
  0x33   : > { %1884 = vmatprep.mubr.f32.mxu0 %v16118_v3 }
  0x36   : > { %8085 = vmatmul.mubr.msk.f32.gmra.mxu0 %vm1748_vm1, %v631_v7 }
  0x37   : > { %1890 = vmatprep.mubr.f32.mxu0 %v16118_v3 }
  0x3a   : > { %8086 = vmatmul.mubr.msk.f32.gmra.mxu0 %vm1748_vm1, %v632_v8 }
  0x3b   : > { %1896 = vmatprep.mubr.f32.mxu0 %v16118_v3 }
  0x3e   : > { %8087 = vmatmul.mubr.msk.f32.gmra.mxu0 %vm1748_vm1, %v633_v9  ;;  %v11029_v9 = vrot.slane %v10915_v23, %v11018_v5 }
  0x3f   : > { %1902 = vmatprep.mubr.f32.mxu0 %v16118_v3 }
  0x42   : > { %8088 = vmatmul.mubr.msk.f32.gmra.mxu0 %vm1748_vm1, %v634_v10 }
  0x43   : > { %1908 = vmatprep.mubr.f32.mxu0 %v16118_v3 }
  0x46   : > { %8089 = vmatmul.mubr.msk.f32.gmra.mxu0 %vm1748_vm1, %v635_v11 }
  0x47   : > { %1914 = vmatprep.mubr.f32.mxu0 %v16118_v3 }
  0x4a   : > { %8090 = vmatmul.mubr.msk.f32.gmra.mxu0 %vm1748_vm1, %v636_v12 }
  0x4b   : > { %1920 = vmatprep.mubr.f32.mxu0 %v16118_v3 }
  0x4e   : > { %8091 = vmatmul.mubr.msk.f32.gmra.mxu0 %vm1748_vm1, %v637_v13 }
  0x4f   : > { %1926 = vmatprep.mubr.f32.mxu0 %v16118_v3 }
  0x52   : > { %8092 = vmatmul.mubr.msk.f32.gmra.mxu0 %vm1748_vm1, %v638_v14 }
  0x53   : > { %1932 = vmatprep.mubr.f32.mxu0 %v16118_v3 }
  0x56   : > { %8093 = vmatmul.mubr.msk.f32.gmra.mxu0 %vm1748_vm1, %v639_v15 }
  0x57   : > { %1938 = vmatprep.mubr.f32.mxu0 %v16118_v3 }
  0x5a   : > { %8094 = vmatmul.mubr.msk.f32.gmra.mxu0 %vm1748_vm1, %v640_v16 }
  0x5b   : > { %1944 = vmatprep.mubr.f32.mxu0 %v16118_v3 }
  0x5e   : > { %8095 = vmatmul.mubr.msk.f32.gmra.mxu0 %vm1748_vm1, %v641_v17 }
  0x5f   : > { %1950 = vmatprep.mubr.f32.mxu0 %v16118_v3 }
  0x62   : > { %8096 = vmatmul.mubr.msk.f32.gmra.mxu0 %vm1748_vm1, %v642_v18 }
  0x63   : > { %1956 = vmatprep.mubr.f32.mxu0 %v16118_v3 }
  0x66   : > { %8097 = vmatmul.mubr.msk.f32.gmra.mxu0 %vm1748_vm1, %v643_v19 }
  0xea   : > { %v1868_v25 = vpop.f32.mrf.mxu0 }
  0xeb   : > { %v10922_v26 = vadd.f32 %v1868_v25, %v10919_v24 }
  0xec   : > { %v10924_v27 = vpop.f32.mrf.mxu0 }
  0xed   : > { %1979 = vrot.lane.b32.xlu1 %v10922_v26, %s16096_s0  ;;  %8806 = vmatprep.mubr.msk.f32.mxu1 %vm1463_vm2, %v10922_v26 }
  0xee   : > { %v1874_v28 = vpop.f32.mrf.mxu0 }
  0xef   : > { %v10931_v29 = vadd.f32 %v1874_v28, %v10919_v24 }
  0xf0   : > { %v10933_v30 = vpop.f32.mrf.mxu0 }
  0xf1   : > { %1981 = vrot.lane.b32.xlu0 %v10931_v29, %s16096_s0 }
  0xf2   : > { %v1880_v31 = vpop.f32.mrf.mxu0 }
  0xf3   : > { %v10938_v32 = vadd.f32 %v1880_v31, %v10919_v24  ;;  %v11139_v31 = vadd.f32 %v10933_v30, %v11029_v9 }
  0xf4   : > { %v10940_v33 = vpop.f32.mrf.mxu0 }
  0xf5   : > { %1983 = vrot.lane.b32.xlu1 %v10938_v32, %s16096_s0  ;;  %v11133_v28 = vadd.f32 %v10940_v33, %v11029_v9  ;;  %16381 = vst [vmem:[#allocation29_spill] sm:$0xff] %v11139_v31 }
  0xf6   : > { %v1886_v34 = vpop.f32.mrf.mxu0 }
  0xf7   : > { %v10945_v35 = vadd.f32 %v1886_v34, %v10919_v24  ;;  %16380 = vst [vmem:[#allocation28_spill] sm:$0xff] %v11133_v28 }
  0xf8   : > { %v10947_v36 = vpop.f32.mrf.mxu0 }
  0xf9   : > { %1985 = vrot.lane.b32.xlu0 %v10945_v35, %s16096_s0  ;;  %v11123_v25 = vadd.f32 %v10947_v36, %v11029_v9 }
  0xfa   : > { %v1892_v37 = vpop.f32.mrf.mxu0 }
  0xfb   : > { %v10952_v38 = vadd.f32 %v1892_v37, %v10919_v24  ;;  %16379 = vst [vmem:[#allocation27_spill] sm:$0xff] %v11123_v25 }
  0xfc   : > { %v10954_v39 = vpop.f32.mrf.mxu0 }
  0xfd   : > { %1987 = vrot.lane.b32.xlu1 %v10952_v38, %s16096_s0 }
  0xfe   : > { %v1898_v40 = vpop.f32.mrf.mxu0 }
  0xff   : > { %v10959_v41 = vadd.f32 %v1898_v40, %v10919_v24 }
 0x100   : > { %v10961_v42 = vpop.f32.mrf.mxu0 }
 0x101   : > { %1989 = vrot.lane.b32.xlu0 %v10959_v41, %s16096_s0  ;;  %v11107_v23 = vadd.f32 %v10961_v42, %v11029_v9 }
 0x102   : > { %v1904_v43 = vpop.f32.mrf.mxu0 }
 0x103   : > { %v10966_v44 = vadd.f32 %v1904_v43, %v10919_v24  ;;  %16377 = vst [vmem:[#allocation25_spill] sm:$0xff] %v11107_v23 }
 0x104   : > { %v10968_v45 = vpop.f32.mrf.mxu0 }
 0x105   : > { %1991 = vrot.lane.b32.xlu1 %v10966_v44, %s16096_s0  ;;  %v11101_v21 = vadd.f32 %v10968_v45, %v11029_v9 }
 0x106   : > { %v1910_v46 = vpop.f32.mrf.mxu0 }
 0x107   : > { %v10973_v47 = vadd.f32 %v1910_v46, %v10919_v24  ;;  %16376 = vst [vmem:[#allocation24_spill] sm:$0xff] %v11101_v21 }
 0x108   : > { %v10975_v48 = vpop.f32.mrf.mxu0 }
 0x109   : > { %1993 = vrot.lane.b32.xlu0 %v10973_v47, %s16096_s0  ;;  %v11091_v20 = vadd.f32 %v10975_v48, %v11029_v9 }
 0x10a   : > { %v1916_v49 = vpop.f32.mrf.mxu0 }
 0x10b   : > { %v10980_v50 = vadd.f32 %v1916_v49, %v10919_v24  ;;  %16375 = vst [vmem:[#allocation23_spill] sm:$0xff] %v11091_v20 }
 0x10c   : > { %v10982_v51 = vpop.f32.mrf.mxu0 }
 0x10d   : > { %1995 = vrot.lane.b32.xlu1 %v10980_v50, %s16096_s0  ;;  %v11085_v19 = vadd.f32 %v10982_v51, %v11029_v9 }
 0x10e   : > { %v1922_v52 = vpop.f32.mrf.mxu0 }
 0x10f   : > { %v10987_v53 = vadd.f32 %v1922_v52, %v10919_v24  ;;  %16374 = vst [vmem:[#allocation22_spill] sm:$0xff] %v11085_v19 }
 0x110   : > { %v1924_v54 = vpop.f32.mrf.mxu0 }
 0x111   : > { %1997 = vrot.lane.b32.xlu0 %v10987_v53, %s16096_s0  ;;  %v11075_v18 = vadd.f32 %v1924_v54, %v11029_v9 }
 0x112   : > { %v1928_v55 = vpop.f32.mrf.mxu0 }
 0x113   : > { %v10992_v56 = vadd.f32 %v1928_v55, %v10919_v24  ;;  %16373 = vst [vmem:[#allocation21_spill] sm:$0xff] %v11075_v18 }
 0x114   : > { %v1930_v57 = vpop.f32.mrf.mxu0 }
 0x115   : > { %1999 = vrot.lane.b32.xlu1 %v10992_v56, %s16096_s0  ;;  %v11070_v17 = vadd.f32 %v1930_v57, %v11029_v9 }
 0x116   : > { %v1934_v58 = vpop.f32.mrf.mxu0 }
 0x117   : > { %v10997_v59 = vadd.f32 %v1934_v58, %v10919_v24  ;;  %16372 = vst [vmem:[#allocation20_spill] sm:$0xff] %v11070_v17 }
 0x118   : > { %v1936_v60 = vpop.f32.mrf.mxu0 }
 0x119   : > { %2001 = vrot.lane.b32.xlu0 %v10997_v59, %s16096_s0  ;;  %2641 = vrot.lane.b32.xlu1 %v10992_v56, %s16100_s2  ;;  %v11061_v16 = vadd.f32 %v1936_v60, %v11029_v9 }
 0x11a   : > { %v1940_v61 = vpop.f32.mrf.mxu0 }
 0x11b   : > { %v11004_v62 = vadd.f32 %v1940_v61, %v10919_v24  ;;  %16371 = vst [vmem:[#allocation19_spill] sm:$0xff] %v11061_v16 }
 0x11c   : > { %v1942_v63 = vpop.f32.mrf.mxu0 }
 0x11d   : > { %2643 = vrot.lane.b32.xlu0 %v10997_v59, %s16100_s2  ;;  %2003 = vrot.lane.b32.xlu1 %v11004_v62, %s16096_s0  ;;  %v11056_v15 = vadd.f32 %v1942_v63, %v11029_v9 }
 0x11e   : > { %v1946_v0 = vpop.f32.mrf.mxu0 }
 0x11f   : > { %v11011_v1 = vadd.f32 %v1946_v0, %v10919_v24  ;;  %16370 = vst [vmem:[#allocation18_spill] sm:$0xff] %v11056_v15 }
 0x120   : > { %v1948_v2 = vpop.f32.mrf.mxu0 }
 0x121   : > { %2647 = vrot.lane.b32.xlu0 %v11011_v1, %s16100_s2  ;;  %2645 = vrot.lane.b32.xlu1 %v11004_v62, %s16100_s2  ;;  %v11047_v14 = vadd.f32 %v1948_v2, %v11029_v9 }
 0x122   : > { %v1952_v4 = vpop.f32.mrf.mxu0 }
 0x123   : > { %v11021_v6 = vadd.f32 %v1952_v4, %v10919_v24  ;;  %16369 = vst [vmem:[#allocation17_spill] sm:$0xff] %v11047_v14 }
 0x124   : > { %v1954_v7 = vpop.f32.mrf.mxu0 }
 0x125   : > { %2007 = vrot.lane.b32.xlu0 %v11021_v6, %s16096_s0  ;;  %2005 = vrot.lane.b32.xlu1 %v11011_v1, %s16096_s0  ;;  %v11042_v13 = vadd.f32 %v1954_v7, %v11029_v9 }
 0x126   : > { %v1958_v8 = vpop.f32.mrf.mxu0 }
 0x127   : > { %v11032_v10 = vadd.f32 %v1958_v8, %v10919_v24  ;;  %16368 = vst [vmem:[#allocation16_spill] sm:$0xff] %v11042_v13  ;;  %v11117_v24 = vadd.f32 %v10954_v39, %v11029_v9 }
 0x128   : > { %v1960_v11 = vpop.f32.mrf.mxu0 }
 0x129   : > { %v11035_v12 = vadd.f32 %v1960_v11, %v11029_v9  ;;  %2009 = vrot.lane.b32.xlu0 %v11032_v10, %s16096_s0  ;;  %2649 = vrot.lane.b32.xlu1 %v11021_v6, %s16100_s2  ;;  %16378 = vst [vmem:[#allocation26_spill] sm:$0xff] %v11117_v24  ;;  %s11167_s0 = scalar_lea.vmem %s16383_s29, %s8079_s25  ;;  %s16116_s25 = smov 8  }
 0x12a   : > { %v11199_v36 = vld [vmem:[%s11167_s0 + $0x8] sm:$0xff]   ;;  %s16102_s29 = smov 48   ;;  %v11224_v42 = vld [vmem:[%s11167_s0 + $0x10] sm:$0xff]   ;;  %v11283_v0 = vld [vmem:[%s11167_s0 + $0x18] sm:$0xff]  }
 0x12b   : > { %16367 = vst [vmem:[#allocation15_spill] sm:$0xff] %v11035_v12  ;;  %8830 = vmatprep.subr.mxu0 %v11035_v12  ;;  %v16124_v37 = vunpack.c.l.bf16 %v11199_v36  ;;  %v16125_v39 = vunpack.c.h.bf16 %v11199_v36  ;;  %v16120_v43 = vunpack.c.l.bf16 %v11224_v42  ;;  %v16121_v45 = vunpack.c.h.bf16 %v11224_v42  ;;  %16388 = vst [vmem:[#allocation31_spill] sm:$0xff] %v11283_v0 }
 0x12c   : > { %8831 = vmatpush3.msra.mxu0 %v11035_v12  ;;  %v16129_v7 = vunpack.c.l.bf16 %v11283_v0  ;;  %v16130_v8 = vunpack.c.h.bf16 %v11283_v0 }
 0x12d   : > { %8832 = vmatprep.subr.mxu0 %v11042_v13  ;;  %2639 = vrot.lane.b32.xlu0 %v10987_v53, %s16100_s2  ;;  %v11215_v40 = vpack.i.bf16 %v16125_v39, %v16124_v37  ;;  %v11242_v48 = vpack.i.bf16 %v16121_v45, %v16120_v43 }
 0x12e   : > { %2637 = vrot.lane.b32.xlu1 %v10980_v50, %s16100_s2  ;;  %8833 = vmatpush3.msra.mxu0 %v11042_v13  ;;  %v11303_v3 = vpack.i.bf16 %v16130_v8, %v16129_v7 }
 0x12f   : > { %8834 = vmatprep.subr.mxu0 %v11047_v14 }
 0x130   : > { %8835 = vmatpush3.msra.mxu0 %v11047_v14 }
 0x131   : > { %8836 = vmatprep.subr.mxu0 %v11056_v15  ;;  %2635 = vrot.lane.b32.xlu0 %v10973_v47, %s16100_s2 }
 0x132   : > { %2633 = vrot.lane.b32.xlu1 %v10966_v44, %s16100_s2  ;;  %8837 = vmatpush3.msra.mxu0 %v11056_v15 }
 0x133   : > { %8838 = vmatprep.subr.mxu0 %v11061_v16 }
 0x134   : > { %8839 = vmatpush3.msra.mxu0 %v11061_v16 }
 0x135   : > { %8840 = vmatprep.subr.mxu0 %v11070_v17  ;;  %2631 = vrot.lane.b32.xlu0 %v10959_v41, %s16100_s2 }
 0x136   : > { %2629 = vrot.lane.b32.xlu1 %v10952_v38, %s16100_s2  ;;  %8841 = vmatpush3.msra.mxu0 %v11070_v17 }
 0x137   : > { %8842 = vmatprep.subr.mxu0 %v11075_v18 }
 0x138   : > { %8843 = vmatpush3.msra.mxu0 %v11075_v18  ;;  %v11449_v18 = vld [vmem:[%s11167_s0 + $0x28] sm:$0xff]  }
 0x139   : > { %8844 = vmatprep.subr.mxu0 %v11085_v19  ;;  %2627 = vrot.lane.b32.xlu0 %v10945_v35, %s16100_s2  ;;  %16400 = vst [vmem:[#allocation33_spill] sm:$0xff] %v11449_v18  ;;  %v16179_v16 = vunpack.c.l.bf16 %v11449_v18 }
 0x13a   : > { %2625 = vrot.lane.b32.xlu1 %v10938_v32, %s16100_s2  ;;  %8845 = vmatpush3.msra.mxu0 %v11085_v19 }
 0x13b   : > { %8846 = vmatprep.subr.mxu0 %v11091_v20 }
 0x13c   : > { %8847 = vmatpush3.msra.mxu0 %v11091_v20  ;;  %v16180_v20 = vunpack.c.h.bf16 %v11449_v18 }
 0x13d   : > { %8848 = vmatprep.subr.mxu0 %v11101_v21  ;;  %2623 = vrot.lane.b32.xlu0 %v10931_v29, %s16100_s2 }
 0x13e   : > { %2621 = vrot.lane.b32.xlu1 %v10922_v26, %s16100_s2  ;;  %8849 = vmatpush3.msra.mxu0 %v11101_v21 }
 0x13f   : > { %8850 = vmatprep.subr.mxu0 %v11107_v23 }
 0x140   : > { %8851 = vmatpush3.msra.mxu0 %v11107_v23 }
 0x141   : > { %8852 = vmatprep.subr.mxu0 %v11117_v24  ;;  %2589 = vrot.lane.b32.xlu0 %v10922_v26, %s16098_s24  ;;  %v11149_v26 = vadd.f32 %v10924_v27, %v11029_v9  ;;  %v11174_v27 = vld [vmem:[%s11167_s0] sm:$0xff]  }
 0x142   : > { %2591 = vrot.lane.b32.xlu1 %v10931_v29, %s16098_s24  ;;  %8853 = vmatpush3.msra.mxu0 %v11117_v24  ;;  %v16134_v30 = vunpack.c.l.bf16 %v11174_v27  ;;  %v16135_v33 = vunpack.c.h.bf16 %v11174_v27 }
 0x143   : > { %8854 = vmatprep.subr.mxu0 %v11123_v25  ;;  %16382 = vst [vmem:[#allocation30_spill] sm:$0xff] %v11149_v26 }
 0x144   : > { %8855 = vmatpush3.msra.mxu0 %v11123_v25  ;;  %v11190_v34 = vpack.i.bf16 %v16135_v33, %v16134_v30  ;;  %v11329_v30 = vld [vmem:[%s11167_s0 + $0x20] sm:$0xff]  }
 0x145   : > { %8856 = vmatprep.subr.mxu0 %v11133_v28  ;;  %2593 = vrot.lane.b32.xlu0 %v10938_v32, %s16098_s24  ;;  %16395 = vst [vmem:[#allocation32_spill] sm:$0xff] %v11329_v30  ;;  %v16154_v22 = vunpack.c.h.bf16 %v11329_v30 }
 0x146   : > { %2595 = vrot.lane.b32.xlu1 %v10945_v35, %s16098_s24  ;;  %8857 = vmatpush3.msra.mxu0 %v11133_v28 }
 0x147   : > { %8858 = vmatprep.subr.mxu0 %v11139_v31 }
 0x148   : > { %8859 = vmatpush3.msra.mxu0 %v11139_v31 }
 0x149   : > { %8860 = vmatprep.subr.mxu0 %v11149_v26  ;;  %2597 = vrot.lane.b32.xlu0 %v10952_v38, %s16098_s24 }
 0x14a   : > { %2599 = vrot.lane.b32.xlu1 %v10959_v41, %s16098_s24  ;;  %8861 = vmatpush3.msra.mxu0 %v11149_v26 }
 0x14d   : > { %2601 = vrot.lane.b32.xlu0 %v10966_v44, %s16098_s24 }
 0x14e   : > { %2603 = vrot.lane.b32.xlu1 %v10973_v47, %s16098_s24 }
 0x151   : > { %2605 = vrot.lane.b32.xlu0 %v10980_v50, %s16098_s24 }
 0x152   : > { %2607 = vrot.lane.b32.xlu1 %v10987_v53, %s16098_s24 }
 0x155   : > { %2609 = vrot.lane.b32.xlu0 %v10992_v56, %s16098_s24 }
 0x156   : > { %2611 = vrot.lane.b32.xlu1 %v10997_v59, %s16098_s24 }
 0x159   : > { %2613 = vrot.lane.b32.xlu0 %v11004_v62, %s16098_s24 }
 0x15a   : > { %2615 = vrot.lane.b32.xlu1 %v11011_v1, %s16098_s24 }
 0x15d   : > { %2617 = vrot.lane.b32.xlu0 %v11021_v6, %s16098_s24  ;;  %s16112_s24 = smov 56  }
 0x15e   : > { %9529 = vrot.lane.b32.xlu1 %v11190_v34, %s16108_s30 }
 0x15f   : > { %v11232_v46 = vpop.permute.xlu1 %1979 }
 0x161   : > { %9524 = vrot.lane.b32.xlu0 %v11190_v34, %s16116_s25 }
 0x162   : > { %9539 = vrot.lane.b32.xlu1 %v11190_v34, %s16100_s2 }
 0x163   : > { %v11244_v49 = vpop.permute.xlu0 %1981 }
 0x165   : > { %9534 = vrot.lane.b32.xlu0 %v11190_v34, %s16106_s28 }
 0x166   : > { %9549 = vrot.lane.b32.xlu1 %v11190_v34, %s16104_s3 }
 0x167   : > { %v11246_v51 = vpop.permute.xlu1 %1983 }
 0x169   : > { %2651 = vrot.lane.b32.xlu0 %v11032_v10, %s16100_s2  ;;  %s16384_s2 = smov 64  }
 0x16a   : > { %9559 = vrot.lane.b32.xlu1 %v11190_v34, %s16102_s29  ;;  %s16385_s29 = smov 32  }
 0x16b   : > { %v11252_v52 = vpop.permute.xlu0 %1985 }
 0x16d   : > { %9544 = vrot.lane.b32.xlu0 %v11215_v40, %s16116_s25 }
 0x16e   : > { %9569 = vrot.lane.b32.xlu1 %v11190_v34, %s16112_s24 }
 0x16f   : > { %v11254_v54 = vpop.permute.xlu1 %1987 }
 0x171   : > { %9554 = vrot.lane.b32.xlu0 %v11215_v40, %s16108_s30 }
 0x172   : > { %9579 = vrot.lane.b32.xlu1 %v11190_v34, %s16384_s2 }
 0x173   : > { %v11260_v55 = vpop.permute.xlu0 %1989 }
 0x175   : > { %9564 = vrot.lane.b32.xlu0 %v11215_v40, %s16106_s28  ;;  %s16114_s28 = smov 72  }
 0x176   : > { %9589 = vrot.lane.b32.xlu1 %v11215_v40, %s16104_s3  ;;  %s16110_s3 = smov 80  }
 0x177   : > { %v11262_v57 = vpop.permute.xlu1 %1991 }
 0x179   : > { %9574 = vrot.lane.b32.xlu0 %v11215_v40, %s16385_s29 }
 0x17a   : > { %9599 = vrot.lane.b32.xlu1 %v11242_v48, %s16108_s30  ;;  %s16386_s30 = smov 48  }
 0x17b   : > { %v11268_v58 = vpop.permute.xlu0 %1993 }
 0x17d   : > { %9584 = vrot.lane.b32.xlu0 %v11242_v48, %s16116_s25  ;;  %s16390_s25 = smov 40  }
 0x17e   : > { %9609 = vrot.lane.b32.xlu1 %v11190_v34, %s16110_s3  ;;  %s16387_s3 = smov 24  }
 0x17f   : > { %v11270_v60 = vpop.permute.xlu1 %1995 }
 0x181   : > { %9594 = vrot.lane.b32.xlu0 %v11190_v34, %s16114_s28  ;;  %s16122_s28 = smov 88  }
 0x182   : > { %9619 = vrot.lane.b32.xlu1 %v11215_v40, %s16112_s24  ;;  %s16389_s24 = smov 96  }
 0x183   : > { %v11276_v61 = vpop.permute.xlu0 %1997 }
 0x185   : > { %9604 = vrot.lane.b32.xlu0 %v11215_v40, %s16386_s30 }
 0x186   : > { %9629 = vrot.lane.b32.xlu1 %v11242_v48, %s16385_s29 }
 0x187   : > { %v11278_v63 = vpop.permute.xlu1 %1999 }
 0x189   : > { %9614 = vrot.lane.b32.xlu0 %v11242_v48, %s16387_s3 }
 0x18a   : > { %9639 = vrot.lane.b32.xlu1 %v11190_v34, %s16389_s24 }
 0x18b   : > { %v2002_v2 = vpop.permute.xlu0 %2001  ;;  %v11287_v4 = vpop.permute.xlu1 %2641 }
 0x18d   : > { %9624 = vrot.lane.b32.xlu0 %v11190_v34, %s16122_s28  ;;  %s16391_s28 = smov 8  }
 0x18e   : > { %9649 = vrot.lane.b32.xlu1 %v11242_v48, %s16390_s25 }
 0x18f   : > { %v11295_v9 = vpop.permute.xlu0 %2643  ;;  %v2004_v11 = vpop.permute.xlu1 %2003 }
 0x191   : > { %9634 = vrot.lane.b32.xlu0 %v11215_v40, %s16384_s2 }
 0x192   : > { %9659 = vrot.lane.b32.xlu1 %v11190_v34, %s16131_s4  ;;  %s16393_s4 = smov 16  }
 0x193   : > { %v11307_v43 = vpop.permute.xlu0 %2647  ;;  %v11309_v45 = vpop.permute.xlu1 %2645 }
 0x195   : > { %9644 = vrot.lane.b32.xlu0 %v11303_v3, %s16391_s28 }
 0x196   : > { %9669 = vrot.lane.b32.xlu1 %v11242_v48, %s16386_s30 }
 0x197   : > { %v2008_v37 = vpop.permute.xlu0 %2007  ;;  %v2006_v39 = vpop.permute.xlu1 %2005 }
 0x199   : > { %9654 = vrot.lane.b32.xlu0 %v11215_v40, %s16392_s1 }
 0x19a   : > { %9679 = vrot.lane.b32.xlu1 %v11190_v34, %s16138_s23  ;;  %s16396_s23 = smov 80  }
 0x19b   : > { %v2010_v7 = vpop.permute.xlu0 %2009  ;;  %v11319_v8 = vpop.permute.xlu1 %2649 }
 0x19c   : > { %8774 = vmatprep.subr.msk.mxu1 %vm1463_vm2, %v2010_v7 }
 0x19d   : > { %8775 = vmatpush3.xpose.msk.msra.mxu1 %vm1463_vm2, %v2010_v7  ;;  %9664 = vrot.lane.b32.xlu0 %v11303_v3, %s16393_s4  ;;  %v16153_v7 = vunpack.c.l.bf16 %v11329_v30 }
 0x19e   : > { %9689 = vrot.lane.b32.xlu1 %v11242_v48, %s16394_s27  ;;  %8776 = vmatprep.subr.msk.mxu1 %vm1463_vm2, %v2008_v37 }
 0x19f   : > { %v11331_v33 = vpop.permute.xlu0 %2639 }
 0x1a0   : > { %v11333_v5 = vpop.permute.xlu1 %2637 }
 0x1a1   : > { %8777 = vmatpush3.xpose.msk.msra.mxu1 %vm1463_vm2, %v2008_v37  ;;  %9674 = vrot.lane.b32.xlu0 %v11215_v40, %s16396_s23 }
 0x1a2   : > { %9699 = vrot.lane.b32.xlu1 %v11190_v34, %s16149_s20  ;;  %8778 = vmatprep.subr.msk.mxu1 %vm1463_vm2, %v2006_v39  ;;  %v11357_v34 = vpack.i.bf16 %v16154_v22, %v16153_v7  ;;  %s16397_s20 = smov 88  }
 0x1a3   : > { %v11343_v26 = vpop.permute.xlu0 %2635 }
 0x1a4   : > { %v11345_v28 = vpop.permute.xlu1 %2633 }
 0x1a5   : > { %9684 = vrot.lane.b32.xlu0 %v11303_v3, %s16387_s3  ;;  %8779 = vmatpush3.xpose.msk.msra.mxu1 %vm1463_vm2, %v2006_v39 }
 0x1a6   : > { %9709 = vrot.lane.b32.xlu1 %v11242_v48, %s16384_s2  ;;  %8780 = vmatprep.subr.msk.mxu1 %vm1463_vm2, %v2004_v11 }
 0x1a7   : > { %v11359_v37 = vpop.permute.xlu0 %2631 }
 0x1a8   : > { %v11361_v31 = vpop.permute.xlu1 %2629 }
 0x1a9   : > { %9694 = vrot.lane.b32.xlu0 %v11215_v40, %s16397_s20  ;;  %8781 = vmatpush3.xpose.msk.msra.mxu1 %vm1463_vm2, %v2004_v11 }
 0x1aa   : > { %9719 = vrot.lane.b32.xlu1 %v11357_v34, %s16391_s28  ;;  %8782 = vmatprep.subr.msk.mxu1 %vm1463_vm2, %v2002_v2 }
 0x1ab   : > { %v11369_v39 = vpop.permute.xlu0 %2627 }
 0x1ac   : > { %v11371_v24 = vpop.permute.xlu1 %2625 }
 0x1ad   : > { %9704 = vrot.lane.b32.xlu0 %v11303_v3, %s16385_s29  ;;  %8783 = vmatpush3.xpose.msk.msra.mxu1 %vm1463_vm2, %v2002_v2 }
 0x1ae   : > { %9729 = vrot.lane.b32.xlu1 %v11242_v48, %s16392_s1  ;;  %8784 = vmatprep.subr.msk.mxu1 %vm1463_vm2, %v11278_v63 }
 0x1af   : > { %v11380_v11 = vpop.permute.xlu0 %2623 }
 0x1b0   : > { %v11382_v7 = vpop.permute.xlu1 %2621 }
 0x1b1   : > { %9714 = vrot.lane.b32.xlu0 %v11215_v40, %s16389_s24  ;;  %8785 = vmatpush3.xpose.msk.msra.mxu1 %vm1463_vm2, %v11278_v63 }
 0x1b2   : > { %9739 = vrot.lane.b32.xlu1 %v11357_v34, %s16393_s4  ;;  %8786 = vmatprep.subr.msk.mxu1 %vm1463_vm2, %v11276_v61 }
 0x1b3   : > { %v11392_v2 = vpop.permute.xlu0 %2589 }
 0x1b4   : > { %v11394_v22 = vpop.permute.xlu1 %2591 }
 0x1b5   : > { %9724 = vrot.lane.b32.xlu0 %v11303_v3, %s16390_s25  ;;  %8787 = vmatpush3.xpose.msk.msra.mxu1 %vm1463_vm2, %v11276_v61 }
 0x1b6   : > { %9749 = vrot.lane.b32.xlu1 %v11242_v48, %s16396_s23  ;;  %8788 = vmatprep.subr.msk.mxu1 %vm1463_vm2, %v11270_v60 }
 0x1b7   : > { %v11404_v63 = vpop.permute.xlu0 %2593 }
 0x1b8   : > { %v11406_v23 = vpop.permute.xlu1 %2595 }
 0x1b9   : > { %9734 = vrot.lane.b32.xlu0 %v11215_v40, %s16398_s22  ;;  %8789 = vmatpush3.xpose.msk.msra.mxu1 %vm1463_vm2, %v11270_v60 }
 0x1ba   : > { %9759 = vrot.lane.b32.xlu1 %v11357_v34, %s16387_s3  ;;  %8790 = vmatprep.subr.msk.mxu1 %vm1463_vm2, %v11268_v58 }
 0x1bb   : > { %v11416_v61 = vpop.permute.xlu0 %2597 }
 0x1bc   : > { %v11418_v19 = vpop.permute.xlu1 %2599 }
 0x1bd   : > { %9744 = vrot.lane.b32.xlu0 %v11303_v3, %s16386_s30  ;;  %8791 = vmatpush3.xpose.msk.msra.mxu1 %vm1463_vm2, %v11268_v58 }
 0x1be   : > { %9769 = vrot.lane.b32.xlu1 %v11242_v48, %s16397_s20  ;;  %8792 = vmatprep.subr.msk.mxu1 %vm1463_vm2, %v11262_v57 }
 0x1bf   : > { %v11428_v60 = vpop.permute.xlu0 %2601 }
 0x1c0   : > { %v11430_v25 = vpop.permute.xlu1 %2603 }
 0x1c1   : > { %9754 = vrot.lane.b32.xlu0 %v11215_v40, %s16399_s19  ;;  %8793 = vmatpush3.xpose.msk.msra.mxu1 %vm1463_vm2, %v11262_v57 }
 0x1c2   : > { %9779 = vrot.lane.b32.xlu1 %v11357_v34, %s16385_s29  ;;  %8794 = vmatprep.subr.msk.mxu1 %vm1463_vm2, %v11260_v55 }
 0x1c3   : > { %v11440_v58 = vpop.permute.xlu0 %2605 }
 0x1c4   : > { %v11442_v30 = vpop.permute.xlu1 %2607 }
 0x1c5   : > { %9764 = vrot.lane.b32.xlu0 %v11303_v3, %s16394_s27  ;;  %8795 = vmatpush3.xpose.msk.msra.mxu1 %vm1463_vm2, %v11260_v55 }
 0x1c6   : > { %9789 = vrot.lane.b32.xlu1 %v11242_v48, %s16389_s24  ;;  %8796 = vmatprep.subr.msk.mxu1 %vm1463_vm2, %v11254_v54 }
 0x1c7   : > { %v11455_v57 = vpop.permute.xlu0 %2609 }
 0x1c8   : > { %v11457_v21 = vpop.permute.xlu1 %2611 }
 0x1c9   : > { %9774 = vrot.lane.b32.xlu0 %v11215_v40, %s16401_s26  ;;  %8797 = vmatpush3.xpose.msk.msra.mxu1 %vm1463_vm2, %v11254_v54  ;;  %v11481_v40 = vpack.i.bf16 %v16180_v20, %v16179_v16 }
 0x1ca   : > { %9799 = vrot.lane.b32.xlu1 %v11357_v34, %s16390_s25  ;;  %8798 = vmatprep.subr.msk.mxu1 %vm1463_vm2, %v11252_v52 }
 0x1cb   : > { %v11469_v55 = vpop.permute.xlu0 %2613 }
 0x1cc   : > { %v11471_v15 = vpop.permute.xlu1 %2615 }
 0x1cd   : > { %9784 = vrot.lane.b32.xlu0 %v11303_v3, %s16384_s2  ;;  %8799 = vmatpush3.xpose.msk.msra.mxu1 %vm1463_vm2, %v11252_v52 }
 0x1ce   : > { %9809 = vrot.lane.b32.xlu1 %v11242_v48, %s16398_s22  ;;  %8800 = vmatprep.subr.msk.mxu1 %vm1463_vm2, %v11246_v51 }
 0x1cf   : > { %v11487_v54 = vpop.permute.xlu0 %2617 }
 0x1d0   : > { %v11489_v17 = vpop.permute.xlu1 %9529 }
 0x1d1   : > { %9794 = vrot.lane.b32.xlu0 %v11481_v40, %s16391_s28  ;;  %8801 = vmatpush3.xpose.msk.msra.mxu1 %vm1463_vm2, %v11246_v51 }
 0x1d2   : > { %9819 = vrot.lane.b32.xlu1 %v11357_v34, %s16386_s30  ;;  %8802 = vmatprep.subr.msk.mxu1 %vm1463_vm2, %v11244_v49 }
 0x1d3   : > { %v11499_v52 = vpop.permute.xlu0 %9524 }
 0x1d4   : > { %v11501_v16 = vpop.permute.xlu1 %9539 }
 0x1d5   : > { %9804 = vrot.lane.b32.xlu0 %v11303_v3, %s16392_s1  ;;  %8803 = vmatpush3.xpose.msk.msra.mxu1 %vm1463_vm2, %v11244_v49  ;;  %v11522_v49 = vld [vmem:[%s11167_s0 + $0x30] sm:$0xff]  }
 0x1d6   : > { %9829 = vrot.lane.b32.xlu1 %v11242_v48, %s16399_s19  ;;  %8804 = vmatprep.subr.msk.mxu1 %vm1463_vm2, %v11232_v46  ;;  %16402 = vst [vmem:[#allocation34_spill] sm:$0xff] %v11522_v49  ;;  %v16192_v14 = vunpack.c.h.bf16 %v11522_v49 }
 0x1d7   : > { %v11511_v51 = vpop.permute.xlu0 %9534 }
 0x1d8   : > { %v11513_v20 = vpop.permute.xlu1 %9549 }
 0x1d9   : > { %9814 = vrot.lane.b32.xlu0 %v11481_v40, %s16393_s4  ;;  %8805 = vmatpush3.xpose.msk.msra.mxu1 %vm1463_vm2, %v11232_v46  ;;  %v16191_v46 = vunpack.c.l.bf16 %v11522_v49  ;;  %v9531_v49 = vunpack.i.l.bf16 %v11489_v17 }
 0x1da   : > { %9839 = vrot.lane.b32.xlu1 %v11357_v34, %s16394_s27 }
 0x1db   : > { %v2652_v18 = vpop.permute.xlu0 %2651 }
 0x1dc   : > { %v11524_v0 = vpop.permute.xlu1 %9559  ;;  %8807 = vmatmul.mubr.msk.f32.vlgmr.msra.gmra.mxu1 %vm1463_vm2, %v10931_v29  ;;  %8886 = vmatprep.subr.msk.mxu1 %vm1463_vm2, %v2652_v18 }
 0x1dd   : > { %9824 = vrot.lane.b32.xlu0 %v11303_v3, %s16396_s23  ;;  %8809 = vmatprep.mubr.msk.f32.mxu1 %vm1463_vm2, %v10938_v32  ;;  %v11558_v32 = vpack.i.bf16 %v16192_v14, %v16191_v46 }
 0x1de   : > { %9849 = vrot.lane.b32.xlu1 %v11242_v48, %s16401_s26  ;;  %8887 = vmatpush3.xpose.msk.msra.mxu1 %vm1463_vm2, %v2652_v18 }
 0x1df   : > { %8888 = vmatprep.subr.msk.mxu1 %vm1463_vm2, %v11319_v8  ;;  %v11540_v29 = vpop.permute.xlu0 %9544 }
 0x1e0   : > { %v11542_v13 = vpop.permute.xlu1 %9569  ;;  %8810 = vmatmul.mubr.msk.f32.gmra.mxu1 %vm1463_vm2, %v10945_v35 }
 0x1e1   : > { %9834 = vrot.lane.b32.xlu0 %v11481_v40, %s16387_s3  ;;  %8812 = vmatprep.mubr.msk.f32.mxu1 %vm1463_vm2, %v10952_v38 }
 0x1e2   : > { %9859 = vrot.lane.b32.xlu1 %v11357_v34, %s16384_s2  ;;  %8889 = vmatpush3.xpose.msk.msra.mxu1 %vm1463_vm2, %v11319_v8 }
 0x1e3   : > { %8890 = vmatprep.subr.msk.mxu1 %vm1463_vm2, %v11307_v43  ;;  %v11562_v35 = vpop.permute.xlu0 %9554 }
 0x1e4   : > { %v11564_v18 = vpop.permute.xlu1 %9579  ;;  %8813 = vmatmul.mubr.msk.f32.gmra.mxu1 %vm1463_vm2, %v10959_v41 }
 0x1e5   : > { %9844 = vrot.lane.b32.xlu0 %v11303_v3, %s16397_s20  ;;  %8815 = vmatprep.mubr.msk.f32.mxu1 %vm1463_vm2, %v10966_v44 }
 0x1e6   : > { %9869 = vrot.lane.b32.xlu1 %v11558_v32, %s16391_s28  ;;  %8891 = vmatpush3.xpose.msk.msra.mxu1 %vm1463_vm2, %v11307_v43  ;;  %v11677_v43 = vld [vmem:[%s11167_s0 + $0x38] sm:$0xff]   ;;  %s612_s0 = sand.u32 1, %s10666_s21  }
 0x1e7   : > { %8892 = vmatprep.subr.msk.mxu1 %vm1463_vm2, %v11309_v45  ;;  %v11578_v38 = vpop.permute.xlu0 %9564  ;;  %16403 = vst [vmem:[#allocation35_spill] sm:$0xff] %v11677_v43  ;;  %v16190_v8 = vunpack.c.h.bf16 %v11677_v43 }
 0x1e8   : > { %v11580_v48 = vpop.permute.xlu1 %9589  ;;  %8816 = vmatmul.mubr.msk.f32.gmra.mxu1 %vm1463_vm2, %v10973_v47 }
 0x1e9   : > { %9854 = vrot.lane.b32.xlu0 %v11481_v40, %s16385_s29  ;;  %8818 = vmatprep.mubr.msk.f32.mxu1 %vm1463_vm2, %v10980_v50 }
 0x1ea   : > { %9879 = vrot.lane.b32.xlu1 %v11357_v34, %s16392_s1  ;;  %8893 = vmatpush3.xpose.msk.msra.mxu1 %vm1463_vm2, %v11309_v45 }
 0x1eb   : > { %8894 = vmatprep.subr.msk.mxu1 %vm1463_vm2, %v11295_v9  ;;  %v11594_v41 = vpop.permute.xlu0 %9574 }
 0x1ec   : > { %v11596_v44 = vpop.permute.xlu1 %9599  ;;  %8819 = vmatmul.mubr.msk.f32.gmra.mxu1 %vm1463_vm2, %v10987_v53 }
 0x1ed   : > { %9864 = vrot.lane.b32.xlu0 %v11303_v3, %s16389_s24  ;;  %8821 = vmatprep.mubr.msk.f32.mxu1 %vm1463_vm2, %v10992_v56 }
 0x1ee   : > { %9889 = vrot.lane.b32.xlu1 %v11558_v32, %s16393_s4  ;;  %8895 = vmatpush3.xpose.msk.msra.mxu1 %vm1463_vm2, %v11295_v9 }
 0x1ef   : > { %8896 = vmatprep.subr.msk.mxu1 %vm1463_vm2, %v11287_v4  ;;  %v11610_v47 = vpop.permute.xlu0 %9584 }
 0x1f0   : > { %v11612_v50 = vpop.permute.xlu1 %9609  ;;  %8822 = vmatmul.mubr.msk.f32.gmra.mxu1 %vm1463_vm2, %v10997_v59 }
 0x1f1   : > { %9874 = vrot.lane.b32.xlu0 %v11481_v40, %s16390_s25  ;;  %8824 = vmatprep.mubr.msk.f32.mxu1 %vm1463_vm2, %v11004_v62 }
 0x1f2   : > { %9899 = vrot.lane.b32.xlu1 %v11357_v34, %s16396_s23  ;;  %8897 = vmatpush3.xpose.msk.msra.mxu1 %vm1463_vm2, %v11287_v4  ;;  %v16189_v4 = vunpack.c.l.bf16 %v11677_v43 }
 0x1f3   : > { %8898 = vmatprep.subr.msk.mxu1 %vm1463_vm2, %v11331_v33  ;;  %v11626_v53 = vpop.permute.xlu0 %9594 }
 0x1f4   : > { %v11628_v56 = vpop.permute.xlu1 %9619  ;;  %8825 = vmatmul.mubr.msk.f32.gmra.mxu1 %vm1463_vm2, %v11011_v1 }
 0x1f5   : > { %9884 = vrot.lane.b32.xlu0 %v11303_v3, %s16398_s22  ;;  %8827 = vmatprep.mubr.msk.f32.mxu1 %vm1463_vm2, %v11021_v6 }
 0x1f6   : > { %9909 = vrot.lane.b32.xlu1 %v11558_v32, %s16387_s3  ;;  %8899 = vmatpush3.xpose.msk.msra.mxu1 %vm1463_vm2, %v11331_v33 }
 0x1f7   : > { %8900 = vmatprep.subr.msk.mxu1 %vm1463_vm2, %v11333_v5  ;;  %v11642_v59 = vpop.permute.xlu0 %9604 }
 0x1f8   : > { %v11644_v62 = vpop.permute.xlu1 %9629  ;;  %8828 = vmatmul.mubr.msk.f32.gmra.mxu1 %vm1463_vm2, %v11032_v10 }
 0x1f9   : > { %9894 = vrot.lane.b32.xlu0 %v11481_v40, %s16386_s30  ;;  %8918 = vmatprep.mubr.msk.f32.mxu1 %vm1463_vm2, %v11392_v2 }
 0x1fa   : > { %9919 = vrot.lane.b32.xlu1 %v11357_v34, %s16397_s20  ;;  %8901 = vmatpush3.xpose.msk.msra.mxu1 %vm1463_vm2, %v11333_v5 }
 0x1fb   : > { %8902 = vmatprep.subr.msk.mxu1 %vm1463_vm2, %v11343_v26  ;;  %v11658_v1 = vpop.permute.xlu0 %9614 }
 0x1fc   : > { %v11660_v6 = vpop.permute.xlu1 %9639 }
 0x1fd   : > { %9904 = vrot.lane.b32.xlu0 %v11303_v3, %s16399_s19 }
 0x1fe   : > { %9929 = vrot.lane.b32.xlu1 %v11558_v32, %s16385_s29  ;;  %8903 = vmatpush3.xpose.msk.msra.mxu1 %vm1463_vm2, %v11343_v26 }
 0x1ff   : > { %8904 = vmatprep.subr.msk.mxu1 %vm1463_vm2, %v11345_v28  ;;  %v11670_v5 = vpop.permute.xlu0 %9624 }
 0x200   : > { %v11672_v33 = vpop.permute.xlu1 %9649 }
 0x201   : > { %9914 = vrot.lane.b32.xlu0 %v11481_v40, %s16394_s27 }
 0x202   : > { %2619 = vrot.lane.b32.xlu1 %v11032_v10, %s16389_s24  ;;  %8905 = vmatpush3.xpose.msk.msra.mxu1 %vm1463_vm2, %v11345_v28 }
 0x203   : > { %8906 = vmatprep.subr.msk.mxu1 %vm1463_vm2, %v11359_v37  ;;  %v11685_v26 = vpop.permute.xlu0 %9634 }
 0x204   : > { %v11687_v45 = vpop.permute.xlu1 %9659 }
 0x205   : > { %9924 = vrot.lane.b32.xlu0 %v11303_v3, %s16401_s26  ;;  %v11709_v3 = vpack.i.bf16 %v16190_v8, %v16189_v4 }
 0x206   : > { %9939 = vrot.lane.b32.xlu1 %v11357_v34, %s16389_s24  ;;  %8907 = vmatpush3.xpose.msk.msra.mxu1 %vm1463_vm2, %v11359_v37 }
 0x207   : > { %8908 = vmatprep.subr.msk.mxu1 %vm1463_vm2, %v11361_v31  ;;  %v11699_v10 = vpop.permute.xlu0 %9644 }
 0x208   : > { %v11701_v28 = vpop.permute.xlu1 %9669 }
 0x209   : > { %9934 = vrot.lane.b32.xlu0 %v11481_v40, %s16384_s2 }
 0x20a   : > { %9949 = vrot.lane.b32.xlu1 %v11558_v32, %s16390_s25  ;;  %8909 = vmatpush3.xpose.msk.msra.mxu1 %vm1463_vm2, %v11361_v31 }
 0x20b   : > { %8910 = vmatprep.subr.msk.mxu1 %vm1463_vm2, %v11369_v39  ;;  %v11717_v9 = vpop.permute.xlu0 %9654 }
 0x20c   : > { %v11719_v37 = vpop.permute.xlu1 %9679 }
 0x20d   : > { %9944 = vrot.lane.b32.xlu0 %v11709_v3, %s16391_s28 }
 0x20e   : > { %9959 = vrot.lane.b32.xlu1 %v11357_v34, %s16398_s22  ;;  %8911 = vmatpush3.xpose.msk.msra.mxu1 %vm1463_vm2, %v11369_v39 }
 0x20f   : > { %8912 = vmatprep.subr.msk.mxu1 %vm1463_vm2, %v11371_v24  ;;  %v11729_v31 = vpop.permute.xlu0 %9664 }
 0x210   : > { %v11731_v2 = vpop.permute.xlu1 %9689 }
 0x211   : > { %9954 = vrot.lane.b32.xlu0 %v11481_v40, %s16392_s1 }
 0x212   : > { %9969 = vrot.lane.b32.xlu1 %v11558_v32, %s16386_s30  ;;  %8913 = vmatpush3.xpose.msk.msra.mxu1 %vm1463_vm2, %v11371_v24 }
 0x213   : > { %8914 = vmatprep.subr.msk.mxu1 %vm1463_vm2, %v11380_v11  ;;  %v11741_v39 = vpop.permute.xlu0 %9674 }
 0x214   : > { %v11743_v4 = vpop.permute.xlu1 %9699 }
 0x215   : > { %9964 = vrot.lane.b32.xlu0 %v11709_v3, %s16393_s4  ;;  %s16694_s4 = sld [smem:[#allocation71_spill]] }
 0x216   : > { %9979 = vrot.lane.b32.xlu1 %v11357_v34, %s16399_s19  ;;  %8915 = vmatpush3.xpose.msk.msra.mxu1 %vm1463_vm2, %v11380_v11 }
 0x217   : > { %8916 = vmatprep.subr.msk.mxu1 %vm1463_vm2, %v11382_v7  ;;  %v11753_v24 = vpop.permute.xlu0 %9684 }
 0x218   : > { %v11755_v8 = vpop.permute.xlu1 %9709 }
 0x219   : > { %9974 = vrot.lane.b32.xlu0 %v11481_v40, %s16396_s23 }
 0x21a   : > { %9989 = vrot.lane.b32.xlu1 %v11558_v32, %s16394_s27  ;;  %8917 = vmatpush3.xpose.msk.msra.mxu1 %vm1463_vm2, %v11382_v7 }
 0x21b   : > { %v11763_v46 = vpop.permute.xlu0 %9694 }
 0x21c   : > { %v11765_v14 = vpop.permute.xlu1 %9719 }
 0x21d   : > { %8919 = vmatmul.mubr.msk.f32.vlgmr.msra.gmra.mxu1 %vm1463_vm2, %v11394_v22  ;;  %9984 = vrot.lane.b32.xlu0 %v11709_v3, %s16387_s3 }
 0x21e   : > { %9999 = vrot.lane.b32.xlu1 %v11357_v34, %s16401_s26  ;;  %8921 = vmatprep.mubr.msk.f32.mxu1 %vm1463_vm2, %v11404_v63 }
 0x21f   : > { %v11775_v11 = vpop.permute.xlu0 %9704 }
 0x220   : > { %v11777_v43 = vpop.permute.xlu1 %9729 }
 0x221   : > { %8922 = vmatmul.mubr.msk.f32.gmra.mxu1 %vm1463_vm2, %v11406_v23  ;;  %9994 = vrot.lane.b32.xlu0 %v11481_v40, %s16397_s20 }
 0x222   : > { %10009 = vrot.lane.b32.xlu1 %v11558_v32, %s16384_s2  ;;  %8924 = vmatprep.mubr.msk.f32.mxu1 %vm1463_vm2, %v11416_v61 }
 0x223   : > { %v11787_v22 = vpop.permute.xlu0 %9714 }
 0x224   : > { %v11789_v7 = vpop.permute.xlu1 %9739 }
 0x225   : > { %8925 = vmatmul.mubr.msk.f32.gmra.mxu1 %vm1463_vm2, %v11418_v19  ;;  %10004 = vrot.lane.b32.xlu0 %v11709_v3, %s16385_s29 }
 0x226   : > { %10019 = vrot.lane.b32.xlu1 %v11709_v3, %s16390_s25  ;;  %8927 = vmatprep.mubr.msk.f32.mxu1 %vm1463_vm2, %v11428_v60  ;;  %v9526_v60 = vunpack.i.l.bf16 %v11499_v52 }
 0x227   : > { %v11799_v23 = vpop.permute.xlu0 %9724 }
 0x228   : > { %v11801_v34 = vpop.permute.xlu1 %9749 }
 0x229   : > { %8928 = vmatmul.mubr.msk.f32.gmra.mxu1 %vm1463_vm2, %v11430_v25  ;;  %10014 = vrot.lane.b32.xlu0 %v11481_v40, %s16389_s24 }
 0x22a   : > { %10029 = vrot.lane.b32.xlu1 %v11481_v40, %s16398_s22  ;;  %8930 = vmatprep.mubr.msk.f32.mxu1 %vm1463_vm2, %v11440_v58 }
 0x22b   : > { %v11811_v19 = vpop.permute.xlu0 %9734 }
 0x22c   : > { %v11813_v63 = vpop.permute.xlu1 %9759 }
 0x22d   : > { %8931 = vmatmul.mubr.msk.f32.gmra.mxu1 %vm1463_vm2, %v11442_v30  ;;  %10024 = vrot.lane.b32.xlu0 %v11558_v32, %s16392_s1  ;;  %v9527_v30 = vunpack.i.h.bf16 %v11499_v52 }
 0x22e   : > { %10039 = vrot.lane.b32.xlu1 %v11558_v32, %s16396_s23  ;;  %8933 = vmatprep.mubr.msk.f32.mxu1 %vm1463_vm2, %v11455_v57 }
 0x22f   : > { %v11823_v25 = vpop.permute.xlu0 %9744 }
 0x230   : > { %16404 = vst [vmem:[#allocation36_spill] sm:$0xff] %v11823_v25  ;;  %v11825_v61 = vpop.permute.xlu1 %9769  ;;  %v9536_v25 = vunpack.i.l.bf16 %v11511_v51 }
 0x231   : > { %16405 = vst [vmem:[#allocation37_spill] sm:$0xff] %v11825_v61  ;;  %8934 = vmatmul.mubr.msk.f32.gmra.mxu1 %vm1463_vm2, %v11457_v21  ;;  %10034 = vrot.lane.b32.xlu0 %v11709_v3, %s16386_s30  ;;  %v9532_v21 = vunpack.i.h.bf16 %v11489_v17  ;;  %v9537_v61 = vunpack.i.h.bf16 %v11511_v51  ;;  %s8075_s30 = sshll.u32 %s612_s0, 4 }
 0x232   : > { %10049 = vrot.lane.b32.xlu1 %v11709_v3, %s16394_s27  ;;  %8936 = vmatprep.mubr.msk.f32.mxu1 %vm1463_vm2, %v11469_v55  ;;  %v16408_v55 = vunpack.c.h.bf16 %v11174_v27  ;;  %s614_s25 = scalar_lea.vmem [#allocation3], %s8075_s30 }
 0x233   : > { %v11837_v58 = vpop.permute.xlu0 %9754 }
 0x234   : > { %16406 = vst [vmem:[#allocation38_spill] sm:$0xff] %v11837_v58  ;;  %v11839_v57 = vpop.permute.xlu1 %9779  ;;  %v1414_v52 = vsel %vm1412_vm3, %v16408_v55, %v9527_v30 }
 0x235   : > { %16407 = vst [vmem:[#allocation39_spill] sm:$0xff] %v11839_v57  ;;  %8937 = vmatmul.mubr.msk.f32.gmra.mxu1 %vm1463_vm2, %v11471_v15  ;;  %10044 = vrot.lane.b32.xlu0 %v11481_v40, %s16399_s19  ;;  %v16409_v15 = vunpack.c.l.bf16 %v11174_v27  ;;  %v1431_v30 = vsel %vm1429_vm4, %v1414_v52, %v9532_v21  ;;  %v9556_v21 = vunpack.i.l.bf16 %v11562_v35 }
 0x236   : > { %10059 = vrot.lane.b32.xlu1 %v11481_v40, %s16401_s26  ;;  %8939 = vmatprep.mubr.msk.f32.mxu1 %vm1463_vm2, %v11487_v54  ;;  %v9542_v40 = vunpack.i.h.bf16 %v11501_v16  ;;  %v9541_v54 = vunpack.i.l.bf16 %v11501_v16 }
 0x237   : > { %v1413_v57 = vsel %vm1412_vm3, %v16409_v15, %v9526_v60  ;;  %v11859_v17 = vpop.permute.xlu0 %9764  ;;  %v1448_v60 = vsel %vm16210_vm5, %v1431_v30, %v9537_v61  ;;  %v9547_v15 = vunpack.i.h.bf16 %v11540_v29  ;;  %v16413_v30 = vunpack.c.h.bf16 %v11199_v36 }
 0x238   : > { %v11861_v58 = vpop.permute.xlu1 %9789  ;;  %v1430_v27 = vsel %vm1429_vm4, %v1413_v57, %v9531_v49  ;;  %v9552_v49 = vunpack.i.h.bf16 %v11513_v20  ;;  %v9551_v57 = vunpack.i.l.bf16 %v11513_v20  ;;  %v1465_v61 = vsel %vm1463_vm2, %v1448_v60, %v9542_v40 }
 0x239   : > { %16410 = vst [vmem:[#allocation40_spill] sm:$0xff] %v11861_v58  ;;  %10054 = vrot.lane.b32.xlu0 %v11558_v32, %s16397_s20  ;;  %v1447_v51 = vsel %vm16210_vm5, %v1430_v27, %v9536_v25  ;;  %v9546_v58 = vunpack.i.l.bf16 %v11540_v29  ;;  %v9557_v29 = vunpack.i.h.bf16 %v11562_v35  ;;  %v9562_v27 = vunpack.i.h.bf16 %v11524_v0 }
 0x23a   : > { %10069 = vrot.lane.b32.xlu1 %v11558_v32, %s16389_s24  ;;  %v1464_v25 = vsel %vm1463_vm2, %v1447_v51, %v9541_v54  ;;  %v9561_v20 = vunpack.i.l.bf16 %v11524_v0  ;;  %v1416_v54 = vsel %vm1412_vm3, %v16413_v30, %v9547_v15  ;;  %v16414_v40 = vunpack.c.l.bf16 %v11199_v36 }
 0x23b   : > { %v11873_v55 = vpop.permute.xlu0 %9774  ;;  %v1482_v35 = vsel %vm16209_vm6, %v1465_v61, %v9552_v49  ;;  %v9572_v0 = vunpack.i.h.bf16 %v11542_v13  ;;  %v9567_v15 = vunpack.i.h.bf16 %v11578_v38  ;;  %v9566_v36 = vunpack.i.l.bf16 %v11578_v38 }
 0x23c   : > { %v11877_v16 = vpop.permute.xlu1 %9799  ;;  %v1415_v51 = vsel %vm1412_vm3, %v16414_v40, %v9546_v58  ;;  %v1499_v61 = vsel %vm16205_vm7, %v1482_v35, %v9562_v27  ;;  %v9587_v30 = vunpack.i.h.bf16 %v11610_v47  ;;  %v9582_v38 = vunpack.i.h.bf16 %v11564_v18 }
 0x23d   : > { %16411 = vst [vmem:[#allocation41_spill] sm:$0xff] %v11877_v16  ;;  %10064 = vrot.lane.b32.xlu0 %v11709_v3, %s16384_s2  ;;  %v1481_v16 = vsel %vm16209_vm6, %v1464_v25, %v9551_v57  ;;  %v1432_v58 = vsel %vm1429_vm4, %v1415_v51, %v9556_v21  ;;  %v1433_v57 = vsel %vm1429_vm4, %v1416_v54, %v9557_v29  ;;  %v9577_v21 = vunpack.i.h.bf16 %v11594_v41 }
 0x23e   : > { %10079 = vrot.lane.b32.xlu1 %v11558_v32, %s16398_s22  ;;  %v1498_v25 = vsel %vm16205_vm7, %v1481_v16, %v9561_v20  ;;  %v9576_v29 = vunpack.i.l.bf16 %v11594_v41  ;;  %v1516_v27 = vsel %vm1514_vm8, %v1499_v61, %v9572_v0  ;;  %v1450_v20 = vsel %vm16210_vm5, %v1433_v57, %v9567_v15 }
 0x23f   : > { %v11889_v52 = vpop.permute.xlu0 %9784  ;;  %v9591_v54 = vunpack.i.l.bf16 %v11580_v48  ;;  %v9602_v41 = vunpack.i.h.bf16 %v11596_v44  ;;  %v9601_v51 = vunpack.i.l.bf16 %v11596_v44  ;;  %v16417_v15 = vunpack.c.l.bf16 %v11224_v42 }
 0x240   : > { %16412 = vst [vmem:[#allocation42_spill] sm:$0xff] %v11889_v52  ;;  %v11899_v60 = vpop.permute.xlu1 %9809  ;;  %v9571_v52 = vunpack.i.l.bf16 %v11542_v13  ;;  %v9586_v13 = vunpack.i.l.bf16 %v11610_v47  ;;  %v1449_v47 = vsel %vm16210_vm5, %v1432_v58, %v9566_v36  ;;  %v9596_v58 = vunpack.i.l.bf16 %v11626_v53 }
 0x241   : > { %16415 = vst [vmem:[#allocation43_spill] sm:$0xff] %v11899_v60  ;;  %10074 = vrot.lane.b32.xlu0 %v11709_v3, %s16392_s1  ;;  %v9581_v60 = vunpack.i.l.bf16 %v11564_v18  ;;  %v9592_v18 = vunpack.i.h.bf16 %v11580_v48  ;;  %v1533_v44 = vsel %vm1531_vm9, %v1516_v27, %v9582_v38  ;;  %v1467_v61 = vsel %vm1463_vm2, %v1450_v20, %v9577_v21 }
 0x242   : > { %10089 = vrot.lane.b32.xlu1 %v11558_v32, %s16399_s19  ;;  %v1515_v16 = vsel %vm1514_vm8, %v1498_v25, %v9571_v52  ;;  %v16416_v52 = vunpack.c.h.bf16 %v11224_v42  ;;  %v1417_v36 = vsel %vm1412_vm3, %v16417_v15, %v9586_v13  ;;  %v1466_v25 = vsel %vm1463_vm2, %v1449_v47, %v9576_v29 }
 0x243   : > { %v11913_v49 = vpop.permute.xlu0 %9794  ;;  %v1532_v48 = vsel %vm1531_vm9, %v1515_v16, %v9581_v60  ;;  %v9612_v42 = vunpack.i.h.bf16 %v11612_v50  ;;  %v9617_v13 = vunpack.i.h.bf16 %v11658_v1  ;;  %v9607_v60 = vunpack.i.h.bf16 %v11642_v59 }
 0x244   : > { %v11919_v40 = vpop.permute.xlu1 %9819  ;;  %v1418_v0 = vsel %vm1412_vm3, %v16416_v52, %v9587_v30  ;;  %v9611_v30 = vunpack.i.l.bf16 %v11612_v50  ;;  %v9606_v38 = vunpack.i.l.bf16 %v11642_v59  ;;  %v1434_v21 = vsel %vm1429_vm4, %v1417_v36, %v9601_v51 }
 0x245   : > { %10084 = vrot.lane.b32.xlu0 %v11709_v3, %s16396_s23  ;;  %v1435_v29 = vsel %vm1429_vm4, %v1418_v0, %v9602_v41  ;;  %v1549_v50 = vsel %vm1548_vm10, %v1532_v48, %v9596_v58  ;;  %v1484_v47 = vsel %vm16209_vm6, %v1467_v61, %v9592_v18  ;;  %v9632_v59 = vunpack.i.h.bf16 %v11644_v62 }
 0x246   : > { %10099 = vrot.lane.b32.xlu1 %v11558_v32, %s16401_s26  ;;  %v9597_v32 = vunpack.i.h.bf16 %v11626_v53  ;;  %v9616_v53 = vunpack.i.l.bf16 %v11658_v1  ;;  %v1483_v1 = vsel %vm16209_vm6, %v1466_v25, %v9591_v54  ;;  %v9631_v51 = vunpack.i.l.bf16 %v11644_v62 }
 0x247   : > { %v11937_v35 = vpop.permute.xlu0 %9804  ;;  %v9627_v41 = vunpack.i.h.bf16 %v11670_v5  ;;  %v9626_v52 = vunpack.i.l.bf16 %v11670_v5  ;;  %v9622_v0 = vunpack.i.h.bf16 %v11628_v56  ;;  %v9621_v54 = vunpack.i.l.bf16 %v11628_v56 }
 0x248   : > { %v11947_v57 = vpop.permute.xlu1 %9829  ;;  %v1550_v27 = vsel %vm1548_vm10, %v1533_v44, %v9597_v32  ;;  %v1451_v18 = vsel %vm16210_vm5, %v1434_v21, %v9616_v53  ;;  %v1452_v15 = vsel %vm16210_vm5, %v1435_v29, %v9617_v13  ;;  %v1500_v62 = vsel %vm16205_vm7, %v1483_v1, %v9606_v38 }
 0x249   : > { %10094 = vrot.lane.b32.xlu0 %v11709_v3, %s16397_s20  ;;  %v1501_v36 = vsel %vm16205_vm7, %v1484_v47, %v9607_v60  ;;  %v1566_v5 = vsel %vm1565_vm11, %v1549_v50, %v9611_v30  ;;  %v1567_v32 = vsel %vm1565_vm11, %v1550_v27, %v9612_v42  ;;  %v9642_v48 = vunpack.i.h.bf16 %v11660_v6  ;;  %s16420_s20 = sld [smem:[#allocation68_spill]] }
 0x24a   : > { %10109 = vrot.lane.b32.xlu1 %v11709_v3, %s16398_s22  ;;  %v9641_v56 = vunpack.i.l.bf16 %v11660_v6  ;;  %v9652_v44 = vunpack.i.h.bf16 %v11672_v33  ;;  %v9651_v25 = vunpack.i.l.bf16 %v11672_v33  ;;  %v1583_v13 = vsel %vm1582_vm12, %v1566_v5, %v9626_v52 }
 0x24b   : > { %v11965_v16 = vpop.permute.xlu0 %9814  ;;  %v1584_v53 = vsel %vm1582_vm12, %v1567_v32, %v9627_v41  ;;  %v1468_v30 = vsel %vm1463_vm2, %v1451_v18, %v9631_v51  ;;  %v1469_v42 = vsel %vm1463_vm2, %v1452_v15, %v9632_v59  ;;  %v9637_v60 = vunpack.i.h.bf16 %v11685_v26 }
 0x24c   : > { %v11971_v20 = vpop.permute.xlu1 %9839  ;;  %v9636_v6 = vunpack.i.l.bf16 %v11685_v26  ;;  %v9662_v38 = vunpack.i.h.bf16 %v11687_v45  ;;  %v9661_v33 = vunpack.i.l.bf16 %v11687_v45  ;;  %v1517_v21 = vsel %vm1514_vm8, %v1500_v62, %v9621_v54  ;;  %v16419_v62 = vld [vmem:[#allocation17_spill] sm:$0xff] }
 0x24d   : > { %10104 = vrot.lane.b32.xlu0 %v11709_v3, %s16389_s24  ;;  %v1518_v29 = vsel %vm1514_vm8, %v1501_v36, %v9622_v0  ;;  %v9682_v50 = vunpack.i.h.bf16 %v11719_v37  ;;  %v9681_v27 = vunpack.i.l.bf16 %v11719_v37  ;;  %v1485_v1 = vsel %vm16209_vm6, %v1468_v30, %v9651_v25  ;;  %v16418_v0 = vld [vmem:[#allocation16_spill] sm:$0xff] }
 0x24e   : > { %10119 = vrot.lane.b32.xlu1 %v11709_v3, %s16401_s26  ;;  %v1486_v26 = vsel %vm16209_vm6, %v1469_v42, %v9652_v44  ;;  %v9702_v47 = vunpack.i.h.bf16 %v11743_v4  ;;  %v9701_v45 = vunpack.i.l.bf16 %v11743_v4  ;;  %v1600_v51 = vsel %vm1599_vm13, %v1583_v13, %v9641_v56  ;;  %v16422_v42 = vld [vmem:[#allocation31_spill] sm:$0xff] }
 0x24f   : > { %v11989_v58 = vpop.permute.xlu0 %9824  ;;  %v1601_v41 = vsel %vm1599_vm13, %v1584_v53, %v9642_v48  ;;  %v9647_v52 = vunpack.i.h.bf16 %v11699_v10  ;;  %v9646_v37 = vunpack.i.l.bf16 %v11699_v10  ;;  %v1534_v54 = vsel %vm1531_vm9, %v1517_v21, %v9636_v6  ;;  %s16421_s23 = smov %s16420_s20  ;;  %v1667_v25 = vld [vmem:[%s16420_s20] sm:$0xff]  ;;  %s16034_s20 = scalar_lea.sflag [#allocation4], %s612_s0 }
 0x250   : > { %v11995_v61 = vpop.permute.xlu1 %9849  ;;  %v1535_v18 = vsel %vm1531_vm9, %v1518_v29, %v9637_v60  ;;  %v1617_v15 = vsel %vm1616_vm14, %v1600_v51, %v9661_v33  ;;  %v1618_v4 = vsel %vm1616_vm14, %v1601_v41, %v9662_v38  ;;  %v9672_v36 = vunpack.i.h.bf16 %v11701_v28  ;;  %v1668_v13 = vld [vmem:[%s16421_s23 + $0x8] sm:$0xff]  ;;  %v16425_v29 = vld [vmem:[#allocation20_spill] sm:$0xff] }
 0x251   : > { %10114 = vrot.lane.b32.xlu0 %v11709_v3, %s16399_s19  ;;  %v9671_v5 = vunpack.i.l.bf16 %v11701_v28  ;;  %v1634_v10 = vsel %vm1633_vm15, %v1617_v15, %v9681_v27  ;;  %v1635_v32 = vsel %vm1633_vm15, %v1618_v4, %v9682_v50  ;;  %v9657_v56 = vunpack.i.h.bf16 %v11717_v9  ;;  %v16426_v51 = vld [vmem:[#allocation18_spill] sm:$0xff] }
 0x252   : > { %3132 = vrot.lane.b32.xlu1 %v11035_v12, %s16389_s24  ;;  %v9656_v44 = vunpack.i.l.bf16 %v11717_v9  ;;  %v1651_v28 = vsel %vm1650_vm0, %v1634_v10, %v9701_v45  ;;  %v1652_v53 = vsel %vm1650_vm0, %v1635_v32, %v9702_v47  ;;  %v16423_v60 = vunpack.c.h.bf16 %v16422_v42 }
 0x253   : > { %v12013_v3 = vpop.permute.xlu0 %9834  ;;  %v16424_v9 = vunpack.c.l.bf16 %v16422_v42  ;;  %v9667_v33 = vunpack.i.h.bf16 %v11729_v31  ;;  %v9666_v21 = vunpack.i.l.bf16 %v11729_v31  ;;  %v9692_v50 = vunpack.i.h.bf16 %v11731_v2 }
 0x254   : > { %v12019_v59 = vpop.permute.xlu1 %9859  ;;  %v1420_v6 = vsel %vm1412_vm3, %v16423_v60, %v9647_v52  ;;  %v9691_v27 = vunpack.i.l.bf16 %v11731_v2  ;;  %v9677_v47 = vunpack.i.h.bf16 %v11741_v39  ;;  %v9676_v45 = vunpack.i.l.bf16 %v11741_v39 }
 0x255   : > { %3130 = vrot.lane.b32.xlu0 %v16418_v0, %s16389_s24  ;;  %v1419_v38 = vsel %vm1412_vm3, %v16424_v9, %v9646_v37  ;;  %v1502_v41 = vsel %vm16205_vm7, %v1485_v1, %v9671_v5  ;;  %v1503_v52 = vsel %vm16205_vm7, %v1486_v26, %v9672_v36  ;;  %v12069_v37 = vmul.f32 %v1667_v25, %v1651_v28  ;;  %v16427_v25 = vld [vmem:[#allocation23_spill] sm:$0xff] }
 0x256   : > { %3128 = vrot.lane.b32.xlu1 %v16419_v62, %s16389_s24  ;;  %v12071_v31 = vmul.f32 %v1668_v13, %v1652_v53  ;;  %v1551_v4 = vsel %vm1548_vm10, %v1534_v54, %v9656_v44  ;;  %v1552_v2 = vsel %vm1548_vm10, %v1535_v18, %v9657_v56  ;;  %v9687_v10 = vunpack.i.h.bf16 %v11753_v24  ;;  %v16428_v44 = vld [vmem:[#allocation19_spill] sm:$0xff] }
 0x257   : > { %v12037_v48 = vpop.permute.xlu0 %9844  ;;  %v9686_v39 = vunpack.i.l.bf16 %v11753_v24  ;;  %v1436_v1 = vsel %vm1429_vm4, %v1419_v38, %v9666_v21  ;;  %v1437_v26 = vsel %vm1429_vm4, %v1420_v6, %v9667_v33  ;;  %v9712_v36 = vunpack.i.h.bf16 %v11755_v8 }
 0x258   : > { %v12049_v30 = vpop.permute.xlu1 %9869  ;;  %v9711_v5 = vunpack.i.l.bf16 %v11755_v8  ;;  %v1519_v54 = vsel %vm1514_vm8, %v1502_v41, %v9691_v27  ;;  %v1520_v18 = vsel %vm1514_vm8, %v1503_v52, %v9692_v50  ;;  %v1568_v56 = vsel %vm1565_vm11, %v1551_v4, %v9676_v45  ;;  %v16429_v50 = vld [vmem:[#allocation24_spill] sm:$0xff]  ;;  %v16430_v45 = vld [vmem:[#allocation21_spill] sm:$0xff] }
 0x259   : > { %3122 = vrot.lane.b32.xlu0 %v16425_v29, %s16389_s24  ;;  %v1569_v24 = vsel %vm1565_vm11, %v1552_v2, %v9677_v47  ;;  %v9697_v13 = vunpack.i.h.bf16 %v11763_v46  ;;  %v9696_v28 = vunpack.i.l.bf16 %v11763_v46  ;;  %vm1700_vm1 = vcmp.gt.f32.partialorder %v12071_v31, 0.0 }
 0x25a   : > { %3126 = vrot.lane.b32.xlu1 %v16426_v51, %s16389_s24  ;;  %vm1699_vm7 = vcmp.gt.f32.partialorder %v12069_v37, 0.0  ;;  %v1453_v8 = vsel %vm16210_vm5, %v1436_v1, %v9686_v39  ;;  %v1454_v42 = vsel %vm16210_vm5, %v1437_v26, %v9687_v10  ;;  %v9722_v60 = vunpack.i.h.bf16 %v11765_v14  ;;  %v16433_v39 = vld [vmem:[#allocation32_spill] sm:$0xff] }
 0x25b   : > { %v12073_v15 = vpop.permute.xlu0 %9854  ;;  %v9721_v6 = vunpack.i.l.bf16 %v11765_v14  ;;  %v1536_v38 = vsel %vm1531_vm9, %v1519_v54, %v9711_v5  ;;  %v1537_v46 = vsel %vm1531_vm9, %v1520_v18, %v9712_v36  ;;  %v9707_v33 = vunpack.i.h.bf16 %v11775_v11 }
 0x25c   : > { %v12079_v32 = vpop.permute.xlu1 %9879  ;;  %v9706_v21 = vunpack.i.l.bf16 %v11775_v11  ;;  %v9732_v27 = vunpack.i.h.bf16 %v11777_v43  ;;  %v9731_v47 = vunpack.i.l.bf16 %v11777_v43  ;;  %v16206_v14 = vmov -1e+30  }
 0x25d   : > { %3116 = vrot.lane.b32.xlu0 %v16427_v25, %s16389_s24  ;;  %v12118_v41 = vsel %vm1700_vm1, 0.0, %v16206_v14  ;;  %v12123_v11 = vsel %vm1699_vm7, 0.0, %v16206_v14  ;;  %v1585_v52 = vsel %vm1582_vm12, %v1568_v56, %v9696_v28  ;;  %v1586_v4 = vsel %vm1582_vm12, %v1569_v24, %v9697_v13 }
 0x25e   : > { %3124 = vrot.lane.b32.xlu1 %v16428_v44, %s16389_s24  ;;  %16431 = vst [vmem:[#allocation31_spill] sm:$0xff] %v12118_v41  ;;  %16432 = vst [vmem:[#allocation44_spill] sm:$0xff] %v12123_v11  ;;  %v9717_v43 = vunpack.i.h.bf16 %v11787_v22  ;;  %v9716_v2 = vunpack.i.l.bf16 %v11787_v22  ;;  %v16434_v1 = vunpack.c.h.bf16 %v16433_v39  ;;  %v16435_v36 = vunpack.c.l.bf16 %v16433_v39 }
 0x25f   : > { %v12095_v53 = vpop.permute.xlu0 %9864  ;;  %v9742_v54 = vunpack.i.h.bf16 %v11789_v7  ;;  %v9741_v18 = vunpack.i.l.bf16 %v11789_v7  ;;  %v1470_v24 = vsel %vm1463_vm2, %v1453_v8, %v9706_v21  ;;  %v1471_v22 = vsel %vm1463_vm2, %v1454_v42, %v9707_v33 }
 0x260   : > { %v12103_v9 = vpop.permute.xlu1 %9889  ;;  %v1422_v26 = vsel %vm1412_vm3, %v16434_v1, %v9722_v60  ;;  %v1421_v5 = vsel %vm1412_vm3, %v16435_v36, %v9721_v6  ;;  %v9727_v13 = vunpack.i.h.bf16 %v11799_v23  ;;  %v9726_v28 = vunpack.i.l.bf16 %v11799_v23  ;;  %v16436_v60 = vld [vmem:[#allocation27_spill] sm:$0xff]  ;;  %v16437_v36 = vld [vmem:[#allocation22_spill] sm:$0xff] }
 0x261   : > { %3114 = vrot.lane.b32.xlu0 %v16429_v50, %s16389_s24  ;;  %v1553_v39 = vsel %vm1548_vm10, %v1536_v38, %v9731_v47  ;;  %v1554_v6 = vsel %vm1548_vm10, %v1537_v46, %v9732_v27  ;;  %v9752_v1 = vunpack.i.h.bf16 %v11801_v34  ;;  %v9751_v7 = vunpack.i.l.bf16 %v11801_v34 }
 0x262   : > { %3120 = vrot.lane.b32.xlu1 %v16430_v45, %s16389_s24  ;;  %v1602_v8 = vsel %vm1599_vm13, %v1585_v52, %v9716_v2  ;;  %v1603_v42 = vsel %vm1599_vm13, %v1586_v4, %v9717_v43  ;;  %v9737_v23 = vunpack.i.h.bf16 %v11811_v19  ;;  %v9736_v33 = vunpack.i.l.bf16 %v11811_v19  ;;  %v16438_v43 = vld [vmem:[#allocation38_spill] sm:$0xff]  ;;  %v16449_v45 = vld [vmem:[#allocation43_spill] sm:$0xff] }
 0x263   : > { %v12129_v10 = vpop.permute.xlu0 %9874  ;;  %v1438_v38 = vsel %vm1429_vm4, %v1421_v5, %v9741_v18  ;;  %v1439_v46 = vsel %vm1429_vm4, %v1422_v26, %v9742_v54  ;;  %v9762_v27 = vunpack.i.h.bf16 %v11813_v63  ;;  %v9761_v34 = vunpack.i.l.bf16 %v11813_v63  ;;  %v16439_v63 = vld [vmem:[#allocation25_spill] sm:$0xff] }
 0x264   : > { %v12139_v56 = vpop.permute.xlu1 %9899  ;;  %v1487_v52 = vsel %vm16209_vm6, %v1470_v24, %v9726_v28  ;;  %v1488_v4 = vsel %vm16209_vm6, %v1471_v22, %v9727_v13  ;;  %v9757_v2 = vunpack.i.h.bf16 %v16438_v43  ;;  %v9756_v19 = vunpack.i.l.bf16 %v16438_v43  ;;  %v16440_v22 = vld [vmem:[#allocation36_spill] sm:$0xff] }
 0x265   : > { %3108 = vrot.lane.b32.xlu0 %v16436_v60, %s16389_s24  ;;  %v1570_v14 = vsel %vm1565_vm11, %v1553_v39, %v9751_v7  ;;  %v1571_v5 = vsel %vm1565_vm11, %v1554_v6, %v9752_v1  ;;  %v9777_v26 = vunpack.i.h.bf16 %v11873_v55  ;;  %v9776_v54 = vunpack.i.l.bf16 %v11873_v55  ;;  %v16441_v1 = vld [vmem:[#allocation37_spill] sm:$0xff] }
 0x266   : > { %3118 = vrot.lane.b32.xlu1 %v16437_v36, %s16389_s24  ;;  %v1619_v18 = vsel %vm1616_vm14, %v1602_v8, %v9736_v33  ;;  %v1620_v24 = vsel %vm1616_vm14, %v1603_v42, %v9737_v23  ;;  %v9747_v13 = vunpack.i.h.bf16 %v16440_v22  ;;  %v9746_v28 = vunpack.i.l.bf16 %v16440_v22  ;;  %v16442_v23 = vld [vmem:[#allocation39_spill] sm:$0xff] }
 0x267   : > { %v12157_v21 = vpop.permute.xlu0 %9884  ;;  %v1455_v39 = vsel %vm16210_vm5, %v1438_v38, %v9761_v34  ;;  %v1456_v6 = vsel %vm16210_vm5, %v1439_v46, %v9762_v27  ;;  %v9772_v7 = vunpack.i.h.bf16 %v16441_v1  ;;  %v9771_v55 = vunpack.i.l.bf16 %v16441_v1  ;;  %v1669_v46 = vld [vmem:[%s16421_s23 + $0x10] sm:$0xff]  ;;  %v1670_v27 = vld [vmem:[%s16421_s23 + $0x18] sm:$0xff] }
 0x268   : > { %v12163_v47 = vpop.permute.xlu1 %9909  ;;  %v1636_v8 = vsel %vm1633_vm15, %v1619_v18, %v9756_v19  ;;  %v1637_v42 = vsel %vm1633_vm15, %v1620_v24, %v9757_v2  ;;  %v9782_v33 = vunpack.i.h.bf16 %v16442_v23  ;;  %v9781_v22 = vunpack.i.l.bf16 %v16442_v23  ;;  %v16443_v19 = vld [vmem:[#allocation26_spill] sm:$0xff] }
 0x269   : > { %v9767_v0 = vunpack.i.h.bf16 %v11859_v17  ;;  %v9766_v38 = vunpack.i.l.bf16 %v11859_v17  ;;  %v1653_v34 = vsel %vm1650_vm0, %v1636_v8, %v9776_v54  ;;  %v1654_v2 = vsel %vm1650_vm0, %v1637_v42, %v9777_v26  ;;  %v16446_v17 = vld [vmem:[#allocation40_spill] sm:$0xff]  ;;  %v16447_v54 = vld [vmem:[#allocation41_spill] sm:$0xff] }
 0x26a   : > { %3112 = vrot.lane.b32.xlu1 %v16439_v63, %s16389_s24  ;;  %vm16444_vm7 = vcmask 392192   ;;  %v9792_v1 = vunpack.i.h.bf16 %v16446_v17  ;;  %v9791_v23 = vunpack.i.l.bf16 %v16446_v17  ;;  %v1587_v51 = vsel %vm1582_vm12, %v1570_v14, %v9771_v55  ;;  %v16448_v55 = vld [vmem:[#allocation42_spill] sm:$0xff] }
 0x26b   : > { %v12179_v43 = vpop.permute.xlu0 %9894  ;;  %v1504_v18 = vsel %vm16444_vm7, %v1487_v52, %v9746_v28  ;;  %vm16445_vm1 = vmmov %vm16444_vm7  ;;  %v1588_v44 = vsel %vm1582_vm12, %v1571_v5, %v9772_v7  ;;  %v9802_v8 = vunpack.i.h.bf16 %v16447_v54  ;;  %v9801_v26 = vunpack.i.l.bf16 %v16447_v54 }
 0x26c   : > { %v12185_v12 = vpop.permute.xlu1 %9919  ;;  %v1505_v24 = vsel %vm16445_vm1, %v1488_v4, %v9747_v13  ;;  %v1472_v52 = vsel %vm1463_vm2, %v1455_v39, %v9781_v22  ;;  %v1473_v4 = vsel %vm1463_vm2, %v1456_v6, %v9782_v33  ;;  %v12217_v13 = vmul.f32 %v1669_v46, %v1653_v34 }
 0x26d   : > { %v12219_v28 = vmul.f32 %v1670_v27, %v1654_v2  ;;  %v1521_v17 = vsel %vm1514_vm8, %v1504_v18, %v9766_v38  ;;  %v1522_v14 = vsel %vm1514_vm8, %v1505_v24, %v9767_v0  ;;  %v9787_v5 = vunpack.i.h.bf16 %v16448_v55 }
 0x26e   : > { %3110 = vrot.lane.b32.xlu1 %v16443_v19, %s16389_s24  ;;  %v9786_v7 = vunpack.i.l.bf16 %v16448_v55  ;;  %v1604_v54 = vsel %vm1599_vm13, %v1587_v51, %v9791_v23  ;;  %v1605_v29 = vsel %vm1599_vm13, %v1588_v44, %v9792_v1  ;;  %v9812_v39 = vunpack.i.h.bf16 %v16449_v45 }
 0x26f   : > { %v12207_v62 = vpop.permute.xlu0 %9904  ;;  %v9811_v6 = vunpack.i.l.bf16 %v16449_v45  ;;  %v1489_v22 = vsel %vm16209_vm6, %v1472_v52, %v9801_v26  ;;  %v1490_v38 = vsel %vm16209_vm6, %v1473_v4, %v9802_v8  ;;  %v9832_v0 = vunpack.i.h.bf16 %v11947_v57 }
 0x270   : > { %v12213_v42 = vpop.permute.xlu1 %9929  ;;  %v9831_v46 = vunpack.i.l.bf16 %v11947_v57  ;;  %v9852_v34 = vunpack.i.h.bf16 %v11995_v61  ;;  %v9851_v51 = vunpack.i.l.bf16 %v11995_v61  ;;  %vm1702_vm7 = vcmp.gt.f32.partialorder %v12219_v28, 0.0 }
 0x271   : > { %vm1701_vm1 = vcmp.gt.f32.partialorder %v12217_v13, 0.0  ;;  %v1538_v44 = vsel %vm1531_vm9, %v1521_v17, %v9786_v7  ;;  %v1539_v45 = vsel %vm1531_vm9, %v1522_v14, %v9787_v5  ;;  %v9797_v2 = vunpack.i.h.bf16 %v11913_v49  ;;  %v16453_v7 = vld [vmem:[#allocation33_spill] sm:$0xff] }
 0x272   : > { %v9796_v18 = vunpack.i.l.bf16 %v11913_v49  ;;  %v1621_v57 = vsel %vm1616_vm14, %v1604_v54, %v9811_v6  ;;  %v1622_v24 = vsel %vm1616_vm14, %v1605_v29, %v9812_v39  ;;  %v9822_v61 = vunpack.i.h.bf16 %v11919_v40  ;;  %v1671_v49 = vld [vmem:[%s16421_s23 + $0x20] sm:$0xff] }
 0x273   : > { %v12229_v33 = vpop.permute.xlu0 %9914  ;;  %v9821_v1 = vunpack.i.l.bf16 %v11919_v40  ;;  %v9807_v8 = vunpack.i.h.bf16 %v11937_v35  ;;  %v9806_v26 = vunpack.i.l.bf16 %v11937_v35  ;;  %v1638_v52 = vsel %vm1633_vm15, %v1621_v57, %v9831_v46  ;;  %v1672_v40 = vld [vmem:[%s16421_s23 + $0x28] sm:$0xff] }
 0x274   : > { %v2620_v27 = vpop.permute.xlu1 %2619  ;;  %v1639_v4 = vsel %vm1633_vm15, %v1622_v24, %v9832_v0  ;;  %v1655_v29 = vsel %vm1650_vm0, %v1638_v52, %v9851_v51  ;;  %v16450_v55 = vmov -1e+30   ;;  %v16454_v54 = vunpack.c.h.bf16 %v16453_v7 }
 0x275   : > { %8940 = vmatmul.mubr.msk.f32.gmra.mxu1 %vm1463_vm2, %v2620_v27  ;;  %v1656_v14 = vsel %vm1650_vm0, %v1639_v4, %v9852_v34  ;;  %v12267_v35 = vsel %vm1702_vm7, 0.0, %v16450_v55  ;;  %v12272_v5 = vsel %vm1701_vm1, 0.0, %v16450_v55  ;;  %v16455_v6 = vunpack.c.l.bf16 %v16453_v7 }
 0x276   : > { %16451 = vst [vmem:[#allocation32_spill] sm:$0xff] %v12267_v35  ;;  %16452 = vst [vmem:[#allocation38_spill] sm:$0xff] %v12272_v5  ;;  %v1424_v39 = vsel %vm1412_vm3, %v16454_v54, %v9797_v2  ;;  %v9817_v46 = vunpack.i.h.bf16 %v11965_v16  ;;  %v9816_v27 = vunpack.i.l.bf16 %v11965_v16  ;;  %vm16456_vm6 = vcmask 392192  }
 0x277   : > { %v12248_v23 = vpop.permute.xlu0 %9924  ;;  %v1423_v0 = vsel %vm1412_vm3, %v16455_v6, %v9796_v18  ;;  %v1506_v34 = vsel %vm16456_vm6, %v1489_v22, %v9821_v1  ;;  %vm16457_vm7 = vmmov %vm16456_vm6  ;;  %v9842_v57 = vunpack.i.h.bf16 %v11971_v20  ;;  %v9841_v24 = vunpack.i.l.bf16 %v11971_v20 }
 0x278   : > { %v12254_v17 = vpop.permute.xlu1 %9939  ;;  %v1507_v51 = vsel %vm16457_vm7, %v1490_v38, %v9822_v61  ;;  %v1555_v2 = vsel %vm1548_vm10, %v1538_v44, %v9806_v26  ;;  %v1556_v4 = vsel %vm1548_vm10, %v1539_v45, %v9807_v8  ;;  %v12290_v7 = vmul.f32 %v1671_v49, %v1655_v29 }
 0x279   : > { %v12292_v18 = vmul.f32 %v1672_v40, %v1656_v14  ;;  %v9827_v16 = vunpack.i.h.bf16 %v11989_v58  ;;  %v9826_v22 = vunpack.i.l.bf16 %v11989_v58  ;;  %v9837_v38 = vunpack.i.h.bf16 %v12013_v3 }
 0x27a   : > { %16458 = vst [vmem:[#allocation36_spill] sm:$0xff] %v12290_v7  ;;  %v9836_v20 = vunpack.i.l.bf16 %v12013_v3  ;;  %v1440_v61 = vsel %vm1429_vm4, %v1423_v0, %v9816_v27  ;;  %v1441_v44 = vsel %vm1429_vm4, %v1424_v39, %v9817_v46  ;;  %v9862_v45 = vunpack.i.h.bf16 %v12019_v59 }
 0x27b   : > { %v12286_v52 = vpop.permute.xlu0 %9934  ;;  %16459 = vst [vmem:[#allocation37_spill] sm:$0xff] %v12292_v18  ;;  %v9861_v1 = vunpack.i.l.bf16 %v12019_v59  ;;  %v1523_v8 = vsel %vm1514_vm8, %v1506_v34, %v9841_v24  ;;  %v1524_v26 = vsel %vm1514_vm8, %v1507_v51, %v9842_v57  ;;  %v9847_v49 = vunpack.i.h.bf16 %v12037_v48 }
 0x27c   : > { %v12294_v54 = vpop.permute.xlu1 %9949  ;;  %v9846_v58 = vunpack.i.l.bf16 %v12037_v48  ;;  %v9872_v3 = vunpack.i.h.bf16 %v12049_v30  ;;  %v9871_v29 = vunpack.i.l.bf16 %v12049_v30  ;;  %vm1704_vm6 = vcmp.gt.f32.partialorder %v12292_v18, 0.0 }
 0x27d   : > { %vm1703_vm1 = vcmp.gt.f32.partialorder %v12290_v7, 0.0  ;;  %v1572_v59 = vsel %vm1565_vm11, %v1555_v2, %v9826_v22  ;;  %v1573_v39 = vsel %vm1565_vm11, %v1556_v4, %v9827_v16  ;;  %v1457_v6 = vsel %vm16210_vm5, %v1440_v61, %v9836_v20  ;;  %v16462_v4 = vld [vmem:[#allocation34_spill] sm:$0xff] }
 0x27e   : > { %v1458_v48 = vsel %vm16210_vm5, %v1441_v44, %v9837_v38  ;;  %v1540_v0 = vsel %vm1531_vm9, %v1523_v8, %v9861_v1  ;;  %v1541_v46 = vsel %vm1531_vm9, %v1524_v26, %v9862_v45  ;;  %v9857_v30 = vunpack.i.h.bf16 %v12073_v15 }
 0x27f   : > { %v12308_v40 = vpop.permute.xlu0 %9944  ;;  %v9856_v27 = vunpack.i.l.bf16 %v12073_v15  ;;  %v1589_v34 = vsel %vm1582_vm12, %v1572_v59, %v9846_v58  ;;  %v1590_v51 = vsel %vm1582_vm12, %v1573_v39, %v9847_v49  ;;  %v12329_v24 = vsel %vm1704_vm6, 0.0, %v16450_v55 }
 0x280   : > { %v12312_v14 = vpop.permute.xlu1 %9959  ;;  %16460 = vst [vmem:[#allocation39_spill] sm:$0xff] %v12329_v24  ;;  %v12332_v2 = vsel %vm1703_vm1, 0.0, %v16450_v55  ;;  %v16463_v16 = vunpack.c.h.bf16 %v16462_v4  ;;  %v16464_v38 = vunpack.c.l.bf16 %v16462_v4  ;;  %v9867_v20 = vunpack.i.h.bf16 %v12095_v53 }
 0x281   : > { %16461 = vst [vmem:[#allocation40_spill] sm:$0xff] %v12332_v2  ;;  %v9866_v61 = vunpack.i.l.bf16 %v12095_v53  ;;  %v9882_v45 = vunpack.i.h.bf16 %v12079_v32  ;;  %v9881_v1 = vunpack.i.l.bf16 %v12079_v32  ;;  %v9887_v8 = vunpack.i.h.bf16 %v12157_v21 }
 0x282   : > { %v1426_v22 = vsel %vm1412_vm3, %v16463_v16, %v9872_v3  ;;  %v1425_v15 = vsel %vm1412_vm3, %v16464_v38, %v9871_v29  ;;  %v9886_v26 = vunpack.i.l.bf16 %v12157_v21  ;;  %v1474_v49 = vsel %vm1463_vm2, %v1457_v6, %v9856_v27 }
 0x283   : > { %v12326_v57 = vpop.permute.xlu0 %9954  ;;  %v1475_v58 = vsel %vm1463_vm2, %v1458_v48, %v9857_v30  ;;  %v9907_v3 = vunpack.i.h.bf16 %v12207_v62  ;;  %v9906_v29 = vunpack.i.l.bf16 %v12207_v62  ;;  %v9892_v53 = vunpack.i.h.bf16 %v12103_v9 }
 0x284   : > { %v12342_v44 = vpop.permute.xlu1 %9969  ;;  %v9891_v59 = vunpack.i.l.bf16 %v12103_v9  ;;  %v9927_v39 = vunpack.i.h.bf16 %v12248_v23  ;;  %v9926_v32 = vunpack.i.l.bf16 %v12248_v23  ;;  %v1606_v21 = vsel %vm1599_vm13, %v1589_v34, %v9866_v61 }
 0x285   : > { %v1607_v6 = vsel %vm1599_vm13, %v1590_v51, %v9867_v20  ;;  %v9877_v48 = vunpack.i.h.bf16 %v12129_v10  ;;  %v9876_v30 = vunpack.i.l.bf16 %v12129_v10  ;;  %v9902_v62 = vunpack.i.h.bf16 %v12139_v56 }
 0x286   : > { %v9901_v9 = vunpack.i.l.bf16 %v12139_v56  ;;  %v1623_v16 = vsel %vm1616_vm14, %v1606_v21, %v9886_v26  ;;  %v1624_v23 = vsel %vm1616_vm14, %v1607_v6, %v9887_v8  ;;  %v1557_v38 = vsel %vm1548_vm10, %v1540_v0, %v9881_v1  ;;  %v1673_v56 = vld [vmem:[%s16421_s23 + $0x30] sm:$0xff]  ;;  %v1674_v8 = vld [vmem:[%s16421_s23 + $0x38] sm:$0xff] }
 0x287   : > { %v12356_v4 = vpop.permute.xlu0 %9964  ;;  %v1558_v34 = vsel %vm1548_vm10, %v1541_v46, %v9882_v45  ;;  %v1640_v51 = vsel %vm1633_vm15, %v1623_v16, %v9906_v29  ;;  %v1641_v20 = vsel %vm1633_vm15, %v1624_v23, %v9907_v3  ;;  %v1442_v10 = vsel %vm1429_vm4, %v1425_v15, %v9891_v59 }
 0x288   : > { %v12362_v27 = vpop.permute.xlu1 %9979  ;;  %v1443_v61 = vsel %vm1429_vm4, %v1426_v22, %v9892_v53  ;;  %v1657_v0 = vsel %vm1650_vm0, %v1640_v51, %v9926_v32  ;;  %v1658_v46 = vsel %vm1650_vm0, %v1641_v20, %v9927_v39  ;;  %vm16465_vm7 = vcmask 326656  }
 0x289   : > { %v1491_v1 = vsel %vm16465_vm7, %v1474_v49, %v9876_v30  ;;  %vm16466_vm6 = vmmov %vm16465_vm7  ;;  %v9912_v22 = vunpack.i.h.bf16 %v12163_v47  ;;  %v9911_v26 = vunpack.i.l.bf16 %v12163_v47  ;;  %v1574_v29 = vsel %vm1565_vm11, %v1557_v38, %v9901_v9 }
 0x28a   : > { %v1492_v15 = vsel %vm16466_vm6, %v1475_v58, %v9877_v48  ;;  %v1575_v53 = vsel %vm1565_vm11, %v1558_v34, %v9902_v62  ;;  %v9897_v59 = vunpack.i.h.bf16 %v12179_v43  ;;  %v9896_v39 = vunpack.i.l.bf16 %v12179_v43 }
 0x28b   : > { %v12382_v45 = vpop.permute.xlu0 %9974  ;;  %v9922_v32 = vunpack.i.h.bf16 %v12185_v12  ;;  %v9921_v49 = vunpack.i.l.bf16 %v12185_v12  ;;  %v12396_v21 = vmul.f32 %v1673_v56, %v1657_v0  ;;  %v12398_v58 = vmul.f32 %v1674_v8, %v1658_v46 }
 0x28c   : > { %v12388_v3 = vpop.permute.xlu1 %9989  ;;  %v9932_v47 = vunpack.i.h.bf16 %v12213_v42  ;;  %v9931_v6 = vunpack.i.l.bf16 %v12213_v42  ;;  %v9917_v48 = vunpack.i.h.bf16 %v12229_v33  ;;  %v9916_v30 = vunpack.i.l.bf16 %v12229_v33 }
 0x28d   : > { %16467 = vst [vmem:[#allocation41_spill] sm:$0xff] %v12398_v58  ;;  %v1459_v43 = vsel %vm16210_vm5, %v1442_v10, %v9911_v26  ;;  %v1460_v9 = vsel %vm16210_vm5, %v1443_v61, %v9912_v22  ;;  %v9942_v12 = vunpack.i.h.bf16 %v12254_v17  ;;  %v9941_v16 = vunpack.i.l.bf16 %v12254_v17 }
 0x28e   : > { %vm16468_vm1 = vcmask 392192   ;;  %v9937_v42 = vunpack.i.h.bf16 %v12286_v52  ;;  %v9936_v51 = vunpack.i.l.bf16 %v12286_v52  ;;  %v1591_v33 = vsel %vm1582_vm12, %v1574_v29, %v9921_v49 }
 0x28f   : > { %v12404_v62 = vpop.permute.xlu0 %9984  ;;  %v1508_v38 = vsel %vm16468_vm1, %v1491_v1, %v9896_v39  ;;  %vm16469_vm7 = vmmov %vm16468_vm1  ;;  %v1592_v20 = vsel %vm1582_vm12, %v1575_v53, %v9922_v32  ;;  %vm1706_vm6 = vcmp.gt.f32.partialorder %v12398_v58, 0.0  ;;  %vm1705_vm5 = vcmp.gt.f32.partialorder %v12396_v21, 0.0 }
 0x290   : > { %v10000_v23 = vpop.permute.xlu1 %9999  ;;  %v1509_v34 = vsel %vm16469_vm7, %v1492_v15, %v9897_v59  ;;  %v1476_v10 = vsel %vm1463_vm2, %v1459_v43, %v9931_v6  ;;  %v1477_v17 = vsel %vm1463_vm2, %v1460_v9, %v9932_v47  ;;  %v1525_v61 = vsel %vm1514_vm8, %v1508_v38, %v9916_v30 }
 0x291   : > { %v1526_v56 = vsel %vm1514_vm8, %v1509_v34, %v9917_v48  ;;  %v1608_v52 = vsel %vm1599_vm13, %v1591_v33, %v9941_v16  ;;  %v1609_v0 = vsel %vm1599_vm13, %v1592_v20, %v9942_v12  ;;  %v9952_v46 = vunpack.i.h.bf16 %v12294_v54 }
 0x292   : > { %v9951_v1 = vunpack.i.l.bf16 %v12294_v54  ;;  %v1542_v22 = vsel %vm1531_vm9, %v1525_v61, %v9936_v51  ;;  %v1543_v26 = vsel %vm1531_vm9, %v1526_v56, %v9937_v42  ;;  %v12433_v29 = vsel %vm1706_vm6, 0.0, %v16450_v55  ;;  %v16474_v42 = vld [vmem:[#allocation35_spill] sm:$0xff]  ;;  %vm16477_vm6 = vmmov %vm16469_vm7 }
 0x293   : > { %v12422_v8 = vpop.permute.xlu0 %9994  ;;  %16470 = vst [vmem:[#allocation42_spill] sm:$0xff] %v12433_v29  ;;  %v12436_v53 = vsel %vm1705_vm5, 0.0, %v16450_v55  ;;  %v9947_v59 = vunpack.i.h.bf16 %v12308_v40  ;;  %v9946_v39 = vunpack.i.l.bf16 %v12308_v40  ;;  %v9962_v32 = vunpack.i.h.bf16 %v12312_v14 }
 0x294   : > { %v12428_v15 = vpop.permute.xlu1 %10009  ;;  %16471 = vst [vmem:[#allocation43_spill] sm:$0xff] %v12436_v53  ;;  %v9961_v54 = vunpack.i.l.bf16 %v12312_v14  ;;  %v9957_v49 = vunpack.i.h.bf16 %v12326_v57  ;;  %v9956_v47 = vunpack.i.l.bf16 %v12326_v57  ;;  %v9971_v6 = vunpack.i.l.bf16 %v12342_v44 }
 0x295   : > { %v9982_v48 = vunpack.i.h.bf16 %v12362_v27  ;;  %vm16472_vm5 = vcmask 326656   ;;  %v9972_v9 = vunpack.i.h.bf16 %v12342_v44  ;;  %v9981_v40 = vunpack.i.l.bf16 %v12362_v27 }
 0x296   : > { %v1493_v43 = vsel %vm16472_vm5, %v1476_v10, %v9951_v1  ;;  %v10002_v12 = vunpack.i.h.bf16 %v10000_v23  ;;  %vm16473_vm1 = vmmov %vm16472_vm5  ;;  %v9967_v38 = vunpack.i.h.bf16 %v12356_v4  ;;  %v9966_v57 = vunpack.i.l.bf16 %v12356_v4 }
 0x297   : > { %v12446_v30 = vpop.permute.xlu0 %10004  ;;  %v1494_v14 = vsel %vm16473_vm1, %v1477_v17, %v9952_v46  ;;  %v10001_v34 = vunpack.i.l.bf16 %v10000_v23  ;;  %v16475_v51 = vunpack.c.h.bf16 %v16474_v42  ;;  %v16476_v20 = vunpack.c.l.bf16 %v16474_v42 }
 0x298   : > { %v12451_v16 = vpop.permute.xlu1 %10019  ;;  %v1625_v27 = vsel %vm1616_vm14, %v1608_v52, %v9961_v54  ;;  %v1626_v10 = vsel %vm1616_vm14, %v1609_v0, %v9962_v32  ;;  %v1559_v61 = vsel %vm1548_vm10, %v1542_v22, %v9956_v47  ;;  %v1560_v17 = vsel %vm1548_vm10, %v1543_v26, %v9957_v49  ;;  %v1676_v52 = vld [vmem:[%s16421_s23 + $0x48] sm:$0xff]  ;;  %v1675_v54 = vld [vmem:[%s16421_s23 + $0x40] sm:$0xff] }
 0x299   : > { %v1428_v33 = vsel %vm1412_vm3, %v16475_v51, %v9947_v59  ;;  %v1427_v44 = vsel %vm1412_vm3, %v16476_v20, %v9946_v39  ;;  %v1510_v56 = vsel %vm16469_vm7, %v1493_v43, %v9971_v6  ;;  %v1643_v4 = vsel %vm1633_vm15, %v1626_v10, %v9982_v48 }
 0x29a   : > { %v1511_v46 = vsel %vm16477_vm6, %v1494_v14, %v9972_v9  ;;  %v1642_v1 = vsel %vm1633_vm15, %v1625_v27, %v9981_v40  ;;  %v9976_v59 = vunpack.i.l.bf16 %v12382_v45  ;;  %v1660_v0 = vsel %vm1650_vm0, %v1643_v4, %v10002_v12 }
 0x29b   : > { %v12468_v23 = vpop.permute.xlu0 %10014  ;;  %v1444_v39 = vsel %vm1429_vm4, %v1427_v44, %v9966_v57  ;;  %v1445_v32 = vsel %vm1429_vm4, %v1428_v33, %v9967_v38  ;;  %v1659_v49 = vsel %vm1650_vm0, %v1642_v1, %v10001_v34  ;;  %v9977_v6 = vunpack.i.h.bf16 %v12382_v45 }
 0x29c   : > { %v12477_v22 = vpop.permute.xlu1 %10029  ;;  %v8808_v26 = vpop.f32.mrf.mxu1  ;;  %v9992_v48 = vunpack.i.h.bf16 %v12388_v3  ;;  %v9991_v43 = vunpack.i.l.bf16 %v12388_v3  ;;  %v9987_v9 = vunpack.i.h.bf16 %v12404_v62  ;;  %v9986_v12 = vunpack.i.l.bf16 %v12404_v62 }
 0x29d   : > { %v2221_v47 = vmul.f32 0.17677669, %v8808_v26  ;;  %v12490_v14 = vmul.f32 %v1676_v52, %v1660_v0  ;;  %v1576_v34 = vsel %vm1565_vm11, %v1559_v61, %v9976_v59  ;;  %v12498_v45 = vmul.f32 %v1675_v54, %v1659_v49 }
 0x29e   : > { %v2141_v40 = vpop.f32.mrf.mxu1  ;;  %v9997_v51 = vunpack.i.h.bf16 %v12422_v8  ;;  %v9996_v3 = vunpack.i.l.bf16 %v12422_v8  ;;  %v10011_v62 = vunpack.i.l.bf16 %v12428_v15  ;;  %v10016_v44 = vunpack.i.l.bf16 %v12468_v23 }
 0x29f   : > { %v12493_v38 = vadd.f32 %v2221_v47, %v12118_v41  ;;  %v2220_v57 = vmul.f32 0.17677669, %v2141_v40  ;;  %v12495_v42 = vpop.permute.xlu0 %10024  ;;  %v1577_v61 = vsel %vm1565_vm11, %v1560_v17, %v9977_v6  ;;  %v1527_v4 = vsel %vm1514_vm8, %v1510_v56, %v9991_v43 }
 0x2a0   : > { %v12502_v33 = vpop.permute.xlu1 %10039  ;;  %v8811_v20 = vpop.f32.mrf.mxu1  ;;  %v1528_v1 = vsel %vm1514_vm8, %v1511_v46, %v9992_v48  ;;  %v10012_v8 = vunpack.i.h.bf16 %v12428_v15  ;;  %vm16478_vm3 = vcmask 195584   ;;  %v10017_v26 = vunpack.i.h.bf16 %v12468_v23 }
 0x2a1   : > { %v12507_v27 = vadd.f32 %v2220_v57, %v12123_v11  ;;  %v2223_v10 = vmul.f32 0.17677669, %v8811_v20  ;;  %2254 = vmax.xlane.f32.xlu1 %v12493_v38  ;;  %v1461_v52 = vsel %vm16478_vm3, %v1444_v39, %v9986_v12  ;;  %vm16479_vm4 = vmmov %vm16478_vm3  ;;  %vm1708_vm5 = vcmp.gt.f32.partialorder %v12490_v14, 0.0 }
 0x2a2   : > { %v2151_v59 = vpop.f32.mrf.mxu1  ;;  %v1462_v0 = vsel %vm16479_vm4, %v1445_v32, %v9987_v9  ;;  %v1593_v17 = vsel %vm1582_vm12, %v1576_v34, %v9996_v3  ;;  %v1594_v56 = vsel %vm1582_vm12, %v1577_v61, %v9997_v51  ;;  %v10031_v46 = vunpack.i.l.bf16 %v12477_v22 }
 0x2a3   : > { %v12517_v54 = vpop.permute.xlu0 %10034  ;;  %2252 = vmax.xlane.f32.xlu0 %v12507_v27  ;;  %vm1707_vm1 = vcmp.gt.f32.partialorder %v12498_v45, 0.0  ;;  %v1544_v39 = vsel %vm1531_vm9, %v1527_v4, %v10011_v62  ;;  %v1610_v23 = vsel %vm1599_vm13, %v1593_v17, %v10016_v44  ;;  %v12530_v32 = vadd.f32 %v2223_v10, %v12267_v35 }
 0x2a4   : > { %v12524_v15 = vpop.permute.xlu1 %10049  ;;  %v8814_v49 = vpop.f32.mrf.mxu1  ;;  %v2222_v47 = vmul.f32 0.17677669, %v2151_v59  ;;  %v1545_v6 = vsel %vm1531_vm9, %v1528_v1, %v10012_v8  ;;  %v10007_v48 = vunpack.i.h.bf16 %v12446_v30  ;;  %v10032_v43 = vunpack.i.h.bf16 %v12477_v22 }
 0x2a5   : > { %v12536_v40 = vsel %vm1708_vm5, 0.0, %v16450_v55  ;;  %v10006_v12 = vunpack.i.l.bf16 %v12446_v30  ;;  %v10022_v57 = vunpack.i.h.bf16 %v12451_v16  ;;  %v1611_v34 = vsel %vm1599_vm13, %v1594_v56, %v10017_v26  ;;  %v1677_v56 = vld [vmem:[%s16421_s23 + $0x50] sm:$0xff] }
 0x2a6   : > { %v2161_v9 = vpop.f32.mrf.mxu1  ;;  %16480 = vst [vmem:[#allocation33_spill] sm:$0xff] %v12536_v40  ;;  %v1627_v20 = vsel %vm1616_vm14, %v1610_v23, %v10031_v46  ;;  %v10026_v62 = vunpack.i.l.bf16 %v12495_v42  ;;  %v12545_v4 = vadd.f32 %v2222_v47, %v12272_v5  ;;  %v2225_v30 = vmul.f32 0.17677669, %v8814_v49 }
 0x2a7   : > { %v2224_v51 = vmul.f32 0.17677669, %v2161_v9  ;;  %v10045_v3 = vpop.permute.xlu0 %10044  ;;  %2258 = vmax.xlane.f32.xlu0 %v12530_v32  ;;  %v10021_v59 = vunpack.i.l.bf16 %v12451_v16  ;;  %v1628_v26 = vsel %vm1616_vm14, %v1611_v34, %v10032_v43  ;;  %v10027_v47 = vunpack.i.h.bf16 %v12495_v42 }
 0x2a8   : > { %v10047_v44 = vunpack.i.h.bf16 %v10045_v3  ;;  %v10046_v22 = vunpack.i.l.bf16 %v10045_v3  ;;  %v10060_v10 = vpop.permute.xlu1 %10059  ;;  %v8817_v61 = vpop.f32.mrf.mxu1  ;;  %v1478_v16 = vsel %vm1463_vm2, %v1461_v52, %v10006_v12  ;;  %v1479_v43 = vsel %vm1463_vm2, %v1462_v0, %v10007_v48  ;;  %v1678_v0 = vld [vmem:[%s16421_s23 + $0x58] sm:$0xff] }
 0x2a9   : > { %v12548_v1 = vadd.f32 %v2224_v51, %v12332_v2  ;;  %v10061_v8 = vunpack.i.l.bf16 %v10060_v10  ;;  %v10062_v46 = vunpack.i.h.bf16 %v10060_v10  ;;  %v10041_v34 = vunpack.i.l.bf16 %v12502_v33 }
 0x2aa   : > { %v1644_v17 = vsel %vm1633_vm15, %v1627_v20, %v10046_v22  ;;  %v2171_v23 = vpop.f32.mrf.mxu1  ;;  %v1645_v49 = vsel %vm1633_vm15, %v1628_v26, %v10047_v44  ;;  %v2227_v20 = vmul.f32 0.17677669, %v8817_v61  ;;  %v1561_v42 = vsel %vm1548_vm10, %v1544_v39, %v10026_v62 }
 0x2ab   : > { %v1661_v9 = vsel %vm1650_vm0, %v1644_v17, %v10061_v8  ;;  %v2226_v51 = vmul.f32 0.17677669, %v2171_v23  ;;  %v10055_v3 = vpop.permute.xlu0 %10054  ;;  %2256 = vmax.xlane.f32.xlu0 %v12545_v4  ;;  %2260 = vmax.xlane.f32.xlu1 %v12548_v1  ;;  %v12566_v44 = vadd.f32 %v2225_v30, %v12329_v24  ;;  %v10042_v17 = vunpack.i.h.bf16 %v12502_v33 }
 0x2ac   : > { %v10070_v22 = vpop.permute.xlu1 %10069  ;;  %v8820_v10 = vpop.f32.mrf.mxu1  ;;  %v12568_v8 = vmul.f32 %v1677_v56, %v1661_v9  ;;  %v10036_v52 = vunpack.i.l.bf16 %v12517_v54  ;;  %v1662_v48 = vsel %vm1650_vm0, %v1645_v49, %v10062_v46  ;;  %v12582_v39 = vsel %vm1707_vm1, 0.0, %v16450_v55 }
 0x2ad   : > { %v12571_v26 = vadd.f32 %v2226_v51, %v12436_v53  ;;  %16482 = vst [vmem:[#allocation35_spill] sm:$0xff] %v12582_v39  ;;  %vm16483_vm7 = vcmask 326656   ;;  %v1562_v61 = vsel %vm1548_vm10, %v1545_v6, %v10027_v47  ;;  %v10056_v30 = vunpack.i.l.bf16 %v10055_v3 }
 0x2ae   : > { %16481 = vst [vmem:[#allocation34_spill] sm:$0xff] %v12568_v8  ;;  %v2181_v12 = vpop.f32.mrf.mxu1  ;;  %v1496_v62 = vsel %vm16483_vm7, %v1479_v43, %v10022_v57  ;;  %vm16484_vm6 = vmmov %vm16483_vm7  ;;  %v1578_v23 = vsel %vm1565_vm11, %v1561_v42, %v10041_v34  ;;  %v12593_v49 = vadd.f32 %v2227_v20, %v12433_v29  ;;  %v10057_v9 = vunpack.i.h.bf16 %v10055_v3 }
 0x2af   : > { %v2228_v33 = vmul.f32 0.17677669, %v2181_v12  ;;  %v12586_v56 = vpop.permute.xlu0 %10064  ;;  %2262 = vmax.xlane.f32.xlu0 %v12566_v44  ;;  %2264 = vmax.xlane.f32.xlu1 %v12571_v26  ;;  %v1495_v46 = vsel %vm16484_vm6, %v1478_v16, %v10021_v59  ;;  %v12595_v43 = vmul.f32 %v1678_v0, %v1662_v48  ;;  %v2229_v6 = vmul.f32 0.17677669, %v8820_v10 }
 0x2b0   : > { %v10080_v51 = vpop.permute.xlu1 %10079  ;;  %v8823_v57 = vpop.f32.mrf.mxu1  ;;  %vm1709_vm3 = vcmp.gt.f32.partialorder %v12568_v8, 0.0  ;;  %v1579_v12 = vsel %vm1565_vm11, %v1562_v61, %v10042_v17  ;;  %v10037_v59 = vunpack.i.h.bf16 %v12517_v54  ;;  %vm16486_vm4 = vcmask 392192  }
 0x2b1   : > { %16485 = vst [vmem:[#allocation45_spill] sm:$0xff] %v12595_v43  ;;  %v12598_v47 = vadd.f32 %v2228_v33, %v12582_v39  ;;  %v1512_v16 = vsel %vm16486_vm4, %v1495_v46, %v10036_v52  ;;  %v10051_v34 = vunpack.i.l.bf16 %v12524_v15  ;;  %v1595_v3 = vsel %vm1582_vm12, %v1578_v23, %v10056_v30  ;;  %vm16488_vm1 = vmmov %vm16486_vm4 }
 0x2b2   : > { %v2191_v20 = vpop.f32.mrf.mxu1  ;;  %v10072_v42 = vunpack.i.h.bf16 %v10070_v22  ;;  %v10071_v0 = vunpack.i.l.bf16 %v10070_v22  ;;  %v1596_v33 = vsel %vm1582_vm12, %v1579_v12, %v10057_v9  ;;  %v10082_v17 = vunpack.i.h.bf16 %v10080_v51 }
 0x2b3   : > { %v2230_v48 = vmul.f32 0.17677669, %v2191_v20  ;;  %v10075_v10 = vpop.permute.xlu0 %10074  ;;  %2266 = vmax.xlane.f32.xlu0 %v12593_v49  ;;  %2268 = vmax.xlane.f32.xlu1 %v12598_v47  ;;  %v10081_v61 = vunpack.i.l.bf16 %v10080_v51  ;;  %v12612_v54 = vsel %vm1709_vm3, 0.0, %v16450_v55  ;;  %v12615_v30 = vadd.f32 %v2229_v6, %v12536_v40 }
 0x2b4   : > { %16487 = vst [vmem:[#allocation46_spill] sm:$0xff] %v12612_v54  ;;  %v10090_v52 = vpop.permute.xlu1 %10089  ;;  %vm1710_vm5 = vcmp.gt.f32.partialorder %v12595_v43, 0.0  ;;  %v2231_v22 = vmul.f32 0.17677669, %v8823_v57  ;;  %v1513_v23 = vsel %vm16488_vm1, %v1496_v62, %v10037_v59  ;;  %v10052_v9 = vunpack.i.h.bf16 %v12524_v15  ;;  %v8826_v50 = vpop.f32.mrf.mxu1 }
 0x2b5   : > { %v12619_v46 = vadd.f32 %v2230_v48, %v12612_v54  ;;  %v10092_v51 = vunpack.i.h.bf16 %v10090_v52  ;;  %v10091_v12 = vunpack.i.l.bf16 %v10090_v52  ;;  %v1529_v20 = vsel %vm1514_vm8, %v1512_v16, %v10051_v34 }
 0x2b6   : > { %v1612_v36 = vsel %vm1599_vm13, %v1595_v3, %v10071_v0  ;;  %v1613_v25 = vsel %vm1599_vm13, %v1596_v33, %v10072_v42  ;;  %v10067_v6 = vunpack.i.h.bf16 %v12586_v56  ;;  %v10066_v62 = vunpack.i.l.bf16 %v12586_v56  ;;  %v1679_v42 = vld [vmem:[%s16421_s23 + $0x60] sm:$0xff] }
 0x2b7   : > { %v10085_v63 = vpop.permute.xlu0 %10084  ;;  %2270 = vmax.xlane.f32.xlu0 %v12615_v30  ;;  %2272 = vmax.xlane.f32.xlu1 %v12619_v46  ;;  %v1629_v15 = vsel %vm1616_vm14, %v1612_v36, %v10081_v61  ;;  %v1630_v57 = vsel %vm1616_vm14, %v1613_v25, %v10082_v17  ;;  %v12635_v59 = vsel %vm1710_vm5, 0.0, %v16450_v55  ;;  %v10076_v3 = vunpack.i.l.bf16 %v10075_v10  ;;  %v1680_v36 = vld [vmem:[%s16421_s23 + $0x68] sm:$0xff]  ;;  %v2201_v61 = vpop.f32.mrf.mxu1 }
 0x2b8   : > { %16489 = vst [vmem:[#allocation47_spill] sm:$0xff] %v12635_v59  ;;  %v10100_v16 = vpop.permute.xlu1 %10099  ;;  %v12638_v34 = vadd.f32 %v2231_v22, %v12635_v59  ;;  %v1530_v0 = vsel %vm1514_vm8, %v1513_v23, %v10052_v9  ;;  %v10077_v48 = vunpack.i.h.bf16 %v10075_v10  ;;  %v1646_v33 = vsel %vm1633_vm15, %v1629_v15, %v10091_v12 }
 0x2b9   : > { %v10102_v56 = vunpack.i.h.bf16 %v10100_v16  ;;  %v10101_v25 = vunpack.i.l.bf16 %v10100_v16  ;;  %v1647_v17 = vsel %vm1633_vm15, %v1630_v57, %v10092_v51  ;;  %v10087_v52 = vunpack.i.h.bf16 %v10085_v63 }
 0x2ba   : > { %v10086_v22 = vunpack.i.l.bf16 %v10085_v63  ;;  %v1546_v43 = vsel %vm1531_vm9, %v1529_v20, %v10066_v62  ;;  %v1547_v16 = vsel %vm1531_vm9, %v1530_v0, %v10067_v6  ;;  %v2233_v12 = vmul.f32 0.17677669, %v8826_v50 }
 0x2bb   : > { %v1663_v19 = vsel %vm1650_vm0, %v1646_v33, %v10101_v25  ;;  %v1664_v60 = vsel %vm1650_vm0, %v1647_v17, %v10102_v56  ;;  %v10095_v8 = vpop.permute.xlu0 %10094  ;;  %2274 = vmax.xlane.f32.xlu0 %v12638_v34  ;;  %v1563_v51 = vsel %vm1548_vm10, %v1546_v43, %v10076_v3  ;;  %v1564_v57 = vsel %vm1548_vm10, %v1547_v16, %v10077_v48 }
 0x2bc   : > { %v12654_v23 = vmul.f32 %v1679_v42, %v1663_v19  ;;  %v12656_v10 = vmul.f32 %v1680_v36, %v1664_v60  ;;  %v10110_v9 = vpop.permute.xlu1 %10109  ;;  %v10097_v63 = vunpack.i.h.bf16 %v10095_v8  ;;  %v10096_v15 = vunpack.i.l.bf16 %v10095_v8 }
 0x2bd   : > { %v2232_v56 = vmul.f32 0.17677669, %v2201_v61  ;;  %v1580_v20 = vsel %vm1565_vm11, %v1563_v51, %v10086_v22  ;;  %v1581_v19 = vsel %vm1565_vm11, %v1564_v57, %v10087_v52  ;;  %v10112_v0 = vunpack.i.h.bf16 %v10110_v9  ;;  %v8829_v61 = vpop.f32.mrf.mxu1 }
 0x2be   : > { %16490 = vst [vmem:[#allocation48_spill] sm:$0xff] %v12654_v23  ;;  %16491 = vst [vmem:[#allocation49_spill] sm:$0xff] %v12656_v10  ;;  %vm1712_vm8 = vcmp.gt.f32.partialorder %v12656_v10, 0.0  ;;  %vm1711_vm7 = vcmp.gt.f32.partialorder %v12654_v23, 0.0  ;;  %v1597_v36 = vsel %vm1582_vm12, %v1580_v20, %v10096_v15  ;;  %v1598_v25 = vsel %vm1582_vm12, %v1581_v19, %v10097_v63  ;;  %v1682_v63 = vld [vmem:[%s16421_s23 + $0x78] sm:$0xff] }
 0x2bf   : > { %v10105_v6 = vpop.permute.xlu0 %10104  ;;  %v12665_v60 = vsel %vm1712_vm8, 0.0, %v16450_v55  ;;  %v12668_v43 = vsel %vm1711_vm7, 0.0, %v16450_v55  ;;  %v10111_v48 = vunpack.i.l.bf16 %v10110_v9  ;;  %v1681_v9 = vld [vmem:[%s16421_s23 + $0x70] sm:$0xff] }
 0x2c0   : > { %16492 = vst [vmem:[#allocation50_spill] sm:$0xff] %v12665_v60  ;;  %16493 = vst [vmem:[#allocation51_spill] sm:$0xff] %v12668_v43  ;;  %v10107_v50 = vunpack.i.h.bf16 %v10105_v6  ;;  %v10106_v8 = vunpack.i.l.bf16 %v10105_v6  ;;  %v10120_v62 = vpop.permute.xlu1 %10119  ;;  %v12671_v3 = vadd.f32 %v2233_v12, %v12665_v60  ;;  %v12674_v42 = vadd.f32 %v2232_v56, %v12668_v43  ;;  %v2211_v6 = vpop.f32.mrf.mxu1 }
 0x2c1   : > { %v10122_v52 = vunpack.i.h.bf16 %v10120_v62  ;;  %v10121_v22 = vunpack.i.l.bf16 %v10120_v62 }
 0x2c2   : > { %v1614_v33 = vsel %vm1599_vm13, %v1597_v36, %v10106_v8  ;;  %v1615_v17 = vsel %vm1599_vm13, %v1598_v25, %v10107_v50  ;;  %2278 = vmax.xlane.f32.xlu0 %v12671_v3  ;;  %2276 = vmax.xlane.f32.xlu1 %v12674_v42  ;;  %v2235_v25 = vmul.f32 0.17677669, %v8829_v61 }
 0x2c3   : > { %v10115_v16 = vpop.permute.xlu0 %10114  ;;  %v1631_v15 = vsel %vm1616_vm14, %v1614_v33, %v10111_v48  ;;  %v1632_v56 = vsel %vm1616_vm14, %v1615_v17, %v10112_v0 }
 0x2c4   : > { %v10117_v51 = vunpack.i.h.bf16 %v10115_v16  ;;  %v10116_v12 = vunpack.i.l.bf16 %v10115_v16  ;;  %v12682_v57 = vpop.permute.xlu1 %3132  ;;  %v2234_v16 = vmul.f32 0.17677669, %v2211_v6 }
 0x2c5   : > { %8942 = vmatprep.subr.mxu0 %v12682_v57 }
 0x2c6   : > { %v1648_v20 = vsel %vm1633_vm15, %v1631_v15, %v10116_v12  ;;  %v1649_v19 = vsel %vm1633_vm15, %v1632_v56, %v10117_v51 }
 0x2c7   : > { %v1665_v50 = vsel %vm1650_vm0, %v1648_v20, %v10121_v22  ;;  %v1666_v8 = vsel %vm1650_vm0, %v1649_v19, %v10122_v52 }
 0x2c8   : > { %v12697_v62 = vmul.f32 %v1681_v9, %v1665_v50  ;;  %v12699_v36 = vmul.f32 %v1682_v63, %v1666_v8 }
 0x2ca   : > { %16494 = vst [vmem:[#allocation52_spill] sm:$0xff] %v12697_v62  ;;  %16495 = vst [vmem:[#allocation53_spill] sm:$0xff] %v12699_v36  ;;  %vm1714_vm10 = vcmp.gt.f32.partialorder %v12699_v36, 0.0  ;;  %vm1713_vm11 = vcmp.gt.f32.partialorder %v12697_v62, 0.0 }
 0x2cb   : > { %v12704_v0 = vsel %vm1714_vm10, 0.0, %v16450_v55  ;;  %v12707_v48 = vsel %vm1713_vm11, 0.0, %v16450_v55 }
 0x2cc   : > { %16496 = vst [vmem:[#allocation54_spill] sm:$0xff] %v12704_v0  ;;  %16497 = vst [vmem:[#allocation55_spill] sm:$0xff] %v12707_v48  ;;  %v12710_v33 = vadd.f32 %v2235_v25, %v12704_v0  ;;  %v12713_v17 = vadd.f32 %v2234_v16, %v12707_v48 }
 0x2ce   : > { %2282 = vmax.xlane.f32.xlu0 %v12710_v33  ;;  %2280 = vmax.xlane.f32.xlu1 %v12713_v17 }
 0x2dd   : > { %v8920_v61 = vpop.f32.mrf.mxu1 }
 0x2de   : > { %v2863_v52 = vmul.f32 0.17677669, %v8920_v61 }
 0x2df   : > { %v2783_v22 = vpop.f32.mrf.mxu1 }
 0x2e0   : > { %v12718_v51 = vadd.f32 %v2863_v52, %v12118_v41  ;;  %v2862_v12 = vmul.f32 0.17677669, %v2783_v22 }
 0x2e1   : > { %v8923_v9 = vpop.f32.mrf.mxu1 }
 0x2e2   : > { %v12721_v55 = vadd.f32 %v2862_v12, %v12123_v11  ;;  %v2865_v63 = vmul.f32 0.17677669, %v8923_v9  ;;  %2896 = vmax.xlane.f32.xlu0 %v12718_v51 }
 0x2e3   : > { %v2793_v15 = vpop.f32.mrf.mxu1 }
 0x2e4   : > { %v12725_v56 = vadd.f32 %v2865_v63, %v12267_v35  ;;  %v2864_v20 = vmul.f32 0.17677669, %v2793_v15  ;;  %2894 = vmax.xlane.f32.xlu1 %v12721_v55 }
 0x2e5   : > { %v8926_v19 = vpop.f32.mrf.mxu1 }
 0x2e6   : > { %v12729_v6 = vadd.f32 %v2864_v20, %v12272_v5  ;;  %v2867_v50 = vmul.f32 0.17677669, %v8926_v19  ;;  %2900 = vmax.xlane.f32.xlu0 %v12725_v56 }
 0x2e7   : > { %v2803_v8 = vpop.f32.mrf.mxu1 }
 0x2e8   : > { %v12733_v25 = vadd.f32 %v2867_v50, %v12329_v24  ;;  %v2866_v16 = vmul.f32 0.17677669, %v2803_v8  ;;  %2898 = vmax.xlane.f32.xlu1 %v12729_v6 }
 0x2e9   : > { %v8929_v61 = vpop.f32.mrf.mxu1 }
 0x2ea   : > { %v12737_v52 = vadd.f32 %v2866_v16, %v12332_v2  ;;  %v2869_v22 = vmul.f32 0.17677669, %v8929_v61  ;;  %2904 = vmax.xlane.f32.xlu0 %v12733_v25 }
 0x2eb   : > { %v2813_v12 = vpop.f32.mrf.mxu1 }
 0x2ec   : > { %v12741_v9 = vadd.f32 %v2869_v22, %v12433_v29  ;;  %v2868_v63 = vmul.f32 0.17677669, %v2813_v12  ;;  %2902 = vmax.xlane.f32.xlu1 %v12737_v52 }
 0x2ed   : > { %v8932_v15 = vpop.f32.mrf.mxu1 }
 0x2ee   : > { %v12745_v20 = vadd.f32 %v2868_v63, %v12436_v53  ;;  %v2871_v19 = vmul.f32 0.17677669, %v8932_v15  ;;  %2908 = vmax.xlane.f32.xlu0 %v12741_v9 }
 0x2ef   : > { %v2823_v50 = vpop.f32.mrf.mxu1 }
 0x2f0   : > { %v12749_v8 = vadd.f32 %v2871_v19, %v12536_v40  ;;  %v2870_v16 = vmul.f32 0.17677669, %v2823_v50  ;;  %2906 = vmax.xlane.f32.xlu1 %v12745_v20 }
 0x2f1   : > { %v8935_v61 = vpop.f32.mrf.mxu1 }
 0x2f2   : > { %v12753_v22 = vadd.f32 %v2870_v16, %v12582_v39  ;;  %v2873_v12 = vmul.f32 0.17677669, %v8935_v61  ;;  %2912 = vmax.xlane.f32.xlu0 %v12749_v8 }
 0x2f3   : > { %v2833_v29 = vpop.f32.mrf.mxu1 }
 0x2f4   : > { %v12757_v63 = vadd.f32 %v2873_v12, %v12635_v59  ;;  %v2872_v15 = vmul.f32 0.17677669, %v2833_v29  ;;  %2910 = vmax.xlane.f32.xlu1 %v12753_v22  ;;  %v12773_v29 = vpop.permute.xlu1 %3128  ;;  %v12779_v59 = vpop.permute.xlu0 %3130 }
 0x2f5   : > { %v8938_v53 = vpop.f32.mrf.mxu1 }
 0x2f6   : > { %v12761_v19 = vadd.f32 %v2872_v15, %v12612_v54  ;;  %v2875_v50 = vmul.f32 0.17677669, %v8938_v53  ;;  %2916 = vmax.xlane.f32.xlu0 %v12757_v63 }
 0x2f7   : > { %v2843_v40 = vpop.f32.mrf.mxu1 }
 0x2f8   : > { %v12765_v16 = vadd.f32 %v2875_v50, %v12665_v60  ;;  %v2874_v61 = vmul.f32 0.17677669, %v2843_v40  ;;  %2914 = vmax.xlane.f32.xlu1 %v12761_v19  ;;  %v12775_v15 = vpop.permute.xlu1 %3126  ;;  %v12783_v40 = vpop.permute.xlu0 %3122 }
 0x2f9   : > { %16498 = vst [vmem:[#allocation56_spill] sm:$0xff] %v12775_v15  ;;  %16501 = vst [vmem:[#allocation59_spill] sm:$0xff] %v12783_v40 }
 0x2fa   : > { %v12769_v12 = vadd.f32 %v2874_v61, %v12668_v43  ;;  %2920 = vmax.xlane.f32.xlu0 %v12765_v16 }
 0x2fc   : > { %2918 = vmax.xlane.f32.xlu1 %v12769_v12  ;;  %v12777_v53 = vpop.permute.xlu1 %3124  ;;  %v12787_v61 = vpop.permute.xlu0 %3116 }
 0x2fd   : > { %16499 = vst [vmem:[#allocation57_spill] sm:$0xff] %v12777_v53  ;;  %16503 = vst [vmem:[#allocation61_spill] sm:$0xff] %v12787_v61 }
 0x300   : > { %v12781_v50 = vpop.permute.xlu1 %3120  ;;  %v12791_v54 = vpop.permute.xlu0 %3114 }
 0x301   : > { %16500 = vst [vmem:[#allocation58_spill] sm:$0xff] %v12781_v50  ;;  %16505 = vst [vmem:[#allocation63_spill] sm:$0xff] %v12791_v54 }
 0x304   : > { %v12785_v60 = vpop.permute.xlu1 %3118  ;;  %v12795_v24 = vpop.permute.xlu0 %3108 }
 0x305   : > { %16502 = vst [vmem:[#allocation60_spill] sm:$0xff] %v12785_v60  ;;  %16507 = vst [vmem:[#allocation65_spill] sm:$0xff] %v12795_v24 }
 0x308   : > { %v12789_v43 = vpop.permute.xlu1 %3112 }
 0x309   : > { %16504 = vst [vmem:[#allocation62_spill] sm:$0xff] %v12789_v43 }
 0x30c   : > { %v12793_v39 = vpop.permute.xlu1 %3110 }
 0x30d   : > { %16506 = vst [vmem:[#allocation64_spill] sm:$0xff] %v12793_v39 }
 0x32a   : > { %v2255_v2 = vpop.xlane.xlu1 %2254 }
 0x32b   : > { %v2285_v5 = vsub.f32 %v12493_v38, %v2255_v2 }
 0x32c   : > { %v2253_v35 = vpop.xlane.xlu0 %2252 }
 0x32d   : > { %v2302_v11 = vmul.f32 1.442695, %v2285_v5  ;;  %v2284_v41 = vsub.f32 %v12507_v27, %v2253_v35 }
 0x32f   : > { %10126 = vpow2.f32 %v2302_v11  ;;  %v2300_v50 = vmul.f32 1.442695, %v2284_v41 }
 0x330   : > { %v2259_v60 = vpop.xlane.xlu0 %2258 }
 0x331   : > { %10128 = vpow2.f32 %v2300_v50  ;;  %v2287_v61 = vsub.f32 %v12530_v32, %v2259_v60 }
 0x333   : > { %v2306_v43 = vmul.f32 1.442695, %v2287_v61 }
 0x334   : > { %v2257_v40 = vpop.xlane.xlu0 %2256  ;;  %v2261_v54 = vpop.xlane.xlu1 %2260 }
 0x335   : > { %10130 = vpow2.f32 %v2306_v43  ;;  %v2286_v39 = vsub.f32 %v12545_v4, %v2257_v40  ;;  %v2288_v24 = vsub.f32 %v12548_v1, %v2261_v54  ;;  %v8941_v53 = vpop.f32.mrf.mxu1 }
 0x336   : > { %v2877_v2 = vmul.f32 0.17677669, %v8941_v53 }
 0x337   : > { %v2304_v38 = vmul.f32 1.442695, %v2286_v39  ;;  %v2308_v5 = vmul.f32 1.442695, %v2288_v24  ;;  %v2853_v15 = vpop.f32.mrf.mxu1 }
 0x338   : > { %v12803_v11 = vadd.f32 %v2877_v2, %v12704_v0  ;;  %v2876_v41 = vmul.f32 0.17677669, %v2853_v15  ;;  %v2263_v35 = vpop.xlane.xlu0 %2262  ;;  %v2265_v27 = vpop.xlane.xlu1 %2264 }
 0x339   : > { %10132 = vpow2.f32 %v2304_v38  ;;  %v2289_v32 = vsub.f32 %v12566_v44, %v2263_v35  ;;  %v2290_v60 = vsub.f32 %v12571_v26, %v2265_v27 }
 0x33a   : > { %v12808_v4 = vadd.f32 %v2876_v41, %v12707_v48  ;;  %2924 = vmax.xlane.f32.xlu0 %v12803_v11  ;;  %10134 = vpow2.f32 %v2308_v5 }
 0x33b   : > { %v2310_v1 = vmul.f32 1.442695, %v2289_v32  ;;  %v2312_v24 = vmul.f32 1.442695, %v2290_v60 }
 0x33c   : > { %v10127_v39 = vpop.eup %10126  ;;  %2922 = vmax.xlane.f32.xlu1 %v12808_v4  ;;  %v2267_v54 = vpop.xlane.xlu0 %2266 }
 0x33d   : > { %v2269_v43 = vpop.xlane.xlu1 %2268  ;;  %10136 = vpow2.f32 %v2310_v1  ;;  %v2291_v15 = vsub.f32 %v12593_v49, %v2267_v54  ;;  %v12815_v26 = vmul.f32 %v10127_v39, %v12071_v31 }
 0x33e   : > { %v2292_v44 = vsub.f32 %v12598_v47, %v2269_v43  ;;  %v10129_v53 = vpop.eup %10128  ;;  %10138 = vpow2.f32 %v2312_v24 }
 0x33f   : > { %v2314_v50 = vmul.f32 1.442695, %v2291_v15  ;;  %2350 = vadd.xlane.f32.xlu0 %v12815_v26  ;;  %v12819_v61 = vmul.f32 %v10129_v53, %v12069_v37 }
 0x340   : > { %v2316_v40 = vmul.f32 1.442695, %v2292_v44  ;;  %v2271_v2 = vpop.xlane.xlu0 %2270 }
 0x341   : > { %v2273_v38 = vpop.xlane.xlu1 %2272  ;;  %10140 = vpow2.f32 %v2314_v50  ;;  %v2293_v5 = vsub.f32 %v12615_v30, %v2271_v2  ;;  %2348 = vadd.xlane.f32.xlu1 %v12819_v61 }
 0x342   : > { %v2294_v49 = vsub.f32 %v12619_v46, %v2273_v38  ;;  %v10131_v47 = vpop.eup %10130  ;;  %10142 = vpow2.f32 %v2316_v40 }
 0x343   : > { %v2318_v41 = vmul.f32 1.442695, %v2293_v5  ;;  %v12825_v27 = vmul.f32 %v10131_v47, %v12219_v28 }
 0x344   : > { %v2320_v35 = vmul.f32 1.442695, %v2294_v49  ;;  %v2275_v32 = vpop.xlane.xlu0 %2274 }
 0x345   : > { %10144 = vpow2.f32 %v2318_v41  ;;  %v2295_v60 = vsub.f32 %v12638_v34, %v2275_v32  ;;  %2354 = vadd.xlane.f32.xlu0 %v12825_v27 }
 0x346   : > { %v10133_v1 = vpop.eup %10132  ;;  %10146 = vpow2.f32 %v2320_v35 }
 0x347   : > { %v2322_v30 = vmul.f32 1.442695, %v2295_v60  ;;  %v12830_v46 = vmul.f32 %v10133_v1, %v12217_v13  ;;  %v10135_v24 = vpop.eup %10134 }
 0x348   : > { %v12837_v34 = vmul.f32 %v10135_v24, %v12290_v7 }
 0x349   : > { %10148 = vpow2.f32 %v2322_v30  ;;  %2352 = vadd.xlane.f32.xlu1 %v12830_v46  ;;  %v16508_v30 = vld [vmem:[#allocation45_spill] sm:$0xff] }
 0x34a   : > { %v10137_v39 = vpop.eup %10136 }
 0x34b   : > { %v2279_v54 = vpop.xlane.xlu0 %2278  ;;  %v2277_v43 = vpop.xlane.xlu1 %2276  ;;  %v12834_v15 = vmul.f32 %v10137_v39, %v12292_v18  ;;  %v16509_v39 = vld [vmem:[#allocation34_spill] sm:$0xff] }
 0x34c   : > { %v10139_v44 = vpop.eup %10138  ;;  %v2297_v53 = vsub.f32 %v12671_v3, %v2279_v54  ;;  %v2296_v50 = vsub.f32 %v12674_v42, %v2277_v43 }
 0x34d   : > { %2358 = vadd.xlane.f32.xlu0 %v12834_v15  ;;  %2356 = vadd.xlane.f32.xlu1 %v12837_v34  ;;  %v12847_v49 = vmul.f32 %v10139_v44, %v12396_v21 }
 0x34e   : > { %v10141_v40 = vpop.eup %10140  ;;  %v2326_v2 = vmul.f32 1.442695, %v2297_v53  ;;  %v2324_v38 = vmul.f32 1.442695, %v2296_v50 }
 0x34f   : > { %v12844_v5 = vmul.f32 %v10141_v40, %v12398_v58  ;;  %v10143_v47 = vpop.eup %10142 }
 0x350   : > { %10150 = vpow2.f32 %v2326_v2  ;;  %v12855_v41 = vmul.f32 %v10143_v47, %v12498_v45 }
 0x351   : > { %10152 = vpow2.f32 %v2324_v38  ;;  %2362 = vadd.xlane.f32.xlu0 %v12844_v5  ;;  %2360 = vadd.xlane.f32.xlu1 %v12847_v49 }
 0x352   : > { %v10145_v3 = vpop.eup %10144 }
 0x353   : > { %v12852_v42 = vmul.f32 %v10145_v3, %v12490_v14  ;;  %v10147_v35 = vpop.eup %10146 }
 0x354   : > { %v12863_v54 = vmul.f32 %v10147_v35, %v16509_v39 }
 0x355   : > { %2366 = vadd.xlane.f32.xlu0 %v12852_v42  ;;  %2364 = vadd.xlane.f32.xlu1 %v12855_v41 }
 0x356   : > { %v10149_v32 = vpop.eup %10148 }
 0x357   : > { %v2283_v60 = vpop.xlane.xlu0 %2282  ;;  %v2281_v1 = vpop.xlane.xlu1 %2280  ;;  %v12860_v24 = vmul.f32 %v10149_v32, %v16508_v30 }
 0x358   : > { %v2299_v43 = vsub.f32 %v12710_v33, %v2283_v60  ;;  %v2298_v44 = vsub.f32 %v12713_v17, %v2281_v1 }
 0x359   : > { %2370 = vadd.xlane.f32.xlu0 %v12860_v24  ;;  %2368 = vadd.xlane.f32.xlu1 %v12863_v54 }
 0x35a   : > { %v2330_v53 = vmul.f32 1.442695, %v2299_v43  ;;  %v2328_v50 = vmul.f32 1.442695, %v2298_v44 }
 0x35c   : > { %10154 = vpow2.f32 %v2330_v53 }
 0x35d   : > { %v10151_v40 = vpop.eup %10150  ;;  %10156 = vpow2.f32 %v2328_v50 }
 0x35e   : > { %v10153_v2 = vpop.eup %10152  ;;  %v12870_v38 = vmul.f32 %v10151_v40, %v12656_v10 }
 0x35f   : > { %v12873_v47 = vmul.f32 %v10153_v2, %v12654_v23 }
 0x360   : > { %2374 = vadd.xlane.f32.xlu0 %v12870_v38 }
 0x361   : > { %2372 = vadd.xlane.f32.xlu1 %v12873_v47 }
 0x369   : > { %v10155_v33 = vpop.eup %10154 }
 0x36a   : > { %v10157_v17 = vpop.eup %10156  ;;  %v12878_v3 = vmul.f32 %v10155_v33, %v12699_v36 }
 0x36b   : > { %v2897_v35 = vpop.xlane.xlu0 %2896  ;;  %v12881_v32 = vmul.f32 %v10157_v17, %v12697_v62 }
 0x36c   : > { %v2927_v60 = vsub.f32 %v12718_v51, %v2897_v35  ;;  %2378 = vadd.xlane.f32.xlu0 %v12878_v3 }
 0x36d   : > { %2376 = vadd.xlane.f32.xlu1 %v12881_v32  ;;  %v2895_v1 = vpop.xlane.xlu1 %2894 }
 0x36e   : > { %v2944_v43 = vmul.f32 1.442695, %v2927_v60  ;;  %v2926_v44 = vsub.f32 %v12721_v55, %v2895_v1 }
 0x36f   : > { %v2901_v53 = vpop.xlane.xlu0 %2900 }
 0x370   : > { %10158 = vpow2.f32 %v2944_v43  ;;  %v2942_v50 = vmul.f32 1.442695, %v2926_v44  ;;  %v2929_v40 = vsub.f32 %v12725_v56, %v2901_v53 }
 0x371   : > { %v2899_v2 = vpop.xlane.xlu1 %2898 }
 0x372   : > { %10160 = vpow2.f32 %v2942_v50  ;;  %v2948_v33 = vmul.f32 1.442695, %v2929_v40  ;;  %v2928_v17 = vsub.f32 %v12729_v6, %v2899_v2 }
 0x373   : > { %v2905_v0 = vpop.xlane.xlu0 %2904 }
 0x374   : > { %v2946_v51 = vmul.f32 1.442695, %v2928_v17  ;;  %v2931_v35 = vsub.f32 %v12733_v25, %v2905_v0  ;;  %10162 = vpow2.f32 %v2948_v33 }
 0x375   : > { %v2903_v48 = vpop.xlane.xlu1 %2902 }
 0x376   : > { %10164 = vpow2.f32 %v2946_v51  ;;  %v2952_v60 = vmul.f32 1.442695, %v2931_v35  ;;  %v2930_v55 = vsub.f32 %v12737_v52, %v2903_v48 }
 0x377   : > { %v2909_v1 = vpop.xlane.xlu0 %2908 }
 0x378   : > { %v2950_v43 = vmul.f32 1.442695, %v2930_v55  ;;  %v2933_v44 = vsub.f32 %v12741_v9, %v2909_v1  ;;  %10166 = vpow2.f32 %v2952_v60  ;;  %v16510_v60 = vld [vmem:[#allocation29_spill] sm:$0xff] }
 0x379   : > { %v2907_v55 = vpop.xlane.xlu1 %2906 }
 0x37a   : > { %10168 = vpow2.f32 %v2950_v43  ;;  %v2956_v56 = vmul.f32 1.442695, %v2933_v44  ;;  %v2932_v1 = vsub.f32 %v12745_v20, %v2907_v55  ;;  %v16511_v44 = vld [vmem:[#allocation28_spill] sm:$0xff] }
 0x37c   : > { %10170 = vpow2.f32 %v2956_v56  ;;  %v12925_v56 = vpop.xlane.xlu0 %2912 }
 0x37d   : > { %v10159_v53 = vpop.eup %10158  ;;  %v2911_v43 = vpop.xlane.xlu1 %2910 }
 0x37e   : > { %v12893_v6 = vmul.f32 %v10159_v53, %v12071_v31  ;;  %v2954_v53 = vmul.f32 1.442695, %v2932_v1 }
 0x37f   : > { %v10161_v50 = vpop.eup %10160 }
 0x380   : > { %2992 = vadd.xlane.f32.xlu0 %v12893_v6  ;;  %v12897_v25 = vmul.f32 %v10161_v50, %v12069_v37  ;;  %v2934_v50 = vsub.f32 %v12753_v22, %v2911_v43  ;;  %10172 = vpow2.f32 %v2954_v53 }
 0x381   : > { %v10163_v0 = vpop.eup %10162 }
 0x382   : > { %v12905_v40 = vmul.f32 %v10163_v0, %v12219_v28  ;;  %v2915_v0 = vpop.xlane.xlu1 %2914 }
 0x383   : > { %v10165_v48 = vpop.eup %10164 }
 0x384   : > { %2990 = vadd.xlane.f32.xlu0 %v12897_v25  ;;  %v12901_v52 = vmul.f32 %v10165_v48, %v12217_v13  ;;  %v2917_v48 = vpop.xlane.xlu0 %2916 }
 0x385   : > { %v10167_v9 = vpop.eup %10166 }
 0x386   : > { %2994 = vadd.xlane.f32.xlu1 %v12901_v52  ;;  %v12913_v17 = vmul.f32 %v10167_v9, %v12292_v18  ;;  %v2958_v9 = vmul.f32 1.442695, %v2934_v50 }
 0x387   : > { %v10169_v2 = vpop.eup %10168 }
 0x388   : > { %2996 = vadd.xlane.f32.xlu0 %v12905_v40  ;;  %v12909_v33 = vmul.f32 %v10169_v2, %v12290_v7  ;;  %v2936_v2 = vsub.f32 %v12761_v19, %v2915_v0  ;;  %10174 = vpow2.f32 %v2958_v9  ;;  %v2921_v20 = vpop.xlane.xlu0 %2920  ;;  %v12935_v19 = vpop.xlane.xlu1 %2918 }
 0x389   : > { %v10171_v51 = vpop.eup %10170  ;;  %v2939_v18 = vsub.f32 %v12765_v16, %v2921_v20 }
 0x38a   : > { %2998 = vadd.xlane.f32.xlu1 %v12909_v33  ;;  %v12917_v35 = vmul.f32 %v10171_v51, %v12398_v58  ;;  %v2937_v51 = vsub.f32 %v12757_v63, %v2917_v48  ;;  %v2962_v58 = vmul.f32 1.442695, %v2936_v2 }
 0x38b   : > { %v2968_v1 = vmul.f32 1.442695, %v2939_v18 }
 0x38c   : > { %3000 = vadd.xlane.f32.xlu0 %v12913_v17  ;;  %v2964_v55 = vmul.f32 1.442695, %v2937_v51  ;;  %10176 = vpow2.f32 %v2962_v58 }
 0x38d   : > { %v10173_v7 = vpop.eup %10172 }
 0x38e   : > { %10178 = vpow2.f32 %v2964_v55  ;;  %v12932_v22 = vmul.f32 %v10173_v7, %v12396_v21 }
 0x38f   : > { %10180 = vpow2.f32 %v2968_v1 }
 0x390   : > { %3004 = vadd.xlane.f32.xlu0 %v12917_v35 }
 0x395   : > { %v10175_v43 = vpop.eup %10174 }
 0x396   : > { %v12938_v63 = vmul.f32 %v10175_v43, %v12498_v45  ;;  %v16512_v43 = vld [vmem:[#allocation30_spill] sm:$0xff] }
 0x399   : > { %v10177_v50 = vpop.eup %10176 }
 0x39a   : > { %v12945_v7 = vmul.f32 %v10177_v50, %v16509_v39 }
 0x39b   : > { %3104 = vrot.lane.b32.xlu1 %v16510_v60, %s16389_s24  ;;  %v10179_v0 = vpop.eup %10178 }
 0x39c   : > { %v12949_v51 = vmul.f32 %v10179_v0, %v16508_v30 }
 0x3a6   : > { %3106 = vrot.lane.b32.xlu0 %v16511_v44, %s16389_s24 }
 0x3bf   : > { %3002 = vadd.xlane.f32.xlu1 %v12932_v22 }
 0x3c3   : > { %v2925_v53 = vpop.xlane.xlu0 %2924 }
 0x3c4   : > { %v2941_v58 = vsub.f32 %v12803_v11, %v2925_v53  ;;  %v10181_v11 = vpop.eup %10180 }
 0x3c5   : > { %3006 = vadd.xlane.f32.xlu0 %v12938_v63  ;;  %v12942_v18 = vpop.xlane.xlu1 %2922  ;;  %v12953_v1 = vmul.f32 %v10181_v11, %v12656_v10 }
 0x3c6   : > { %v2972_v16 = vmul.f32 1.442695, %v2941_v58 }
 0x3c8   : > { %10182 = vpow2.f32 %v2972_v16  ;;  %v2351_v48 = vpop.xlane.xlu0 %2350 }
 0x3c9   : > { %vm2381_vm12 = vcmp.gt.f32.partialorder %v2351_v48, 0.0  ;;  %3010 = vadd.xlane.f32.xlu0 %v12945_v7 }
 0x3ca   : > { %v2397_v9 = vsel %vm2381_vm12, %v2351_v48, 1.0  ;;  %v2349_v2 = vpop.xlane.xlu1 %2348 }
 0x3cb   : > { %vm2380_vm13 = vcmp.gt.f32.partialorder %v2349_v2, 0.0  ;;  %10184 = vrcp.f32 %v2397_v9 }
 0x3cc   : > { %v2396_v20 = vsel %vm2380_vm13, %v2349_v2, 1.0  ;;  %v2935_v2 = vsub.f32 %v12749_v8, %v12925_v56  ;;  %v2938_v8 = vsub.f32 %v12769_v12, %v12935_v19 }
 0x3cd   : > { %10186 = vrcp.f32 %v2396_v20  ;;  %3012 = vadd.xlane.f32.xlu0 %v12949_v51 }
 0x3ce   : > { %v2355_v55 = vpop.xlane.xlu0 %2354 }
 0x3cf   : > { %vm2383_vm14 = vcmp.gt.f32.partialorder %v2355_v55, 0.0 }
 0x3d0   : > { %3102 = vrot.lane.b32.xlu1 %v16512_v43, %s16389_s24  ;;  %v2399_v53 = vsel %vm2383_vm14, %v2355_v55, 1.0 }
 0x3d1   : > { %3016 = vadd.xlane.f32.xlu0 %v12953_v1  ;;  %10188 = vrcp.f32 %v2399_v53 }
 0x3d2   : > { %v2353_v50 = vpop.xlane.xlu1 %2352 }
 0x3d3   : > { %vm2382_vm15 = vcmp.gt.f32.partialorder %v2353_v50, 0.0 }
 0x3d4   : > { %v2398_v58 = vsel %vm2382_vm15, %v2353_v50, 1.0 }
 0x3d5   : > { %v10183_v16 = vpop.eup %10182  ;;  %10190 = vrcp.f32 %v2398_v58 }
 0x3d6   : > { %v2359_v0 = vpop.xlane.xlu0 %2358  ;;  %v2357_v48 = vpop.xlane.xlu1 %2356  ;;  %v12959_v9 = vmul.f32 %v10183_v16, %v12699_v36  ;;  %v2960_v36 = vmul.f32 1.442695, %v2935_v2 }
 0x3d7   : > { %vm2385_vm0 = vcmp.gt.f32.partialorder %v2359_v0, 0.0  ;;  %vm2384_vm6 = vcmp.gt.f32.partialorder %v2357_v48, 0.0 }
 0x3d8   : > { %v2401_v11 = vsel %vm2385_vm0, %v2359_v0, 1.0  ;;  %v2400_v20 = vsel %vm2384_vm6, %v2357_v48, 1.0  ;;  %3020 = vadd.xlane.f32.xlu0 %v12959_v9  ;;  %v10185_v55 = vpop.eup %10184 }
 0x3d9   : > { %10192 = vrcp.f32 %v2401_v11  ;;  %v2429_v39 = vmul.f32 %v10185_v55, %v12815_v26  ;;  %v2966_v26 = vmul.f32 1.442695, %v2938_v8  ;;  %v16513_v11 = vld [vmem:[#allocation56_spill] sm:$0xff]  ;;  %v16514_v55 = vld [vmem:[#allocation57_spill] sm:$0xff] }
 0x3da   : > { %v10187_v53 = vpop.eup %10186  ;;  %10194 = vrcp.f32 %v2400_v20  ;;  %v2363_v50 = vpop.xlane.xlu0 %2362 }
 0x3db   : > { %v2361_v58 = vpop.xlane.xlu1 %2360  ;;  %vm2387_vm3 = vcmp.gt.f32.partialorder %v2363_v50, 0.0  ;;  %v2428_v16 = vmul.f32 %v10187_v53, %v12819_v61 }
 0x3dc   : > { %vm2386_vm4 = vcmp.gt.f32.partialorder %v2361_v58, 0.0  ;;  %v2403_v10 = vsel %vm2387_vm3, %v2363_v50, 1.0 }
 0x3dd   : > { %v2402_v30 = vsel %vm2386_vm4, %v2361_v58, 1.0  ;;  %10196 = vrcp.f32 %v2403_v10  ;;  %8862 = vmatprep.mubr.f32.mxu0 %v2428_v16  ;;  %v16516_v16 = vld [vmem:[#allocation58_spill] sm:$0xff] }
 0x3de   : > { %10198 = vrcp.f32 %v2402_v30  ;;  %v2367_v56 = vpop.xlane.xlu0 %2366  ;;  %8863 = vmatmul.mubr.f32.vlgmr.msra.gmra.mxu0 %v2429_v39  ;;  %v10189_v2 = vpop.eup %10188 }
 0x3df   : > { %v2365_v0 = vpop.xlane.xlu1 %2364  ;;  %vm2389_vm5 = vcmp.gt.f32.partialorder %v2367_v56, 0.0  ;;  %8943 = vmatpush3.msra.mxu0 %v12682_v57  ;;  %10200 = vpow2.f32 %v2960_v36  ;;  %v2940_v57 = vsub.f32 %v12808_v4, %v12942_v18  ;;  %v16515_v18 = vld [vmem:[#allocation59_spill] sm:$0xff] }
 0x3e0   : > { %vm2388_vm1 = vcmp.gt.f32.partialorder %v2365_v0, 0.0  ;;  %v2405_v61 = vsel %vm2389_vm5, %v2367_v56, 1.0  ;;  %8944 = vmatprep.subr.mxu0 %v12779_v59 }
 0x3e1   : > { %v2404_v48 = vsel %vm2388_vm1, %v2365_v0, 1.0  ;;  %10202 = vrcp.f32 %v2405_v61  ;;  %8945 = vmatpush3.msra.mxu0 %v12779_v59  ;;  %v2431_v59 = vmul.f32 %v10189_v2, %v12825_v27 }
 0x3e2   : > { %v10191_v10 = vpop.eup %10190  ;;  %10204 = vrcp.f32 %v2404_v48  ;;  %8946 = vmatprep.subr.mxu0 %v12773_v29  ;;  %v2371_v12 = vpop.xlane.xlu0 %2370  ;;  %v16517_v48 = vld [vmem:[#allocation60_spill] sm:$0xff] }
 0x3e3   : > { %v2369_v30 = vpop.xlane.xlu1 %2368  ;;  %vm2391_vm8 = vcmp.gt.f32.partialorder %v2371_v12, 0.0  ;;  %8947 = vmatpush3.msra.mxu0 %v12773_v29  ;;  %v2430_v36 = vmul.f32 %v10191_v10, %v12830_v46  ;;  %v2970_v29 = vmul.f32 1.442695, %v2940_v57 }
 0x3e4   : > { %vm2390_vm7 = vcmp.gt.f32.partialorder %v2369_v30, 0.0  ;;  %v2407_v39 = vsel %vm2391_vm8, %v2371_v12, 1.0  ;;  %8948 = vmatprep.subr.mxu0 %v16513_v11 }
 0x3e5   : > { %v2406_v19 = vsel %vm2390_vm7, %v2369_v30, 1.0  ;;  %10206 = vrcp.f32 %v2407_v39  ;;  %8949 = vmatpush3.msra.mxu0 %v16513_v11  ;;  %8865 = vmatprep.mubr.f32.mxu0 %v2430_v36  ;;  %v16519_v30 = vld [vmem:[#allocation63_spill] sm:$0xff]  ;;  %v16520_v39 = vld [vmem:[#allocation62_spill] sm:$0xff]  ;;  %v16521_v11 = vld [vmem:[#allocation64_spill] sm:$0xff] }
 0x3e6   : > { %v10193_v20 = vpop.eup %10192  ;;  %10208 = vrcp.f32 %v2406_v19  ;;  %8950 = vmatprep.subr.mxu0 %v16514_v55  ;;  %8866 = vmatmul.mubr.f32.gmra.mxu0 %v2431_v59 }
 0x3e7   : > { %v10195_v4 = vpop.eup %10194  ;;  %10210 = vpow2.f32 %v2966_v26  ;;  %8951 = vmatpush3.msra.mxu0 %v16514_v55  ;;  %v2433_v46 = vmul.f32 %v10193_v20, %v12834_v15  ;;  %v16518_v26 = vld [vmem:[#allocation61_spill] sm:$0xff] }
 0x3e8   : > { %8952 = vmatprep.subr.mxu0 %v16515_v18  ;;  %v2432_v27 = vmul.f32 %v10195_v4, %v12837_v34  ;;  %10212 = vpow2.f32 %v2970_v29 }
 0x3e9   : > { %v2375_v53 = vpop.xlane.xlu0 %2374  ;;  %8953 = vmatpush3.msra.mxu0 %v16515_v18 }
 0x3ea   : > { %v10197_v50 = vpop.eup %10196  ;;  %vm2393_vm10 = vcmp.gt.f32.partialorder %v2375_v53, 0.0  ;;  %v2373_v58 = vpop.xlane.xlu1 %2372  ;;  %8868 = vmatprep.mubr.f32.mxu0 %v2432_v27  ;;  %8954 = vmatprep.subr.mxu0 %v16516_v16 }
 0x3eb   : > { %v10199_v8 = vpop.eup %10198  ;;  %v2409_v56 = vsel %vm2393_vm10, %v2375_v53, 1.0  ;;  %vm2392_vm11 = vcmp.gt.f32.partialorder %v2373_v58, 0.0  ;;  %8869 = vmatmul.mubr.f32.gmra.mxu0 %v2433_v46  ;;  %v2435_v0 = vmul.f32 %v10197_v50, %v12844_v5 }
 0x3ec   : > { %10214 = vrcp.f32 %v2409_v56  ;;  %v2408_v15 = vsel %vm2392_vm11, %v2373_v58, 1.0  ;;  %8955 = vmatpush3.msra.mxu0 %v16516_v16  ;;  %v2434_v34 = vmul.f32 %v10199_v8, %v12847_v49  ;;  %v10201_v61 = vpop.eup %10200 }
 0x3ed   : > { %10216 = vrcp.f32 %v2408_v15  ;;  %8956 = vmatprep.subr.mxu0 %v16517_v48 }
 0x3ee   : > { %v10203_v2 = vpop.eup %10202  ;;  %8957 = vmatpush3.msra.mxu0 %v16517_v48  ;;  %3375 = vrot.lane.b32.xlu0 %v16512_v43, %s16384_s2  ;;  %v13000_v43 = vmul.f32 %v10201_v61, %v12490_v14 }
 0x3ef   : > { %v10205_v10 = vpop.eup %10204  ;;  %8871 = vmatprep.mubr.f32.mxu0 %v2434_v34  ;;  %8958 = vmatprep.subr.mxu0 %v16518_v26  ;;  %v2437_v49 = vmul.f32 %v10203_v2, %v12852_v42 }
 0x3f0   : > { %8872 = vmatmul.mubr.f32.gmra.mxu0 %v2435_v0  ;;  %v2436_v12 = vmul.f32 %v10205_v10, %v12855_v41 }
 0x3f1   : > { %8959 = vmatpush3.msra.mxu0 %v16518_v26 }
 0x3f2   : > { %v10207_v5 = vpop.eup %10206  ;;  %8960 = vmatprep.subr.mxu0 %v16519_v30  ;;  %8874 = vmatprep.mubr.f32.mxu0 %v2436_v12 }
 0x3f3   : > { %v10209_v57 = vpop.eup %10208  ;;  %8961 = vmatpush3.msra.mxu0 %v16519_v30  ;;  %v2439_v42 = vmul.f32 %v10207_v5, %v12860_v24  ;;  %v16522_v24 = vld [vmem:[#allocation65_spill] sm:$0xff] }
 0x3f4   : > { %v10211_v36 = vpop.eup %10210  ;;  %8962 = vmatprep.subr.mxu0 %v16520_v39  ;;  %8875 = vmatmul.mubr.f32.gmra.mxu0 %v2437_v49  ;;  %v2438_v41 = vmul.f32 %v10209_v57, %v12863_v54 }
 0x3f5   : > { %8963 = vmatpush3.msra.mxu0 %v16520_v39  ;;  %3008 = vadd.xlane.f32.xlu1 %v13000_v43  ;;  %v2379_v19 = vpop.xlane.xlu0 %2378  ;;  %v13010_v55 = vmul.f32 %v10211_v36, %v12654_v23  ;;  %v10213_v54 = vpop.eup %10212 }
 0x3f6   : > { %8964 = vmatprep.subr.mxu0 %v16521_v11  ;;  %vm2395_vm12 = vcmp.gt.f32.partialorder %v2379_v19, 0.0  ;;  %8877 = vmatprep.mubr.f32.mxu0 %v2438_v41  ;;  %v2377_v59 = vpop.xlane.xlu1 %2376  ;;  %v13017_v27 = vmul.f32 %v10213_v54, %v12697_v62 }
 0x3f7   : > { %8965 = vmatpush3.msra.mxu0 %v16521_v11  ;;  %v2411_v20 = vsel %vm2395_vm12, %v2379_v19, 1.0  ;;  %vm2394_vm13 = vcmp.gt.f32.partialorder %v2377_v59, 0.0 }
 0x3f8   : > { %10218 = vrcp.f32 %v2411_v20  ;;  %8966 = vmatprep.subr.mxu0 %v16522_v24  ;;  %v2410_v4 = vsel %vm2394_vm13, %v2377_v59, 1.0  ;;  %8878 = vmatmul.mubr.f32.gmra.mxu0 %v2439_v42 }
 0x3f9   : > { %v10215_v29 = vpop.eup %10214  ;;  %10220 = vrcp.f32 %v2410_v4  ;;  %8967 = vmatpush3.msra.mxu0 %v16522_v24  ;;  %3014 = vadd.xlane.f32.xlu1 %v13010_v55 }
 0x3fa   : > { %v10217_v46 = vpop.eup %10216  ;;  %v2441_v18 = vmul.f32 %v10215_v29, %v12870_v38 }
 0x3fb   : > { %v2440_v53 = vmul.f32 %v10217_v46, %v12873_v47 }
 0x3fd   : > { %3018 = vadd.xlane.f32.xlu1 %v13017_v27  ;;  %8880 = vmatprep.mubr.f32.mxu0 %v2440_v53 }
 0x3fe   : > { %8881 = vmatmul.mubr.f32.gmra.mxu0 %v2441_v18 }
 0x405   : > { %v10219_v50 = vpop.eup %10218 }
 0x406   : > { %v10221_v58 = vpop.eup %10220  ;;  %v2443_v16 = vmul.f32 %v10219_v50, %v12878_v3 }
 0x407   : > { %v2442_v8 = vmul.f32 %v10221_v58, %v12881_v32 }
 0x409   : > { %v2993_v56 = vpop.xlane.xlu0 %2992  ;;  %8883 = vmatprep.mubr.f32.mxu0 %v2442_v8 }
 0x40a   : > { %8884 = vmatmul.mubr.f32.gmra.mxu0 %v2443_v16  ;;  %vm3023_vm15 = vcmp.gt.f32.partialorder %v2993_v56, 0.0 }
 0x40d   : > { %v2991_v15 = vpop.xlane.xlu0 %2990 }
 0x40e   : > { %vm3022_vm14 = vcmp.gt.f32.partialorder %v2991_v15, 0.0  ;;  %3377 = vrot.lane.b32.xlu1 %v16510_v60, %s16384_s2  ;;  %v3039_v60 = vsel %vm3023_vm15, %v2993_v56, 1.0 }
 0x40f   : > { %v3038_v38 = vsel %vm3022_vm14, %v2991_v15, 1.0  ;;  %v2995_v34 = vpop.xlane.xlu1 %2994 }
 0x410   : > { %10222 = vrcp.f32 %v3038_v38  ;;  %vm3024_vm0 = vcmp.gt.f32.partialorder %v2995_v34, 0.0 }
 0x411   : > { %v2997_v47 = vpop.xlane.xlu0 %2996  ;;  %v3040_v26 = vsel %vm3024_vm0, %v2995_v34, 1.0  ;;  %10224 = vrcp.f32 %v3039_v60 }
 0x412   : > { %3379 = vrot.lane.b32.xlu1 %v16511_v44, %s16384_s2  ;;  %vm3025_vm6 = vcmp.gt.f32.partialorder %v2997_v47, 0.0  ;;  %10226 = vrcp.f32 %v3040_v26 }
 0x413   : > { %v2999_v61 = vpop.xlane.xlu1 %2998  ;;  %v3041_v44 = vsel %vm3025_vm6, %v2997_v47, 1.0 }
 0x414   : > { %vm3026_vm3 = vcmp.gt.f32.partialorder %v2999_v61, 0.0  ;;  %10228 = vrcp.f32 %v3041_v44 }
 0x415   : > { %v3001_v0 = vpop.xlane.xlu0 %3000  ;;  %v3042_v12 = vsel %vm3026_vm3, %v2999_v61, 1.0 }
 0x416   : > { %vm3027_vm4 = vcmp.gt.f32.partialorder %v3001_v0, 0.0  ;;  %10230 = vrcp.f32 %v3042_v12 }
 0x417   : > { %v3105_v10 = vpop.permute.xlu1 %3104  ;;  %v3043_v49 = vsel %vm3027_vm4, %v3001_v0, 1.0 }
 0x418   : > { %10232 = vrcp.f32 %v3043_v49 }
 0x419   : > { %v3005_v3 = vpop.xlane.xlu0 %3004 }
 0x41a   : > { %vm3029_vm5 = vcmp.gt.f32.partialorder %v3005_v3, 0.0 }
 0x41d   : > { %v10223_v48 = vpop.eup %10222  ;;  %v3107_v32 = vpop.permute.xlu0 %3106 }
 0x41e   : > { %8968 = vmatprep.subr.mxu0 %v3107_v32  ;;  %v3070_v2 = vmul.f32 %v10223_v48, %v12897_v25  ;;  %v3045_v25 = vsel %vm3029_vm5, %v3005_v3, 1.0  ;;  %v10225_v30 = vpop.eup %10224 }
 0x41f   : > { %8969 = vmatpush3.msra.mxu0 %v3107_v32  ;;  %10234 = vrcp.f32 %v3045_v25  ;;  %v10227_v36 = vpop.eup %10226  ;;  %v3071_v41 = vmul.f32 %v10225_v30, %v12893_v6 }
 0x420   : > { %8970 = vmatprep.subr.mxu0 %v3105_v10  ;;  %8974 = vmatprep.mubr.f32.mxu0 %v3070_v2  ;;  %v3072_v11 = vmul.f32 %v10227_v36, %v12901_v52 }
 0x421   : > { %8971 = vmatpush3.msra.mxu0 %v3105_v10  ;;  %v10229_v42 = vpop.eup %10228 }
 0x422   : > { %v3073_v54 = vmul.f32 %v10229_v42, %v12905_v40 }
 0x423   : > { %v10231_v59 = vpop.eup %10230 }
 0x424   : > { %v3074_v4 = vmul.f32 %v10231_v59, %v12909_v33 }
 0x425   : > { %v10233_v24 = vpop.eup %10232 }
 0x426   : > { %v3075_v6 = vmul.f32 %v10233_v24, %v12913_v17 }
 0x42c   : > { %v10235_v29 = vpop.eup %10234 }
 0x42d   : > { %v3077_v18 = vmul.f32 %v10235_v29, %v12917_v35  ;;  %v16524_v29 = vld [vmem:[#allocation27_spill] sm:$0xff] }
 0x448   : > { %v3003_v5 = vpop.xlane.xlu1 %3002 }
 0x449   : > { %vm3028_vm1 = vcmp.gt.f32.partialorder %v3003_v5, 0.0 }
 0x44a   : > { %v3044_v57 = vsel %vm3028_vm1, %v3003_v5, 1.0 }
 0x44b   : > { %10236 = vrcp.f32 %v3044_v57 }
 0x44c   : > { %v3103_v39 = vpop.permute.xlu1 %3102 }
 0x44d   : > { %8972 = vmatprep.subr.mxu0 %v3103_v39 }
 0x44e   : > { %v3007_v19 = vpop.xlane.xlu0 %3006  ;;  %8973 = vmatpush3.msra.mxu0 %v3103_v39 }
 0x44f   : > { %vm3030_vm8 = vcmp.gt.f32.partialorder %v3007_v19, 0.0  ;;  %8975 = vmatmul.mubr.f32.vlgmr.msra.gmra.mxu0 %v3071_v41 }
 0x450   : > { %v3046_v20 = vsel %vm3030_vm8, %v3007_v19, 1.0  ;;  %8977 = vmatprep.mubr.f32.mxu0 %v3072_v11 }
 0x451   : > { %10238 = vrcp.f32 %v3046_v20 }
 0x452   : > { %v3011_v40 = vpop.xlane.xlu0 %3010 }
 0x453   : > { %8978 = vmatmul.mubr.f32.gmra.mxu0 %v3073_v54  ;;  %vm3032_vm7 = vcmp.gt.f32.partialorder %v3011_v40, 0.0 }
 0x454   : > { %8980 = vmatprep.mubr.f32.mxu0 %v3074_v4  ;;  %v3048_v33 = vsel %vm3032_vm7, %v3011_v40, 1.0  ;;  %v16527_v40 = vld [vmem:[#allocation24_spill] sm:$0xff] }
 0x455   : > { %10240 = vrcp.f32 %v3048_v33  ;;  %v16528_v33 = vld [vmem:[#allocation23_spill] sm:$0xff] }
 0x456   : > { %v3013_v58 = vpop.xlane.xlu0 %3012 }
 0x457   : > { %8981 = vmatmul.mubr.f32.gmra.mxu0 %v3075_v6  ;;  %vm3033_vm10 = vcmp.gt.f32.partialorder %v3013_v58, 0.0 }
 0x458   : > { %v10237_v46 = vpop.eup %10236  ;;  %v3049_v8 = vsel %vm3033_vm10, %v3013_v58, 1.0 }
 0x459   : > { %v3076_v52 = vmul.f32 %v10237_v46, %v12932_v22 }
 0x45a   : > { %v3017_v16 = vpop.xlane.xlu0 %3016 }
 0x45b   : > { %8983 = vmatprep.mubr.f32.mxu0 %v3076_v52  ;;  %vm3035_vm12 = vcmp.gt.f32.partialorder %v3017_v16, 0.0  ;;  %v16525_v52 = vld [vmem:[#allocation26_spill] sm:$0xff] }
 0x45c   : > { %8984 = vmatmul.mubr.f32.gmra.mxu0 %v3077_v18  ;;  %v3051_v15 = vsel %vm3035_vm12, %v3017_v16, 1.0  ;;  %v16529_v16 = vld [vmem:[#allocation22_spill] sm:$0xff] }
 0x45e   : > { %v10239_v53 = vpop.eup %10238 }
 0x45f   : > { %v3078_v50 = vmul.f32 %v10239_v53, %v12938_v63  ;;  %v16526_v53 = vld [vmem:[#allocation25_spill] sm:$0xff] }
 0x461   : > { %8986 = vmatprep.mubr.f32.mxu0 %v3078_v50  ;;  %v3021_v35 = vpop.xlane.xlu0 %3020 }
 0x462   : > { %vm3037_vm14 = vcmp.gt.f32.partialorder %v3021_v35, 0.0  ;;  %v10241_v0 = vpop.eup %10240 }
 0x463   : > { %v3053_v47 = vsel %vm3037_vm14, %v3021_v35, 1.0  ;;  %v3080_v32 = vmul.f32 %v10241_v0, %v12945_v7  ;;  %v16533_v35 = vld [vmem:[#allocation18_spill] sm:$0xff] }
 0x47e   : > { %v3009_v17 = vpop.xlane.xlu1 %3008 }
 0x47f   : > { %vm3031_vm11 = vcmp.gt.f32.partialorder %v3009_v17, 0.0 }
 0x480   : > { %v3047_v56 = vsel %vm3031_vm11, %v3009_v17, 1.0  ;;  %v16530_v17 = vld [vmem:[#allocation21_spill] sm:$0xff] }
 0x481   : > { %10242 = vrcp.f32 %v3047_v56  ;;  %v16532_v56 = vld [vmem:[#allocation19_spill] sm:$0xff] }
 0x482   : > { %v3015_v22 = vpop.xlane.xlu1 %3014  ;;  %10244 = vrcp.f32 %v3049_v8  ;;  %v16531_v8 = vld [vmem:[#allocation20_spill] sm:$0xff] }
 0x483   : > { %vm3034_vm13 = vcmp.gt.f32.partialorder %v3015_v22, 0.0 }
 0x484   : > { %v3050_v63 = vsel %vm3034_vm13, %v3015_v22, 1.0  ;;  %v16534_v22 = vld [vmem:[#allocation17_spill] sm:$0xff] }
 0x485   : > { %10246 = vrcp.f32 %v3050_v63  ;;  %v16536_v63 = vld [vmem:[#allocation15_spill] sm:$0xff] }
 0x486   : > { %v3019_v38 = vpop.xlane.xlu1 %3018  ;;  %10248 = vrcp.f32 %v3051_v15  ;;  %v16535_v15 = vld [vmem:[#allocation16_spill] sm:$0xff] }
 0x487   : > { %vm3036_vm15 = vcmp.gt.f32.partialorder %v3019_v38, 0.0 }
 0x488   : > { %v3052_v34 = vsel %vm3036_vm15, %v3019_v38, 1.0 }
 0x489   : > { %10250 = vrcp.f32 %v3052_v34 }
 0x48a   : > { %10252 = vrcp.f32 %v3053_v47 }
 0x48e   : > { %v10243_v61 = vpop.eup %10242 }
 0x48f   : > { %v3079_v3 = vmul.f32 %v10243_v61, %v13000_v43  ;;  %v10245_v48 = vpop.eup %10244  ;;  %v16523_v43 = vmov 0.0  }
 0x490   : > { %v3081_v10 = vmul.f32 %v10245_v48, %v12949_v51 }
 0x491   : > { %8987 = vmatmul.mubr.f32.gmra.mxu0 %v3079_v3 }
 0x492   : > { %v10247_v2 = vpop.eup %10246  ;;  %8989 = vmatprep.mubr.f32.mxu0 %v3080_v32 }
 0x493   : > { %v3082_v60 = vmul.f32 %v10247_v2, %v13010_v55  ;;  %v10249_v26 = vpop.eup %10248  ;;  %v3378_v2 = vpop.permute.xlu1 %3377 }
 0x494   : > { %v3083_v12 = vmul.f32 %v10249_v26, %v12953_v1 }
 0x495   : > { %8990 = vmatmul.mubr.f32.gmra.mxu0 %v3081_v10 }
 0x496   : > { %v10251_v44 = vpop.eup %10250  ;;  %8992 = vmatprep.mubr.f32.mxu0 %v3082_v60  ;;  %v3376_v60 = vpop.permute.xlu0 %3375 }
 0x497   : > { %v3084_v49 = vmul.f32 %v10251_v44, %v13017_v27  ;;  %v10253_v25 = vpop.eup %10252  ;;  %v3380_v10 = vpop.permute.xlu1 %3379 }
 0x498   : > { %v3085_v7 = vmul.f32 %v10253_v25, %v12959_v9 }
 0x499   : > { %8993 = vmatmul.mubr.f32.gmra.mxu0 %v3083_v12 }
 0x49a   : > { %8995 = vmatprep.mubr.f32.mxu0 %v3084_v49 }
 0x49d   : > { %8996 = vmatmul.mubr.f32.gmra.mxu0 %v3085_v7 }
 0x49e   : > { %3850 = vmatprep.mubr.f32.mxu0 %v16523_v43  ;;  %v13044_v5 = vpop.f32.mrf.mxu0 }
 0x4a0   : > { %v13046_v51 = vpop.f32.mrf.mxu0 }
 0x4a6   : > { %v13048_v55 = vpop.f32.mrf.mxu0 }
 0x4a8   : > { %v13050_v30 = vpop.f32.mrf.mxu0 }
 0x4ab   : > { %v13052_v57 = vpop.f32.mrf.mxu0 }
 0x4ad   : > { %v13054_v1 = vpop.f32.mrf.mxu0 }
 0x4b0   : > { %v13056_v27 = vpop.f32.mrf.mxu0 }
 0x4b2   : > { %v13058_v36 = vpop.f32.mrf.mxu0 }
 0x4b4   : > { %v13060_v9 = vpop.f32.mrf.mxu0 }
 0x4b6   : > { %v13062_v39 = vpop.f32.mrf.mxu0 }
 0x4b8   : > { %v13064_v41 = vpop.f32.mrf.mxu0 }
 0x4ba   : > { %v13066_v42 = vpop.f32.mrf.mxu0 }
 0x4be   : > { %v13068_v19 = vpop.f32.mrf.mxu0 }
 0x4c0   : > { %v13070_v11 = vpop.f32.mrf.mxu0 }
 0x4ca   : > { %v13072_v59 = vpop.f32.mrf.mxu0 }
 0x4cc   : > { %v13074_v20 = vpop.f32.mrf.mxu0 }
 0x50f   : > { %v8976_v54 = vpop.f32.mrf.mxu0 }
 0x510   : > { %3313 = vrot.lane.b32.xlu1 %v8976_v54, %s16385_s29 }
 0x511   : > { %v3216_v24 = vpop.f32.mrf.mxu0 }
 0x513   : > { %v8979_v4 = vpop.f32.mrf.mxu0 }
 0x514   : > { %3311 = vrot.lane.b32.xlu1 %v3216_v24, %s16385_s29  ;;  %3317 = vrot.lane.b32.xlu0 %v8979_v4, %s16385_s29 }
 0x515   : > { %v3226_v6 = vpop.f32.mrf.mxu0 }
 0x517   : > { %v8982_v46 = vpop.f32.mrf.mxu0 }
 0x518   : > { %3381 = vrot.lane.b32.xlu1 %v16524_v29, %s16384_s2  ;;  %3315 = vrot.lane.b32.xlu0 %v3226_v6, %s16385_s29 }
 0x519   : > { %v3236_v18 = vpop.f32.mrf.mxu0 }
 0x51c   : > { %3383 = vrot.lane.b32.xlu1 %v16525_v52, %s16384_s2  ;;  %3321 = vrot.lane.b32.xlu0 %v8982_v46, %s16385_s29  ;;  %v8985_v50 = vpop.f32.mrf.mxu0 }
 0x51e   : > { %v3246_v58 = vpop.f32.mrf.mxu0 }
 0x520   : > { %3385 = vrot.lane.b32.xlu1 %v16526_v53, %s16384_s2  ;;  %3319 = vrot.lane.b32.xlu0 %v3236_v18, %s16385_s29 }
 0x524   : > { %3387 = vrot.lane.b32.xlu1 %v16527_v40, %s16384_s2  ;;  %3325 = vrot.lane.b32.xlu0 %v8985_v50, %s16385_s29 }
 0x528   : > { %3389 = vrot.lane.b32.xlu1 %v16528_v33, %s16384_s2  ;;  %3323 = vrot.lane.b32.xlu0 %v3246_v58, %s16385_s29 }
 0x52c   : > { %3391 = vrot.lane.b32.xlu1 %v16529_v16, %s16384_s2 }
 0x530   : > { %3393 = vrot.lane.b32.xlu1 %v16530_v17, %s16384_s2 }
 0x534   : > { %3395 = vrot.lane.b32.xlu1 %v16531_v8, %s16384_s2 }
 0x538   : > { %3397 = vrot.lane.b32.xlu1 %v16532_v56, %s16384_s2 }
 0x53c   : > { %3399 = vrot.lane.b32.xlu1 %v16533_v35, %s16384_s2 }
 0x540   : > { %3401 = vrot.lane.b32.xlu1 %v16534_v22, %s16384_s2 }
 0x544   : > { %3403 = vrot.lane.b32.xlu1 %v16535_v15, %s16384_s2 }
 0x548   : > { %3405 = vrot.lane.b32.xlu1 %v16536_v63, %s16384_s2 }
 0x551   : > { %v8988_v38 = vpop.f32.mrf.mxu0 }
 0x552   : > { %3329 = vrot.lane.b32.xlu0 %v8988_v38, %s16385_s29 }
 0x553   : > { %v3256_v47 = vpop.f32.mrf.mxu0 }
 0x555   : > { %v8991_v34 = vpop.f32.mrf.mxu0 }
 0x556   : > { %3327 = vrot.lane.b32.xlu0 %v3256_v47, %s16385_s29 }
 0x557   : > { %v3266_v0 = vpop.f32.mrf.mxu0 }
 0x559   : > { %v8994_v61 = vpop.f32.mrf.mxu0 }
 0x55a   : > { %3333 = vrot.lane.b32.xlu0 %v8991_v34, %s16385_s29 }
 0x55b   : > { %v3276_v3 = vpop.f32.mrf.mxu0 }
 0x55d   : > { %v8997_v48 = vpop.f32.mrf.mxu0 }
 0x55e   : > { %3331 = vrot.lane.b32.xlu0 %v3266_v0, %s16385_s29 }
 0x55f   : > { %v3286_v32 = vpop.f32.mrf.mxu0 }
 0x562   : > { %3337 = vrot.lane.b32.xlu0 %v8994_v61, %s16385_s29 }
 0x566   : > { %3335 = vrot.lane.b32.xlu0 %v3276_v3, %s16385_s29 }
 0x56a   : > { %3341 = vrot.lane.b32.xlu0 %v8997_v48, %s16385_s29 }
 0x56e   : > { %3339 = vrot.lane.b32.xlu0 %v3286_v32, %s16385_s29 }
 0x582   : > { %v3314_v26 = vpop.permute.xlu1 %3313 }
 0x583   : > { %v3360_v44 = vsel %vm1463_vm2, %v13044_v5, %v3314_v26 }
 0x584   : > { %v13120_v12 = vadd.f32 %v3378_v2, %v3360_v44 }
 0x586   : > { %v3440_v49 = vmax.f32 %v13120_v12, 0.0  ;;  %v3318_v25 = vpop.permute.xlu0 %3317  ;;  %v3312_v7 = vpop.permute.xlu1 %3311 }
 0x587   : > { %v3359_v54 = vsel %vm1463_vm2, %v13046_v51, %v3312_v7  ;;  %v3362_v46 = vsel %vm1463_vm2, %v13048_v55, %v3318_v25 }
 0x588   : > { %v13125_v24 = vadd.f32 %v3376_v60, %v3359_v54  ;;  %v3458_v4 = vsel %vm1531_vm9, %v3440_v49, 0.0 }
 0x589   : > { %3459 = vadd.xlane.f32.xlu1 %v3458_v4 }
 0x58a   : > { %v3439_v6 = vmax.f32 %v13125_v24, 0.0  ;;  %v3316_v29 = vpop.permute.xlu0 %3315  ;;  %v3382_v5 = vpop.permute.xlu1 %3381 }
 0x58b   : > { %v3361_v52 = vsel %vm1463_vm2, %v13050_v30, %v3316_v29  ;;  %v13137_v51 = vadd.f32 %v3382_v5, %v3362_v46 }
 0x58c   : > { %v13135_v18 = vadd.f32 %v3380_v10, %v3361_v52  ;;  %v3455_v53 = vsel %vm1531_vm9, %v3439_v6, 0.0 }
 0x58d   : > { %3456 = vadd.xlane.f32.xlu0 %v3455_v53  ;;  %v3442_v33 = vmax.f32 %v13137_v51, 0.0 }
 0x58e   : > { %v3441_v50 = vmax.f32 %v13135_v18, 0.0  ;;  %v3322_v40 = vpop.permute.xlu0 %3321  ;;  %v3384_v58 = vpop.permute.xlu1 %3383 }
 0x58f   : > { %v3364_v30 = vsel %vm1463_vm2, %v13052_v57, %v3322_v40  ;;  %v3464_v22 = vsel %vm1531_vm9, %v3442_v33, 0.0 }
 0x590   : > { %v3461_v55 = vsel %vm1531_vm9, %v3441_v50, 0.0 }
 0x591   : > { %3462 = vadd.xlane.f32.xlu0 %v3461_v55 }
 0x592   : > { %v3320_v16 = vpop.permute.xlu0 %3319  ;;  %v3386_v17 = vpop.permute.xlu1 %3385 }
 0x593   : > { %v3363_v8 = vsel %vm1463_vm2, %v13054_v1, %v3320_v16  ;;  %v13151_v56 = vadd.f32 %v3386_v17, %v3364_v30 }
 0x594   : > { %v13153_v35 = vadd.f32 %v3384_v58, %v3363_v8 }
 0x595   : > { %v3444_v15 = vmax.f32 %v13151_v56, 0.0  ;;  %3465 = vadd.xlane.f32.xlu0 %v3464_v22 }
 0x596   : > { %v3443_v63 = vmax.f32 %v13153_v35, 0.0  ;;  %v3326_v38 = vpop.permute.xlu0 %3325  ;;  %v3388_v57 = vpop.permute.xlu1 %3387 }
 0x597   : > { %v3470_v47 = vsel %vm1531_vm9, %v3444_v15, 0.0  ;;  %v3366_v34 = vsel %vm1463_vm2, %v13056_v27, %v3326_v38 }
 0x598   : > { %v3467_v1 = vsel %vm1531_vm9, %v3443_v63, 0.0 }
 0x599   : > { %3468 = vadd.xlane.f32.xlu1 %v3467_v1  ;;  %3471 = vadd.xlane.f32.xlu0 %v3470_v47 }
 0x59a   : > { %v3324_v0 = vpop.permute.xlu0 %3323  ;;  %v3390_v61 = vpop.permute.xlu1 %3389 }
 0x59b   : > { %v3365_v3 = vsel %vm1463_vm2, %v13058_v36, %v3324_v0  ;;  %v13170_v48 = vadd.f32 %v3390_v61, %v3366_v34 }
 0x59c   : > { %v13172_v32 = vadd.f32 %v3388_v57, %v3365_v3 }
 0x59d   : > { %v3446_v2 = vmax.f32 %v13170_v48, 0.0  ;;  %v3723_v48 = vld [vmem:[%s16082_s7 + $0x78] sm:$0xff] }
 0x59e   : > { %v3445_v10 = vmax.f32 %v13172_v32, 0.0  ;;  %v3392_v26 = vpop.permute.xlu1 %3391  ;;  %3802 = vmatprep.subr.mxu0 %v3723_v48  ;;  %v3722_v32 = vld [vmem:[%s16082_s7 + $0x70] sm:$0xff] }
 0x59f   : > { %v3476_v60 = vsel %vm1531_vm9, %v3446_v2, 0.0  ;;  %3803 = vmatpush1.msra.mxu0 %v3722_v32 }
 0x5a0   : > { %3477 = vadd.xlane.f32.xlu0 %v3476_v60  ;;  %v3473_v27 = vsel %vm1531_vm9, %v3445_v10, 0.0 }
 0x5a1   : > { %3474 = vadd.xlane.f32.xlu1 %v3473_v27 }
 0x5a2   : > { %v3394_v36 = vpop.permute.xlu1 %3393 }
 0x5a6   : > { %v3396_v44 = vpop.permute.xlu1 %3395 }
 0x5aa   : > { %v3398_v7 = vpop.permute.xlu1 %3397 }
 0x5ae   : > { %v3400_v40 = vpop.permute.xlu1 %3399 }
 0x5b2   : > { %v3402_v8 = vpop.permute.xlu1 %3401 }
 0x5c4   : > { %v3330_v25 = vpop.permute.xlu0 %3329 }
 0x5c5   : > { %v3368_v54 = vsel %vm1463_vm2, %v13060_v9, %v3330_v25 }
 0x5c6   : > { %v13184_v4 = vadd.f32 %v3394_v36, %v3368_v54 }
 0x5c8   : > { %v3448_v29 = vmax.f32 %v13184_v4, 0.0  ;;  %v3328_v5 = vpop.permute.xlu0 %3327 }
 0x5c9   : > { %v3367_v46 = vsel %vm1463_vm2, %v13062_v39, %v3328_v5 }
 0x5ca   : > { %v13189_v52 = vadd.f32 %v3392_v26, %v3367_v46  ;;  %v3482_v53 = vsel %vm1531_vm9, %v3448_v29, 0.0 }
 0x5cb   : > { %3483 = vadd.xlane.f32.xlu0 %v3482_v53 }
 0x5cc   : > { %v3447_v58 = vmax.f32 %v13189_v52, 0.0  ;;  %v3334_v55 = vpop.permute.xlu0 %3333 }
 0x5cd   : > { %v3370_v9 = vsel %vm1463_vm2, %v13064_v41, %v3334_v55 }
 0x5ce   : > { %v13197_v30 = vadd.f32 %v3398_v7, %v3370_v9  ;;  %v3479_v39 = vsel %vm1531_vm9, %v3447_v58, 0.0 }
 0x5cf   : > { %3480 = vadd.xlane.f32.xlu1 %v3479_v39 }
 0x5d0   : > { %v3450_v16 = vmax.f32 %v13197_v30, 0.0  ;;  %v3332_v17 = vpop.permute.xlu0 %3331 }
 0x5d1   : > { %v3369_v22 = vsel %vm1463_vm2, %v13066_v42, %v3332_v17  ;;  %v3404_v42 = vpop.permute.xlu1 %3403 }
 0x5d2   : > { %v13205_v38 = vadd.f32 %v3396_v44, %v3369_v22  ;;  %v3488_v41 = vsel %vm1531_vm9, %v3450_v16, 0.0 }
 0x5d3   : > { %3489 = vadd.xlane.f32.xlu0 %v3488_v41 }
 0x5d4   : > { %v3449_v57 = vmax.f32 %v13205_v38, 0.0  ;;  %v3338_v47 = vpop.permute.xlu0 %3337 }
 0x5d5   : > { %v3372_v1 = vsel %vm1463_vm2, %v13068_v19, %v3338_v47  ;;  %v3406_v44 = vpop.permute.xlu1 %3405 }
 0x5d6   : > { %v13213_v34 = vadd.f32 %v3402_v8, %v3372_v1  ;;  %v3485_v0 = vsel %vm1531_vm9, %v3449_v57, 0.0 }
 0x5d7   : > { %3486 = vadd.xlane.f32.xlu1 %v3485_v0 }
 0x5d8   : > { %v3452_v61 = vmax.f32 %v13213_v34, 0.0  ;;  %v3336_v3 = vpop.permute.xlu0 %3335 }
 0x5d9   : > { %v3371_v60 = vsel %vm1463_vm2, %v13070_v11, %v3336_v3 }
 0x5da   : > { %v13221_v27 = vadd.f32 %v3400_v40, %v3371_v60  ;;  %v3494_v19 = vsel %vm1531_vm9, %v3452_v61, 0.0 }
 0x5db   : > { %3495 = vadd.xlane.f32.xlu0 %v3494_v19 }
 0x5dc   : > { %v3451_v26 = vmax.f32 %v13221_v27, 0.0  ;;  %v3342_v36 = vpop.permute.xlu0 %3341 }
 0x5dd   : > { %v3374_v25 = vsel %vm1463_vm2, %v13072_v59, %v3342_v36 }
 0x5de   : > { %v13229_v7 = vadd.f32 %v3406_v44, %v3374_v25  ;;  %v3491_v11 = vsel %vm1531_vm9, %v3451_v26, 0.0 }
 0x5df   : > { %3492 = vadd.xlane.f32.xlu1 %v3491_v11 }
 0x5e0   : > { %v3454_v54 = vmax.f32 %v13229_v7, 0.0  ;;  %v3340_v5 = vpop.permute.xlu0 %3339 }
 0x5e1   : > { %v3373_v46 = vsel %vm1463_vm2, %v13074_v20, %v3340_v5 }
 0x5e2   : > { %v13237_v53 = vadd.f32 %v3404_v42, %v3373_v46  ;;  %v3500_v40 = vsel %vm1531_vm9, %v3454_v54, 0.0 }
 0x5e3   : > { %3501 = vadd.xlane.f32.xlu0 %v3500_v40 }
 0x5e4   : > { %v3453_v59 = vmax.f32 %v13237_v53, 0.0 }
 0x5e6   : > { %v3497_v55 = vsel %vm1531_vm9, %v3453_v59, 0.0 }
 0x5e7   : > { %3498 = vadd.xlane.f32.xlu1 %v3497_v55 }
 0x612   : > { %v3460_v9 = vpop.xlane.xlu1 %3459 }
 0x613   : > { %v3505_v39 = vmul.f32 0.015625, %v3460_v9 }
 0x615   : > { %v13248_v17 = vsub.f32 %v3440_v49, %v3505_v39 }
 0x616   : > { %v3457_v20 = vpop.xlane.xlu0 %3456 }
 0x617   : > { %v3504_v8 = vmul.f32 0.015625, %v3457_v20  ;;  %v3537_v22 = vmul.f32 %v13248_v17, %v13248_v17 }
 0x619   : > { %v13254_v41 = vsub.f32 %v3439_v6, %v3504_v8  ;;  %v3555_v47 = vsel %vm1531_vm9, %v3537_v22, 0.0 }
 0x61a   : > { %v3463_v1 = vpop.xlane.xlu0 %3462  ;;  %3556 = vadd.xlane.f32.xlu0 %v3555_v47 }
 0x61b   : > { %v3506_v0 = vmul.f32 0.015625, %v3463_v1  ;;  %v3536_v42 = vmul.f32 %v13254_v41, %v13254_v41  ;;  %v3719_v1 = vld [vmem:[%s16082_s7 + $0x58] sm:$0xff] }
 0x61d   : > { %v13261_v12 = vsub.f32 %v3441_v50, %v3506_v0  ;;  %v3552_v49 = vsel %vm1531_vm9, %v3536_v42, 0.0  ;;  %v3718_v0 = vld [vmem:[%s16082_s7 + $0x50] sm:$0xff]  ;;  %v3717_v42 = vld [vmem:[%s16082_s7 + $0x48] sm:$0xff] }
 0x61e   : > { %v3466_v3 = vpop.xlane.xlu0 %3465  ;;  %3553 = vadd.xlane.f32.xlu1 %v3552_v49  ;;  %v3716_v49 = vld [vmem:[%s16082_s7 + $0x40] sm:$0xff] }
 0x61f   : > { %v3507_v60 = vmul.f32 0.015625, %v3466_v3  ;;  %v3538_v24 = vmul.f32 %v13261_v12, %v13261_v12  ;;  %v3715_v3 = vld [vmem:[%s16082_s7 + $0x38] sm:$0xff] }
 0x621   : > { %v13268_v6 = vsub.f32 %v3442_v33, %v3507_v60  ;;  %v3558_v19 = vsel %vm1531_vm9, %v3538_v24, 0.0  ;;  %v3714_v60 = vld [vmem:[%s16082_s7 + $0x30] sm:$0xff]  ;;  %v3713_v24 = vld [vmem:[%s16082_s7 + $0x28] sm:$0xff] }
 0x622   : > { %v3472_v36 = vpop.xlane.xlu0 %3471  ;;  %3559 = vadd.xlane.f32.xlu1 %v3558_v19  ;;  %v3469_v44 = vpop.xlane.xlu1 %3468  ;;  %v3712_v19 = vld [vmem:[%s16082_s7 + $0x20] sm:$0xff] }
 0x623   : > { %v3509_v18 = vmul.f32 0.015625, %v3472_v36  ;;  %v3508_v50 = vmul.f32 0.015625, %v3469_v44  ;;  %v3539_v25 = vmul.f32 %v13268_v6, %v13268_v6  ;;  %v3711_v36 = vld [vmem:[%s16082_s7 + $0x18] sm:$0xff]  ;;  %v3710_v44 = vld [vmem:[%s16082_s7 + $0x10] sm:$0xff] }
 0x625   : > { %v13275_v11 = vsub.f32 %v3444_v15, %v3509_v18  ;;  %v13279_v5 = vsub.f32 %v3443_v63, %v3508_v50  ;;  %v3561_v51 = vsel %vm1531_vm9, %v3539_v25, 0.0  ;;  %v3709_v18 = vld [vmem:[%s16082_s7 + $0x8] sm:$0xff]  ;;  %v3708_v50 = vld [vmem:[%s16082_s7] sm:$0xff] }
 0x626   : > { %3562 = vadd.xlane.f32.xlu0 %v3561_v51 }
 0x627   : > { %v3541_v33 = vmul.f32 %v13275_v11, %v13275_v11  ;;  %v3540_v46 = vmul.f32 %v13279_v5, %v13279_v5 }
 0x629   : > { %v3478_v40 = vpop.xlane.xlu0 %3477  ;;  %v3567_v55 = vsel %vm1531_vm9, %v3541_v33, 0.0  ;;  %v3564_v56 = vsel %vm1531_vm9, %v3540_v46, 0.0 }
 0x62a   : > { %v3511_v15 = vmul.f32 0.015625, %v3478_v40  ;;  %3568 = vadd.xlane.f32.xlu0 %v3567_v55  ;;  %3565 = vadd.xlane.f32.xlu1 %v3564_v56  ;;  %v3475_v35 = vpop.xlane.xlu1 %3474 }
 0x62b   : > { %v3510_v63 = vmul.f32 0.015625, %v3475_v35 }
 0x62c   : > { %v13290_v9 = vsub.f32 %v3446_v2, %v3511_v15  ;;  %v3721_v2 = vld [vmem:[%s16082_s7 + $0x68] sm:$0xff] }
 0x62d   : > { %v13294_v39 = vsub.f32 %v3445_v10, %v3510_v63  ;;  %3804 = vmatprep.subr.mxu0 %v3721_v2  ;;  %v3720_v10 = vld [vmem:[%s16082_s7 + $0x60] sm:$0xff] }
 0x62e   : > { %v3543_v20 = vmul.f32 %v13290_v9, %v13290_v9  ;;  %3805 = vmatpush1.msra.mxu0 %v3720_v10 }
 0x62f   : > { %v3542_v8 = vmul.f32 %v13294_v39, %v13294_v39  ;;  %3806 = vmatprep.subr.mxu0 %v3719_v1 }
 0x630   : > { %v3573_v22 = vsel %vm1531_vm9, %v3543_v20, 0.0  ;;  %3807 = vmatpush1.msra.mxu0 %v3718_v0 }
 0x631   : > { %3574 = vadd.xlane.f32.xlu0 %v3573_v22  ;;  %v3570_v47 = vsel %vm1531_vm9, %v3542_v8, 0.0  ;;  %3808 = vmatprep.subr.mxu0 %v3717_v42 }
 0x632   : > { %3571 = vadd.xlane.f32.xlu1 %v3570_v47  ;;  %3809 = vmatpush1.msra.mxu0 %v3716_v49 }
 0x633   : > { %3810 = vmatprep.subr.mxu0 %v3715_v3 }
 0x634   : > { %3811 = vmatpush1.msra.mxu0 %v3714_v60 }
 0x635   : > { %3812 = vmatprep.subr.mxu0 %v3713_v24 }
 0x636   : > { %3813 = vmatpush1.msra.mxu0 %v3712_v19 }
 0x637   : > { %3814 = vmatprep.subr.mxu0 %v3711_v36 }
 0x638   : > { %3815 = vmatpush1.msra.mxu0 %v3710_v44 }
 0x639   : > { %3816 = vmatprep.subr.mxu0 %v3709_v18 }
 0x63a   : > { %3817 = vmatpush1.msra.mxu0 %v3708_v50 }
 0x654   : > { %v3484_v25 = vpop.xlane.xlu0 %3483 }
 0x655   : > { %v3513_v51 = vmul.f32 0.015625, %v3484_v25 }
 0x657   : > { %v13352_v33 = vsub.f32 %v3448_v29, %v3513_v51 }
 0x658   : > { %v3481_v46 = vpop.xlane.xlu1 %3480 }
 0x659   : > { %v3512_v40 = vmul.f32 0.015625, %v3481_v46  ;;  %v3545_v55 = vmul.f32 %v13352_v33, %v13352_v33 }
 0x65b   : > { %v13358_v56 = vsub.f32 %v3447_v58, %v3512_v40  ;;  %v3579_v15 = vsel %vm1531_vm9, %v3545_v55, 0.0 }
 0x65c   : > { %v3490_v35 = vpop.xlane.xlu0 %3489  ;;  %3580 = vadd.xlane.f32.xlu0 %v3579_v15 }
 0x65d   : > { %v3515_v63 = vmul.f32 0.015625, %v3490_v35  ;;  %v3544_v20 = vmul.f32 %v13358_v56, %v13358_v56 }
 0x65f   : > { %v13365_v4 = vsub.f32 %v3450_v16, %v3515_v63  ;;  %v3576_v29 = vsel %vm1531_vm9, %v3544_v20, 0.0 }
 0x660   : > { %3577 = vadd.xlane.f32.xlu1 %v3576_v29  ;;  %v3487_v8 = vpop.xlane.xlu1 %3486 }
 0x661   : > { %v3514_v22 = vmul.f32 0.015625, %v3487_v8  ;;  %v3547_v52 = vmul.f32 %v13365_v4, %v13365_v4 }
 0x663   : > { %v13372_v58 = vsub.f32 %v3449_v57, %v3514_v22  ;;  %v3585_v47 = vsel %vm1531_vm9, %v3547_v52, 0.0 }
 0x664   : > { %v3496_v48 = vpop.xlane.xlu0 %3495  ;;  %3586 = vadd.xlane.f32.xlu0 %v3585_v47 }
 0x665   : > { %v3517_v32 = vmul.f32 0.015625, %v3496_v48  ;;  %v3546_v30 = vmul.f32 %v13372_v58, %v13372_v58 }
 0x667   : > { %v13379_v16 = vsub.f32 %v3452_v61, %v3517_v32  ;;  %v3582_v2 = vsel %vm1531_vm9, %v3546_v30, 0.0  ;;  %v13410_v32 = vld [vmem:[%s16080_s5] ss:$0 sm:$0xff] }
 0x668   : > { %3583 = vadd.xlane.f32.xlu1 %v3582_v2  ;;  %v3493_v10 = vpop.xlane.xlu1 %3492 }
 0x669   : > { %v3516_v1 = vmul.f32 0.015625, %v3493_v10  ;;  %v3549_v38 = vmul.f32 %v13379_v16, %v13379_v16 }
 0x66b   : > { %v13386_v57 = vsub.f32 %v3451_v26, %v3516_v1  ;;  %v3591_v0 = vsel %vm1531_vm9, %v3549_v38, 0.0 }
 0x66c   : > { %v3502_v42 = vpop.xlane.xlu0 %3501  ;;  %3592 = vadd.xlane.f32.xlu0 %v3591_v0 }
 0x66d   : > { %v3519_v49 = vmul.f32 0.015625, %v3502_v42  ;;  %v3548_v34 = vmul.f32 %v13386_v57, %v13386_v57 }
 0x66f   : > { %v13393_v61 = vsub.f32 %v3454_v54, %v3519_v49  ;;  %v3588_v3 = vsel %vm1531_vm9, %v3548_v34, 0.0  ;;  %v13417_v49 = vld [vmem:[%s16081_s6] ss:$0 sm:$0xff] }
 0x670   : > { %3589 = vadd.xlane.f32.xlu1 %v3588_v3  ;;  %v3499_v60 = vpop.xlane.xlu1 %3498 }
 0x671   : > { %v3518_v24 = vmul.f32 0.015625, %v3499_v60  ;;  %v3551_v27 = vmul.f32 %v13393_v61, %v13393_v61 }
 0x673   : > { %v13400_v26 = vsub.f32 %v3453_v59, %v3518_v24  ;;  %v3597_v19 = vsel %vm1531_vm9, %v3551_v27, 0.0 }
 0x674   : > { %3598 = vadd.xlane.f32.xlu0 %v3597_v19 }
 0x675   : > { %v3550_v7 = vmul.f32 %v13400_v26, %v13400_v26 }
 0x677   : > { %v3594_v54 = vsel %vm1531_vm9, %v3550_v7, 0.0 }
 0x678   : > { %3595 = vadd.xlane.f32.xlu1 %v3594_v54 }
 0x6a3   : > { %v3557_v36 = vpop.xlane.xlu0 %3556 }
 0x6a4   : > { %v3601_v44 = vmul.f32 0.015625, %v3557_v36 }
 0x6a6   : > { %v3617_v18 = vadd.f32 1e-05, %v3601_v44 }
 0x6a7   : > { %v3554_v50 = vpop.xlane.xlu1 %3553 }
 0x6a8   : > { %v3600_v25 = vmul.f32 0.015625, %v3554_v50  ;;  %10254 = vrsqrt.f32 %v3617_v18 }
 0x6aa   : > { %v3616_v51 = vadd.f32 1e-05, %v3600_v25 }
 0x6ab   : > { %v3560_v46 = vpop.xlane.xlu1 %3559 }
 0x6ac   : > { %10256 = vrsqrt.f32 %v3616_v51  ;;  %v3602_v53 = vmul.f32 0.015625, %v3560_v46 }
 0x6ae   : > { %v3618_v59 = vadd.f32 1e-05, %v3602_v53 }
 0x6af   : > { %v3563_v40 = vpop.xlane.xlu0 %3562 }
 0x6b0   : > { %10258 = vrsqrt.f32 %v3618_v59  ;;  %v3603_v55 = vmul.f32 0.015625, %v3563_v40 }
 0x6b2   : > { %v3619_v15 = vadd.f32 1e-05, %v3603_v55 }
 0x6b3   : > { %v3569_v35 = vpop.xlane.xlu0 %3568  ;;  %v3566_v63 = vpop.xlane.xlu1 %3565 }
 0x6b4   : > { %10260 = vrsqrt.f32 %v3619_v15  ;;  %v3605_v20 = vmul.f32 0.015625, %v3569_v35  ;;  %v3604_v29 = vmul.f32 0.015625, %v3566_v63 }
 0x6b5   : > { %v10255_v8 = vpop.eup %10254 }
 0x6b6   : > { %v3621_v22 = vadd.f32 1e-05, %v3605_v20  ;;  %v3620_v52 = vadd.f32 1e-05, %v3604_v29  ;;  %v3649_v48 = vmul.f32 %v10255_v8, %v13248_v17 }
 0x6b8   : > { %10262 = vrsqrt.f32 %v3620_v52  ;;  %v3671_v17 = vmul.f32 %v13410_v32, %v3649_v48 }
 0x6b9   : > { %v10257_v47 = vpop.eup %10256  ;;  %10264 = vrsqrt.f32 %v3621_v22 }
 0x6ba   : > { %v3648_v30 = vmul.f32 %v10257_v47, %v13254_v41  ;;  %v3575_v2 = vpop.xlane.xlu0 %3574  ;;  %v3693_v27 = vadd.f32 %v13417_v49, %v3671_v17 }
 0x6bb   : > { %v3607_v10 = vmul.f32 0.015625, %v3575_v2  ;;  %v3572_v1 = vpop.xlane.xlu1 %3571 }
 0x6bc   : > { %v3670_v38 = vmul.f32 %v13410_v32, %v3648_v30  ;;  %v3606_v0 = vmul.f32 0.015625, %v3572_v1 }
 0x6bd   : > { %v10259_v42 = vpop.eup %10258  ;;  %v3623_v34 = vadd.f32 1e-05, %v3607_v10 }
 0x6be   : > { %v3622_v3 = vadd.f32 1e-05, %v3606_v0  ;;  %v3692_v60 = vadd.f32 %v13417_v49, %v3670_v38  ;;  %v3650_v41 = vmul.f32 %v10259_v42, %v13261_v12 }
 0x6c0   : > { %10266 = vrsqrt.f32 %v3622_v3  ;;  %8164 = vmatmul.mubr.msk.f32.vlgmr.msra.gmra.mxu0 %vm1531_vm9, %v3692_v60  ;;  %v3672_v19 = vmul.f32 %v13410_v32, %v3650_v41 }
 0x6c1   : > { %v10261_v24 = vpop.eup %10260  ;;  %3856 = vmatprep.mubr.f32.mxu0 %v16523_v43  ;;  %10268 = vrsqrt.f32 %v3623_v34 }
 0x6c2   : > { %v3651_v7 = vmul.f32 %v10261_v24, %v13268_v6  ;;  %v3694_v12 = vadd.f32 %v13417_v49, %v3672_v19 }
 0x6c4   : > { %8165 = vmatmul.mubr.msk.f32.gmra.mxu0 %vm1531_vm9, %v3693_v27  ;;  %v3673_v36 = vmul.f32 %v13410_v32, %v3651_v7 }
 0x6c5   : > { %3862 = vmatprep.mubr.f32.mxu0 %v16523_v43  ;;  %v10263_v54 = vpop.eup %10262 }
 0x6c6   : > { %v10265_v44 = vpop.eup %10264  ;;  %v3652_v18 = vmul.f32 %v10263_v54, %v13279_v5  ;;  %v3695_v50 = vadd.f32 %v13417_v49, %v3673_v36 }
 0x6c7   : > { %v3653_v25 = vmul.f32 %v10265_v44, %v13275_v11 }
 0x6c8   : > { %8166 = vmatmul.mubr.msk.f32.gmra.mxu0 %vm1531_vm9, %v3694_v12  ;;  %v3674_v6 = vmul.f32 %v13410_v32, %v3652_v18 }
 0x6c9   : > { %3868 = vmatprep.mubr.f32.mxu0 %v16523_v43  ;;  %v3675_v53 = vmul.f32 %v13410_v32, %v3653_v25 }
 0x6ca   : > { %v3696_v46 = vadd.f32 %v13417_v49, %v3674_v6 }
 0x6cb   : > { %v3697_v40 = vadd.f32 %v13417_v49, %v3675_v53 }
 0x6cc   : > { %8167 = vmatmul.mubr.msk.f32.gmra.mxu0 %vm1531_vm9, %v3695_v50 }
 0x6cd   : > { %v10267_v51 = vpop.eup %10266  ;;  %3874 = vmatprep.mubr.f32.mxu0 %v16523_v43 }
 0x6ce   : > { %v3654_v5 = vmul.f32 %v10267_v51, %v13294_v39  ;;  %v10269_v59 = vpop.eup %10268 }
 0x6cf   : > { %v3655_v55 = vmul.f32 %v10269_v59, %v13290_v9 }
 0x6d0   : > { %8168 = vmatmul.mubr.msk.f32.gmra.mxu0 %vm1531_vm9, %v3696_v46  ;;  %v3676_v11 = vmul.f32 %v13410_v32, %v3654_v5 }
 0x6d1   : > { %3880 = vmatprep.mubr.f32.mxu0 %v16523_v43  ;;  %v3677_v35 = vmul.f32 %v13410_v32, %v3655_v55 }
 0x6d2   : > { %v3698_v15 = vadd.f32 %v13417_v49, %v3676_v11 }
 0x6d3   : > { %v3699_v39 = vadd.f32 %v13417_v49, %v3677_v35 }
 0x6d4   : > { %8169 = vmatmul.mubr.msk.f32.gmra.mxu0 %vm1531_vm9, %v3697_v40 }
 0x6d5   : > { %3886 = vmatprep.mubr.f32.mxu0 %v16523_v43 }
 0x6d8   : > { %8170 = vmatmul.mubr.msk.f32.gmra.mxu0 %vm1531_vm9, %v3698_v15 }
 0x6d9   : > { %3892 = vmatprep.mubr.f32.mxu0 %v16523_v43 }
 0x6dc   : > { %8171 = vmatmul.mubr.msk.f32.gmra.mxu0 %vm1531_vm9, %v3699_v39 }
 0x6dd   : > { %3898 = vmatprep.mubr.f32.mxu0 %v16523_v43 }
 0x6e5   : > { %v3581_v63 = vpop.xlane.xlu0 %3580 }
 0x6e6   : > { %v3609_v9 = vmul.f32 0.015625, %v3581_v63 }
 0x6e8   : > { %v3625_v20 = vadd.f32 1e-05, %v3609_v9 }
 0x6e9   : > { %v3578_v29 = vpop.xlane.xlu1 %3577 }
 0x6ea   : > { %v3608_v8 = vmul.f32 0.015625, %v3578_v29  ;;  %10270 = vrsqrt.f32 %v3625_v20 }
 0x6ec   : > { %v3624_v22 = vadd.f32 1e-05, %v3608_v8 }
 0x6ed   : > { %v3587_v52 = vpop.xlane.xlu0 %3586 }
 0x6ee   : > { %10272 = vrsqrt.f32 %v3624_v22  ;;  %v3611_v47 = vmul.f32 0.015625, %v3587_v52 }
 0x6f0   : > { %v3627_v48 = vadd.f32 1e-05, %v3611_v47 }
 0x6f1   : > { %v3584_v30 = vpop.xlane.xlu1 %3583 }
 0x6f2   : > { %v3610_v2 = vmul.f32 0.015625, %v3584_v30  ;;  %10274 = vrsqrt.f32 %v3627_v48 }
 0x6f4   : > { %v3626_v10 = vadd.f32 1e-05, %v3610_v2 }
 0x6f5   : > { %v3593_v1 = vpop.xlane.xlu0 %3592 }
 0x6f6   : > { %10276 = vrsqrt.f32 %v3626_v10  ;;  %v3613_v38 = vmul.f32 0.015625, %v3593_v1 }
 0x6f7   : > { %v10271_v0 = vpop.eup %10270 }
 0x6f8   : > { %v3629_v42 = vadd.f32 1e-05, %v3613_v38  ;;  %v3657_v60 = vmul.f32 %v10271_v0, %v13352_v33 }
 0x6f9   : > { %v3590_v17 = vpop.xlane.xlu1 %3589 }
 0x6fa   : > { %v3612_v34 = vmul.f32 0.015625, %v3590_v17  ;;  %10278 = vrsqrt.f32 %v3629_v42  ;;  %v3679_v54 = vmul.f32 %v13410_v32, %v3657_v60 }
 0x6fb   : > { %v10273_v3 = vpop.eup %10272 }
 0x6fc   : > { %v3628_v41 = vadd.f32 1e-05, %v3612_v34  ;;  %v3656_v24 = vmul.f32 %v10273_v3, %v13358_v56  ;;  %v3701_v56 = vadd.f32 %v13417_v49, %v3679_v54 }
 0x6fd   : > { %v3599_v27 = vpop.xlane.xlu0 %3598 }
 0x6fe   : > { %10280 = vrsqrt.f32 %v3628_v41  ;;  %v3615_v19 = vmul.f32 0.015625, %v3599_v27  ;;  %v3678_v7 = vmul.f32 %v13410_v32, %v3656_v24 }
 0x6ff   : > { %v10275_v44 = vpop.eup %10274 }
 0x700   : > { %v3631_v12 = vadd.f32 1e-05, %v3615_v19  ;;  %v3700_v36 = vadd.f32 %v13417_v49, %v3678_v7  ;;  %v3659_v51 = vmul.f32 %v10275_v44, %v13365_v4 }
 0x701   : > { %v3596_v18 = vpop.xlane.xlu1 %3595 }
 0x702   : > { %v3614_v50 = vmul.f32 0.015625, %v3596_v18  ;;  %8172 = vmatmul.mubr.msk.f32.gmra.mxu0 %vm1531_vm9, %v3700_v36  ;;  %10282 = vrsqrt.f32 %v3631_v12  ;;  %v3681_v5 = vmul.f32 %v13410_v32, %v3659_v51 }
 0x703   : > { %v10277_v33 = vpop.eup %10276  ;;  %3904 = vmatprep.mubr.f32.mxu0 %v16523_v43 }
 0x704   : > { %v3630_v6 = vadd.f32 1e-05, %v3614_v50  ;;  %v3658_v25 = vmul.f32 %v10277_v33, %v13372_v58  ;;  %v3703_v58 = vadd.f32 %v13417_v49, %v3681_v5  ;;  %v16538_v5 = vld [vmem:[#allocation14_spill] sm:$0xff] }
 0x706   : > { %10284 = vrsqrt.f32 %v3630_v6  ;;  %8173 = vmatmul.mubr.msk.f32.gmra.mxu0 %vm1531_vm9, %v3701_v56  ;;  %v3680_v46 = vmul.f32 %v13410_v32, %v3658_v25 }
 0x707   : > { %3910 = vmatprep.mubr.f32.mxu0 %v16523_v43  ;;  %v10279_v59 = vpop.eup %10278 }
 0x708   : > { %v3702_v53 = vadd.f32 %v13417_v49, %v3680_v46  ;;  %v3661_v11 = vmul.f32 %v10279_v59, %v13379_v16 }
 0x70a   : > { %8174 = vmatmul.mubr.msk.f32.gmra.mxu0 %vm1531_vm9, %v3702_v53  ;;  %v3683_v35 = vmul.f32 %v13410_v32, %v3661_v11 }
 0x70b   : > { %v10281_v40 = vpop.eup %10280  ;;  %3916 = vmatprep.mubr.f32.mxu0 %v16523_v43 }
 0x70c   : > { %v3660_v4 = vmul.f32 %v10281_v40, %v13386_v57  ;;  %v3705_v57 = vadd.f32 %v13417_v49, %v3683_v35 }
 0x70e   : > { %8175 = vmatmul.mubr.msk.f32.gmra.mxu0 %vm1531_vm9, %v3703_v58  ;;  %v3682_v55 = vmul.f32 %v13410_v32, %v3660_v4 }
 0x70f   : > { %3922 = vmatprep.mubr.f32.mxu0 %v16523_v43  ;;  %v10283_v39 = vpop.eup %10282 }
 0x710   : > { %v3704_v15 = vadd.f32 %v13417_v49, %v3682_v55  ;;  %v3663_v9 = vmul.f32 %v10283_v39, %v13393_v61  ;;  %v3724_v61 = vld [vmem:[%s16083_s8] sm:$0x3] }
 0x711   : > { %v13536_v59 = vrot.slane %v3724_v61, %v16538_v5 }
 0x712   : > { %8176 = vmatmul.mubr.msk.f32.gmra.mxu0 %vm1531_vm9, %v3704_v15  ;;  %v3685_v8 = vmul.f32 %v13410_v32, %v3663_v9 }
 0x713   : > { %v10285_v63 = vpop.eup %10284  ;;  %3928 = vmatprep.mubr.f32.mxu0 %v16523_v43 }
 0x714   : > { %v3662_v16 = vmul.f32 %v10285_v63, %v13400_v26  ;;  %v3707_v22 = vadd.f32 %v13417_v49, %v3685_v8  ;;  %v16537_v26 = vld [vmem:[#allocation13_spill] sm:$0xff] }
 0x715   : > { %v13499_v52 = vrot.slane %v3724_v61, %v16537_v26  ;;  %v16566_v26 = vld [vmem:[#allocation46_spill] sm:$0xff] }
 0x716   : > { %8177 = vmatmul.mubr.msk.f32.gmra.mxu0 %vm1531_vm9, %v3705_v57  ;;  %v3684_v20 = vmul.f32 %v13410_v32, %v3662_v16 }
 0x717   : > { %3934 = vmatprep.mubr.f32.mxu0 %v16523_v43 }
 0x718   : > { %v3706_v29 = vadd.f32 %v13417_v49, %v3684_v20 }
 0x71a   : > { %8178 = vmatmul.mubr.msk.f32.gmra.mxu0 %vm1531_vm9, %v3706_v29 }
 0x71b   : > { %3940 = vmatprep.mubr.f32.mxu0 %v16523_v43 }
 0x71e   : > { %8179 = vmatmul.mubr.msk.f32.gmra.mxu0 %vm1531_vm9, %v3707_v22 }
 0x780   : > { %v3852_v47 = vpop.f32.mrf.mxu0 }
 0x781   : > { %v13502_v48 = vadd.f32 %v3852_v47, %v13499_v52 }
 0x782   : > { %v13506_v32 = vpop.f32.mrf.mxu0 }
 0x783   : > { %9030 = vmatprep.mubr.msk.f32.mxu1 %vm1463_vm2, %v13502_v48 }
 0x784   : > { %v13508_v30 = vpop.f32.mrf.mxu0 }
 0x786   : > { %v13510_v49 = vpop.f32.mrf.mxu0 }
 0x788   : > { %v13512_v2 = vpop.f32.mrf.mxu0 }
 0x78a   : > { %v13514_v10 = vpop.f32.mrf.mxu0 }
 0x78c   : > { %v13516_v1 = vpop.f32.mrf.mxu0 }
 0x78e   : > { %v13518_v38 = vpop.f32.mrf.mxu0 }
 0x790   : > { %v13520_v0 = vpop.f32.mrf.mxu0 }
 0x792   : > { %v13522_v42 = vpop.f32.mrf.mxu0 }
 0x794   : > { %v3882_v17 = vpop.f32.mrf.mxu0 }
 0x795   : > { %v13599_v8 = vadd.f32 %v3882_v17, %v13499_v52  ;;  %v13620_v17 = vadd.f32 %v13516_v1, %v13499_v52 }
 0x796   : > { %v13524_v34 = vpop.f32.mrf.mxu0 }
 0x798   : > { %v13526_v3 = vpop.f32.mrf.mxu0 }
 0x79a   : > { %v13528_v60 = vpop.f32.mrf.mxu0 }
 0x79b   : > { %v13638_v1 = vadd.f32 %v13528_v60, %v13536_v59 }
 0x79c   : > { %v3894_v41 = vpop.f32.mrf.mxu0 }
 0x79d   : > { %v13579_v16 = vadd.f32 %v3894_v41, %v13499_v52  ;;  %16548 = vst [vmem:[#allocation63_spill] sm:$0xff] %v13638_v1 }
 0x79e   : > { %v3896_v24 = vpop.f32.mrf.mxu0 }
 0x79f   : > { %v13624_v41 = vadd.f32 %v3896_v24, %v13536_v59  ;;  %v13643_v24 = vadd.f32 %v13508_v30, %v13499_v52  ;;  %v13658_v30 = vadd.f32 %v13520_v0, %v13499_v52  ;;  %v13678_v0 = vadd.f32 %v13512_v2, %v13499_v52 }
 0x7a1   : > { %16547 = vst [vmem:[#allocation61_spill] sm:$0xff] %v13624_v41 }
 0x7c2   : > { %v3900_v27 = vpop.f32.mrf.mxu0 }
 0x7c3   : > { %v13612_v61 = vadd.f32 %v3900_v27, %v13499_v52  ;;  %v13634_v27 = vadd.f32 %v13526_v3, %v13499_v52  ;;  %v13662_v3 = vadd.f32 %v13522_v42, %v13536_v59  ;;  %v13682_v42 = vadd.f32 %v13514_v10, %v13536_v59 }
 0x7c4   : > { %v3902_v19 = vpop.f32.mrf.mxu0 }
 0x7c5   : > { %v13615_v47 = vadd.f32 %v3902_v19, %v13536_v59  ;;  %v13648_v19 = vadd.f32 %v13524_v34, %v13536_v59  ;;  %16550 = vst [vmem:[#allocation64_spill] sm:$0xff] %v13662_v3  ;;  %v13668_v34 = vadd.f32 %v13518_v38, %v13536_v59  ;;  %v13688_v38 = vadd.f32 %v13510_v49, %v13536_v59 }
 0x7c6   : > { %v3906_v7 = vpop.f32.mrf.mxu0 }
 0x7c7   : > { %v13559_v35 = vadd.f32 %v3906_v7, %v13499_v52  ;;  %16546 = vst [vmem:[#allocation60_spill] sm:$0xff] %v13615_v47  ;;  %16549 = vst [vmem:[#allocation62_spill] sm:$0xff] %v13648_v19 }
 0x7c8   : > { %v3908_v54 = vpop.f32.mrf.mxu0  ;;  %16551 = vst [vmem:[#allocation65_spill] sm:$0xff] %v13668_v34 }
 0x7c9   : > { %v13603_v22 = vadd.f32 %v3908_v54, %v13536_v59 }
 0x7ca   : > { %v3912_v12 = vpop.f32.mrf.mxu0 }
 0x7cb   : > { %v13592_v20 = vadd.f32 %v3912_v12, %v13499_v52  ;;  %16545 = vst [vmem:[#allocation58_spill] sm:$0xff] %v13603_v22 }
 0x7cc   : > { %v3914_v36 = vpop.f32.mrf.mxu0 }
 0x7cd   : > { %v13595_v29 = vadd.f32 %v3914_v36, %v13536_v59 }
 0x7ce   : > { %v3918_v44 = vpop.f32.mrf.mxu0 }
 0x7cf   : > { %v13539_v40 = vadd.f32 %v3918_v44, %v13499_v52  ;;  %16544 = vst [vmem:[#allocation59_spill] sm:$0xff] %v13595_v29 }
 0x7d0   : > { %v3920_v18 = vpop.f32.mrf.mxu0 }
 0x7d1   : > { %v13583_v9 = vadd.f32 %v3920_v18, %v13536_v59 }
 0x7d2   : > { %v3924_v50 = vpop.f32.mrf.mxu0 }
 0x7d3   : > { %v13572_v63 = vadd.f32 %v3924_v50, %v13499_v52  ;;  %16543 = vst [vmem:[#allocation57_spill] sm:$0xff] %v13583_v9 }
 0x7d4   : > { %v3926_v33 = vpop.f32.mrf.mxu0 }
 0x7d5   : > { %v13575_v57 = vadd.f32 %v3926_v33, %v13536_v59 }
 0x7d6   : > { %v3930_v56 = vpop.f32.mrf.mxu0 }
 0x7d7   : > { %v13552_v55 = vadd.f32 %v3930_v56, %v13499_v52  ;;  %16542 = vst [vmem:[#allocation56_spill] sm:$0xff] %v13575_v57 }
 0x7d8   : > { %v3932_v6 = vpop.f32.mrf.mxu0 }
 0x7d9   : > { %v13563_v39 = vadd.f32 %v3932_v6, %v13536_v59 }
 0x7da   : > { %v3936_v25 = vpop.f32.mrf.mxu0 }
 0x7db   : > { %v13531_v51 = vadd.f32 %v3936_v25, %v13499_v52  ;;  %16541 = vst [vmem:[#allocation30_spill] sm:$0xff] %v13563_v39 }
 0x7dc   : > { %v3938_v46 = vpop.f32.mrf.mxu0 }
 0x7dd   : > { %3991 = vrot.lane.b32.xlu0 %v13531_v51, %s16384_s2  ;;  %v13555_v15 = vadd.f32 %v3938_v46, %v13536_v59 }
 0x7de   : > { %v3942_v53 = vpop.f32.mrf.mxu0 }
 0x7df   : > { %v13542_v58 = vadd.f32 %v3942_v53, %v13499_v52  ;;  %16540 = vst [vmem:[#allocation28_spill] sm:$0xff] %v13555_v15  ;;  %v13698_v52 = vadd.f32 %v13506_v32, %v13536_v59 }
 0x7e0   : > { %v3944_v4 = vpop.f32.mrf.mxu0 }
 0x7e1   : > { %v13545_v11 = vadd.f32 %v3944_v4, %v13536_v59  ;;  %3993 = vrot.lane.b32.xlu1 %v13542_v58, %s16384_s2  ;;  %3985 = vrot.lane.b32.xlu0 %v13539_v40, %s16384_s2 }
 0x7e3   : > { %16539 = vst [vmem:[#allocation29_spill] sm:$0xff] %v13545_v11  ;;  %9054 = vmatprep.subr.mxu0 %v13545_v11 }
 0x7e4   : > { %9055 = vmatpush3.msra.mxu0 %v13545_v11 }
 0x7e5   : > { %3989 = vrot.lane.b32.xlu1 %v13552_v55, %s16384_s2  ;;  %9056 = vmatprep.subr.mxu0 %v13555_v15 }
 0x7e6   : > { %3981 = vrot.lane.b32.xlu0 %v13559_v35, %s16384_s2  ;;  %9057 = vmatpush3.msra.mxu0 %v13555_v15 }
 0x7e7   : > { %9058 = vmatprep.subr.mxu0 %v13563_v39 }
 0x7e8   : > { %9059 = vmatpush3.msra.mxu0 %v13563_v39 }
 0x7e9   : > { %3987 = vrot.lane.b32.xlu1 %v13572_v63, %s16384_s2  ;;  %9060 = vmatprep.subr.mxu0 %v13575_v57 }
 0x7ea   : > { %3977 = vrot.lane.b32.xlu0 %v13579_v16, %s16384_s2  ;;  %9061 = vmatpush3.msra.mxu0 %v13575_v57 }
 0x7eb   : > { %9062 = vmatprep.subr.mxu0 %v13583_v9 }
 0x7ec   : > { %9063 = vmatpush3.msra.mxu0 %v13583_v9 }
 0x7ed   : > { %3983 = vrot.lane.b32.xlu1 %v13592_v20, %s16384_s2  ;;  %9064 = vmatprep.subr.mxu0 %v13595_v29 }
 0x7ee   : > { %3973 = vrot.lane.b32.xlu0 %v13599_v8, %s16384_s2  ;;  %9065 = vmatpush3.msra.mxu0 %v13595_v29 }
 0x7ef   : > { %9066 = vmatprep.subr.mxu0 %v13603_v22 }
 0x7f0   : > { %9067 = vmatpush3.msra.mxu0 %v13603_v22 }
 0x7f1   : > { %3979 = vrot.lane.b32.xlu1 %v13612_v61, %s16384_s2  ;;  %9068 = vmatprep.subr.mxu0 %v13615_v47 }
 0x7f2   : > { %3969 = vrot.lane.b32.xlu0 %v13620_v17, %s16384_s2  ;;  %9069 = vmatpush3.msra.mxu0 %v13615_v47 }
 0x7f3   : > { %9070 = vmatprep.subr.mxu0 %v13624_v41 }
 0x7f4   : > { %9071 = vmatpush3.msra.mxu0 %v13624_v41 }
 0x7f5   : > { %3975 = vrot.lane.b32.xlu1 %v13634_v27, %s16384_s2  ;;  %9072 = vmatprep.subr.mxu0 %v13638_v1 }
 0x7f6   : > { %3965 = vrot.lane.b32.xlu0 %v13643_v24, %s16384_s2  ;;  %9073 = vmatpush3.msra.mxu0 %v13638_v1 }
 0x7f7   : > { %9074 = vmatprep.subr.mxu0 %v13648_v19 }
 0x7f8   : > { %9075 = vmatpush3.msra.mxu0 %v13648_v19 }
 0x7f9   : > { %3971 = vrot.lane.b32.xlu1 %v13658_v30, %s16384_s2  ;;  %9076 = vmatprep.subr.mxu0 %v13662_v3 }
 0x7fa   : > { %4635 = vrot.lane.b32.xlu0 %v13542_v58, %s16385_s29  ;;  %9077 = vmatpush3.msra.mxu0 %v13662_v3 }
 0x7fb   : > { %9078 = vmatprep.subr.mxu0 %v13668_v34 }
 0x7fc   : > { %9079 = vmatpush3.msra.mxu0 %v13668_v34 }
 0x7fd   : > { %3967 = vrot.lane.b32.xlu1 %v13678_v0, %s16384_s2  ;;  %9080 = vmatprep.subr.mxu0 %v13682_v42 }
 0x7fe   : > { %4631 = vrot.lane.b32.xlu0 %v13552_v55, %s16385_s29  ;;  %9081 = vmatpush3.msra.mxu0 %v13682_v42 }
 0x7ff   : > { %9082 = vmatprep.subr.mxu0 %v13688_v38 }
 0x800   : > { %9083 = vmatpush3.msra.mxu0 %v13688_v38 }
 0x801   : > { %3963 = vrot.lane.b32.xlu1 %v13502_v48, %s16384_s2  ;;  %9084 = vmatprep.subr.mxu0 %v13698_v52 }
 0x802   : > { %4627 = vrot.lane.b32.xlu0 %v13539_v40, %s16385_s29  ;;  %9085 = vmatpush3.msra.mxu0 %v13698_v52 }
 0x805   : > { %4633 = vrot.lane.b32.xlu1 %v13531_v51, %s16385_s29 }
 0x806   : > { %4623 = vrot.lane.b32.xlu0 %v13559_v35, %s16385_s29 }
 0x809   : > { %4629 = vrot.lane.b32.xlu1 %v13572_v63, %s16385_s29 }
 0x80a   : > { %4619 = vrot.lane.b32.xlu0 %v13579_v16, %s16385_s29 }
 0x80d   : > { %4625 = vrot.lane.b32.xlu1 %v13592_v20, %s16385_s29 }
 0x80e   : > { %4615 = vrot.lane.b32.xlu0 %v13599_v8, %s16385_s29 }
 0x811   : > { %4621 = vrot.lane.b32.xlu1 %v13612_v61, %s16385_s29 }
 0x812   : > { %4611 = vrot.lane.b32.xlu0 %v13620_v17, %s16385_s29 }
 0x815   : > { %4617 = vrot.lane.b32.xlu1 %v13634_v27, %s16385_s29 }
 0x816   : > { %4607 = vrot.lane.b32.xlu0 %v13643_v24, %s16385_s29 }
 0x819   : > { %4613 = vrot.lane.b32.xlu1 %v13658_v30, %s16385_s29 }
 0x81a   : > { %4573 = vrot.lane.b32.xlu0 %v13502_v48, %s16389_s24 }
 0x81d   : > { %4609 = vrot.lane.b32.xlu1 %v13678_v0, %s16385_s29 }
 0x81e   : > { %4577 = vrot.lane.b32.xlu0 %v13678_v0, %s16389_s24 }
 0x821   : > { %4605 = vrot.lane.b32.xlu1 %v13502_v48, %s16385_s29 }
 0x822   : > { %4581 = vrot.lane.b32.xlu0 %v13658_v30, %s16389_s24 }
 0x825   : > { %4575 = vrot.lane.b32.xlu1 %v13643_v24, %s16389_s24 }
 0x826   : > { %4585 = vrot.lane.b32.xlu0 %v13634_v27, %s16389_s24 }
 0x829   : > { %4579 = vrot.lane.b32.xlu1 %v13620_v17, %s16389_s24 }
 0x82a   : > { %4589 = vrot.lane.b32.xlu0 %v13612_v61, %s16389_s24 }
 0x82d   : > { %4583 = vrot.lane.b32.xlu1 %v13599_v8, %s16389_s24 }
 0x82e   : > { %4593 = vrot.lane.b32.xlu0 %v13592_v20, %s16389_s24 }
 0x831   : > { %4587 = vrot.lane.b32.xlu1 %v13579_v16, %s16389_s24 }
 0x832   : > { %4597 = vrot.lane.b32.xlu0 %v13572_v63, %s16389_s24 }
 0x835   : > { %4591 = vrot.lane.b32.xlu1 %v13559_v35, %s16389_s24 }
 0x836   : > { %4601 = vrot.lane.b32.xlu0 %v13531_v51, %s16389_s24 }
 0x839   : > { %4595 = vrot.lane.b32.xlu1 %v13539_v40, %s16389_s24 }
 0x83a   : > { %5114 = vrot.lane.b32.xlu0 %v13555_v15, %s16389_s24 }
 0x83d   : > { %4599 = vrot.lane.b32.xlu1 %v13552_v55, %s16389_s24 }
 0x83e   : > { %5106 = vrot.lane.b32.xlu0 %v13595_v29, %s16389_s24 }
 0x841   : > { %4603 = vrot.lane.b32.xlu1 %v13542_v58, %s16389_s24 }
 0x842   : > { %5100 = vrot.lane.b32.xlu0 %v13624_v41, %s16389_s24 }
 0x845   : > { %5112 = vrot.lane.b32.xlu1 %v13563_v39, %s16389_s24 }
 0x846   : > { %5098 = vrot.lane.b32.xlu0 %v13638_v1, %s16389_s24 }
 0x849   : > { %5110 = vrot.lane.b32.xlu1 %v13575_v57, %s16389_s24  ;;  %v16568_v57 = vld [vmem:[#allocation51_spill] sm:$0xff] }
 0x84a   : > { %5092 = vrot.lane.b32.xlu0 %v13668_v34, %s16389_s24 }
 0x84d   : > { %5108 = vrot.lane.b32.xlu1 %v13583_v9, %s16389_s24 }
 0x84f   : > { %v3992_v32 = vpop.permute.xlu0 %3991 }
 0x851   : > { %5104 = vrot.lane.b32.xlu1 %v13603_v22, %s16389_s24  ;;  %v16570_v22 = vld [vmem:[#allocation55_spill] sm:$0xff] }
 0x853   : > { %v3994_v48 = vpop.permute.xlu1 %3993  ;;  %v3986_v10 = vpop.permute.xlu0 %3985 }
 0x854   : > { %8998 = vmatprep.subr.msk.mxu1 %vm1463_vm2, %v3994_v48 }
 0x855   : > { %8999 = vmatpush3.xpose.msk.msra.mxu1 %vm1463_vm2, %v3994_v48  ;;  %5102 = vrot.lane.b32.xlu1 %v13615_v47, %s16389_s24 }
 0x856   : > { %9000 = vmatprep.subr.msk.mxu1 %vm1463_vm2, %v3992_v32 }
 0x857   : > { %v3990_v49 = vpop.permute.xlu1 %3989 }
 0x858   : > { %v3982_v7 = vpop.permute.xlu0 %3981 }
 0x859   : > { %5096 = vrot.lane.b32.xlu1 %v13648_v19, %s16389_s24  ;;  %9001 = vmatpush3.xpose.msk.msra.mxu1 %vm1463_vm2, %v3992_v32 }
 0x85a   : > { %9002 = vmatprep.subr.msk.mxu1 %vm1463_vm2, %v3990_v49 }
 0x85b   : > { %v3988_v2 = vpop.permute.xlu1 %3987 }
 0x85c   : > { %v3978_v36 = vpop.permute.xlu0 %3977 }
 0x85d   : > { %5094 = vrot.lane.b32.xlu1 %v13662_v3, %s16389_s24  ;;  %9003 = vmatpush3.xpose.msk.msra.mxu1 %vm1463_vm2, %v3990_v49 }
 0x85e   : > { %9004 = vmatprep.subr.msk.mxu1 %vm1463_vm2, %v3988_v2 }
 0x85f   : > { %v3984_v60 = vpop.permute.xlu1 %3983 }
 0x860   : > { %v3974_v18 = vpop.permute.xlu0 %3973 }
 0x861   : > { %5116 = vrot.lane.b32.xlu1 %v13545_v11, %s16389_s24  ;;  %9005 = vmatpush3.xpose.msk.msra.mxu1 %vm1463_vm2, %v3988_v2 }
 0x862   : > { %9006 = vmatprep.subr.msk.mxu1 %vm1463_vm2, %v3986_v10 }
 0x863   : > { %v3980_v54 = vpop.permute.xlu1 %3979 }
 0x864   : > { %v3970_v56 = vpop.permute.xlu0 %3969 }
 0x865   : > { %9007 = vmatpush3.xpose.msk.msra.mxu1 %vm1463_vm2, %v3986_v10 }
 0x866   : > { %9008 = vmatprep.subr.msk.mxu1 %vm1463_vm2, %v3984_v60 }
 0x867   : > { %v3976_v12 = vpop.permute.xlu1 %3975 }
 0x868   : > { %v3966_v25 = vpop.permute.xlu0 %3965 }
 0x869   : > { %9009 = vmatpush3.xpose.msk.msra.mxu1 %vm1463_vm2, %v3984_v60 }
 0x86a   : > { %9010 = vmatprep.subr.msk.mxu1 %vm1463_vm2, %v3982_v7 }
 0x86b   : > { %v3972_v44 = vpop.permute.xlu1 %3971 }
 0x86c   : > { %v4636_v59 = vpop.permute.xlu0 %4635 }
 0x86d   : > { %9011 = vmatpush3.xpose.msk.msra.mxu1 %vm1463_vm2, %v3982_v7 }
 0x86e   : > { %9012 = vmatprep.subr.msk.mxu1 %vm1463_vm2, %v3980_v54 }
 0x86f   : > { %v3968_v50 = vpop.permute.xlu1 %3967 }
 0x870   : > { %v4632_v48 = vpop.permute.xlu0 %4631 }
 0x871   : > { %9013 = vmatpush3.xpose.msk.msra.mxu1 %vm1463_vm2, %v3980_v54 }
 0x872   : > { %9014 = vmatprep.subr.msk.mxu1 %vm1463_vm2, %v3978_v36 }
 0x873   : > { %v3964_v33 = vpop.permute.xlu1 %3963 }
 0x874   : > { %v4628_v2 = vpop.permute.xlu0 %4627 }
 0x875   : > { %9015 = vmatpush3.xpose.msk.msra.mxu1 %vm1463_vm2, %v3978_v36 }
 0x876   : > { %9016 = vmatprep.subr.msk.mxu1 %vm1463_vm2, %v3976_v12 }
 0x877   : > { %v4634_v6 = vpop.permute.xlu1 %4633 }
 0x878   : > { %v4624_v60 = vpop.permute.xlu0 %4623 }
 0x879   : > { %9017 = vmatpush3.xpose.msk.msra.mxu1 %vm1463_vm2, %v3976_v12 }
 0x87a   : > { %9018 = vmatprep.subr.msk.mxu1 %vm1463_vm2, %v3974_v18 }
 0x87b   : > { %v4630_v46 = vpop.permute.xlu1 %4629 }
 0x87c   : > { %v4620_v12 = vpop.permute.xlu0 %4619 }
 0x87d   : > { %9019 = vmatpush3.xpose.msk.msra.mxu1 %vm1463_vm2, %v3974_v18 }
 0x87e   : > { %9020 = vmatprep.subr.msk.mxu1 %vm1463_vm2, %v3972_v44 }
 0x87f   : > { %v4626_v53 = vpop.permute.xlu1 %4625 }
 0x881   : > { %9021 = vmatpush3.xpose.msk.msra.mxu1 %vm1463_vm2, %v3972_v44 }
 0x882   : > { %9022 = vmatprep.subr.msk.mxu1 %vm1463_vm2, %v3970_v56 }
 0x883   : > { %v4622_v4 = vpop.permute.xlu1 %4621 }
 0x885   : > { %9023 = vmatpush3.xpose.msk.msra.mxu1 %vm1463_vm2, %v3970_v56 }
 0x886   : > { %9024 = vmatprep.subr.msk.mxu1 %vm1463_vm2, %v3968_v50 }
 0x887   : > { %v4618_v32 = vpop.permute.xlu1 %4617 }
 0x889   : > { %9025 = vmatpush3.xpose.msk.msra.mxu1 %vm1463_vm2, %v3968_v50 }
 0x88a   : > { %9026 = vmatprep.subr.msk.mxu1 %vm1463_vm2, %v3966_v25 }
 0x88b   : > { %v13821_v49 = vpop.permute.xlu1 %4613 }
 0x88d   : > { %9027 = vmatpush3.xpose.msk.msra.mxu1 %vm1463_vm2, %v3966_v25 }
 0x88e   : > { %9028 = vmatprep.subr.msk.mxu1 %vm1463_vm2, %v3964_v33 }
 0x88f   : > { %v13825_v10 = vpop.permute.xlu1 %4609 }
 0x891   : > { %9029 = vmatpush3.xpose.msk.msra.mxu1 %vm1463_vm2, %v3964_v33 }
 0x892   : > { %9110 = vmatprep.subr.msk.mxu1 %vm1463_vm2, %v4636_v59 }
 0x893   : > { %v13829_v7 = vpop.permute.xlu1 %4605 }
 0x894   : > { %9031 = vmatmul.mubr.msk.f32.vlgmr.msra.gmra.mxu1 %vm1463_vm2, %v13643_v24 }
 0x895   : > { %9033 = vmatprep.mubr.msk.f32.mxu1 %vm1463_vm2, %v13678_v0  ;;  %9111 = vmatpush3.xpose.msk.msra.mxu1 %vm1463_vm2, %v4636_v59  ;;  %v4616_v0 = vpop.permute.xlu0 %4615 }
 0x896   : > { %9112 = vmatprep.subr.msk.mxu1 %vm1463_vm2, %v4634_v6 }
 0x897   : > { %v13837_v54 = vpop.permute.xlu1 %4575 }
 0x898   : > { %9034 = vmatmul.mubr.msk.f32.gmra.mxu1 %vm1463_vm2, %v13620_v17 }
 0x899   : > { %9036 = vmatprep.mubr.msk.f32.mxu1 %vm1463_vm2, %v13658_v30  ;;  %9113 = vmatpush3.xpose.msk.msra.mxu1 %vm1463_vm2, %v4634_v6  ;;  %v4612_v30 = vpop.permute.xlu0 %4611 }
 0x89a   : > { %9114 = vmatprep.subr.msk.mxu1 %vm1463_vm2, %v4632_v48 }
 0x89b   : > { %v13845_v24 = vpop.permute.xlu1 %4579 }
 0x89c   : > { %9037 = vmatmul.mubr.msk.f32.gmra.mxu1 %vm1463_vm2, %v13599_v8 }
 0x89d   : > { %9039 = vmatprep.mubr.msk.f32.mxu1 %vm1463_vm2, %v13634_v27  ;;  %9115 = vmatpush3.xpose.msk.msra.mxu1 %vm1463_vm2, %v4632_v48 }
 0x89e   : > { %9116 = vmatprep.subr.msk.mxu1 %vm1463_vm2, %v4630_v46 }
 0x89f   : > { %v4584_v17 = vpop.permute.xlu1 %4583 }
 0x8a0   : > { %9040 = vmatmul.mubr.msk.f32.gmra.mxu1 %vm1463_vm2, %v13579_v16 }
 0x8a1   : > { %9042 = vmatprep.mubr.msk.f32.mxu1 %vm1463_vm2, %v13612_v61  ;;  %9117 = vmatpush3.xpose.msk.msra.mxu1 %vm1463_vm2, %v4630_v46  ;;  %v4608_v61 = vpop.permute.xlu0 %4607 }
 0x8a2   : > { %9118 = vmatprep.subr.msk.mxu1 %vm1463_vm2, %v4628_v2 }
 0x8a3   : > { %v4588_v8 = vpop.permute.xlu1 %4587 }
 0x8a4   : > { %9043 = vmatmul.mubr.msk.f32.gmra.mxu1 %vm1463_vm2, %v13559_v35 }
 0x8a5   : > { %9045 = vmatprep.mubr.msk.f32.mxu1 %vm1463_vm2, %v13592_v20  ;;  %9119 = vmatpush3.xpose.msk.msra.mxu1 %vm1463_vm2, %v4628_v2  ;;  %v4574_v20 = vpop.permute.xlu0 %4573 }
 0x8a6   : > { %9120 = vmatprep.subr.msk.mxu1 %vm1463_vm2, %v4626_v53 }
 0x8a7   : > { %v4592_v16 = vpop.permute.xlu1 %4591 }
 0x8a8   : > { %9046 = vmatmul.mubr.msk.f32.gmra.mxu1 %vm1463_vm2, %v13539_v40 }
 0x8a9   : > { %9048 = vmatprep.mubr.msk.f32.mxu1 %vm1463_vm2, %v13572_v63  ;;  %9121 = vmatpush3.xpose.msk.msra.mxu1 %vm1463_vm2, %v4626_v53  ;;  %v4578_v44 = vpop.permute.xlu0 %4577 }
 0x8aa   : > { %9122 = vmatprep.subr.msk.mxu1 %vm1463_vm2, %v4624_v60 }
 0x8ab   : > { %v4596_v35 = vpop.permute.xlu1 %4595 }
 0x8ac   : > { %9049 = vmatmul.mubr.msk.f32.gmra.mxu1 %vm1463_vm2, %v13552_v55 }
 0x8ad   : > { %9051 = vmatprep.mubr.msk.f32.mxu1 %vm1463_vm2, %v13531_v51  ;;  %9123 = vmatpush3.xpose.msk.msra.mxu1 %vm1463_vm2, %v4624_v60  ;;  %v4582_v50 = vpop.permute.xlu0 %4581 }
 0x8ae   : > { %9124 = vmatprep.subr.msk.mxu1 %vm1463_vm2, %v4622_v4 }
 0x8af   : > { %v4600_v40 = vpop.permute.xlu1 %4599 }
 0x8b0   : > { %9052 = vmatmul.mubr.msk.f32.gmra.mxu1 %vm1463_vm2, %v13542_v58 }
 0x8b1   : > { %9125 = vmatpush3.xpose.msk.msra.mxu1 %vm1463_vm2, %v4622_v4  ;;  %9142 = vmatprep.mubr.msk.f32.mxu1 %vm1463_vm2, %v4574_v20  ;;  %v4586_v6 = vpop.permute.xlu0 %4585 }
 0x8b2   : > { %9126 = vmatprep.subr.msk.mxu1 %vm1463_vm2, %v4620_v12 }
 0x8b3   : > { %v4604_v63 = vpop.permute.xlu1 %4603 }
 0x8b5   : > { %9127 = vmatpush3.xpose.msk.msra.mxu1 %vm1463_vm2, %v4620_v12  ;;  %v4590_v25 = vpop.permute.xlu0 %4589 }
 0x8b6   : > { %9128 = vmatprep.subr.msk.mxu1 %vm1463_vm2, %v4618_v32 }
 0x8b7   : > { %v13884_v51 = vpop.permute.xlu1 %5112 }
 0x8b9   : > { %9129 = vmatpush3.xpose.msk.msra.mxu1 %vm1463_vm2, %v4618_v32  ;;  %v4594_v46 = vpop.permute.xlu0 %4593 }
 0x8ba   : > { %9130 = vmatprep.subr.msk.mxu1 %vm1463_vm2, %v4616_v0 }
 0x8bb   : > { %v13888_v55 = vpop.permute.xlu1 %5110 }
 0x8bd   : > { %9131 = vmatpush3.xpose.msk.msra.mxu1 %vm1463_vm2, %v4616_v0  ;;  %v4598_v53 = vpop.permute.xlu0 %4597 }
 0x8be   : > { %9132 = vmatprep.subr.msk.mxu1 %vm1463_vm2, %v13821_v49 }
 0x8bf   : > { %v13893_v58 = vpop.permute.xlu1 %5108 }
 0x8c1   : > { %9133 = vmatpush3.xpose.msk.msra.mxu1 %vm1463_vm2, %v13821_v49  ;;  %v4602_v59 = vpop.permute.xlu0 %4601  ;;  %v16556_v49 = vld [vmem:[#allocation31_spill] sm:$0xff] }
 0x8c2   : > { %9134 = vmatprep.subr.msk.mxu1 %vm1463_vm2, %v4612_v30 }
 0x8c3   : > { %v13898_v27 = vpop.permute.xlu1 %5104 }
 0x8c4   : > { %16552 = vst [vmem:[#allocation27_spill] sm:$0xff] %v13898_v27 }
 0x8c5   : > { %9135 = vmatpush3.xpose.msk.msra.mxu1 %vm1463_vm2, %v4612_v30 }
 0x8c6   : > { %9136 = vmatprep.subr.msk.mxu1 %vm1463_vm2, %v13825_v10 }
 0x8c7   : > { %v13903_v36 = vpop.permute.xlu1 %5102 }
 0x8c8   : > { %16553 = vst [vmem:[#allocation26_spill] sm:$0xff] %v13903_v36 }
 0x8c9   : > { %9137 = vmatpush3.xpose.msk.msra.mxu1 %vm1463_vm2, %v13825_v10 }
 0x8ca   : > { %9138 = vmatprep.subr.msk.mxu1 %vm1463_vm2, %v4608_v61 }
 0x8cb   : > { %v13908_v18 = vpop.permute.xlu1 %5096 }
 0x8cc   : > { %16554 = vst [vmem:[#allocation25_spill] sm:$0xff] %v13908_v18 }
 0x8cd   : > { %9139 = vmatpush3.xpose.msk.msra.mxu1 %vm1463_vm2, %v4608_v61 }
 0x8ce   : > { %9140 = vmatprep.subr.msk.mxu1 %vm1463_vm2, %v13829_v7 }
 0x8cf   : > { %v13913_v33 = vpop.permute.xlu1 %5094 }
 0x8d0   : > { %16555 = vst [vmem:[#allocation24_spill] sm:$0xff] %v13913_v33 }
 0x8d1   : > { %9141 = vmatpush3.xpose.msk.msra.mxu1 %vm1463_vm2, %v13829_v7  ;;  %v16557_v7 = vld [vmem:[#allocation44_spill] sm:$0xff] }
 0x8d3   : > { %v13917_v56 = vpop.permute.xlu1 %5116 }
 0x8d4   : > { %9143 = vmatmul.mubr.msk.f32.vlgmr.msra.gmra.mxu1 %vm1463_vm2, %v13837_v54  ;;  %9166 = vmatprep.subr.mxu0 %v13917_v56 }
 0x8d5   : > { %9145 = vmatprep.mubr.msk.f32.mxu1 %vm1463_vm2, %v4578_v44  ;;  %v16560_v44 = vld [vmem:[#allocation40_spill] sm:$0xff] }
 0x8d8   : > { %9146 = vmatmul.mubr.msk.f32.gmra.mxu1 %vm1463_vm2, %v13845_v24 }
 0x8d9   : > { %9148 = vmatprep.mubr.msk.f32.mxu1 %vm1463_vm2, %v4582_v50 }
 0x8dc   : > { %9149 = vmatmul.mubr.msk.f32.gmra.mxu1 %vm1463_vm2, %v4584_v17  ;;  %v16558_v17 = vld [vmem:[#allocation32_spill] sm:$0xff] }
 0x8dd   : > { %9151 = vmatprep.mubr.msk.f32.mxu1 %vm1463_vm2, %v4586_v6 }
 0x8e0   : > { %9152 = vmatmul.mubr.msk.f32.gmra.mxu1 %vm1463_vm2, %v4588_v8 }
 0x8e1   : > { %9154 = vmatprep.mubr.msk.f32.mxu1 %vm1463_vm2, %v4590_v25 }
 0x8e4   : > { %9155 = vmatmul.mubr.msk.f32.gmra.mxu1 %vm1463_vm2, %v4592_v16 }
 0x8e5   : > { %9157 = vmatprep.mubr.msk.f32.mxu1 %vm1463_vm2, %v4594_v46 }
 0x8e8   : > { %9158 = vmatmul.mubr.msk.f32.gmra.mxu1 %vm1463_vm2, %v4596_v35 }
 0x8e9   : > { %9160 = vmatprep.mubr.msk.f32.mxu1 %vm1463_vm2, %v4598_v53  ;;  %v16561_v53 = vld [vmem:[#allocation39_spill] sm:$0xff] }
 0x8ec   : > { %9161 = vmatmul.mubr.msk.f32.gmra.mxu1 %vm1463_vm2, %v4600_v40  ;;  %v16559_v40 = vld [vmem:[#allocation38_spill] sm:$0xff] }
 0x8ed   : > { %9163 = vmatprep.mubr.msk.f32.mxu1 %vm1463_vm2, %v4602_v59 }
 0x8f0   : > { %9164 = vmatmul.mubr.msk.f32.gmra.mxu1 %vm1463_vm2, %v4604_v63 }
 0x954   : > { %v9032_v4 = vpop.f32.mrf.mxu1 }
 0x955   : > { %v4205_v48 = vmul.f32 0.17677669, %v9032_v4 }
 0x956   : > { %v4125_v32 = vpop.f32.mrf.mxu1 }
 0x957   : > { %v13938_v2 = vadd.f32 %v4205_v48, %v16556_v49  ;;  %v4204_v10 = vmul.f32 0.17677669, %v4125_v32  ;;  %v16562_v48 = vld [vmem:[#allocation43_spill] sm:$0xff] }
 0x958   : > { %v9035_v60 = vpop.f32.mrf.mxu1 }
 0x959   : > { %v13941_v54 = vadd.f32 %v4204_v10, %v16557_v7  ;;  %v4207_v12 = vmul.f32 0.17677669, %v9035_v60  ;;  %4238 = vmax.xlane.f32.xlu1 %v13938_v2 }
 0x95a   : > { %v4135_v24 = vpop.f32.mrf.mxu1 }
 0x95b   : > { %4236 = vmax.xlane.f32.xlu0 %v13941_v54  ;;  %v13946_v8 = vadd.f32 %v4207_v12, %v16558_v17  ;;  %v4206_v30 = vmul.f32 0.17677669, %v4135_v24  ;;  %v16563_v24 = vld [vmem:[#allocation42_spill] sm:$0xff] }
 0x95c   : > { %v9038_v0 = vpop.f32.mrf.mxu1 }
 0x95d   : > { %v13950_v20 = vadd.f32 %v4206_v30, %v16559_v40  ;;  %v4209_v63 = vmul.f32 0.17677669, %v9038_v0 }
 0x95e   : > { %v4145_v16 = vpop.f32.mrf.mxu1 }
 0x95f   : > { %v4208_v61 = vmul.f32 0.17677669, %v4145_v16  ;;  %4242 = vmax.xlane.f32.xlu0 %v13946_v8  ;;  %v13958_v59 = vadd.f32 %v4209_v63, %v16561_v53  ;;  %v16564_v16 = vld [vmem:[#allocation35_spill] sm:$0xff] }
 0x960   : > { %v9041_v35 = vpop.f32.mrf.mxu1 }
 0x961   : > { %v13953_v50 = vadd.f32 %v4208_v61, %v16560_v44  ;;  %v4211_v4 = vmul.f32 0.17677669, %v9041_v35 }
 0x962   : > { %v4155_v6 = vpop.f32.mrf.mxu1 }
 0x963   : > { %v4210_v25 = vmul.f32 0.17677669, %v4155_v6  ;;  %4240 = vmax.xlane.f32.xlu0 %v13950_v20  ;;  %4244 = vmax.xlane.f32.xlu1 %v13953_v50  ;;  %v13966_v0 = vadd.f32 %v4211_v4, %v16563_v24 }
 0x964   : > { %v9044_v46 = vpop.f32.mrf.mxu1 }
 0x965   : > { %v13961_v32 = vadd.f32 %v4210_v25, %v16562_v48  ;;  %v4213_v30 = vmul.f32 0.17677669, %v9044_v46  ;;  %v16565_v25 = vld [vmem:[#allocation33_spill] sm:$0xff] }
 0x966   : > { %v4165_v10 = vpop.f32.mrf.mxu1 }
 0x967   : > { %v4212_v60 = vmul.f32 0.17677669, %v4165_v10  ;;  %4246 = vmax.xlane.f32.xlu0 %v13958_v59  ;;  %4248 = vmax.xlane.f32.xlu1 %v13961_v32  ;;  %v13974_v10 = vadd.f32 %v4213_v30, %v16565_v25 }
 0x968   : > { %v9047_v12 = vpop.f32.mrf.mxu1 }
 0x969   : > { %v13969_v61 = vadd.f32 %v4212_v60, %v16564_v16  ;;  %v4215_v5 = vmul.f32 0.17677669, %v9047_v12  ;;  %v16567_v60 = vld [vmem:[#allocation47_spill] sm:$0xff]  ;;  %v16569_v12 = vld [vmem:[#allocation50_spill] sm:$0xff] }
 0x96a   : > { %v4175_v63 = vpop.f32.mrf.mxu1 }
 0x96b   : > { %v4214_v6 = vmul.f32 0.17677669, %v4175_v63  ;;  %4250 = vmax.xlane.f32.xlu0 %v13966_v0  ;;  %4252 = vmax.xlane.f32.xlu1 %v13969_v61  ;;  %v13982_v63 = vadd.f32 %v4215_v5, %v16567_v60  ;;  %v16571_v5 = vld [vmem:[#allocation54_spill] sm:$0xff] }
 0x96c   : > { %v9050_v35 = vpop.f32.mrf.mxu1 }
 0x96d   : > { %v13977_v11 = vadd.f32 %v4214_v6, %v16566_v26  ;;  %v4217_v39 = vmul.f32 0.17677669, %v9050_v35 }
 0x96e   : > { %v4185_v4 = vpop.f32.mrf.mxu1 }
 0x96f   : > { %v4216_v15 = vmul.f32 0.17677669, %v4185_v4  ;;  %4254 = vmax.xlane.f32.xlu0 %v13974_v10  ;;  %4256 = vmax.xlane.f32.xlu1 %v13977_v11  ;;  %v13990_v6 = vadd.f32 %v4217_v39, %v16569_v12 }
 0x970   : > { %v9053_v46 = vpop.f32.mrf.mxu1 }
 0x971   : > { %v13985_v9 = vadd.f32 %v4216_v15, %v16568_v57  ;;  %v4219_v4 = vmul.f32 0.17677669, %v9053_v46 }
 0x972   : > { %v4195_v30 = vpop.f32.mrf.mxu1 }
 0x973   : > { %v4218_v29 = vmul.f32 0.17677669, %v4195_v30  ;;  %4258 = vmax.xlane.f32.xlu0 %v13982_v63  ;;  %4260 = vmax.xlane.f32.xlu1 %v13985_v9  ;;  %v13998_v15 = vadd.f32 %v4219_v4, %v16571_v5 }
 0x975   : > { %v13993_v47 = vadd.f32 %v4218_v29, %v16570_v22 }
 0x977   : > { %4262 = vmax.xlane.f32.xlu0 %v13990_v6  ;;  %4264 = vmax.xlane.f32.xlu1 %v13993_v47 }
 0x97b   : > { %4266 = vmax.xlane.f32.xlu0 %v13998_v15 }
 0x994   : > { %v9144_v35 = vpop.f32.mrf.mxu1 }
 0x995   : > { %v4847_v30 = vmul.f32 0.17677669, %v9144_v35 }
 0x996   : > { %v4767_v41 = vpop.f32.mrf.mxu1 }
 0x997   : > { %v14002_v1 = vadd.f32 %v4847_v30, %v16556_v49  ;;  %v4846_v39 = vmul.f32 0.17677669, %v4767_v41 }
 0x998   : > { %v9147_v46 = vpop.f32.mrf.mxu1 }
 0x999   : > { %v14005_v29 = vadd.f32 %v4846_v39, %v16557_v7  ;;  %v4849_v19 = vmul.f32 0.17677669, %v9147_v46  ;;  %4880 = vmax.xlane.f32.xlu0 %v14002_v1 }
 0x99a   : > { %v4777_v3 = vpop.f32.mrf.mxu1 }
 0x99b   : > { %v14009_v4 = vadd.f32 %v4849_v19, %v16558_v17  ;;  %v4848_v34 = vmul.f32 0.17677669, %v4777_v3  ;;  %4878 = vmax.xlane.f32.xlu1 %v14005_v29 }
 0x99c   : > { %v9150_v35 = vpop.f32.mrf.mxu1 }
 0x99d   : > { %v14013_v43 = vadd.f32 %v4848_v34, %v16559_v40  ;;  %v4851_v30 = vmul.f32 0.17677669, %v9150_v35  ;;  %4884 = vmax.xlane.f32.xlu0 %v14009_v4 }
 0x99e   : > { %v4787_v41 = vpop.f32.mrf.mxu1 }
 0x99f   : > { %v14017_v39 = vadd.f32 %v4851_v30, %v16561_v53  ;;  %v4850_v46 = vmul.f32 0.17677669, %v4787_v41  ;;  %4882 = vmax.xlane.f32.xlu1 %v14013_v43 }
 0x9a0   : > { %v9153_v7 = vpop.f32.mrf.mxu1 }
 0x9a1   : > { %v14021_v19 = vadd.f32 %v4850_v46, %v16560_v44  ;;  %v4853_v3 = vmul.f32 0.17677669, %v9153_v7  ;;  %4888 = vmax.xlane.f32.xlu0 %v14017_v39 }
 0x9a2   : > { %v4797_v17 = vpop.f32.mrf.mxu1 }
 0x9a3   : > { %v14025_v34 = vadd.f32 %v4853_v3, %v16563_v24  ;;  %v4852_v35 = vmul.f32 0.17677669, %v4797_v17  ;;  %4886 = vmax.xlane.f32.xlu1 %v14021_v19 }
 0x9a4   : > { %v9156_v40 = vpop.f32.mrf.mxu1 }
 0x9a5   : > { %v14029_v30 = vadd.f32 %v4852_v35, %v16562_v48  ;;  %v4855_v41 = vmul.f32 0.17677669, %v9156_v40  ;;  %4892 = vmax.xlane.f32.xlu0 %v14025_v34 }
 0x9a6   : > { %v4807_v53 = vpop.f32.mrf.mxu1 }
 0x9a7   : > { %v14033_v46 = vadd.f32 %v4855_v41, %v16565_v25  ;;  %v4854_v7 = vmul.f32 0.17677669, %v4807_v53  ;;  %4890 = vmax.xlane.f32.xlu1 %v14029_v30 }
 0x9a8   : > { %v9159_v44 = vpop.f32.mrf.mxu1 }
 0x9a9   : > { %v14037_v3 = vadd.f32 %v4854_v7, %v16564_v16  ;;  %v4857_v17 = vmul.f32 0.17677669, %v9159_v44  ;;  %4896 = vmax.xlane.f32.xlu0 %v14033_v46 }
 0x9aa   : > { %v4817_v24 = vpop.f32.mrf.mxu1 }
 0x9ab   : > { %v14041_v35 = vadd.f32 %v4857_v17, %v16567_v60  ;;  %v4856_v40 = vmul.f32 0.17677669, %v4817_v24  ;;  %4894 = vmax.xlane.f32.xlu1 %v14037_v3 }
 0x9ac   : > { %v9162_v48 = vpop.f32.mrf.mxu1 }
 0x9ad   : > { %v14045_v41 = vadd.f32 %v4856_v40, %v16566_v26  ;;  %v4859_v53 = vmul.f32 0.17677669, %v9162_v48  ;;  %4900 = vmax.xlane.f32.xlu0 %v14041_v35 }
 0x9ae   : > { %v4827_v25 = vpop.f32.mrf.mxu1 }
 0x9af   : > { %v14049_v7 = vadd.f32 %v4859_v53, %v16569_v12  ;;  %v4858_v44 = vmul.f32 0.17677669, %v4827_v25  ;;  %4898 = vmax.xlane.f32.xlu1 %v14045_v41  ;;  %v14065_v25 = vpop.permute.xlu0 %5114 }
 0x9b0   : > { %v9165_v16 = vpop.f32.mrf.mxu1 }
 0x9b1   : > { %v14053_v17 = vadd.f32 %v4858_v44, %v16568_v57  ;;  %v4861_v24 = vmul.f32 0.17677669, %v9165_v16  ;;  %4904 = vmax.xlane.f32.xlu0 %v14049_v7 }
 0x9b2   : > { %v4837_v60 = vpop.f32.mrf.mxu1 }
 0x9b3   : > { %v14057_v40 = vadd.f32 %v4861_v24, %v16571_v5  ;;  %v4860_v48 = vmul.f32 0.17677669, %v4837_v60  ;;  %4902 = vmax.xlane.f32.xlu1 %v14053_v17  ;;  %v14067_v44 = vpop.permute.xlu0 %5106 }
 0x9b5   : > { %v14061_v53 = vadd.f32 %v4860_v48, %v16570_v22  ;;  %4908 = vmax.xlane.f32.xlu0 %v14057_v40 }
 0x9b7   : > { %4906 = vmax.xlane.f32.xlu1 %v14061_v53  ;;  %v14069_v16 = vpop.permute.xlu0 %5100 }
 0x9b8   : > { %16572 = vst [vmem:[#allocation23_spill] sm:$0xff] %v14069_v16 }
 0x9bb   : > { %v14071_v12 = vpop.permute.xlu0 %5098 }
 0x9bc   : > { %16573 = vst [vmem:[#allocation22_spill] sm:$0xff] %v14071_v12 }
 0x9bf   : > { %v14073_v24 = vpop.permute.xlu0 %5092 }
 0x9c0   : > { %16574 = vst [vmem:[#allocation21_spill] sm:$0xff] %v14073_v24 }
 0x9e2   : > { %v4239_v60 = vpop.xlane.xlu1 %4238 }
 0x9e3   : > { %v4269_v5 = vsub.f32 %v13938_v2, %v4239_v60 }
 0x9e4   : > { %v4237_v57 = vpop.xlane.xlu0 %4236 }
 0x9e5   : > { %v4286_v48 = vmul.f32 1.442695, %v4269_v5  ;;  %v4268_v22 = vsub.f32 %v13941_v54, %v4237_v57 }
 0x9e7   : > { %10286 = vpow2.f32 %v4286_v48  ;;  %v4284_v26 = vmul.f32 1.442695, %v4268_v22 }
 0x9e8   : > { %v4243_v49 = vpop.xlane.xlu0 %4242 }
 0x9e9   : > { %10288 = vpow2.f32 %v4284_v26  ;;  %v4271_v33 = vsub.f32 %v13946_v8, %v4243_v49 }
 0x9eb   : > { %v4290_v18 = vmul.f32 1.442695, %v4271_v33 }
 0x9ec   : > { %v4245_v36 = vpop.xlane.xlu1 %4244  ;;  %v4241_v16 = vpop.xlane.xlu0 %4240 }
 0x9ed   : > { %10290 = vpow2.f32 %v4290_v18  ;;  %v4272_v12 = vsub.f32 %v13953_v50, %v4245_v36  ;;  %v4270_v24 = vsub.f32 %v13950_v20, %v4241_v16 }
 0x9ef   : > { %v4288_v27 = vmul.f32 1.442695, %v4270_v24  ;;  %v4292_v2 = vmul.f32 1.442695, %v4272_v12 }
 0x9f0   : > { %v4249_v60 = vpop.xlane.xlu1 %4248  ;;  %v4247_v5 = vpop.xlane.xlu0 %4246 }
 0x9f1   : > { %v4274_v57 = vsub.f32 %v13961_v32, %v4249_v60  ;;  %v4273_v22 = vsub.f32 %v13958_v59, %v4247_v5  ;;  %10292 = vpow2.f32 %v4288_v27 }
 0x9f2   : > { %10294 = vpow2.f32 %v4292_v2 }
 0x9f3   : > { %v4294_v26 = vmul.f32 1.442695, %v4273_v22  ;;  %v4296_v33 = vmul.f32 1.442695, %v4274_v57 }
 0x9f4   : > { %v10287_v54 = vpop.eup %10286  ;;  %v4253_v49 = vpop.xlane.xlu1 %4252 }
 0x9f5   : > { %v4251_v8 = vpop.xlane.xlu0 %4250  ;;  %v4276_v18 = vsub.f32 %v13969_v61, %v4253_v49  ;;  %v14085_v20 = vmul.f32 %v10287_v54, %v12071_v31  ;;  %10296 = vpow2.f32 %v4294_v26 }
 0x9f6   : > { %v4275_v36 = vsub.f32 %v13966_v0, %v4251_v8  ;;  %v10289_v50 = vpop.eup %10288  ;;  %10298 = vpow2.f32 %v4296_v33 }
 0x9f7   : > { %4334 = vadd.xlane.f32.xlu0 %v14085_v20  ;;  %v14089_v27 = vmul.f32 %v10289_v50, %v12069_v37  ;;  %v4300_v59 = vmul.f32 1.442695, %v4276_v18 }
 0x9f8   : > { %v4298_v12 = vmul.f32 1.442695, %v4275_v36  ;;  %v4257_v32 = vpop.xlane.xlu1 %4256 }
 0x9f9   : > { %v4255_v16 = vpop.xlane.xlu0 %4254  ;;  %v4278_v24 = vsub.f32 %v13977_v11, %v4257_v32  ;;  %4332 = vadd.xlane.f32.xlu1 %v14089_v27  ;;  %v16575_v32 = vld [vmem:[#allocation36_spill] sm:$0xff] }
 0x9fa   : > { %v4277_v61 = vsub.f32 %v13974_v10, %v4255_v16  ;;  %v10291_v0 = vpop.eup %10290  ;;  %10300 = vpow2.f32 %v4298_v12 }
 0x9fb   : > { %v14095_v2 = vmul.f32 %v10291_v0, %v12219_v28  ;;  %10302 = vpow2.f32 %v4300_v59  ;;  %v4304_v60 = vmul.f32 1.442695, %v4278_v24  ;;  %v16576_v24 = vld [vmem:[#allocation37_spill] sm:$0xff] }
 0x9fc   : > { %v4302_v48 = vmul.f32 1.442695, %v4277_v61  ;;  %v4261_v5 = vpop.xlane.xlu1 %4260 }
 0x9fd   : > { %v4259_v57 = vpop.xlane.xlu0 %4258  ;;  %v4280_v22 = vsub.f32 %v13985_v9, %v4261_v5  ;;  %4338 = vadd.xlane.f32.xlu0 %v14095_v2  ;;  %v16577_v5 = vld [vmem:[#allocation41_spill] sm:$0xff] }
 0x9fe   : > { %v4279_v26 = vsub.f32 %v13982_v63, %v4259_v57  ;;  %10304 = vpow2.f32 %v4302_v48  ;;  %v10293_v11 = vpop.eup %10292 }
 0x9ff   : > { %10306 = vpow2.f32 %v4304_v60  ;;  %v4308_v54 = vmul.f32 1.442695, %v4280_v22  ;;  %v14101_v8 = vmul.f32 %v10293_v11, %v12217_v13  ;;  %v10295_v18 = vpop.eup %10294 }
 0xa00   : > { %v4306_v10 = vmul.f32 1.442695, %v4279_v26  ;;  %v4265_v33 = vpop.xlane.xlu1 %4264  ;;  %v14107_v16 = vmul.f32 %v10295_v18, %v16575_v32  ;;  %v16579_v18 = vld [vmem:[#allocation45_spill] sm:$0xff] }
 0xa01   : > { %v4263_v49 = vpop.xlane.xlu0 %4262  ;;  %v4282_v36 = vsub.f32 %v13993_v47, %v4265_v33  ;;  %4336 = vadd.xlane.f32.xlu1 %v14101_v8  ;;  %v16578_v33 = vld [vmem:[#allocation34_spill] sm:$0xff] }
 0xa02   : > { %v4281_v50 = vsub.f32 %v13990_v6, %v4263_v49  ;;  %10308 = vpow2.f32 %v4306_v10  ;;  %v10297_v9 = vpop.eup %10296 }
 0xa03   : > { %10310 = vpow2.f32 %v4308_v54  ;;  %v4312_v12 = vmul.f32 1.442695, %v4282_v36  ;;  %v14110_v61 = vmul.f32 %v10297_v9, %v16576_v24  ;;  %v10299_v0 = vpop.eup %10298 }
 0xa04   : > { %v4310_v63 = vmul.f32 1.442695, %v4281_v50  ;;  %v14116_v60 = vmul.f32 %v10299_v0, %v12396_v21 }
 0xa05   : > { %v4267_v59 = vpop.xlane.xlu0 %4266  ;;  %4340 = vadd.xlane.f32.xlu1 %v14107_v16  ;;  %4342 = vadd.xlane.f32.xlu0 %v14110_v61 }
 0xa06   : > { %v4283_v48 = vsub.f32 %v13998_v15, %v4267_v59  ;;  %10312 = vpow2.f32 %v4310_v63 }
 0xa07   : > { %v10301_v47 = vpop.eup %10300  ;;  %10314 = vpow2.f32 %v4312_v12  ;;  %v16582_v12 = vld [vmem:[#allocation49_spill] sm:$0xff] }
 0xa08   : > { %v4314_v6 = vmul.f32 1.442695, %v4283_v48  ;;  %v14119_v57 = vmul.f32 %v10301_v47, %v16577_v5  ;;  %v10303_v22 = vpop.eup %10302  ;;  %v16584_v47 = vld [vmem:[#allocation53_spill] sm:$0xff] }
 0xa09   : > { %4344 = vadd.xlane.f32.xlu1 %v14116_v60  ;;  %v14124_v26 = vmul.f32 %v10303_v22, %v12498_v45 }
 0xa0a   : > { %10316 = vpow2.f32 %v4314_v6  ;;  %4346 = vadd.xlane.f32.xlu0 %v14119_v57 }
 0xa0b   : > { %v10305_v15 = vpop.eup %10304 }
 0xa0c   : > { %v14127_v11 = vmul.f32 %v10305_v15, %v12490_v14  ;;  %v10307_v10 = vpop.eup %10306 }
 0xa0d   : > { %4348 = vadd.xlane.f32.xlu1 %v14124_v26  ;;  %v14132_v49 = vmul.f32 %v10307_v10, %v16578_v33 }
 0xa0e   : > { %4350 = vadd.xlane.f32.xlu0 %v14127_v11 }
 0xa0f   : > { %v10309_v54 = vpop.eup %10308 }
 0xa10   : > { %v14135_v36 = vmul.f32 %v10309_v54, %v16579_v18  ;;  %v10311_v50 = vpop.eup %10310 }
 0xa11   : > { %4352 = vadd.xlane.f32.xlu1 %v14132_v49  ;;  %v14140_v63 = vmul.f32 %v10311_v50, %v12654_v23 }
 0xa12   : > { %16580 = vst [vmem:[#allocation20_spill] sm:$0xff] %v14135_v36  ;;  %4354 = vadd.xlane.f32.xlu0 %v14135_v36 }
 0xa13   : > { %v10313_v9 = vpop.eup %10312  ;;  %16581 = vst [vmem:[#allocation19_spill] sm:$0xff] %v14140_v63 }
 0xa14   : > { %v14143_v59 = vmul.f32 %v10313_v9, %v16582_v12  ;;  %v10315_v0 = vpop.eup %10314 }
 0xa15   : > { %4356 = vadd.xlane.f32.xlu1 %v14140_v63  ;;  %v14151_v22 = vmul.f32 %v10315_v0, %v12697_v62 }
 0xa16   : > { %16583 = vst [vmem:[#allocation18_spill] sm:$0xff] %v14143_v59  ;;  %4358 = vadd.xlane.f32.xlu0 %v14143_v59 }
 0xa17   : > { %v10317_v48 = vpop.eup %10316  ;;  %16586 = vst [vmem:[#allocation16_spill] sm:$0xff] %v14151_v22 }
 0xa18   : > { %v14148_v6 = vmul.f32 %v10317_v48, %v16584_v47 }
 0xa19   : > { %4360 = vadd.xlane.f32.xlu1 %v14151_v22 }
 0xa1a   : > { %16585 = vst [vmem:[#allocation17_spill] sm:$0xff] %v14148_v6  ;;  %4362 = vadd.xlane.f32.xlu0 %v14148_v6 }
 0xa22   : > { %v4881_v15 = vpop.xlane.xlu0 %4880 }
 0xa23   : > { %v4911_v10 = vsub.f32 %v14002_v1, %v4881_v15 }
 0xa24   : > { %v4879_v54 = vpop.xlane.xlu1 %4878 }
 0xa25   : > { %v4928_v50 = vmul.f32 1.442695, %v4911_v10  ;;  %v4910_v9 = vsub.f32 %v14005_v29, %v4879_v54 }
 0xa26   : > { %v4885_v63 = vpop.xlane.xlu0 %4884 }
 0xa27   : > { %10318 = vpow2.f32 %v4928_v50  ;;  %v4926_v59 = vmul.f32 1.442695, %v4910_v9  ;;  %v4913_v48 = vsub.f32 %v14009_v4, %v4885_v63 }
 0xa28   : > { %v4883_v23 = vpop.xlane.xlu1 %4882 }
 0xa29   : > { %10320 = vpow2.f32 %v4926_v59  ;;  %v4932_v0 = vmul.f32 1.442695, %v4913_v48  ;;  %v4912_v62 = vsub.f32 %v14013_v43, %v4883_v23 }
 0xa2a   : > { %v4889_v22 = vpop.xlane.xlu0 %4888 }
 0xa2b   : > { %v4930_v36 = vmul.f32 1.442695, %v4912_v62  ;;  %v4915_v6 = vsub.f32 %v14017_v39, %v4889_v22  ;;  %10322 = vpow2.f32 %v4932_v0 }
 0xa2c   : > { %v4887_v1 = vpop.xlane.xlu1 %4886 }
 0xa2d   : > { %10324 = vpow2.f32 %v4930_v36  ;;  %v4936_v15 = vmul.f32 1.442695, %v4915_v6  ;;  %v4914_v29 = vsub.f32 %v14021_v19, %v4887_v1 }
 0xa2e   : > { %v4893_v10 = vpop.xlane.xlu0 %4892 }
 0xa2f   : > { %v4934_v54 = vmul.f32 1.442695, %v4914_v29  ;;  %v4917_v50 = vsub.f32 %v14025_v34, %v4893_v10  ;;  %10326 = vpow2.f32 %v4936_v15 }
 0xa30   : > { %v4891_v1 = vpop.xlane.xlu1 %4890 }
 0xa31   : > { %10328 = vpow2.f32 %v4934_v54  ;;  %v4940_v4 = vmul.f32 1.442695, %v4917_v50  ;;  %v4916_v15 = vsub.f32 %v14029_v30, %v4891_v1 }
 0xa32   : > { %v14193_v29 = vpop.xlane.xlu0 %4896 }
 0xa33   : > { %10330 = vpow2.f32 %v4940_v4  ;;  %v4938_v54 = vmul.f32 1.442695, %v4916_v15 }
 0xa34   : > { %v10319_v63 = vpop.eup %10318  ;;  %v4895_v10 = vpop.xlane.xlu1 %4894 }
 0xa35   : > { %v14163_v23 = vmul.f32 %v10319_v63, %v12071_v31  ;;  %v4918_v50 = vsub.f32 %v14037_v3, %v4895_v10  ;;  %10332 = vpow2.f32 %v4938_v54 }
 0xa36   : > { %v10321_v62 = vpop.eup %10320  ;;  %v4901_v4 = vpop.xlane.xlu0 %4900 }
 0xa37   : > { %4976 = vadd.xlane.f32.xlu0 %v14163_v23  ;;  %v14167_v39 = vmul.f32 %v10321_v62, %v12069_v37  ;;  %v4942_v62 = vmul.f32 1.442695, %v4918_v50 }
 0xa38   : > { %v10323_v43 = vpop.eup %10322  ;;  %v4899_v63 = vpop.xlane.xlu1 %4898 }
 0xa39   : > { %v14175_v59 = vmul.f32 %v10323_v43, %v12219_v28  ;;  %v4920_v43 = vsub.f32 %v14045_v41, %v4899_v63  ;;  %10334 = vpow2.f32 %v4942_v62 }
 0xa3a   : > { %v10325_v19 = vpop.eup %10324 }
 0xa3b   : > { %4974 = vadd.xlane.f32.xlu0 %v14167_v39  ;;  %v14171_v34 = vmul.f32 %v10325_v19, %v12217_v13  ;;  %v4905_v19 = vpop.xlane.xlu0 %4904  ;;  %v4946_v30 = vmul.f32 1.442695, %v4920_v43 }
 0xa3c   : > { %v10327_v36 = vpop.eup %10326 }
 0xa3d   : > { %4978 = vadd.xlane.f32.xlu1 %v14171_v34  ;;  %v14183_v9 = vmul.f32 %v10327_v36, %v16576_v24  ;;  %v4921_v36 = vsub.f32 %v14041_v35, %v4901_v4  ;;  %10336 = vpow2.f32 %v4946_v30  ;;  %v4903_v35 = vpop.xlane.xlu1 %4902 }
 0xa3e   : > { %v10329_v6 = vpop.eup %10328 }
 0xa3f   : > { %4980 = vadd.xlane.f32.xlu0 %v14175_v59  ;;  %v14179_v22 = vmul.f32 %v10329_v6, %v16575_v32  ;;  %v4948_v6 = vmul.f32 1.442695, %v4921_v36  ;;  %v4909_v1 = vpop.xlane.xlu0 %4908 }
 0xa40   : > { %v10331_v48 = vpop.eup %10330  ;;  %v4925_v3 = vsub.f32 %v14057_v40, %v4909_v1 }
 0xa41   : > { %4982 = vadd.xlane.f32.xlu1 %v14179_v22  ;;  %v14187_v0 = vmul.f32 %v10331_v48, %v16577_v5  ;;  %v4923_v48 = vsub.f32 %v14049_v7, %v4905_v19  ;;  %10338 = vpow2.f32 %v4948_v6  ;;  %v14210_v4 = vpop.xlane.xlu1 %4906 }
 0xa42   : > { %v10333_v5 = vpop.eup %10332  ;;  %v4956_v41 = vmul.f32 1.442695, %v4925_v3 }
 0xa43   : > { %4984 = vadd.xlane.f32.xlu0 %v14183_v9  ;;  %v4952_v15 = vmul.f32 1.442695, %v4923_v48  ;;  %v14203_v10 = vmul.f32 %v10333_v5, %v12396_v21 }
 0xa45   : > { %10340 = vpow2.f32 %v4952_v15 }
 0xa46   : > { %v10335_v54 = vpop.eup %10334  ;;  %10342 = vpow2.f32 %v4956_v41 }
 0xa47   : > { %4988 = vadd.xlane.f32.xlu0 %v14187_v0  ;;  %v14207_v50 = vmul.f32 %v10335_v54, %v12498_v45 }
 0xa4a   : > { %v10337_v7 = vpop.eup %10336 }
 0xa4b   : > { %v14213_v40 = vmul.f32 %v10337_v7, %v16578_v33 }
 0xa4e   : > { %v10339_v5 = vpop.eup %10338 }
 0xa4f   : > { %v14217_v19 = vmul.f32 %v10339_v5, %v16579_v18 }
 0xa52   : > { %5088 = vrot.lane.b32.xlu1 %v13688_v38, %s16389_s24  ;;  %v10341_v36 = vpop.eup %10340 }
 0xa53   : > { %v14221_v48 = vmul.f32 %v10341_v36, %v16582_v12  ;;  %v10343_v1 = vpop.eup %10342 }
 0xa54   : > { %v14227_v3 = vmul.f32 %v10343_v1, %v16584_v47 }
 0xa5d   : > { %5090 = vrot.lane.b32.xlu0 %v13682_v42, %s16389_s24 }
 0xa76   : > { %4986 = vadd.xlane.f32.xlu1 %v14203_v10 }
 0xa7c   : > { %4990 = vadd.xlane.f32.xlu0 %v14207_v50 }
 0xa80   : > { %4994 = vadd.xlane.f32.xlu0 %v14213_v40  ;;  %v4335_v63 = vpop.xlane.xlu0 %4334 }
 0xa81   : > { %vm4365_vm0 = vcmp.gt.f32.partialorder %v4335_v63, 0.0 }
 0xa82   : > { %v4381_v62 = vsel %vm4365_vm0, %v4335_v63, 1.0  ;;  %v4333_v43 = vpop.xlane.xlu1 %4332 }
 0xa83   : > { %vm4364_vm6 = vcmp.gt.f32.partialorder %v4333_v43, 0.0  ;;  %10344 = vrcp.f32 %v4381_v62  ;;  %v4919_v62 = vsub.f32 %v14033_v46, %v14193_v29 }
 0xa84   : > { %v4380_v30 = vsel %vm4364_vm6, %v4333_v43, 1.0  ;;  %4996 = vadd.xlane.f32.xlu0 %v14217_v19 }
 0xa85   : > { %10346 = vrcp.f32 %v4380_v30 }
 0xa86   : > { %v4339_v6 = vpop.xlane.xlu0 %4338 }
 0xa87   : > { %vm4367_vm3 = vcmp.gt.f32.partialorder %v4339_v6, 0.0  ;;  %5086 = vrot.lane.b32.xlu1 %v13698_v52, %s16389_s24 }
 0xa88   : > { %5000 = vadd.xlane.f32.xlu0 %v14221_v48  ;;  %v4383_v15 = vsel %vm4367_vm3, %v4339_v6, 1.0 }
 0xa89   : > { %10348 = vrcp.f32 %v4383_v15  ;;  %v4922_v15 = vsub.f32 %v14053_v17, %v4903_v35  ;;  %v4924_v17 = vsub.f32 %v14061_v53, %v14210_v4 }
 0xa8a   : > { %v4337_v41 = vpop.xlane.xlu1 %4336 }
 0xa8b   : > { %vm4366_vm4 = vcmp.gt.f32.partialorder %v4337_v41, 0.0  ;;  %v4954_v35 = vmul.f32 1.442695, %v4924_v17 }
 0xa8c   : > { %5004 = vadd.xlane.f32.xlu0 %v14227_v3  ;;  %v4382_v54 = vsel %vm4366_vm4, %v4337_v41, 1.0 }
 0xa8d   : > { %10350 = vrcp.f32 %v4382_v54  ;;  %v4944_v54 = vmul.f32 1.442695, %v4919_v62 }
 0xa8e   : > { %v4341_v7 = vpop.xlane.xlu1 %4340  ;;  %v4343_v5 = vpop.xlane.xlu0 %4342 }
 0xa8f   : > { %vm4368_vm5 = vcmp.gt.f32.partialorder %v4341_v7, 0.0  ;;  %vm4369_vm1 = vcmp.gt.f32.partialorder %v4343_v5, 0.0 }
 0xa90   : > { %v10345_v63 = vpop.eup %10344  ;;  %v4384_v43 = vsel %vm4368_vm5, %v4341_v7, 1.0  ;;  %v4385_v36 = vsel %vm4369_vm1, %v4343_v5, 1.0  ;;  %v4950_v7 = vmul.f32 1.442695, %v4922_v15 }
 0xa91   : > { %10352 = vrcp.f32 %v4384_v43  ;;  %v4413_v41 = vmul.f32 %v10345_v63, %v14085_v20 }
 0xa92   : > { %v10347_v30 = vpop.eup %10346  ;;  %10354 = vrcp.f32 %v4385_v36  ;;  %v4345_v6 = vpop.xlane.xlu1 %4344 }
 0xa93   : > { %v4347_v1 = vpop.xlane.xlu0 %4346  ;;  %v4412_v47 = vmul.f32 %v10347_v30, %v14089_v27  ;;  %vm4370_vm8 = vcmp.gt.f32.partialorder %v4345_v6, 0.0 }
 0xa94   : > { %vm4371_vm7 = vcmp.gt.f32.partialorder %v4347_v1, 0.0  ;;  %v4386_v12 = vsel %vm4370_vm8, %v4345_v6, 1.0  ;;  %v16587_v6 = vld [vmem:[#allocation27_spill] sm:$0xff] }
 0xa95   : > { %v4387_v18 = vsel %vm4371_vm7, %v4347_v1, 1.0  ;;  %9086 = vmatprep.mubr.f32.mxu0 %v4412_v47  ;;  %10356 = vrcp.f32 %v4386_v12 }
 0xa96   : > { %9087 = vmatmul.mubr.f32.vlgmr.msra.gmra.mxu0 %v4413_v41  ;;  %10358 = vrcp.f32 %v4387_v18  ;;  %v4349_v46 = vpop.xlane.xlu1 %4348  ;;  %v10349_v12 = vpop.eup %10348 }
 0xa97   : > { %9167 = vmatpush3.msra.mxu0 %v13917_v56  ;;  %v4351_v29 = vpop.xlane.xlu0 %4350  ;;  %vm4372_vm10 = vcmp.gt.f32.partialorder %v4349_v46, 0.0  ;;  %10360 = vpow2.f32 %v4944_v54  ;;  %v4415_v5 = vmul.f32 %v10349_v12, %v14095_v2 }
 0xa98   : > { %vm4373_vm11 = vcmp.gt.f32.partialorder %v4351_v29, 0.0  ;;  %9168 = vmatprep.subr.mxu0 %v14065_v25  ;;  %v4388_v20 = vsel %vm4372_vm10, %v4349_v46, 1.0  ;;  %v16588_v46 = vld [vmem:[#allocation26_spill] sm:$0xff] }
 0xa99   : > { %v4389_v27 = vsel %vm4373_vm11, %v4351_v29, 1.0  ;;  %9169 = vmatpush3.msra.mxu0 %v14065_v25  ;;  %10362 = vrcp.f32 %v4388_v20 }
 0xa9a   : > { %9170 = vmatprep.subr.mxu0 %v13884_v51  ;;  %v10351_v18 = vpop.eup %10350  ;;  %10364 = vrcp.f32 %v4389_v27  ;;  %v4353_v56 = vpop.xlane.xlu1 %4352  ;;  %v16590_v27 = vld [vmem:[#allocation22_spill] sm:$0xff] }
 0xa9b   : > { %9171 = vmatpush3.msra.mxu0 %v13884_v51  ;;  %v4355_v47 = vpop.xlane.xlu0 %4354  ;;  %10366 = vpow2.f32 %v4950_v7  ;;  %vm4374_vm12 = vcmp.gt.f32.partialorder %v4353_v56, 0.0  ;;  %v4414_v53 = vmul.f32 %v10351_v18, %v14101_v8  ;;  %v16589_v7 = vld [vmem:[#allocation23_spill] sm:$0xff] }
 0xa9c   : > { %vm4375_vm13 = vcmp.gt.f32.partialorder %v4355_v47, 0.0  ;;  %9172 = vmatprep.subr.mxu0 %v13888_v55  ;;  %v4390_v4 = vsel %vm4374_vm12, %v4353_v56, 1.0  ;;  %v16591_v56 = vld [vmem:[#allocation25_spill] sm:$0xff] }
 0xa9d   : > { %v4391_v25 = vsel %vm4375_vm13, %v4355_v47, 1.0  ;;  %9173 = vmatpush3.msra.mxu0 %v13888_v55  ;;  %10368 = vrcp.f32 %v4390_v4  ;;  %9089 = vmatprep.mubr.f32.mxu0 %v4414_v53  ;;  %v16593_v53 = vld [vmem:[#allocation48_spill] sm:$0xff] }
 0xa9e   : > { %9174 = vmatprep.subr.mxu0 %v13893_v58  ;;  %v10353_v51 = vpop.eup %10352  ;;  %10370 = vrcp.f32 %v4391_v25  ;;  %v4357_v63 = vpop.xlane.xlu1 %4356  ;;  %9090 = vmatmul.mubr.f32.gmra.mxu0 %v4415_v5  ;;  %v16594_v25 = vld [vmem:[#allocation24_spill] sm:$0xff] }
 0xa9f   : > { %v4359_v62 = vpop.xlane.xlu0 %4358  ;;  %v10355_v43 = vpop.eup %10354  ;;  %vm4376_vm14 = vcmp.gt.f32.partialorder %v4357_v63, 0.0  ;;  %9175 = vmatpush3.msra.mxu0 %v13893_v58  ;;  %v4416_v8 = vmul.f32 %v10353_v51, %v14107_v16  ;;  %10372 = vpow2.f32 %v4954_v35 }
 0xaa0   : > { %vm4377_vm15 = vcmp.gt.f32.partialorder %v4359_v62, 0.0  ;;  %v4392_v55 = vsel %vm4376_vm14, %v4357_v63, 1.0  ;;  %9176 = vmatprep.subr.mxu0 %v14067_v44  ;;  %v4417_v2 = vmul.f32 %v10355_v43, %v14110_v61  ;;  %v16595_v63 = vld [vmem:[#allocation21_spill] sm:$0xff]  ;;  %v16597_v43 = vld [vmem:[#allocation18_spill] sm:$0xff] }
 0xaa1   : > { %v4393_v36 = vsel %vm4377_vm15, %v4359_v62, 1.0  ;;  %10374 = vrcp.f32 %v4392_v55  ;;  %9177 = vmatpush3.msra.mxu0 %v14067_v44  ;;  %9092 = vmatprep.mubr.f32.mxu0 %v4416_v8  ;;  %v16598_v55 = vld [vmem:[#allocation52_spill] sm:$0xff] }
 0xaa2   : > { %v10357_v30 = vpop.eup %10356  ;;  %10376 = vrcp.f32 %v4393_v36  ;;  %9178 = vmatprep.subr.mxu0 %v16587_v6  ;;  %v4361_v1 = vpop.xlane.xlu1 %4360  ;;  %5359 = vrot.lane.b32.xlu0 %v13698_v52, %s16384_s2 }
 0xaa3   : > { %v4363_v58 = vpop.xlane.xlu0 %4362  ;;  %v10359_v16 = vpop.eup %10358  ;;  %vm4378_vm0 = vcmp.gt.f32.partialorder %v4361_v1, 0.0  ;;  %9093 = vmatmul.mubr.f32.gmra.mxu0 %v4417_v2  ;;  %v4418_v15 = vmul.f32 %v10357_v30, %v14116_v60 }
 0xaa4   : > { %vm4379_vm6 = vcmp.gt.f32.partialorder %v4363_v58, 0.0  ;;  %v4394_v61 = vsel %vm4378_vm0, %v4361_v1, 1.0  ;;  %9179 = vmatpush3.msra.mxu0 %v16587_v6  ;;  %v4419_v41 = vmul.f32 %v10359_v16, %v14119_v57  ;;  %v10361_v54 = vpop.eup %10360  ;;  %v16599_v6 = vld [vmem:[#allocation16_spill] sm:$0xff] }
 0xaa5   : > { %v4395_v44 = vsel %vm4379_vm6, %v4363_v58, 1.0  ;;  %10378 = vrcp.f32 %v4394_v61  ;;  %9180 = vmatprep.subr.mxu0 %v16588_v46  ;;  %9095 = vmatprep.mubr.f32.mxu0 %v4418_v15  ;;  %v14265_v20 = vmul.f32 %v10361_v54, %v12490_v14  ;;  %v16600_v58 = vld [vmem:[#allocation17_spill] sm:$0xff] }
 0xaa6   : > { %v10363_v29 = vpop.eup %10362  ;;  %10380 = vrcp.f32 %v4395_v44  ;;  %9181 = vmatpush3.msra.mxu0 %v16588_v46 }
 0xaa7   : > { %v10365_v52 = vpop.eup %10364  ;;  %9182 = vmatprep.subr.mxu0 %v16589_v7  ;;  %9096 = vmatmul.mubr.f32.gmra.mxu0 %v4419_v41  ;;  %v4420_v60 = vmul.f32 %v10363_v29, %v14124_v26 }
 0xaa8   : > { %v10367_v17 = vpop.eup %10366  ;;  %9183 = vmatpush3.msra.mxu0 %v16589_v7  ;;  %v4421_v57 = vmul.f32 %v10365_v52, %v14127_v11  ;;  %v16592_v11 = vld [vmem:[#allocation20_spill] sm:$0xff] }
 0xaa9   : > { %9184 = vmatprep.subr.mxu0 %v16590_v27  ;;  %9098 = vmatprep.mubr.f32.mxu0 %v4420_v60  ;;  %v14275_v35 = vmul.f32 %v10367_v17, %v16593_v53 }
 0xaaa   : > { %v10369_v12 = vpop.eup %10368  ;;  %9185 = vmatpush3.msra.mxu0 %v16590_v27 }
 0xaab   : > { %4992 = vadd.xlane.f32.xlu1 %v14265_v20  ;;  %v10371_v18 = vpop.eup %10370  ;;  %9186 = vmatprep.subr.mxu0 %v16591_v56  ;;  %v4422_v26 = vmul.f32 %v10369_v12, %v14132_v49  ;;  %v16596_v49 = vld [vmem:[#allocation19_spill] sm:$0xff] }
 0xaac   : > { %9099 = vmatmul.mubr.f32.gmra.mxu0 %v4421_v57  ;;  %v4423_v47 = vmul.f32 %v10371_v18, %v16592_v11  ;;  %v10373_v4 = vpop.eup %10372 }
 0xaad   : > { %9187 = vmatpush3.msra.mxu0 %v16591_v56  ;;  %9101 = vmatprep.mubr.f32.mxu0 %v4422_v26  ;;  %v14285_v36 = vmul.f32 %v10373_v4, %v16598_v55 }
 0xaae   : > { %9188 = vmatprep.subr.mxu0 %v16594_v25  ;;  %v10375_v5 = vpop.eup %10374 }
 0xaaf   : > { %9189 = vmatpush3.msra.mxu0 %v16594_v25  ;;  %4998 = vadd.xlane.f32.xlu1 %v14275_v35  ;;  %v10377_v51 = vpop.eup %10376  ;;  %v4424_v62 = vmul.f32 %v10375_v5, %v16596_v49 }
 0xab0   : > { %9190 = vmatprep.subr.mxu0 %v16595_v63  ;;  %9102 = vmatmul.mubr.f32.gmra.mxu0 %v4423_v47  ;;  %v4425_v8 = vmul.f32 %v10377_v51, %v16597_v43 }
 0xab1   : > { %9191 = vmatpush3.msra.mxu0 %v16595_v63  ;;  %9104 = vmatprep.mubr.f32.mxu0 %v4424_v62 }
 0xab2   : > { %v10379_v2 = vpop.eup %10378 }
 0xab3   : > { %5002 = vadd.xlane.f32.xlu1 %v14285_v36  ;;  %v10381_v30 = vpop.eup %10380  ;;  %v4426_v1 = vmul.f32 %v10379_v2, %v16599_v6 }
 0xab4   : > { %9105 = vmatmul.mubr.f32.gmra.mxu0 %v4425_v8  ;;  %v4427_v16 = vmul.f32 %v10381_v30, %v16600_v58 }
 0xab5   : > { %9107 = vmatprep.mubr.f32.mxu0 %v4426_v1 }
 0xab8   : > { %9108 = vmatmul.mubr.f32.gmra.mxu0 %v4427_v16 }
 0xac0   : > { %v4977_v15 = vpop.xlane.xlu0 %4976 }
 0xac1   : > { %vm5007_vm4 = vcmp.gt.f32.partialorder %v4977_v15, 0.0 }
 0xac4   : > { %5361 = vrot.lane.b32.xlu1 %v13688_v38, %s16384_s2  ;;  %v4975_v61 = vpop.xlane.xlu0 %4974  ;;  %v5023_v38 = vsel %vm5007_vm4, %v4977_v15, 1.0 }
 0xac5   : > { %vm5006_vm3 = vcmp.gt.f32.partialorder %v4975_v61, 0.0 }
 0xac6   : > { %v5022_v44 = vsel %vm5006_vm3, %v4975_v61, 1.0  ;;  %v4979_v54 = vpop.xlane.xlu1 %4978 }
 0xac7   : > { %10382 = vrcp.f32 %v5022_v44  ;;  %vm5008_vm5 = vcmp.gt.f32.partialorder %v4979_v54, 0.0 }
 0xac8   : > { %5363 = vrot.lane.b32.xlu1 %v13682_v42, %s16384_s2  ;;  %v4981_v41 = vpop.xlane.xlu0 %4980  ;;  %v5024_v27 = vsel %vm5008_vm5, %v4979_v54, 1.0  ;;  %10384 = vrcp.f32 %v5023_v38 }
 0xac9   : > { %vm5009_vm1 = vcmp.gt.f32.partialorder %v4981_v41, 0.0  ;;  %10386 = vrcp.f32 %v5024_v27 }
 0xaca   : > { %v4983_v29 = vpop.xlane.xlu1 %4982  ;;  %v5025_v42 = vsel %vm5009_vm1, %v4981_v41, 1.0 }
 0xacb   : > { %vm5010_vm8 = vcmp.gt.f32.partialorder %v4983_v29, 0.0  ;;  %10388 = vrcp.f32 %v5025_v42 }
 0xacc   : > { %v4985_v46 = vpop.xlane.xlu0 %4984  ;;  %v5026_v12 = vsel %vm5010_vm8, %v4983_v29, 1.0 }
 0xacd   : > { %vm5011_vm7 = vcmp.gt.f32.partialorder %v4985_v46, 0.0  ;;  %10390 = vrcp.f32 %v5026_v12 }
 0xace   : > { %v5089_v57 = vpop.permute.xlu1 %5088  ;;  %v5027_v18 = vsel %vm5011_vm7, %v4985_v46, 1.0 }
 0xacf   : > { %10392 = vrcp.f32 %v5027_v18 }
 0xad0   : > { %v4989_v52 = vpop.xlane.xlu0 %4988 }
 0xad1   : > { %vm5013_vm10 = vcmp.gt.f32.partialorder %v4989_v52, 0.0 }
 0xad4   : > { %v10383_v7 = vpop.eup %10382  ;;  %v5091_v60 = vpop.permute.xlu0 %5090 }
 0xad5   : > { %9192 = vmatprep.subr.mxu0 %v5091_v60  ;;  %v5054_v17 = vmul.f32 %v10383_v7, %v14167_v39  ;;  %v5029_v39 = vsel %vm5013_vm10, %v4989_v52, 1.0  ;;  %v10385_v26 = vpop.eup %10384 }
 0xad6   : > { %9193 = vmatpush3.msra.mxu0 %v5091_v60  ;;  %10394 = vrcp.f32 %v5029_v39  ;;  %v10387_v47 = vpop.eup %10386  ;;  %v5055_v25 = vmul.f32 %v10385_v26, %v14163_v23 }
 0xad7   : > { %9194 = vmatprep.subr.mxu0 %v5089_v57  ;;  %9198 = vmatprep.mubr.f32.mxu0 %v5054_v17  ;;  %v5056_v63 = vmul.f32 %v10387_v47, %v14171_v34 }
 0xad8   : > { %9195 = vmatpush3.msra.mxu0 %v5089_v57  ;;  %v10389_v5 = vpop.eup %10388 }
 0xad9   : > { %v5057_v43 = vmul.f32 %v10389_v5, %v14175_v59 }
 0xada   : > { %v10391_v49 = vpop.eup %10390 }
 0xadb   : > { %v5058_v2 = vmul.f32 %v10391_v49, %v14179_v22 }
 0xadc   : > { %v10393_v8 = vpop.eup %10392 }
 0xadd   : > { %v5059_v23 = vmul.f32 %v10393_v8, %v14183_v9 }
 0xae3   : > { %v10395_v30 = vpop.eup %10394 }
 0xae4   : > { %v5061_v1 = vmul.f32 %v10395_v30, %v14187_v0 }
 0xaff   : > { %v4987_v56 = vpop.xlane.xlu1 %4986 }
 0xb00   : > { %vm5012_vm11 = vcmp.gt.f32.partialorder %v4987_v56, 0.0 }
 0xb01   : > { %v5028_v11 = vsel %vm5012_vm11, %v4987_v56, 1.0 }
 0xb02   : > { %10396 = vrcp.f32 %v5028_v11 }
 0xb03   : > { %v5087_v4 = vpop.permute.xlu1 %5086 }
 0xb04   : > { %9196 = vmatprep.subr.mxu0 %v5087_v4 }
 0xb05   : > { %9197 = vmatpush3.msra.mxu0 %v5087_v4  ;;  %v4991_v51 = vpop.xlane.xlu0 %4990 }
 0xb06   : > { %vm5014_vm12 = vcmp.gt.f32.partialorder %v4991_v51, 0.0  ;;  %9199 = vmatmul.mubr.f32.vlgmr.msra.gmra.mxu0 %v5055_v25 }
 0xb07   : > { %v5030_v62 = vsel %vm5014_vm12, %v4991_v51, 1.0  ;;  %9201 = vmatprep.mubr.f32.mxu0 %v5056_v63 }
 0xb08   : > { %10398 = vrcp.f32 %v5030_v62 }
 0xb09   : > { %v4995_v59 = vpop.xlane.xlu0 %4994 }
 0xb0a   : > { %9202 = vmatmul.mubr.f32.gmra.mxu0 %v5057_v43  ;;  %vm5016_vm13 = vcmp.gt.f32.partialorder %v4995_v59, 0.0 }
 0xb0b   : > { %9204 = vmatprep.mubr.f32.mxu0 %v5058_v2  ;;  %v5032_v61 = vsel %vm5016_vm13, %v4995_v59, 1.0 }
 0xb0c   : > { %10400 = vrcp.f32 %v5032_v61  ;;  %v16605_v61 = vld [vmem:[#allocation63_spill] sm:$0xff] }
 0xb0d   : > { %v4997_v15 = vpop.xlane.xlu0 %4996 }
 0xb0e   : > { %9205 = vmatmul.mubr.f32.gmra.mxu0 %v5059_v23  ;;  %vm5017_vm14 = vcmp.gt.f32.partialorder %v4997_v15, 0.0 }
 0xb0f   : > { %v10397_v6 = vpop.eup %10396  ;;  %v5033_v44 = vsel %vm5017_vm14, %v4997_v15, 1.0  ;;  %v16604_v15 = vld [vmem:[#allocation62_spill] sm:$0xff] }
 0xb10   : > { %v5060_v34 = vmul.f32 %v10397_v6, %v14203_v10 }
 0xb11   : > { %v5001_v22 = vpop.xlane.xlu0 %5000 }
 0xb12   : > { %9207 = vmatprep.mubr.f32.mxu0 %v5060_v34  ;;  %vm5019_vm0 = vcmp.gt.f32.partialorder %v5001_v22, 0.0 }
 0xb13   : > { %9208 = vmatmul.mubr.f32.gmra.mxu0 %v5061_v1  ;;  %v5035_v54 = vsel %vm5019_vm0, %v5001_v22, 1.0  ;;  %v16602_v1 = vld [vmem:[#allocation65_spill] sm:$0xff] }
 0xb15   : > { %v10399_v58 = vpop.eup %10398  ;;  %v5005_v0 = vpop.xlane.xlu0 %5004 }
 0xb16   : > { %v5062_v16 = vmul.f32 %v10399_v58, %v14207_v50  ;;  %vm5021_vm3 = vcmp.gt.f32.partialorder %v5005_v0, 0.0 }
 0xb17   : > { %v5037_v29 = vsel %vm5021_vm3, %v5005_v0, 1.0  ;;  %v16608_v0 = vld [vmem:[#allocation58_spill] sm:$0xff] }
 0xb18   : > { %9210 = vmatprep.mubr.f32.mxu0 %v5062_v16  ;;  %v16603_v16 = vld [vmem:[#allocation64_spill] sm:$0xff] }
 0xb19   : > { %v10401_v7 = vpop.eup %10400 }
 0xb1a   : > { %v5064_v38 = vmul.f32 %v10401_v7, %v14213_v40 }
 0xb34   : > { %v4993_v9 = vpop.xlane.xlu1 %4992 }
 0xb35   : > { %vm5015_vm15 = vcmp.gt.f32.partialorder %v4993_v9, 0.0 }
 0xb36   : > { %v5031_v41 = vsel %vm5015_vm15, %v4993_v9, 1.0 }
 0xb37   : > { %10402 = vrcp.f32 %v5031_v41  ;;  %v16607_v41 = vld [vmem:[#allocation60_spill] sm:$0xff] }
 0xb38   : > { %v4999_v10 = vpop.xlane.xlu1 %4998  ;;  %10404 = vrcp.f32 %v5033_v44  ;;  %v16606_v44 = vld [vmem:[#allocation61_spill] sm:$0xff] }
 0xb39   : > { %vm5018_vm6 = vcmp.gt.f32.partialorder %v4999_v10, 0.0 }
 0xb3a   : > { %v5034_v50 = vsel %vm5018_vm6, %v4999_v10, 1.0  ;;  %v16609_v10 = vld [vmem:[#allocation59_spill] sm:$0xff] }
 0xb3b   : > { %10406 = vrcp.f32 %v5034_v50  ;;  %v16611_v50 = vld [vmem:[#allocation56_spill] sm:$0xff] }
 0xb3c   : > { %v5003_v46 = vpop.xlane.xlu1 %5002  ;;  %10408 = vrcp.f32 %v5035_v54  ;;  %v16610_v54 = vld [vmem:[#allocation57_spill] sm:$0xff] }
 0xb3d   : > { %vm5020_vm4 = vcmp.gt.f32.partialorder %v5003_v46, 0.0 }
 0xb3e   : > { %v5036_v52 = vsel %vm5020_vm4, %v5003_v46, 1.0  ;;  %v16612_v46 = vld [vmem:[#allocation30_spill] sm:$0xff] }
 0xb3f   : > { %10410 = vrcp.f32 %v5036_v52  ;;  %v16614_v52 = vld [vmem:[#allocation29_spill] sm:$0xff] }
 0xb40   : > { %10412 = vrcp.f32 %v5037_v29  ;;  %v16613_v29 = vld [vmem:[#allocation28_spill] sm:$0xff] }
 0xb44   : > { %v10403_v60 = vpop.eup %10402 }
 0xb45   : > { %v5063_v17 = vmul.f32 %v10403_v60, %v14265_v20  ;;  %v10405_v57 = vpop.eup %10404  ;;  %v16601_v20 = vmov 0.0  }
 0xb46   : > { %v5065_v42 = vmul.f32 %v10405_v57, %v14217_v19 }
 0xb47   : > { %9211 = vmatmul.mubr.f32.gmra.mxu0 %v5063_v17 }
 0xb48   : > { %v10407_v27 = vpop.eup %10406  ;;  %9213 = vmatprep.mubr.f32.mxu0 %v5064_v38 }
 0xb49   : > { %v5066_v12 = vmul.f32 %v10407_v27, %v14275_v35  ;;  %v10409_v18 = vpop.eup %10408 }
 0xb4a   : > { %v5067_v56 = vmul.f32 %v10409_v18, %v14221_v48  ;;  %v5362_v18 = vpop.permute.xlu1 %5361 }
 0xb4b   : > { %9214 = vmatmul.mubr.f32.gmra.mxu0 %v5065_v42 }
 0xb4c   : > { %v10411_v39 = vpop.eup %10410  ;;  %9216 = vmatprep.mubr.f32.mxu0 %v5066_v12 }
 0xb4d   : > { %v5068_v26 = vmul.f32 %v10411_v39, %v14285_v36  ;;  %v10413_v11 = vpop.eup %10412 }
 0xb4e   : > { %v5069_v40 = vmul.f32 %v10413_v11, %v14227_v3  ;;  %v5364_v39 = vpop.permute.xlu1 %5363 }
 0xb4f   : > { %9217 = vmatmul.mubr.f32.gmra.mxu0 %v5067_v56  ;;  %v5360_v56 = vpop.permute.xlu0 %5359 }
 0xb50   : > { %9219 = vmatprep.mubr.f32.mxu0 %v5068_v26 }
 0xb53   : > { %9220 = vmatmul.mubr.f32.gmra.mxu0 %v5069_v40 }
 0xb54   : > { %5833 = vmatprep.mubr.f32.mxu0 %v16601_v20 }
 0xb56   : > { %v14311_v47 = vpop.f32.mrf.mxu0 }
 0xb58   : > { %v14313_v19 = vpop.f32.mrf.mxu0 }
 0xb5e   : > { %v14315_v35 = vpop.f32.mrf.mxu0 }
 0xb60   : > { %v14317_v4 = vpop.f32.mrf.mxu0 }
 0xb63   : > { %v14319_v25 = vpop.f32.mrf.mxu0 }
 0xb65   : > { %v14321_v48 = vpop.f32.mrf.mxu0 }
 0xb67   : > { %v14323_v36 = vpop.f32.mrf.mxu0 }
 0xb69   : > { %v14325_v5 = vpop.f32.mrf.mxu0 }
 0xb6c   : > { %v14327_v3 = vpop.f32.mrf.mxu0 }
 0xb6e   : > { %v14329_v51 = vpop.f32.mrf.mxu0 }
 0xb70   : > { %v14331_v63 = vpop.f32.mrf.mxu0 }
 0xb72   : > { %v14333_v49 = vpop.f32.mrf.mxu0 }
 0xb74   : > { %v14335_v62 = vpop.f32.mrf.mxu0 }
 0xb76   : > { %v14337_v43 = vpop.f32.mrf.mxu0 }
 0xb78   : > { %v14339_v8 = vpop.f32.mrf.mxu0 }
 0xb7a   : > { %v14341_v2 = vpop.f32.mrf.mxu0 }
 0xbc6   : > { %v9200_v23 = vpop.f32.mrf.mxu0 }
 0xbc7   : > { %5297 = vrot.lane.b32.xlu1 %v9200_v23, %s16385_s29 }
 0xbc8   : > { %v5200_v30 = vpop.f32.mrf.mxu0 }
 0xbca   : > { %v9203_v6 = vpop.f32.mrf.mxu0 }
 0xbcb   : > { %5295 = vrot.lane.b32.xlu1 %v5200_v30, %s16385_s29  ;;  %5301 = vrot.lane.b32.xlu0 %v9203_v6, %s16385_s29 }
 0xbcc   : > { %v5210_v34 = vpop.f32.mrf.mxu0 }
 0xbce   : > { %v9206_v58 = vpop.f32.mrf.mxu0 }
 0xbcf   : > { %5365 = vrot.lane.b32.xlu1 %v16602_v1, %s16384_s2  ;;  %5299 = vrot.lane.b32.xlu0 %v5210_v34, %s16385_s29 }
 0xbd0   : > { %v5220_v59 = vpop.f32.mrf.mxu0 }
 0xbd3   : > { %5367 = vrot.lane.b32.xlu1 %v16603_v16, %s16384_s2  ;;  %5305 = vrot.lane.b32.xlu0 %v9206_v58, %s16385_s29  ;;  %v9209_v22 = vpop.f32.mrf.mxu0 }
 0xbd5   : > { %v5230_v9 = vpop.f32.mrf.mxu0 }
 0xbd7   : > { %5369 = vrot.lane.b32.xlu1 %v16604_v15, %s16384_s2  ;;  %5303 = vrot.lane.b32.xlu0 %v5220_v59, %s16385_s29 }
 0xbdb   : > { %5371 = vrot.lane.b32.xlu1 %v16605_v61, %s16384_s2  ;;  %5309 = vrot.lane.b32.xlu0 %v9209_v22, %s16385_s29 }
 0xbdf   : > { %5373 = vrot.lane.b32.xlu1 %v16606_v44, %s16384_s2  ;;  %5307 = vrot.lane.b32.xlu0 %v5230_v9, %s16385_s29 }
 0xbe3   : > { %5375 = vrot.lane.b32.xlu1 %v16607_v41, %s16384_s2 }
 0xbe7   : > { %5377 = vrot.lane.b32.xlu1 %v16608_v0, %s16384_s2 }
 0xbeb   : > { %5379 = vrot.lane.b32.xlu1 %v16609_v10, %s16384_s2 }
 0xbef   : > { %5381 = vrot.lane.b32.xlu1 %v16610_v54, %s16384_s2 }
 0xbf3   : > { %5383 = vrot.lane.b32.xlu1 %v16611_v50, %s16384_s2 }
 0xbf7   : > { %5385 = vrot.lane.b32.xlu1 %v16612_v46, %s16384_s2 }
 0xbfb   : > { %5387 = vrot.lane.b32.xlu1 %v16613_v29, %s16384_s2 }
 0xbff   : > { %5389 = vrot.lane.b32.xlu1 %v16614_v52, %s16384_s2 }
 0xc07   : > { %v9212_v7 = vpop.f32.mrf.mxu0 }
 0xc08   : > { %5313 = vrot.lane.b32.xlu0 %v9212_v7, %s16385_s29 }
 0xc09   : > { %v5240_v60 = vpop.f32.mrf.mxu0 }
 0xc0b   : > { %v9215_v17 = vpop.f32.mrf.mxu0 }
 0xc0c   : > { %5311 = vrot.lane.b32.xlu0 %v5240_v60, %s16385_s29 }
 0xc0d   : > { %v5250_v57 = vpop.f32.mrf.mxu0 }
 0xc0f   : > { %v9218_v38 = vpop.f32.mrf.mxu0 }
 0xc10   : > { %5317 = vrot.lane.b32.xlu0 %v9215_v17, %s16385_s29 }
 0xc11   : > { %v5260_v27 = vpop.f32.mrf.mxu0 }
 0xc13   : > { %v9221_v42 = vpop.f32.mrf.mxu0 }
 0xc14   : > { %5315 = vrot.lane.b32.xlu0 %v5250_v57, %s16385_s29 }
 0xc15   : > { %v5270_v12 = vpop.f32.mrf.mxu0 }
 0xc18   : > { %5321 = vrot.lane.b32.xlu0 %v9218_v38, %s16385_s29 }
 0xc1c   : > { %5319 = vrot.lane.b32.xlu0 %v5260_v27, %s16385_s29 }
 0xc20   : > { %5325 = vrot.lane.b32.xlu0 %v9221_v42, %s16385_s29 }
 0xc24   : > { %5323 = vrot.lane.b32.xlu0 %v5270_v12, %s16385_s29 }
 0xc39   : > { %v5298_v26 = vpop.permute.xlu1 %5297 }
 0xc3a   : > { %v5344_v11 = vsel %vm1463_vm2, %v14311_v47, %v5298_v26 }
 0xc3b   : > { %v14387_v40 = vadd.f32 %v5362_v18, %v5344_v11 }
 0xc3d   : > { %v5424_v23 = vmax.f32 %v14387_v40, 0.0  ;;  %v5296_v30 = vpop.permute.xlu1 %5295  ;;  %v5302_v6 = vpop.permute.xlu0 %5301 }
 0xc3e   : > { %v5343_v34 = vsel %vm1463_vm2, %v14313_v19, %v5296_v30  ;;  %v5346_v15 = vsel %vm1463_vm2, %v14315_v35, %v5302_v6 }
 0xc3f   : > { %v14392_v1 = vadd.f32 %v5360_v56, %v5343_v34  ;;  %v5442_v58 = vsel %vm1531_vm9, %v5424_v23, 0.0 }
 0xc40   : > { %5443 = vadd.xlane.f32.xlu1 %v5442_v58 }
 0xc41   : > { %v5423_v16 = vmax.f32 %v14392_v1, 0.0  ;;  %v5366_v59 = vpop.permute.xlu1 %5365  ;;  %v5300_v47 = vpop.permute.xlu0 %5299 }
 0xc42   : > { %v5345_v22 = vsel %vm1463_vm2, %v14317_v4, %v5300_v47  ;;  %v14402_v61 = vadd.f32 %v5366_v59, %v5346_v15 }
 0xc43   : > { %v14404_v19 = vadd.f32 %v5364_v39, %v5345_v22  ;;  %v5439_v9 = vsel %vm1531_vm9, %v5423_v16, 0.0 }
 0xc44   : > { %5440 = vadd.xlane.f32.xlu0 %v5439_v9  ;;  %v5426_v10 = vmax.f32 %v14402_v61, 0.0 }
 0xc45   : > { %v5425_v44 = vmax.f32 %v14404_v19, 0.0  ;;  %v5368_v41 = vpop.permute.xlu1 %5367  ;;  %v5306_v0 = vpop.permute.xlu0 %5305 }
 0xc46   : > { %v5348_v4 = vsel %vm1463_vm2, %v14319_v25, %v5306_v0  ;;  %v5448_v7 = vsel %vm1531_vm9, %v5426_v10, 0.0 }
 0xc47   : > { %v5445_v35 = vsel %vm1531_vm9, %v5425_v44, 0.0 }
 0xc48   : > { %5446 = vadd.xlane.f32.xlu0 %v5445_v35 }
 0xc49   : > { %v5370_v54 = vpop.permute.xlu1 %5369  ;;  %v5304_v50 = vpop.permute.xlu0 %5303 }
 0xc4a   : > { %v14416_v46 = vadd.f32 %v5370_v54, %v5348_v4  ;;  %v5347_v29 = vsel %vm1463_vm2, %v14321_v48, %v5304_v50 }
 0xc4b   : > { %v14420_v52 = vadd.f32 %v5368_v41, %v5347_v29 }
 0xc4c   : > { %v5428_v60 = vmax.f32 %v14416_v46, 0.0  ;;  %5449 = vadd.xlane.f32.xlu0 %v5448_v7 }
 0xc4d   : > { %v5427_v17 = vmax.f32 %v14420_v52, 0.0  ;;  %v5372_v57 = vpop.permute.xlu1 %5371  ;;  %v5310_v25 = vpop.permute.xlu0 %5309 }
 0xc4e   : > { %v5454_v38 = vsel %vm1531_vm9, %v5428_v60, 0.0  ;;  %v5350_v27 = vsel %vm1463_vm2, %v14323_v36, %v5310_v25 }
 0xc4f   : > { %v5451_v48 = vsel %vm1531_vm9, %v5427_v17, 0.0 }
 0xc50   : > { %5455 = vadd.xlane.f32.xlu0 %v5454_v38  ;;  %5452 = vadd.xlane.f32.xlu1 %v5451_v48 }
 0xc51   : > { %v5374_v42 = vpop.permute.xlu1 %5373  ;;  %v5308_v12 = vpop.permute.xlu0 %5307 }
 0xc52   : > { %v14435_v18 = vadd.f32 %v5374_v42, %v5350_v27  ;;  %v5349_v39 = vsel %vm1463_vm2, %v14325_v5, %v5308_v12 }
 0xc53   : > { %v14439_v56 = vadd.f32 %v5372_v57, %v5349_v39 }
 0xc54   : > { %v5430_v26 = vmax.f32 %v14435_v18, 0.0  ;;  %v5706_v18 = vld [vmem:[%s16086_s11 + $0x78] sm:$0xff] }
 0xc55   : > { %v5429_v11 = vmax.f32 %v14439_v56, 0.0  ;;  %v5376_v6 = vpop.permute.xlu1 %5375  ;;  %5785 = vmatprep.subr.mxu0 %v5706_v18  ;;  %v5705_v56 = vld [vmem:[%s16086_s11 + $0x70] sm:$0xff] }
 0xc56   : > { %v5460_v30 = vsel %vm1531_vm9, %v5430_v26, 0.0  ;;  %5786 = vmatpush1.msra.mxu0 %v5705_v56 }
 0xc57   : > { %5461 = vadd.xlane.f32.xlu0 %v5460_v30  ;;  %v5457_v36 = vsel %vm1531_vm9, %v5429_v11, 0.0 }
 0xc58   : > { %5458 = vadd.xlane.f32.xlu1 %v5457_v36 }
 0xc59   : > { %v5378_v34 = vpop.permute.xlu1 %5377 }
 0xc5d   : > { %v5380_v58 = vpop.permute.xlu1 %5379 }
 0xc61   : > { %v5382_v59 = vpop.permute.xlu1 %5381 }
 0xc65   : > { %v5384_v4 = vpop.permute.xlu1 %5383 }
 0xc69   : > { %v5386_v25 = vpop.permute.xlu1 %5385 }
 0xc7a   : > { %v5314_v5 = vpop.permute.xlu0 %5313 }
 0xc7b   : > { %v5352_v47 = vsel %vm1463_vm2, %v14327_v3, %v5314_v5 }
 0xc7c   : > { %v14451_v15 = vadd.f32 %v5378_v34, %v5352_v47 }
 0xc7e   : > { %v5432_v22 = vmax.f32 %v14451_v15, 0.0  ;;  %v5312_v9 = vpop.permute.xlu0 %5311 }
 0xc7f   : > { %v5351_v41 = vsel %vm1463_vm2, %v14329_v51, %v5312_v9 }
 0xc80   : > { %v14456_v0 = vadd.f32 %v5376_v6, %v5351_v41  ;;  %v5466_v35 = vsel %vm1531_vm9, %v5432_v22, 0.0 }
 0xc81   : > { %5467 = vadd.xlane.f32.xlu0 %v5466_v35 }
 0xc82   : > { %v5431_v54 = vmax.f32 %v14456_v0, 0.0  ;;  %v5318_v50 = vpop.permute.xlu0 %5317 }
 0xc83   : > { %v5354_v3 = vsel %vm1463_vm2, %v14331_v63, %v5318_v50 }
 0xc84   : > { %v14464_v29 = vadd.f32 %v5382_v59, %v5354_v3  ;;  %v5463_v51 = vsel %vm1531_vm9, %v5431_v54, 0.0 }
 0xc85   : > { %5464 = vadd.xlane.f32.xlu1 %v5463_v51 }
 0xc86   : > { %v5434_v7 = vmax.f32 %v14464_v29, 0.0  ;;  %v5316_v57 = vpop.permute.xlu0 %5315 }
 0xc87   : > { %v5353_v38 = vsel %vm1463_vm2, %v14333_v49, %v5316_v57  ;;  %v5388_v49 = vpop.permute.xlu1 %5387 }
 0xc88   : > { %v14472_v48 = vadd.f32 %v5380_v58, %v5353_v38  ;;  %v5472_v63 = vsel %vm1531_vm9, %v5434_v7, 0.0 }
 0xc89   : > { %5473 = vadd.xlane.f32.xlu0 %v5472_v63 }
 0xc8a   : > { %v5433_v27 = vmax.f32 %v14472_v48, 0.0  ;;  %v5322_v42 = vpop.permute.xlu0 %5321 }
 0xc8b   : > { %v5356_v12 = vsel %vm1463_vm2, %v14335_v62, %v5322_v42  ;;  %v5390_v47 = vpop.permute.xlu1 %5389 }
 0xc8c   : > { %v14480_v39 = vadd.f32 %v5386_v25, %v5356_v12  ;;  %v5469_v30 = vsel %vm1531_vm9, %v5433_v27, 0.0 }
 0xc8d   : > { %5470 = vadd.xlane.f32.xlu1 %v5469_v30 }
 0xc8e   : > { %v5436_v36 = vmax.f32 %v14480_v39, 0.0  ;;  %v5320_v6 = vpop.permute.xlu0 %5319 }
 0xc8f   : > { %v5355_v34 = vsel %vm1463_vm2, %v14337_v43, %v5320_v6 }
 0xc90   : > { %v14488_v58 = vadd.f32 %v5384_v4, %v5355_v34  ;;  %v5478_v62 = vsel %vm1531_vm9, %v5436_v36, 0.0 }
 0xc91   : > { %5479 = vadd.xlane.f32.xlu0 %v5478_v62 }
 0xc92   : > { %v5435_v5 = vmax.f32 %v14488_v58, 0.0  ;;  %v5326_v59 = vpop.permute.xlu0 %5325 }
 0xc93   : > { %v5358_v9 = vsel %vm1463_vm2, %v14339_v8, %v5326_v59 }
 0xc94   : > { %v14496_v41 = vadd.f32 %v5390_v47, %v5358_v9  ;;  %v5475_v43 = vsel %vm1531_vm9, %v5435_v5, 0.0 }
 0xc95   : > { %5476 = vadd.xlane.f32.xlu1 %v5475_v43 }
 0xc96   : > { %v5438_v35 = vmax.f32 %v14496_v41, 0.0  ;;  %v5324_v4 = vpop.permute.xlu0 %5323 }
 0xc97   : > { %v5357_v50 = vsel %vm1463_vm2, %v14341_v2, %v5324_v4 }
 0xc98   : > { %v14504_v3 = vadd.f32 %v5388_v49, %v5357_v50  ;;  %v5484_v51 = vsel %vm1531_vm9, %v5438_v35, 0.0 }
 0xc99   : > { %5485 = vadd.xlane.f32.xlu0 %v5484_v51 }
 0xc9a   : > { %v5437_v8 = vmax.f32 %v14504_v3, 0.0 }
 0xc9c   : > { %v5481_v57 = vsel %vm1531_vm9, %v5437_v8, 0.0 }
 0xc9d   : > { %5482 = vadd.xlane.f32.xlu1 %v5481_v57 }
 0xcc9   : > { %v5444_v25 = vpop.xlane.xlu1 %5443 }
 0xcca   : > { %v5488_v38 = vmul.f32 0.015625, %v5444_v25 }
 0xccc   : > { %v14515_v63 = vsub.f32 %v5424_v23, %v5488_v38 }
 0xccd   : > { %v5441_v2 = vpop.xlane.xlu0 %5440 }
 0xcce   : > { %v5487_v42 = vmul.f32 0.015625, %v5441_v2  ;;  %v5520_v12 = vmul.f32 %v14515_v63, %v14515_v63 }
 0xcd0   : > { %v14521_v30 = vsub.f32 %v5423_v16, %v5487_v42  ;;  %v5538_v49 = vsel %vm1531_vm9, %v5520_v12, 0.0 }
 0xcd1   : > { %5539 = vadd.xlane.f32.xlu0 %v5538_v49  ;;  %v5447_v6 = vpop.xlane.xlu0 %5446 }
 0xcd2   : > { %v5489_v34 = vmul.f32 0.015625, %v5447_v6  ;;  %v5519_v62 = vmul.f32 %v14521_v30, %v14521_v30 }
 0xcd4   : > { %v14528_v40 = vsub.f32 %v5425_v44, %v5489_v34  ;;  %v5535_v23 = vsel %vm1531_vm9, %v5519_v62, 0.0 }
 0xcd5   : > { %5536 = vadd.xlane.f32.xlu1 %v5535_v23  ;;  %v5450_v59 = vpop.xlane.xlu0 %5449  ;;  %v5702_v23 = vld [vmem:[%s16086_s11 + $0x58] sm:$0xff] }
 0xcd6   : > { %v5490_v47 = vmul.f32 0.015625, %v5450_v59  ;;  %v5521_v1 = vmul.f32 %v14528_v40, %v14528_v40  ;;  %v5701_v59 = vld [vmem:[%s16086_s11 + $0x50] sm:$0xff] }
 0xcd8   : > { %v14535_v16 = vsub.f32 %v5426_v10, %v5490_v47  ;;  %v5541_v9 = vsel %vm1531_vm9, %v5521_v1, 0.0  ;;  %v5700_v47 = vld [vmem:[%s16086_s11 + $0x48] sm:$0xff]  ;;  %v5699_v1 = vld [vmem:[%s16086_s11 + $0x40] sm:$0xff] }
 0xcd9   : > { %v5453_v43 = vpop.xlane.xlu1 %5452  ;;  %5542 = vadd.xlane.f32.xlu1 %v5541_v9  ;;  %v5456_v4 = vpop.xlane.xlu0 %5455  ;;  %v5698_v9 = vld [vmem:[%s16086_s11 + $0x38] sm:$0xff] }
 0xcda   : > { %v5491_v19 = vmul.f32 0.015625, %v5453_v43  ;;  %v5492_v44 = vmul.f32 0.015625, %v5456_v4  ;;  %v5522_v50 = vmul.f32 %v14535_v16, %v14535_v16  ;;  %v5697_v43 = vld [vmem:[%s16086_s11 + $0x30] sm:$0xff]  ;;  %v5696_v4 = vld [vmem:[%s16086_s11 + $0x28] sm:$0xff] }
 0xcdc   : > { %v14542_v51 = vsub.f32 %v5427_v17, %v5491_v19  ;;  %v14546_v57 = vsub.f32 %v5428_v60, %v5492_v44  ;;  %v5544_v61 = vsel %vm1531_vm9, %v5522_v50, 0.0  ;;  %v5695_v19 = vld [vmem:[%s16086_s11 + $0x20] sm:$0xff]  ;;  %v5694_v44 = vld [vmem:[%s16086_s11 + $0x18] sm:$0xff]  ;;  %v5693_v50 = vld [vmem:[%s16086_s11 + $0x10] sm:$0xff] }
 0xcdd   : > { %5545 = vadd.xlane.f32.xlu0 %v5544_v61  ;;  %v5692_v61 = vld [vmem:[%s16086_s11 + $0x8] sm:$0xff] }
 0xcde   : > { %v5523_v10 = vmul.f32 %v14542_v51, %v14542_v51  ;;  %v5524_v25 = vmul.f32 %v14546_v57, %v14546_v57 }
 0xce0   : > { %v5462_v38 = vpop.xlane.xlu0 %5461  ;;  %v5547_v2 = vsel %vm1531_vm9, %v5523_v10, 0.0  ;;  %v5550_v52 = vsel %vm1531_vm9, %v5524_v25, 0.0  ;;  %v5691_v10 = vld [vmem:[%s16086_s11] sm:$0xff] }
 0xce1   : > { %v5494_v17 = vmul.f32 0.015625, %v5462_v38  ;;  %v5459_v42 = vpop.xlane.xlu1 %5458  ;;  %5548 = vadd.xlane.f32.xlu1 %v5547_v2  ;;  %5551 = vadd.xlane.f32.xlu0 %v5550_v52 }
 0xce2   : > { %v5493_v46 = vmul.f32 0.015625, %v5459_v42 }
 0xce3   : > { %v14557_v60 = vsub.f32 %v5430_v26, %v5494_v17  ;;  %v5704_v26 = vld [vmem:[%s16086_s11 + $0x68] sm:$0xff] }
 0xce4   : > { %v14561_v12 = vsub.f32 %v5429_v11, %v5493_v46  ;;  %5787 = vmatprep.subr.mxu0 %v5704_v26  ;;  %v5703_v11 = vld [vmem:[%s16086_s11 + $0x60] sm:$0xff] }
 0xce5   : > { %v5526_v49 = vmul.f32 %v14557_v60, %v14557_v60  ;;  %5788 = vmatpush1.msra.mxu0 %v5703_v11 }
 0xce6   : > { %v5525_v6 = vmul.f32 %v14561_v12, %v14561_v12  ;;  %5789 = vmatprep.subr.mxu0 %v5702_v23 }
 0xce7   : > { %v5556_v34 = vsel %vm1531_vm9, %v5526_v49, 0.0  ;;  %5790 = vmatpush1.msra.mxu0 %v5701_v59 }
 0xce8   : > { %5557 = vadd.xlane.f32.xlu0 %v5556_v34  ;;  %v5553_v62 = vsel %vm1531_vm9, %v5525_v6, 0.0  ;;  %5791 = vmatprep.subr.mxu0 %v5700_v47 }
 0xce9   : > { %5554 = vadd.xlane.f32.xlu1 %v5553_v62  ;;  %5792 = vmatpush1.msra.mxu0 %v5699_v1 }
 0xcea   : > { %5793 = vmatprep.subr.mxu0 %v5698_v9 }
 0xceb   : > { %5794 = vmatpush1.msra.mxu0 %v5697_v43 }
 0xcec   : > { %5795 = vmatprep.subr.mxu0 %v5696_v4 }
 0xced   : > { %5796 = vmatpush1.msra.mxu0 %v5695_v19 }
 0xcee   : > { %5797 = vmatprep.subr.mxu0 %v5694_v44 }
 0xcef   : > { %5798 = vmatpush1.msra.mxu0 %v5693_v50 }
 0xcf0   : > { %5799 = vmatprep.subr.mxu0 %v5692_v61 }
 0xcf1   : > { %5800 = vmatpush1.msra.mxu0 %v5691_v10 }
 0xd0a   : > { %v5468_v25 = vpop.xlane.xlu0 %5467 }
 0xd0b   : > { %v5496_v38 = vmul.f32 0.015625, %v5468_v25 }
 0xd0d   : > { %v14619_v2 = vsub.f32 %v5432_v22, %v5496_v38 }
 0xd0e   : > { %v5465_v52 = vpop.xlane.xlu1 %5464 }
 0xd0f   : > { %v5495_v17 = vmul.f32 0.015625, %v5465_v52  ;;  %v5528_v42 = vmul.f32 %v14619_v2, %v14619_v2 }
 0xd11   : > { %v14625_v46 = vsub.f32 %v5431_v54, %v5495_v17  ;;  %v5562_v49 = vsel %vm1531_vm9, %v5528_v42, 0.0 }
 0xd12   : > { %5563 = vadd.xlane.f32.xlu0 %v5562_v49  ;;  %v5474_v6 = vpop.xlane.xlu0 %5473 }
 0xd13   : > { %v5498_v34 = vmul.f32 0.015625, %v5474_v6  ;;  %v5527_v62 = vmul.f32 %v14625_v46, %v14625_v46 }
 0xd15   : > { %v14632_v15 = vsub.f32 %v5434_v7, %v5498_v34  ;;  %v5559_v22 = vsel %vm1531_vm9, %v5527_v62, 0.0 }
 0xd16   : > { %v5471_v18 = vpop.xlane.xlu1 %5470  ;;  %5560 = vadd.xlane.f32.xlu1 %v5559_v22 }
 0xd17   : > { %v5497_v56 = vmul.f32 0.015625, %v5471_v18  ;;  %v5530_v0 = vmul.f32 %v14632_v15, %v14632_v15 }
 0xd19   : > { %v14639_v54 = vsub.f32 %v5433_v27, %v5497_v56  ;;  %v5568_v26 = vsel %vm1531_vm9, %v5530_v0, 0.0 }
 0xd1a   : > { %5569 = vadd.xlane.f32.xlu0 %v5568_v26  ;;  %v5480_v11 = vpop.xlane.xlu0 %5479 }
 0xd1b   : > { %v5500_v23 = vmul.f32 0.015625, %v5480_v11  ;;  %v5529_v29 = vmul.f32 %v14639_v54, %v14639_v54 }
 0xd1d   : > { %v14646_v7 = vsub.f32 %v5436_v36, %v5500_v23  ;;  %v5565_v59 = vsel %vm1531_vm9, %v5529_v29, 0.0 }
 0xd1e   : > { %v5477_v47 = vpop.xlane.xlu1 %5476  ;;  %5566 = vadd.xlane.f32.xlu1 %v5565_v59 }
 0xd1f   : > { %v5499_v1 = vmul.f32 0.015625, %v5477_v47  ;;  %v5532_v48 = vmul.f32 %v14646_v7, %v14646_v7  ;;  %v14677_v47 = vld [vmem:[%s16084_s9] ss:$0 sm:$0xff] }
 0xd21   : > { %v14653_v27 = vsub.f32 %v5435_v5, %v5499_v1  ;;  %v5574_v9 = vsel %vm1531_vm9, %v5532_v48, 0.0 }
 0xd22   : > { %5575 = vadd.xlane.f32.xlu0 %v5574_v9  ;;  %v5486_v43 = vpop.xlane.xlu0 %5485 }
 0xd23   : > { %v5502_v4 = vmul.f32 0.015625, %v5486_v43  ;;  %v5531_v39 = vmul.f32 %v14653_v27, %v14653_v27 }
 0xd25   : > { %v14660_v36 = vsub.f32 %v5438_v35, %v5502_v4  ;;  %v5571_v19 = vsel %vm1531_vm9, %v5531_v39, 0.0 }
 0xd26   : > { %v5483_v44 = vpop.xlane.xlu1 %5482  ;;  %5572 = vadd.xlane.f32.xlu1 %v5571_v19 }
 0xd27   : > { %v5501_v50 = vmul.f32 0.015625, %v5483_v44  ;;  %v5534_v58 = vmul.f32 %v14660_v36, %v14660_v36  ;;  %v14684_v44 = vld [vmem:[%s16085_s10] ss:$0 sm:$0xff] }
 0xd29   : > { %v14667_v5 = vsub.f32 %v5437_v8, %v5501_v50  ;;  %v5580_v61 = vsel %vm1531_vm9, %v5534_v58, 0.0 }
 0xd2a   : > { %5581 = vadd.xlane.f32.xlu0 %v5580_v61 }
 0xd2b   : > { %v5533_v41 = vmul.f32 %v14667_v5, %v14667_v5 }
 0xd2d   : > { %v5577_v35 = vsel %vm1531_vm9, %v5533_v41, 0.0 }
 0xd2e   : > { %5578 = vadd.xlane.f32.xlu1 %v5577_v35 }
 0xd5a   : > { %v5540_v10 = vpop.xlane.xlu0 %5539 }
 0xd5b   : > { %v5584_v25 = vmul.f32 0.015625, %v5540_v10 }
 0xd5d   : > { %v5600_v38 = vadd.f32 1e-05, %v5584_v25 }
 0xd5e   : > { %v5537_v52 = vpop.xlane.xlu1 %5536 }
 0xd5f   : > { %v5583_v17 = vmul.f32 0.015625, %v5537_v52  ;;  %10414 = vrsqrt.f32 %v5600_v38 }
 0xd61   : > { %v5599_v42 = vadd.f32 1e-05, %v5583_v17 }
 0xd62   : > { %v5543_v49 = vpop.xlane.xlu1 %5542 }
 0xd63   : > { %10416 = vrsqrt.f32 %v5599_v42  ;;  %v5585_v3 = vmul.f32 0.015625, %v5543_v49 }
 0xd65   : > { %v5601_v8 = vadd.f32 1e-05, %v5585_v3 }
 0xd66   : > { %v5546_v6 = vpop.xlane.xlu0 %5545 }
 0xd67   : > { %10418 = vrsqrt.f32 %v5601_v8  ;;  %v5586_v34 = vmul.f32 0.015625, %v5546_v6 }
 0xd69   : > { %v5602_v62 = vadd.f32 1e-05, %v5586_v34 }
 0xd6a   : > { %v5549_v22 = vpop.xlane.xlu1 %5548  ;;  %v5552_v18 = vpop.xlane.xlu0 %5551 }
 0xd6b   : > { %10420 = vrsqrt.f32 %v5602_v62  ;;  %v5587_v56 = vmul.f32 0.015625, %v5549_v22  ;;  %v5588_v0 = vmul.f32 0.015625, %v5552_v18 }
 0xd6c   : > { %v10415_v26 = vpop.eup %10414 }
 0xd6d   : > { %v5603_v11 = vadd.f32 1e-05, %v5587_v56  ;;  %v5604_v23 = vadd.f32 1e-05, %v5588_v0  ;;  %v5632_v59 = vmul.f32 %v10415_v26, %v14515_v63 }
 0xd6f   : > { %10422 = vrsqrt.f32 %v5603_v11  ;;  %v5654_v63 = vmul.f32 %v14677_v47, %v5632_v59 }
 0xd70   : > { %v10417_v29 = vpop.eup %10416  ;;  %10424 = vrsqrt.f32 %v5604_v23 }
 0xd71   : > { %v5631_v1 = vmul.f32 %v10417_v29, %v14521_v30  ;;  %v5558_v48 = vpop.xlane.xlu0 %5557  ;;  %v5676_v35 = vadd.f32 %v14684_v44, %v5654_v63 }
 0xd72   : > { %v5590_v9 = vmul.f32 0.015625, %v5558_v48  ;;  %v5555_v43 = vpop.xlane.xlu1 %5554 }
 0xd73   : > { %v5653_v4 = vmul.f32 %v14677_v47, %v5631_v1  ;;  %v5589_v39 = vmul.f32 0.015625, %v5555_v43 }
 0xd74   : > { %v10419_v19 = vpop.eup %10418  ;;  %v5606_v58 = vadd.f32 1e-05, %v5590_v9 }
 0xd75   : > { %v5675_v50 = vadd.f32 %v14684_v44, %v5653_v4  ;;  %v5605_v61 = vadd.f32 1e-05, %v5589_v39  ;;  %v5633_v30 = vmul.f32 %v10419_v19, %v14528_v40 }
 0xd77   : > { %10426 = vrsqrt.f32 %v5605_v61  ;;  %8246 = vmatmul.mubr.msk.f32.vlgmr.msra.gmra.mxu0 %vm1531_vm9, %v5675_v50  ;;  %v5655_v10 = vmul.f32 %v14677_v47, %v5633_v30 }
 0xd78   : > { %v10421_v41 = vpop.eup %10420  ;;  %5839 = vmatprep.mubr.f32.mxu0 %v16601_v20  ;;  %10428 = vrsqrt.f32 %v5606_v58 }
 0xd79   : > { %v5634_v25 = vmul.f32 %v10421_v41, %v14535_v16  ;;  %v5677_v40 = vadd.f32 %v14684_v44, %v5655_v10 }
 0xd7b   : > { %8247 = vmatmul.mubr.msk.f32.gmra.mxu0 %vm1531_vm9, %v5676_v35  ;;  %v5656_v52 = vmul.f32 %v14677_v47, %v5634_v25 }
 0xd7c   : > { %v10423_v38 = vpop.eup %10422  ;;  %5845 = vmatprep.mubr.f32.mxu0 %v16601_v20 }
 0xd7d   : > { %v5635_v17 = vmul.f32 %v10423_v38, %v14542_v51  ;;  %v10425_v42 = vpop.eup %10424  ;;  %v5678_v49 = vadd.f32 %v14684_v44, %v5656_v52 }
 0xd7e   : > { %v5636_v3 = vmul.f32 %v10425_v42, %v14546_v57 }
 0xd7f   : > { %8248 = vmatmul.mubr.msk.f32.gmra.mxu0 %vm1531_vm9, %v5677_v40  ;;  %v5657_v16 = vmul.f32 %v14677_v47, %v5635_v17 }
 0xd80   : > { %5851 = vmatprep.mubr.f32.mxu0 %v16601_v20  ;;  %v5658_v51 = vmul.f32 %v14677_v47, %v5636_v3 }
 0xd81   : > { %v5679_v6 = vadd.f32 %v14684_v44, %v5657_v16 }
 0xd82   : > { %v5680_v22 = vadd.f32 %v14684_v44, %v5658_v51 }
 0xd83   : > { %8249 = vmatmul.mubr.msk.f32.gmra.mxu0 %vm1531_vm9, %v5678_v49 }
 0xd84   : > { %v10427_v8 = vpop.eup %10426  ;;  %5857 = vmatprep.mubr.f32.mxu0 %v16601_v20 }
 0xd85   : > { %v5637_v34 = vmul.f32 %v10427_v8, %v14561_v12  ;;  %v10429_v62 = vpop.eup %10428 }
 0xd86   : > { %v5638_v18 = vmul.f32 %v10429_v62, %v14557_v60 }
 0xd87   : > { %8250 = vmatmul.mubr.msk.f32.gmra.mxu0 %vm1531_vm9, %v5679_v6  ;;  %v5659_v57 = vmul.f32 %v14677_v47, %v5637_v34 }
 0xd88   : > { %5863 = vmatprep.mubr.f32.mxu0 %v16601_v20  ;;  %v5660_v0 = vmul.f32 %v14677_v47, %v5638_v18 }
 0xd89   : > { %v5681_v56 = vadd.f32 %v14684_v44, %v5659_v57 }
 0xd8a   : > { %v5682_v12 = vadd.f32 %v14684_v44, %v5660_v0 }
 0xd8b   : > { %8251 = vmatmul.mubr.msk.f32.gmra.mxu0 %vm1531_vm9, %v5680_v22 }
 0xd8c   : > { %5869 = vmatprep.mubr.f32.mxu0 %v16601_v20 }
 0xd8f   : > { %8252 = vmatmul.mubr.msk.f32.gmra.mxu0 %vm1531_vm9, %v5681_v56 }
 0xd90   : > { %5875 = vmatprep.mubr.f32.mxu0 %v16601_v20 }
 0xd93   : > { %8253 = vmatmul.mubr.msk.f32.gmra.mxu0 %vm1531_vm9, %v5682_v12 }
 0xd94   : > { %5881 = vmatprep.mubr.f32.mxu0 %v16601_v20 }
 0xd9b   : > { %v5564_v26 = vpop.xlane.xlu0 %5563 }
 0xd9c   : > { %v5592_v60 = vmul.f32 0.015625, %v5564_v26 }
 0xd9e   : > { %v5608_v11 = vadd.f32 1e-05, %v5592_v60 }
 0xd9f   : > { %v5561_v23 = vpop.xlane.xlu1 %5560 }
 0xda0   : > { %v5591_v29 = vmul.f32 0.015625, %v5561_v23  ;;  %10430 = vrsqrt.f32 %v5608_v11 }
 0xda2   : > { %v5607_v59 = vadd.f32 1e-05, %v5591_v29 }
 0xda3   : > { %v5570_v1 = vpop.xlane.xlu0 %5569 }
 0xda4   : > { %10432 = vrsqrt.f32 %v5607_v59  ;;  %v5594_v48 = vmul.f32 0.015625, %v5570_v1 }
 0xda6   : > { %v5610_v9 = vadd.f32 1e-05, %v5594_v48 }
 0xda7   : > { %v5567_v43 = vpop.xlane.xlu1 %5566 }
 0xda8   : > { %v5593_v4 = vmul.f32 0.015625, %v5567_v43  ;;  %10434 = vrsqrt.f32 %v5610_v9 }
 0xdaa   : > { %v5609_v39 = vadd.f32 1e-05, %v5593_v4 }
 0xdab   : > { %v5576_v19 = vpop.xlane.xlu0 %5575 }
 0xdac   : > { %10436 = vrsqrt.f32 %v5609_v39  ;;  %v5596_v63 = vmul.f32 0.015625, %v5576_v19 }
 0xdad   : > { %v10431_v50 = vpop.eup %10430 }
 0xdae   : > { %v5612_v58 = vadd.f32 1e-05, %v5596_v63  ;;  %v5640_v35 = vmul.f32 %v10431_v50, %v14619_v2 }
 0xdaf   : > { %v5573_v61 = vpop.xlane.xlu1 %5572 }
 0xdb0   : > { %v5595_v30 = vmul.f32 0.015625, %v5573_v61  ;;  %10438 = vrsqrt.f32 %v5612_v58  ;;  %v5662_v17 = vmul.f32 %v14677_v47, %v5640_v35 }
 0xdb1   : > { %v10433_v41 = vpop.eup %10432 }
 0xdb2   : > { %v5611_v10 = vadd.f32 1e-05, %v5595_v30  ;;  %v5639_v25 = vmul.f32 %v10433_v41, %v14625_v46  ;;  %v5684_v46 = vadd.f32 %v14684_v44, %v5662_v17 }
 0xdb3   : > { %v5582_v38 = vpop.xlane.xlu0 %5581 }
 0xdb4   : > { %10440 = vrsqrt.f32 %v5611_v10  ;;  %v5598_v40 = vmul.f32 0.015625, %v5582_v38  ;;  %v5661_v52 = vmul.f32 %v14677_v47, %v5639_v25 }
 0xdb5   : > { %v10435_v16 = vpop.eup %10434 }
 0xdb6   : > { %v5614_v42 = vadd.f32 1e-05, %v5598_v40  ;;  %v5683_v49 = vadd.f32 %v14684_v44, %v5661_v52  ;;  %v5642_v34 = vmul.f32 %v10435_v16, %v14632_v15 }
 0xdb7   : > { %v5579_v3 = vpop.xlane.xlu1 %5578 }
 0xdb8   : > { %v5597_v8 = vmul.f32 0.015625, %v5579_v3  ;;  %8254 = vmatmul.mubr.msk.f32.gmra.mxu0 %vm1531_vm9, %v5683_v49  ;;  %10442 = vrsqrt.f32 %v5614_v42  ;;  %v5664_v57 = vmul.f32 %v14677_v47, %v5642_v34 }
 0xdb9   : > { %v10437_v2 = vpop.eup %10436  ;;  %5887 = vmatprep.mubr.f32.mxu0 %v16601_v20 }
 0xdba   : > { %v5613_v6 = vadd.f32 1e-05, %v5597_v8  ;;  %v5641_v51 = vmul.f32 %v10437_v2, %v14639_v54  ;;  %v5686_v54 = vadd.f32 %v14684_v44, %v5664_v57 }
 0xdbc   : > { %10444 = vrsqrt.f32 %v5613_v6  ;;  %8255 = vmatmul.mubr.msk.f32.gmra.mxu0 %vm1531_vm9, %v5684_v46  ;;  %v5663_v62 = vmul.f32 %v14677_v47, %v5641_v51 }
 0xdbd   : > { %5893 = vmatprep.mubr.f32.mxu0 %v16601_v20  ;;  %v10439_v18 = vpop.eup %10438 }
 0xdbe   : > { %v5685_v22 = vadd.f32 %v14684_v44, %v5663_v62  ;;  %v5644_v0 = vmul.f32 %v10439_v18, %v14646_v7 }
 0xdc0   : > { %8256 = vmatmul.mubr.msk.f32.gmra.mxu0 %vm1531_vm9, %v5685_v22  ;;  %v5666_v60 = vmul.f32 %v14677_v47, %v5644_v0 }
 0xdc1   : > { %v10441_v56 = vpop.eup %10440  ;;  %5899 = vmatprep.mubr.f32.mxu0 %v16601_v20 }
 0xdc2   : > { %v5643_v15 = vmul.f32 %v10441_v56, %v14653_v27  ;;  %v5688_v27 = vadd.f32 %v14684_v44, %v5666_v60  ;;  %v16616_v56 = vld [vmem:[#allocation14_spill] sm:$0xff] }
 0xdc4   : > { %8257 = vmatmul.mubr.msk.f32.gmra.mxu0 %vm1531_vm9, %v5686_v54  ;;  %v5665_v12 = vmul.f32 %v14677_v47, %v5643_v15 }
 0xdc5   : > { %5905 = vmatprep.mubr.f32.mxu0 %v16601_v20  ;;  %v10443_v11 = vpop.eup %10442 }
 0xdc6   : > { %v5687_v26 = vadd.f32 %v14684_v44, %v5665_v12  ;;  %v5646_v29 = vmul.f32 %v10443_v11, %v14660_v36  ;;  %v5707_v36 = vld [vmem:[%s16087_s12] sm:$0x3] }
 0xdc7   : > { %v14803_v54 = vrot.slane %v5707_v36, %v16616_v56 }
 0xdc8   : > { %8258 = vmatmul.mubr.msk.f32.gmra.mxu0 %vm1531_vm9, %v5687_v26  ;;  %v5668_v48 = vmul.f32 %v14677_v47, %v5646_v29 }
 0xdc9   : > { %v10445_v23 = vpop.eup %10444  ;;  %5911 = vmatprep.mubr.f32.mxu0 %v16601_v20 }
 0xdca   : > { %v5645_v7 = vmul.f32 %v10445_v23, %v14667_v5  ;;  %v5690_v9 = vadd.f32 %v14684_v44, %v5668_v48  ;;  %v16615_v5 = vld [vmem:[#allocation13_spill] sm:$0xff] }
 0xdcb   : > { %v14766_v43 = vrot.slane %v5707_v36, %v16615_v5 }
 0xdcc   : > { %8259 = vmatmul.mubr.msk.f32.gmra.mxu0 %vm1531_vm9, %v5688_v27  ;;  %v5667_v59 = vmul.f32 %v14677_v47, %v5645_v7 }
 0xdcd   : > { %5917 = vmatprep.mubr.f32.mxu0 %v16601_v20 }
 0xdce   : > { %v5689_v1 = vadd.f32 %v14684_v44, %v5667_v59 }
 0xdd0   : > { %8260 = vmatmul.mubr.msk.f32.gmra.mxu0 %vm1531_vm9, %v5689_v1 }
 0xdd1   : > { %5923 = vmatprep.mubr.f32.mxu0 %v16601_v20 }
 0xdd4   : > { %8261 = vmatmul.mubr.msk.f32.gmra.mxu0 %vm1531_vm9, %v5690_v9 }
 0xe37   : > { %v5835_v4 = vpop.f32.mrf.mxu0 }
 0xe38   : > { %v14769_v39 = vadd.f32 %v5835_v4, %v14766_v43 }
 0xe39   : > { %v14773_v47 = vpop.f32.mrf.mxu0 }
 0xe3a   : > { %9254 = vmatprep.mubr.msk.f32.mxu1 %vm1463_vm2, %v14769_v39 }
 0xe3b   : > { %v14775_v20 = vpop.f32.mrf.mxu0 }
 0xe3d   : > { %v14777_v44 = vpop.f32.mrf.mxu0 }
 0xe3f   : > { %v14779_v19 = vpop.f32.mrf.mxu0 }
 0xe41   : > { %v14781_v63 = vpop.f32.mrf.mxu0 }
 0xe43   : > { %v14783_v50 = vpop.f32.mrf.mxu0 }
 0xe44   : > { %v14880_v4 = vadd.f32 %v14783_v50, %v14766_v43  ;;  %v14901_v50 = vadd.f32 %v14775_v20, %v14766_v43 }
 0xe45   : > { %v14785_v58 = vpop.f32.mrf.mxu0 }
 0xe47   : > { %v14787_v61 = vpop.f32.mrf.mxu0 }
 0xe49   : > { %v14789_v30 = vpop.f32.mrf.mxu0 }
 0xe4a   : > { %v14925_v20 = vadd.f32 %v14789_v30, %v14803_v54  ;;  %v14955_v30 = vadd.f32 %v14777_v44, %v14803_v54 }
 0xe4b   : > { %v5865_v41 = vpop.f32.mrf.mxu0 }
 0xe4c   : > { %v14859_v48 = vadd.f32 %v5865_v41, %v14766_v43  ;;  %16625 = vst [vmem:[#allocation25_spill] sm:$0xff] %v14925_v20 }
 0xe4d   : > { %v14791_v35 = vpop.f32.mrf.mxu0 }
 0xe4f   : > { %v14793_v10 = vpop.f32.mrf.mxu0 }
 0xe51   : > { %v14795_v25 = vpop.f32.mrf.mxu0 }
 0xe53   : > { %v5877_v38 = vpop.f32.mrf.mxu0 }
 0xe54   : > { %v14839_v7 = vadd.f32 %v5877_v38, %v14766_v43 }
 0xe55   : > { %v5879_v40 = vpop.f32.mrf.mxu0 }
 0xe78   : > { %v5883_v52 = vpop.f32.mrf.mxu0 }
 0xe79   : > { %v14887_v38 = vadd.f32 %v5883_v52, %v14766_v43  ;;  %v14905_v52 = vadd.f32 %v14795_v25, %v14803_v54 }
 0xe7a   : > { %v5885_v17 = vpop.f32.mrf.mxu0 }
 0xe7b   : > { %v14883_v41 = vadd.f32 %v5885_v17, %v14803_v54  ;;  %16623 = vst [vmem:[#allocation23_spill] sm:$0xff] %v14905_v52  ;;  %v14915_v17 = vadd.f32 %v14791_v35, %v14803_v54  ;;  %v14930_v35 = vadd.f32 %v14787_v61, %v14766_v43  ;;  %v14945_v61 = vadd.f32 %v14781_v63, %v14803_v54 }
 0xe7c   : > { %v5889_v42 = vpop.f32.mrf.mxu0 }
 0xe7d   : > { %v14819_v60 = vadd.f32 %v5889_v42, %v14766_v43  ;;  %16621 = vst [vmem:[#allocation27_spill] sm:$0xff] %v14883_v41  ;;  %v14891_v42 = vadd.f32 %v5879_v40, %v14803_v54  ;;  %v14910_v40 = vadd.f32 %v14793_v10, %v14766_v43  ;;  %16624 = vst [vmem:[#allocation22_spill] sm:$0xff] %v14915_v17 }
 0xe7e   : > { %v5891_v49 = vpop.f32.mrf.mxu0  ;;  %v14935_v10 = vadd.f32 %v14785_v58, %v14803_v54  ;;  %v14950_v58 = vadd.f32 %v14779_v19, %v14766_v43 }
 0xe7f   : > { %v14870_v5 = vadd.f32 %v5891_v49, %v14803_v54  ;;  %16622 = vst [vmem:[#allocation26_spill] sm:$0xff] %v14891_v42 }
 0xe80   : > { %v5895_v16 = vpop.f32.mrf.mxu0  ;;  %16626 = vst [vmem:[#allocation20_spill] sm:$0xff] %v14935_v10 }
 0xe81   : > { %v14866_v36 = vadd.f32 %v5895_v16, %v14766_v43 }
 0xe82   : > { %v5897_v3 = vpop.f32.mrf.mxu0 }
 0xe83   : > { %v14862_v9 = vadd.f32 %v5897_v3, %v14803_v54 }
 0xe84   : > { %v5901_v8 = vpop.f32.mrf.mxu0 }
 0xe85   : > { %v14806_v15 = vadd.f32 %v5901_v8, %v14766_v43 }
 0xe86   : > { %v5903_v2 = vpop.f32.mrf.mxu0 }
 0xe87   : > { %v14850_v1 = vadd.f32 %v5903_v2, %v14803_v54 }
 0xe88   : > { %v5907_v46 = vpop.f32.mrf.mxu0 }
 0xe89   : > { %v14846_v59 = vadd.f32 %v5907_v46, %v14766_v43 }
 0xe8a   : > { %v5909_v6 = vpop.f32.mrf.mxu0 }
 0xe8b   : > { %v14842_v29 = vadd.f32 %v5909_v6, %v14803_v54 }
 0xe8c   : > { %v5913_v51 = vpop.f32.mrf.mxu0 }
 0xe8d   : > { %v14826_v23 = vadd.f32 %v5913_v51, %v14766_v43  ;;  %16620 = vst [vmem:[#allocation34_spill] sm:$0xff] %v14842_v29 }
 0xe8e   : > { %v5915_v34 = vpop.f32.mrf.mxu0 }
 0xe8f   : > { %v14830_v27 = vadd.f32 %v5915_v34, %v14803_v54 }
 0xe90   : > { %v5919_v62 = vpop.f32.mrf.mxu0 }
 0xe91   : > { %v14798_v22 = vadd.f32 %v5919_v62, %v14766_v43  ;;  %16619 = vst [vmem:[#allocation37_spill] sm:$0xff] %v14830_v27 }
 0xe92   : > { %v5921_v57 = vpop.f32.mrf.mxu0 }
 0xe93   : > { %5974 = vrot.lane.b32.xlu0 %v14798_v22, %s16384_s2  ;;  %v14822_v11 = vadd.f32 %v5921_v57, %v14803_v54 }
 0xe94   : > { %v5925_v18 = vpop.f32.mrf.mxu0 }
 0xe95   : > { %v14809_v0 = vadd.f32 %v5925_v18, %v14766_v43  ;;  %16618 = vst [vmem:[#allocation36_spill] sm:$0xff] %v14822_v11  ;;  %v14965_v43 = vadd.f32 %v14773_v47, %v14803_v54 }
 0xe96   : > { %v5927_v12 = vpop.f32.mrf.mxu0 }
 0xe97   : > { %v14812_v26 = vadd.f32 %v5927_v12, %v14803_v54  ;;  %5968 = vrot.lane.b32.xlu0 %v14806_v15, %s16384_s2  ;;  %5976 = vrot.lane.b32.xlu1 %v14809_v0, %s16384_s2 }
 0xe99   : > { %16617 = vst [vmem:[#allocation15_spill] sm:$0xff] %v14812_v26  ;;  %9278 = vmatprep.subr.mxu0 %v14812_v26 }
 0xe9a   : > { %9279 = vmatpush3.msra.mxu0 %v14812_v26 }
 0xe9b   : > { %5964 = vrot.lane.b32.xlu0 %v14819_v60, %s16384_s2  ;;  %9280 = vmatprep.subr.mxu0 %v14822_v11 }
 0xe9c   : > { %5972 = vrot.lane.b32.xlu1 %v14826_v23, %s16384_s2  ;;  %9281 = vmatpush3.msra.mxu0 %v14822_v11 }
 0xe9d   : > { %9282 = vmatprep.subr.mxu0 %v14830_v27 }
 0xe9e   : > { %9283 = vmatpush3.msra.mxu0 %v14830_v27 }
 0xe9f   : > { %5960 = vrot.lane.b32.xlu0 %v14839_v7, %s16384_s2  ;;  %9284 = vmatprep.subr.mxu0 %v14842_v29 }
 0xea0   : > { %5970 = vrot.lane.b32.xlu1 %v14846_v59, %s16384_s2  ;;  %9285 = vmatpush3.msra.mxu0 %v14842_v29 }
 0xea1   : > { %9286 = vmatprep.subr.mxu0 %v14850_v1 }
 0xea2   : > { %9287 = vmatpush3.msra.mxu0 %v14850_v1 }
 0xea3   : > { %5956 = vrot.lane.b32.xlu0 %v14859_v48, %s16384_s2  ;;  %9288 = vmatprep.subr.mxu0 %v14862_v9 }
 0xea4   : > { %5966 = vrot.lane.b32.xlu1 %v14866_v36, %s16384_s2  ;;  %9289 = vmatpush3.msra.mxu0 %v14862_v9 }
 0xea5   : > { %9290 = vmatprep.subr.mxu0 %v14870_v5 }
 0xea6   : > { %9291 = vmatpush3.msra.mxu0 %v14870_v5 }
 0xea7   : > { %5952 = vrot.lane.b32.xlu0 %v14880_v4, %s16384_s2  ;;  %9292 = vmatprep.subr.mxu0 %v14883_v41 }
 0xea8   : > { %5962 = vrot.lane.b32.xlu1 %v14887_v38, %s16384_s2  ;;  %9293 = vmatpush3.msra.mxu0 %v14883_v41 }
 0xea9   : > { %9294 = vmatprep.subr.mxu0 %v14891_v42 }
 0xeaa   : > { %9295 = vmatpush3.msra.mxu0 %v14891_v42 }
 0xeab   : > { %5948 = vrot.lane.b32.xlu0 %v14901_v50, %s16384_s2  ;;  %9296 = vmatprep.subr.mxu0 %v14905_v52 }
 0xeac   : > { %5958 = vrot.lane.b32.xlu1 %v14910_v40, %s16384_s2  ;;  %9297 = vmatpush3.msra.mxu0 %v14905_v52 }
 0xead   : > { %9298 = vmatprep.subr.mxu0 %v14915_v17 }
 0xeae   : > { %9299 = vmatpush3.msra.mxu0 %v14915_v17 }
 0xeaf   : > { %9300 = vmatprep.subr.mxu0 %v14925_v20  ;;  %6618 = vrot.lane.b32.xlu0 %v14809_v0, %s16385_s29 }
 0xeb0   : > { %5954 = vrot.lane.b32.xlu1 %v14930_v35, %s16384_s2  ;;  %9301 = vmatpush3.msra.mxu0 %v14925_v20 }
 0xeb1   : > { %9302 = vmatprep.subr.mxu0 %v14935_v10 }
 0xeb2   : > { %9303 = vmatpush3.msra.mxu0 %v14935_v10 }
 0xeb3   : > { %9304 = vmatprep.subr.mxu0 %v14945_v61  ;;  %6614 = vrot.lane.b32.xlu0 %v14826_v23, %s16385_s29 }
 0xeb4   : > { %5950 = vrot.lane.b32.xlu1 %v14950_v58, %s16384_s2  ;;  %9305 = vmatpush3.msra.mxu0 %v14945_v61 }
 0xeb5   : > { %9306 = vmatprep.subr.mxu0 %v14955_v30 }
 0xeb6   : > { %9307 = vmatpush3.msra.mxu0 %v14955_v30 }
 0xeb7   : > { %9308 = vmatprep.subr.mxu0 %v14965_v43  ;;  %6610 = vrot.lane.b32.xlu0 %v14806_v15, %s16385_s29 }
 0xeb8   : > { %5946 = vrot.lane.b32.xlu1 %v14769_v39, %s16384_s2  ;;  %9309 = vmatpush3.msra.mxu0 %v14965_v43 }
 0xebb   : > { %6606 = vrot.lane.b32.xlu0 %v14819_v60, %s16385_s29 }
 0xebc   : > { %6616 = vrot.lane.b32.xlu1 %v14798_v22, %s16385_s29 }
 0xebf   : > { %6602 = vrot.lane.b32.xlu0 %v14839_v7, %s16385_s29 }
 0xec0   : > { %6612 = vrot.lane.b32.xlu1 %v14846_v59, %s16385_s29 }
 0xec3   : > { %6598 = vrot.lane.b32.xlu0 %v14859_v48, %s16385_s29 }
 0xec4   : > { %6608 = vrot.lane.b32.xlu1 %v14866_v36, %s16385_s29 }
 0xec7   : > { %6594 = vrot.lane.b32.xlu0 %v14880_v4, %s16385_s29 }
 0xec8   : > { %6604 = vrot.lane.b32.xlu1 %v14887_v38, %s16385_s29 }
 0xecb   : > { %6590 = vrot.lane.b32.xlu0 %v14901_v50, %s16385_s29 }
 0xecc   : > { %6600 = vrot.lane.b32.xlu1 %v14910_v40, %s16385_s29 }
 0xecf   : > { %6556 = vrot.lane.b32.xlu0 %v14769_v39, %s16389_s24 }
 0xed0   : > { %6596 = vrot.lane.b32.xlu1 %v14930_v35, %s16385_s29 }
 0xed3   : > { %6560 = vrot.lane.b32.xlu0 %v14950_v58, %s16389_s24 }
 0xed4   : > { %6592 = vrot.lane.b32.xlu1 %v14950_v58, %s16385_s29 }
 0xed7   : > { %6564 = vrot.lane.b32.xlu0 %v14930_v35, %s16389_s24 }
 0xed8   : > { %6588 = vrot.lane.b32.xlu1 %v14769_v39, %s16385_s29 }
 0xedb   : > { %6568 = vrot.lane.b32.xlu0 %v14910_v40, %s16389_s24 }
 0xedc   : > { %6558 = vrot.lane.b32.xlu1 %v14901_v50, %s16389_s24 }
 0xedf   : > { %6572 = vrot.lane.b32.xlu0 %v14887_v38, %s16389_s24 }
 0xee0   : > { %6562 = vrot.lane.b32.xlu1 %v14880_v4, %s16389_s24 }
 0xee3   : > { %6576 = vrot.lane.b32.xlu0 %v14866_v36, %s16389_s24 }
 0xee4   : > { %6566 = vrot.lane.b32.xlu1 %v14859_v48, %s16389_s24 }
 0xee7   : > { %6580 = vrot.lane.b32.xlu0 %v14846_v59, %s16389_s24 }
 0xee8   : > { %6570 = vrot.lane.b32.xlu1 %v14839_v7, %s16389_s24 }
 0xeeb   : > { %6584 = vrot.lane.b32.xlu0 %v14798_v22, %s16389_s24 }
 0xeec   : > { %6574 = vrot.lane.b32.xlu1 %v14819_v60, %s16389_s24 }
 0xeef   : > { %7097 = vrot.lane.b32.xlu0 %v14822_v11, %s16389_s24  ;;  %v16645_v11 = vld [vmem:[#allocation46_spill] sm:$0xff] }
 0xef0   : > { %6578 = vrot.lane.b32.xlu1 %v14806_v15, %s16389_s24 }
 0xef3   : > { %7091 = vrot.lane.b32.xlu0 %v14850_v1, %s16389_s24 }
 0xef4   : > { %6582 = vrot.lane.b32.xlu1 %v14826_v23, %s16389_s24 }
 0xef7   : > { %7087 = vrot.lane.b32.xlu0 %v14870_v5, %s16389_s24 }
 0xef8   : > { %6586 = vrot.lane.b32.xlu1 %v14809_v0, %s16389_s24 }
 0xefb   : > { %7083 = vrot.lane.b32.xlu0 %v14891_v42, %s16389_s24 }
 0xefc   : > { %7095 = vrot.lane.b32.xlu1 %v14830_v27, %s16389_s24 }
 0xeff   : > { %7079 = vrot.lane.b32.xlu0 %v14915_v17, %s16389_s24 }
 0xf00   : > { %7093 = vrot.lane.b32.xlu1 %v14842_v29, %s16389_s24 }
 0xf03   : > { %7075 = vrot.lane.b32.xlu0 %v14935_v10, %s16389_s24  ;;  %v16649_v10 = vld [vmem:[#allocation55_spill] sm:$0xff] }
 0xf04   : > { %7089 = vrot.lane.b32.xlu1 %v14862_v9, %s16389_s24 }
 0xf05   : > { %v5975_v47 = vpop.permute.xlu0 %5974 }
 0xf08   : > { %7085 = vrot.lane.b32.xlu1 %v14883_v41, %s16389_s24 }
 0xf09   : > { %v5977_v39 = vpop.permute.xlu1 %5976  ;;  %v5969_v19 = vpop.permute.xlu0 %5968 }
 0xf0a   : > { %9222 = vmatprep.subr.msk.mxu1 %vm1463_vm2, %v5977_v39 }
 0xf0b   : > { %9223 = vmatpush3.xpose.msk.msra.mxu1 %vm1463_vm2, %v5977_v39 }
 0xf0c   : > { %7081 = vrot.lane.b32.xlu1 %v14905_v52, %s16389_s24  ;;  %9224 = vmatprep.subr.msk.mxu1 %vm1463_vm2, %v5975_v47 }
 0xf0d   : > { %v5965_v49 = vpop.permute.xlu0 %5964 }
 0xf0e   : > { %v5973_v44 = vpop.permute.xlu1 %5972 }
 0xf0f   : > { %9225 = vmatpush3.xpose.msk.msra.mxu1 %vm1463_vm2, %v5975_v47 }
 0xf10   : > { %7077 = vrot.lane.b32.xlu1 %v14925_v20, %s16389_s24  ;;  %9226 = vmatprep.subr.msk.mxu1 %vm1463_vm2, %v5973_v44 }
 0xf11   : > { %v5961_v3 = vpop.permute.xlu0 %5960 }
 0xf12   : > { %v5971_v63 = vpop.permute.xlu1 %5970 }
 0xf13   : > { %9227 = vmatpush3.xpose.msk.msra.mxu1 %vm1463_vm2, %v5973_v44 }
 0xf14   : > { %7073 = vrot.lane.b32.xlu1 %v14945_v61, %s16389_s24  ;;  %9228 = vmatprep.subr.msk.mxu1 %vm1463_vm2, %v5971_v63 }
 0xf15   : > { %v5957_v46 = vpop.permute.xlu0 %5956 }
 0xf16   : > { %v5967_v25 = vpop.permute.xlu1 %5966 }
 0xf17   : > { %9229 = vmatpush3.xpose.msk.msra.mxu1 %vm1463_vm2, %v5971_v63 }
 0xf18   : > { %7099 = vrot.lane.b32.xlu1 %v14812_v26, %s16389_s24  ;;  %9230 = vmatprep.subr.msk.mxu1 %vm1463_vm2, %v5969_v19 }
 0xf19   : > { %v5953_v51 = vpop.permute.xlu0 %5952 }
 0xf1a   : > { %v5963_v16 = vpop.permute.xlu1 %5962 }
 0xf1b   : > { %9231 = vmatpush3.xpose.msk.msra.mxu1 %vm1463_vm2, %v5969_v19 }
 0xf1c   : > { %9232 = vmatprep.subr.msk.mxu1 %vm1463_vm2, %v5967_v25 }
 0xf1d   : > { %v5949_v57 = vpop.permute.xlu0 %5948 }
 0xf1e   : > { %v5959_v8 = vpop.permute.xlu1 %5958 }
 0xf1f   : > { %9233 = vmatpush3.xpose.msk.msra.mxu1 %vm1463_vm2, %v5967_v25 }
 0xf20   : > { %9234 = vmatprep.subr.msk.mxu1 %vm1463_vm2, %v5965_v49 }
 0xf21   : > { %v6619_v56 = vpop.permute.xlu0 %6618 }
 0xf22   : > { %v5955_v2 = vpop.permute.xlu1 %5954 }
 0xf23   : > { %9235 = vmatpush3.xpose.msk.msra.mxu1 %vm1463_vm2, %v5965_v49 }
 0xf24   : > { %9236 = vmatprep.subr.msk.mxu1 %vm1463_vm2, %v5963_v16 }
 0xf25   : > { %v6615_v39 = vpop.permute.xlu0 %6614 }
 0xf26   : > { %v5951_v6 = vpop.permute.xlu1 %5950 }
 0xf27   : > { %9237 = vmatpush3.xpose.msk.msra.mxu1 %vm1463_vm2, %v5963_v16 }
 0xf28   : > { %9238 = vmatprep.subr.msk.mxu1 %vm1463_vm2, %v5961_v3 }
 0xf29   : > { %v6611_v44 = vpop.permute.xlu0 %6610 }
 0xf2a   : > { %v5947_v34 = vpop.permute.xlu1 %5946 }
 0xf2b   : > { %9239 = vmatpush3.xpose.msk.msra.mxu1 %vm1463_vm2, %v5961_v3 }
 0xf2c   : > { %9240 = vmatprep.subr.msk.mxu1 %vm1463_vm2, %v5959_v8 }
 0xf2d   : > { %v6607_v25 = vpop.permute.xlu0 %6606 }
 0xf2e   : > { %v6617_v62 = vpop.permute.xlu1 %6616 }
 0xf2f   : > { %9241 = vmatpush3.xpose.msk.msra.mxu1 %vm1463_vm2, %v5959_v8 }
 0xf30   : > { %9242 = vmatprep.subr.msk.mxu1 %vm1463_vm2, %v5957_v46 }
 0xf31   : > { %v6603_v16 = vpop.permute.xlu0 %6602 }
 0xf32   : > { %v6613_v18 = vpop.permute.xlu1 %6612 }
 0xf33   : > { %9243 = vmatpush3.xpose.msk.msra.mxu1 %vm1463_vm2, %v5957_v46 }
 0xf34   : > { %9244 = vmatprep.subr.msk.mxu1 %vm1463_vm2, %v5955_v2 }
 0xf36   : > { %v6609_v54 = vpop.permute.xlu1 %6608 }
 0xf37   : > { %9245 = vmatpush3.xpose.msk.msra.mxu1 %vm1463_vm2, %v5955_v2 }
 0xf38   : > { %9246 = vmatprep.subr.msk.mxu1 %vm1463_vm2, %v5953_v51 }
 0xf3a   : > { %v6605_v12 = vpop.permute.xlu1 %6604 }
 0xf3b   : > { %9247 = vmatpush3.xpose.msk.msra.mxu1 %vm1463_vm2, %v5953_v51 }
 0xf3c   : > { %9248 = vmatprep.subr.msk.mxu1 %vm1463_vm2, %v5951_v6 }
 0xf3e   : > { %v6601_v47 = vpop.permute.xlu1 %6600 }
 0xf3f   : > { %9249 = vmatpush3.xpose.msk.msra.mxu1 %vm1463_vm2, %v5951_v6 }
 0xf40   : > { %9250 = vmatprep.subr.msk.mxu1 %vm1463_vm2, %v5949_v57 }
 0xf42   : > { %v6597_v19 = vpop.permute.xlu1 %6596 }
 0xf43   : > { %9251 = vmatpush3.xpose.msk.msra.mxu1 %vm1463_vm2, %v5949_v57 }
 0xf44   : > { %9252 = vmatprep.subr.msk.mxu1 %vm1463_vm2, %v5947_v34 }
 0xf46   : > { %v15092_v63 = vpop.permute.xlu1 %6592 }
 0xf47   : > { %9253 = vmatpush3.xpose.msk.msra.mxu1 %vm1463_vm2, %v5947_v34 }
 0xf48   : > { %9334 = vmatprep.subr.msk.mxu1 %vm1463_vm2, %v6619_v56 }
 0xf4a   : > { %v15096_v49 = vpop.permute.xlu1 %6588  ;;  %9255 = vmatmul.mubr.msk.f32.vlgmr.msra.gmra.mxu1 %vm1463_vm2, %v14901_v50 }
 0xf4b   : > { %9257 = vmatprep.mubr.msk.f32.mxu1 %vm1463_vm2, %v14950_v58  ;;  %9335 = vmatpush3.xpose.msk.msra.mxu1 %vm1463_vm2, %v6619_v56  ;;  %v6599_v58 = vpop.permute.xlu0 %6598 }
 0xf4c   : > { %9336 = vmatprep.subr.msk.mxu1 %vm1463_vm2, %v6617_v62 }
 0xf4e   : > { %v15104_v3 = vpop.permute.xlu1 %6558  ;;  %9258 = vmatmul.mubr.msk.f32.gmra.mxu1 %vm1463_vm2, %v14880_v4 }
 0xf4f   : > { %9260 = vmatprep.mubr.msk.f32.mxu1 %vm1463_vm2, %v14930_v35  ;;  %9337 = vmatpush3.xpose.msk.msra.mxu1 %vm1463_vm2, %v6617_v62 }
 0xf50   : > { %9338 = vmatprep.subr.msk.mxu1 %vm1463_vm2, %v6615_v39 }
 0xf52   : > { %v15112_v50 = vpop.permute.xlu1 %6562  ;;  %9261 = vmatmul.mubr.msk.f32.gmra.mxu1 %vm1463_vm2, %v14859_v48  ;;  %v6595_v48 = vpop.permute.xlu0 %6594 }
 0xf53   : > { %9263 = vmatprep.mubr.msk.f32.mxu1 %vm1463_vm2, %v14910_v40  ;;  %9339 = vmatpush3.xpose.msk.msra.mxu1 %vm1463_vm2, %v6615_v39 }
 0xf54   : > { %9340 = vmatprep.subr.msk.mxu1 %vm1463_vm2, %v6613_v18 }
 0xf56   : > { %v6567_v4 = vpop.permute.xlu1 %6566  ;;  %9264 = vmatmul.mubr.msk.f32.gmra.mxu1 %vm1463_vm2, %v14839_v7 }
 0xf57   : > { %9266 = vmatprep.mubr.msk.f32.mxu1 %vm1463_vm2, %v14887_v38  ;;  %9341 = vmatpush3.xpose.msk.msra.mxu1 %vm1463_vm2, %v6613_v18  ;;  %v6591_v38 = vpop.permute.xlu0 %6590 }
 0xf58   : > { %9342 = vmatprep.subr.msk.mxu1 %vm1463_vm2, %v6611_v44 }
 0xf5a   : > { %v6571_v35 = vpop.permute.xlu1 %6570  ;;  %9267 = vmatmul.mubr.msk.f32.gmra.mxu1 %vm1463_vm2, %v14819_v60 }
 0xf5b   : > { %9269 = vmatprep.mubr.msk.f32.mxu1 %vm1463_vm2, %v14866_v36  ;;  %9343 = vmatpush3.xpose.msk.msra.mxu1 %vm1463_vm2, %v6611_v44  ;;  %v16635_v44 = vld [vmem:[#allocation31_spill] sm:$0xff] }
 0xf5c   : > { %9344 = vmatprep.subr.msk.mxu1 %vm1463_vm2, %v6609_v54 }
 0xf5e   : > { %v6575_v7 = vpop.permute.xlu1 %6574  ;;  %9270 = vmatmul.mubr.msk.f32.gmra.mxu1 %vm1463_vm2, %v14806_v15  ;;  %v6557_v15 = vpop.permute.xlu0 %6556 }
 0xf5f   : > { %9272 = vmatprep.mubr.msk.f32.mxu1 %vm1463_vm2, %v14846_v59  ;;  %9345 = vmatpush3.xpose.msk.msra.mxu1 %vm1463_vm2, %v6609_v54 }
 0xf60   : > { %9346 = vmatprep.subr.msk.mxu1 %vm1463_vm2, %v6607_v25 }
 0xf62   : > { %v6579_v60 = vpop.permute.xlu1 %6578  ;;  %9273 = vmatmul.mubr.msk.f32.gmra.mxu1 %vm1463_vm2, %v14826_v23  ;;  %v6561_v8 = vpop.permute.xlu0 %6560 }
 0xf63   : > { %9275 = vmatprep.mubr.msk.f32.mxu1 %vm1463_vm2, %v14798_v22  ;;  %9347 = vmatpush3.xpose.msk.msra.mxu1 %vm1463_vm2, %v6607_v25 }
 0xf64   : > { %9348 = vmatprep.subr.msk.mxu1 %vm1463_vm2, %v6605_v12 }
 0xf66   : > { %v6583_v36 = vpop.permute.xlu1 %6582  ;;  %9276 = vmatmul.mubr.msk.f32.gmra.mxu1 %vm1463_vm2, %v14809_v0  ;;  %v6565_v6 = vpop.permute.xlu0 %6564 }
 0xf67   : > { %9349 = vmatpush3.xpose.msk.msra.mxu1 %vm1463_vm2, %v6605_v12  ;;  %9366 = vmatprep.mubr.msk.f32.mxu1 %vm1463_vm2, %v6557_v15  ;;  %v16638_v15 = vld [vmem:[#allocation38_spill] sm:$0xff] }
 0xf68   : > { %9350 = vmatprep.subr.msk.mxu1 %vm1463_vm2, %v6603_v16 }
 0xf6a   : > { %v6587_v59 = vpop.permute.xlu1 %6586  ;;  %v6569_v34 = vpop.permute.xlu0 %6568 }
 0xf6b   : > { %9351 = vmatpush3.xpose.msk.msra.mxu1 %vm1463_vm2, %v6603_v16 }
 0xf6c   : > { %9352 = vmatprep.subr.msk.mxu1 %vm1463_vm2, %v6601_v47 }
 0xf6e   : > { %v15151_v22 = vpop.permute.xlu1 %7095  ;;  %v6573_v57 = vpop.permute.xlu0 %6572 }
 0xf6f   : > { %16627 = vst [vmem:[#allocation48_spill] sm:$0xff] %v15151_v22  ;;  %9353 = vmatpush3.xpose.msk.msra.mxu1 %vm1463_vm2, %v6601_v47 }
 0xf70   : > { %9354 = vmatprep.subr.msk.mxu1 %vm1463_vm2, %v6599_v58 }
 0xf72   : > { %v15155_v23 = vpop.permute.xlu1 %7093  ;;  %v6577_v18 = vpop.permute.xlu0 %6576 }
 0xf73   : > { %16628 = vst [vmem:[#allocation24_spill] sm:$0xff] %v15155_v23  ;;  %9355 = vmatpush3.xpose.msk.msra.mxu1 %vm1463_vm2, %v6599_v58 }
 0xf74   : > { %9356 = vmatprep.subr.msk.mxu1 %vm1463_vm2, %v6597_v19 }
 0xf76   : > { %v15159_v0 = vpop.permute.xlu1 %7089  ;;  %v6581_v56 = vpop.permute.xlu0 %6580 }
 0xf77   : > { %16629 = vst [vmem:[#allocation21_spill] sm:$0xff] %v15159_v0  ;;  %9357 = vmatpush3.xpose.msk.msra.mxu1 %vm1463_vm2, %v6597_v19 }
 0xf78   : > { %9358 = vmatprep.subr.msk.mxu1 %vm1463_vm2, %v6595_v48 }
 0xf7a   : > { %v15163_v40 = vpop.permute.xlu1 %7085  ;;  %v6585_v54 = vpop.permute.xlu0 %6584 }
 0xf7b   : > { %16630 = vst [vmem:[#allocation19_spill] sm:$0xff] %v15163_v40  ;;  %9359 = vmatpush3.xpose.msk.msra.mxu1 %vm1463_vm2, %v6595_v48 }
 0xf7c   : > { %9360 = vmatprep.subr.msk.mxu1 %vm1463_vm2, %v15092_v63 }
 0xf7e   : > { %v15168_v2 = vpop.permute.xlu1 %7081 }
 0xf7f   : > { %16631 = vst [vmem:[#allocation18_spill] sm:$0xff] %v15168_v2  ;;  %9361 = vmatpush3.xpose.msk.msra.mxu1 %vm1463_vm2, %v15092_v63 }
 0xf80   : > { %9362 = vmatprep.subr.msk.mxu1 %vm1463_vm2, %v6591_v38 }
 0xf82   : > { %v15173_v46 = vpop.permute.xlu1 %7077 }
 0xf83   : > { %16632 = vst [vmem:[#allocation52_spill] sm:$0xff] %v15173_v46  ;;  %9363 = vmatpush3.xpose.msk.msra.mxu1 %vm1463_vm2, %v6591_v38  ;;  %v16647_v46 = vld [vmem:[#allocation51_spill] sm:$0xff] }
 0xf84   : > { %9364 = vmatprep.subr.msk.mxu1 %vm1463_vm2, %v15096_v49 }
 0xf86   : > { %v15178_v51 = vpop.permute.xlu1 %7073 }
 0xf87   : > { %16633 = vst [vmem:[#allocation16_spill] sm:$0xff] %v15178_v51  ;;  %9365 = vmatpush3.xpose.msk.msra.mxu1 %vm1463_vm2, %v15096_v49  ;;  %v16636_v49 = vld [vmem:[#allocation44_spill] sm:$0xff] }
 0xf8a   : > { %v15182_v62 = vpop.permute.xlu1 %7099  ;;  %9367 = vmatmul.mubr.msk.f32.vlgmr.msra.gmra.mxu1 %vm1463_vm2, %v15104_v3 }
 0xf8b   : > { %16634 = vst [vmem:[#allocation17_spill] sm:$0xff] %v15182_v62  ;;  %9390 = vmatprep.subr.mxu0 %v15182_v62  ;;  %9369 = vmatprep.mubr.msk.f32.mxu1 %vm1463_vm2, %v6561_v8  ;;  %v16639_v8 = vld [vmem:[#allocation40_spill] sm:$0xff] }
 0xf8e   : > { %9370 = vmatmul.mubr.msk.f32.gmra.mxu1 %vm1463_vm2, %v15112_v50 }
 0xf8f   : > { %9372 = vmatprep.mubr.msk.f32.mxu1 %vm1463_vm2, %v6565_v6 }
 0xf92   : > { %9373 = vmatmul.mubr.msk.f32.gmra.mxu1 %vm1463_vm2, %v6567_v4  ;;  %v16637_v4 = vld [vmem:[#allocation32_spill] sm:$0xff] }
 0xf93   : > { %9375 = vmatprep.mubr.msk.f32.mxu1 %vm1463_vm2, %v6569_v34 }
 0xf96   : > { %9376 = vmatmul.mubr.msk.f32.gmra.mxu1 %vm1463_vm2, %v6571_v35 }
 0xf97   : > { %9378 = vmatprep.mubr.msk.f32.mxu1 %vm1463_vm2, %v6573_v57 }
 0xf9a   : > { %9379 = vmatmul.mubr.msk.f32.gmra.mxu1 %vm1463_vm2, %v6575_v7 }
 0xf9b   : > { %9381 = vmatprep.mubr.msk.f32.mxu1 %vm1463_vm2, %v6577_v18 }
 0xf9e   : > { %9382 = vmatmul.mubr.msk.f32.gmra.mxu1 %vm1463_vm2, %v6579_v60 }
 0xf9f   : > { %9384 = vmatprep.mubr.msk.f32.mxu1 %vm1463_vm2, %v6581_v56  ;;  %v16640_v56 = vld [vmem:[#allocation39_spill] sm:$0xff] }
 0xfa2   : > { %9385 = vmatmul.mubr.msk.f32.gmra.mxu1 %vm1463_vm2, %v6583_v36 }
 0xfa3   : > { %9387 = vmatprep.mubr.msk.f32.mxu1 %vm1463_vm2, %v6585_v54 }
 0xfa6   : > { %9388 = vmatmul.mubr.msk.f32.gmra.mxu1 %vm1463_vm2, %v6587_v59 }
0x100a   : > { %v9256_v12 = vpop.f32.mrf.mxu1 }
0x100b   : > { %v6188_v39 = vmul.f32 0.17677669, %v9256_v12 }
0x100c   : > { %v6108_v47 = vpop.f32.mrf.mxu1 }
0x100d   : > { %v15203_v19 = vadd.f32 %v6188_v39, %v16635_v44  ;;  %v6187_v63 = vmul.f32 0.17677669, %v6108_v47  ;;  %v16641_v39 = vld [vmem:[#allocation43_spill] sm:$0xff] }
0x100e   : > { %v9259_v25 = vpop.f32.mrf.mxu1 }
0x100f   : > { %v15206_v16 = vadd.f32 %v6187_v63, %v16636_v49  ;;  %v6190_v3 = vmul.f32 0.17677669, %v9259_v25  ;;  %6221 = vmax.xlane.f32.xlu1 %v15203_v19 }
0x1010   : > { %v6118_v50 = vpop.f32.mrf.mxu1 }
0x1011   : > { %6219 = vmax.xlane.f32.xlu0 %v15206_v16  ;;  %v15211_v48 = vadd.f32 %v6190_v3, %v16637_v4  ;;  %v6189_v35 = vmul.f32 0.17677669, %v6118_v50  ;;  %v16642_v50 = vld [vmem:[#allocation42_spill] sm:$0xff] }
0x1012   : > { %v9262_v58 = vpop.f32.mrf.mxu1 }
0x1013   : > { %v15215_v36 = vadd.f32 %v6189_v35, %v16638_v15  ;;  %v6192_v59 = vmul.f32 0.17677669, %v9262_v58 }
0x1014   : > { %v6128_v7 = vpop.f32.mrf.mxu1 }
0x1015   : > { %v6191_v38 = vmul.f32 0.17677669, %v6128_v7  ;;  %6225 = vmax.xlane.f32.xlu0 %v15211_v48  ;;  %v15223_v54 = vadd.f32 %v6192_v59, %v16640_v56  ;;  %v16643_v7 = vld [vmem:[#allocation35_spill] sm:$0xff] }
0x1016   : > { %v9265_v60 = vpop.f32.mrf.mxu1 }
0x1017   : > { %v15218_v6 = vadd.f32 %v6191_v38, %v16639_v8  ;;  %v6194_v12 = vmul.f32 0.17677669, %v9265_v60 }
0x1018   : > { %v6138_v34 = vpop.f32.mrf.mxu1 }
0x1019   : > { %v6193_v57 = vmul.f32 0.17677669, %v6138_v34  ;;  %6223 = vmax.xlane.f32.xlu0 %v15215_v36  ;;  %6227 = vmax.xlane.f32.xlu1 %v15218_v6  ;;  %v15231_v58 = vadd.f32 %v6194_v12, %v16642_v50 }
0x101a   : > { %v9268_v18 = vpop.f32.mrf.mxu1 }
0x101b   : > { %v15226_v47 = vadd.f32 %v6193_v57, %v16641_v39  ;;  %v6196_v35 = vmul.f32 0.17677669, %v9268_v18  ;;  %v16644_v57 = vld [vmem:[#allocation33_spill] sm:$0xff] }
0x101c   : > { %v6148_v63 = vpop.f32.mrf.mxu1 }
0x101d   : > { %v6195_v25 = vmul.f32 0.17677669, %v6148_v63  ;;  %6229 = vmax.xlane.f32.xlu0 %v15223_v54  ;;  %6231 = vmax.xlane.f32.xlu1 %v15226_v47  ;;  %v15239_v63 = vadd.f32 %v6196_v35, %v16644_v57 }
0x101e   : > { %v9271_v3 = vpop.f32.mrf.mxu1 }
0x101f   : > { %v15234_v38 = vadd.f32 %v6195_v25, %v16643_v7  ;;  %v6198_v26 = vmul.f32 0.17677669, %v9271_v3  ;;  %v16646_v25 = vld [vmem:[#allocation47_spill] sm:$0xff]  ;;  %v16648_v3 = vld [vmem:[#allocation50_spill] sm:$0xff] }
0x1020   : > { %v6158_v59 = vpop.f32.mrf.mxu1 }
0x1021   : > { %v6197_v34 = vmul.f32 0.17677669, %v6158_v59  ;;  %6233 = vmax.xlane.f32.xlu0 %v15231_v58  ;;  %6235 = vmax.xlane.f32.xlu1 %v15234_v38  ;;  %v15247_v59 = vadd.f32 %v6198_v26, %v16646_v25  ;;  %v16650_v26 = vld [vmem:[#allocation54_spill] sm:$0xff] }
0x1022   : > { %v9274_v60 = vpop.f32.mrf.mxu1 }
0x1023   : > { %v15242_v52 = vadd.f32 %v6197_v34, %v16645_v11  ;;  %v6200_v17 = vmul.f32 0.17677669, %v9274_v60 }
0x1024   : > { %v6168_v12 = vpop.f32.mrf.mxu1 }
0x1025   : > { %v6199_v51 = vmul.f32 0.17677669, %v6168_v12  ;;  %6237 = vmax.xlane.f32.xlu0 %v15239_v63  ;;  %6239 = vmax.xlane.f32.xlu1 %v15242_v52  ;;  %v15255_v34 = vadd.f32 %v6200_v17, %v16648_v3 }
0x1026   : > { %v9277_v18 = vpop.f32.mrf.mxu1 }
0x1027   : > { %v15250_v20 = vadd.f32 %v6199_v51, %v16647_v46  ;;  %v6202_v12 = vmul.f32 0.17677669, %v9277_v18 }
0x1028   : > { %v6178_v35 = vpop.f32.mrf.mxu1 }
0x1029   : > { %v6201_v2 = vmul.f32 0.17677669, %v6178_v35  ;;  %6241 = vmax.xlane.f32.xlu0 %v15247_v59  ;;  %6243 = vmax.xlane.f32.xlu1 %v15250_v20  ;;  %v15263_v51 = vadd.f32 %v6202_v12, %v16650_v26 }
0x102b   : > { %v15258_v40 = vadd.f32 %v6201_v2, %v16649_v10 }
0x102d   : > { %6245 = vmax.xlane.f32.xlu0 %v15255_v34  ;;  %6247 = vmax.xlane.f32.xlu1 %v15258_v40 }
0x1031   : > { %6249 = vmax.xlane.f32.xlu0 %v15263_v51 }
0x104a   : > { %v9368_v60 = vpop.f32.mrf.mxu1 }
0x104b   : > { %v6830_v35 = vmul.f32 0.17677669, %v9368_v60 }
0x104c   : > { %v6750_v41 = vpop.f32.mrf.mxu1 }
0x104d   : > { %v15267_v0 = vadd.f32 %v6830_v35, %v16635_v44  ;;  %v6829_v17 = vmul.f32 0.17677669, %v6750_v41 }
0x104e   : > { %v9371_v18 = vpop.f32.mrf.mxu1 }
0x104f   : > { %v15270_v2 = vadd.f32 %v6829_v17, %v16636_v49  ;;  %v6832_v23 = vmul.f32 0.17677669, %v9371_v18  ;;  %6863 = vmax.xlane.f32.xlu0 %v15267_v0 }
0x1050   : > { %v6760_v22 = vpop.f32.mrf.mxu1 }
0x1051   : > { %v15274_v12 = vadd.f32 %v6832_v23, %v16637_v4  ;;  %v6831_v62 = vmul.f32 0.17677669, %v6760_v22  ;;  %6861 = vmax.xlane.f32.xlu1 %v15270_v2 }
0x1052   : > { %v9374_v60 = vpop.f32.mrf.mxu1 }
0x1053   : > { %v15278_v42 = vadd.f32 %v6831_v62, %v16638_v15  ;;  %v6834_v44 = vmul.f32 0.17677669, %v9374_v60  ;;  %6867 = vmax.xlane.f32.xlu0 %v15274_v12 }
0x1054   : > { %v6770_v41 = vpop.f32.mrf.mxu1 }
0x1055   : > { %v15282_v49 = vadd.f32 %v6834_v44, %v16640_v56  ;;  %v6833_v35 = vmul.f32 0.17677669, %v6770_v41  ;;  %6865 = vmax.xlane.f32.xlu1 %v15278_v42 }
0x1056   : > { %v9377_v17 = vpop.f32.mrf.mxu1 }
0x1057   : > { %v15286_v23 = vadd.f32 %v6833_v35, %v16639_v8  ;;  %v6836_v22 = vmul.f32 0.17677669, %v9377_v17  ;;  %6871 = vmax.xlane.f32.xlu0 %v15282_v49 }
0x1058   : > { %v6780_v4 = vpop.f32.mrf.mxu1 }
0x1059   : > { %v15290_v62 = vadd.f32 %v6836_v22, %v16642_v50  ;;  %v6835_v15 = vmul.f32 0.17677669, %v6780_v4  ;;  %6869 = vmax.xlane.f32.xlu1 %v15286_v23 }
0x105a   : > { %v9380_v18 = vpop.f32.mrf.mxu1 }
0x105b   : > { %v15294_v56 = vadd.f32 %v6835_v15, %v16641_v39  ;;  %v6838_v60 = vmul.f32 0.17677669, %v9380_v18  ;;  %6875 = vmax.xlane.f32.xlu0 %v15290_v62 }
0x105c   : > { %v6790_v44 = vpop.f32.mrf.mxu1 }
0x105d   : > { %v15298_v8 = vadd.f32 %v6838_v60, %v16644_v57  ;;  %v6837_v41 = vmul.f32 0.17677669, %v6790_v44  ;;  %6873 = vmax.xlane.f32.xlu1 %v15294_v56 }
0x105e   : > { %v9383_v35 = vpop.f32.mrf.mxu1 }
0x105f   : > { %v15302_v50 = vadd.f32 %v6837_v41, %v16643_v7  ;;  %v6840_v17 = vmul.f32 0.17677669, %v9383_v35  ;;  %6879 = vmax.xlane.f32.xlu0 %v15298_v8 }
0x1060   : > { %v6800_v22 = vpop.f32.mrf.mxu1 }
0x1061   : > { %v15306_v39 = vadd.f32 %v6840_v17, %v16646_v25  ;;  %v6839_v4 = vmul.f32 0.17677669, %v6800_v22  ;;  %6877 = vmax.xlane.f32.xlu1 %v15302_v50 }
0x1062   : > { %v9386_v15 = vpop.f32.mrf.mxu1 }
0x1063   : > { %v15310_v57 = vadd.f32 %v6839_v4, %v16645_v11  ;;  %v6842_v18 = vmul.f32 0.17677669, %v9386_v15  ;;  %6883 = vmax.xlane.f32.xlu0 %v15306_v39  ;;  %v15330_v4 = vpop.permute.xlu0 %7097 }
0x1064   : > { %v6810_v60 = vpop.f32.mrf.mxu1  ;;  %16651 = vst [vmem:[#allocation65_spill] sm:$0xff] %v15330_v4 }
0x1065   : > { %v15314_v7 = vadd.f32 %v6842_v18, %v16648_v3  ;;  %v6841_v44 = vmul.f32 0.17677669, %v6810_v60  ;;  %6881 = vmax.xlane.f32.xlu1 %v15310_v57 }
0x1066   : > { %v9389_v41 = vpop.f32.mrf.mxu1 }
0x1067   : > { %v15318_v25 = vadd.f32 %v6841_v44, %v16647_v46  ;;  %v6844_v35 = vmul.f32 0.17677669, %v9389_v41  ;;  %6887 = vmax.xlane.f32.xlu0 %v15314_v7  ;;  %v15332_v46 = vpop.permute.xlu0 %7091 }
0x1068   : > { %v6820_v17 = vpop.f32.mrf.mxu1  ;;  %16652 = vst [vmem:[#allocation64_spill] sm:$0xff] %v15332_v46 }
0x1069   : > { %v15322_v11 = vadd.f32 %v6844_v35, %v16650_v26  ;;  %v6843_v22 = vmul.f32 0.17677669, %v6820_v17  ;;  %6885 = vmax.xlane.f32.xlu1 %v15318_v25 }
0x106b   : > { %v15326_v3 = vadd.f32 %v6843_v22, %v16649_v10  ;;  %6891 = vmax.xlane.f32.xlu0 %v15322_v11  ;;  %v15334_v15 = vpop.permute.xlu0 %7087 }
0x106c   : > { %16653 = vst [vmem:[#allocation62_spill] sm:$0xff] %v15334_v15 }
0x106d   : > { %6889 = vmax.xlane.f32.xlu1 %v15326_v3 }
0x106f   : > { %v15336_v18 = vpop.permute.xlu0 %7083 }
0x1070   : > { %16654 = vst [vmem:[#allocation63_spill] sm:$0xff] %v15336_v18 }
0x1073   : > { %v15338_v26 = vpop.permute.xlu0 %7079 }
0x1074   : > { %16655 = vst [vmem:[#allocation61_spill] sm:$0xff] %v15338_v26 }
0x1077   : > { %v15340_v60 = vpop.permute.xlu0 %7075 }
0x1078   : > { %16656 = vst [vmem:[#allocation60_spill] sm:$0xff] %v15340_v60 }
0x1098   : > { %v6222_v44 = vpop.xlane.xlu1 %6221 }
0x1099   : > { %v6252_v10 = vsub.f32 %v15203_v19, %v6222_v44 }
0x109a   : > { %v6220_v41 = vpop.xlane.xlu0 %6219 }
0x109b   : > { %v6269_v35 = vmul.f32 1.442695, %v6252_v10  ;;  %v6251_v17 = vsub.f32 %v15206_v16, %v6220_v41 }
0x109d   : > { %10446 = vpow2.f32 %v6269_v35  ;;  %v6267_v22 = vmul.f32 1.442695, %v6251_v17 }
0x109e   : > { %v6226_v4 = vpop.xlane.xlu0 %6225 }
0x109f   : > { %10448 = vpow2.f32 %v6267_v22  ;;  %v6254_v46 = vsub.f32 %v15211_v48, %v6226_v4 }
0x10a1   : > { %v6273_v15 = vmul.f32 1.442695, %v6254_v46 }
0x10a2   : > { %v6228_v27 = vpop.xlane.xlu1 %6227  ;;  %v6224_v18 = vpop.xlane.xlu0 %6223 }
0x10a3   : > { %10450 = vpow2.f32 %v6273_v15  ;;  %v6255_v26 = vsub.f32 %v15218_v6, %v6228_v27  ;;  %v6253_v60 = vsub.f32 %v15215_v36, %v6224_v18 }
0x10a5   : > { %v6271_v29 = vmul.f32 1.442695, %v6253_v60  ;;  %v6275_v19 = vmul.f32 1.442695, %v6255_v26 }
0x10a6   : > { %v6232_v44 = vpop.xlane.xlu1 %6231  ;;  %v6230_v10 = vpop.xlane.xlu0 %6229 }
0x10a7   : > { %v6257_v16 = vsub.f32 %v15226_v47, %v6232_v44  ;;  %v6256_v41 = vsub.f32 %v15223_v54, %v6230_v10  ;;  %10452 = vpow2.f32 %v6271_v29 }
0x10a8   : > { %10454 = vpow2.f32 %v6275_v19 }
0x10a9   : > { %v6277_v35 = vmul.f32 1.442695, %v6256_v41  ;;  %v6279_v48 = vmul.f32 1.442695, %v6257_v16 }
0x10aa   : > { %v10447_v17 = vpop.eup %10446  ;;  %v6236_v4 = vpop.xlane.xlu1 %6235 }
0x10ab   : > { %v6234_v46 = vpop.xlane.xlu0 %6233  ;;  %v6259_v15 = vsub.f32 %v15234_v38, %v6236_v4  ;;  %v15352_v36 = vmul.f32 %v10447_v17, %v12071_v31  ;;  %10456 = vpow2.f32 %v6277_v35 }
0x10ac   : > { %v6258_v27 = vsub.f32 %v15231_v58, %v6234_v46  ;;  %v10449_v6 = vpop.eup %10448  ;;  %10458 = vpow2.f32 %v6279_v48 }
0x10ad   : > { %6317 = vadd.xlane.f32.xlu0 %v15352_v36  ;;  %v15356_v29 = vmul.f32 %v10449_v6, %v12069_v37  ;;  %v6283_v54 = vmul.f32 1.442695, %v6259_v15 }
0x10ae   : > { %v6281_v18 = vmul.f32 1.442695, %v6258_v27  ;;  %v6240_v47 = vpop.xlane.xlu1 %6239 }
0x10af   : > { %v6238_v26 = vpop.xlane.xlu0 %6237  ;;  %v6261_v60 = vsub.f32 %v15242_v52, %v6240_v47  ;;  %6315 = vadd.xlane.f32.xlu1 %v15356_v29 }
0x10b0   : > { %v6260_v38 = vsub.f32 %v15239_v63, %v6238_v26  ;;  %v10451_v58 = vpop.eup %10450  ;;  %10460 = vpow2.f32 %v6281_v18 }
0x10b1   : > { %v15362_v19 = vmul.f32 %v10451_v58, %v12219_v28  ;;  %10462 = vpow2.f32 %v6283_v54  ;;  %v6287_v44 = vmul.f32 1.442695, %v6261_v60 }
0x10b2   : > { %v6285_v22 = vmul.f32 1.442695, %v6260_v38  ;;  %v6244_v10 = vpop.xlane.xlu1 %6243 }
0x10b3   : > { %v6242_v16 = vpop.xlane.xlu0 %6241  ;;  %v6263_v41 = vsub.f32 %v15250_v20, %v6244_v10  ;;  %6321 = vadd.xlane.f32.xlu0 %v15362_v19 }
0x10b4   : > { %v6262_v35 = vsub.f32 %v15247_v59, %v6242_v16  ;;  %10464 = vpow2.f32 %v6285_v22  ;;  %v10453_v52 = vpop.eup %10452  ;;  %v16657_v22 = vld [vmem:[#allocation41_spill] sm:$0xff] }
0x10b5   : > { %10466 = vpow2.f32 %v6287_v44  ;;  %v6291_v17 = vmul.f32 1.442695, %v6263_v41  ;;  %v15368_v46 = vmul.f32 %v10453_v52, %v12217_v13  ;;  %v10455_v15 = vpop.eup %10454 }
0x10b6   : > { %v6289_v63 = vmul.f32 1.442695, %v6262_v35  ;;  %v6248_v48 = vpop.xlane.xlu1 %6247  ;;  %v15374_v47 = vmul.f32 %v10455_v15, %v16575_v32 }
0x10b7   : > { %v6246_v4 = vpop.xlane.xlu0 %6245  ;;  %v6265_v27 = vsub.f32 %v15258_v40, %v6248_v48  ;;  %6319 = vadd.xlane.f32.xlu1 %v15368_v46 }
0x10b8   : > { %v6264_v6 = vsub.f32 %v15255_v34, %v6246_v4  ;;  %10468 = vpow2.f32 %v6289_v63  ;;  %v10457_v20 = vpop.eup %10456 }
0x10b9   : > { %10470 = vpow2.f32 %v6291_v17  ;;  %v6295_v18 = vmul.f32 1.442695, %v6265_v27  ;;  %v15377_v26 = vmul.f32 %v10457_v20, %v16576_v24  ;;  %v10459_v60 = vpop.eup %10458  ;;  %v16658_v17 = vld [vmem:[#allocation45_spill] sm:$0xff] }
0x10ba   : > { %v6293_v59 = vmul.f32 1.442695, %v6264_v6  ;;  %v15383_v58 = vmul.f32 %v10459_v60, %v12396_v21  ;;  %v16660_v6 = vld [vmem:[#allocation49_spill] sm:$0xff] }
0x10bb   : > { %v6250_v54 = vpop.xlane.xlu0 %6249  ;;  %6323 = vadd.xlane.f32.xlu1 %v15374_v47  ;;  %6325 = vadd.xlane.f32.xlu0 %v15377_v26 }
0x10bc   : > { %v6266_v38 = vsub.f32 %v15263_v51, %v6250_v54  ;;  %10472 = vpow2.f32 %v6293_v59  ;;  %v16662_v54 = vld [vmem:[#allocation53_spill] sm:$0xff] }
0x10bd   : > { %v10461_v40 = vpop.eup %10460  ;;  %10474 = vpow2.f32 %v6295_v18 }
0x10be   : > { %v6297_v34 = vmul.f32 1.442695, %v6266_v38  ;;  %v15386_v44 = vmul.f32 %v10461_v40, %v16657_v22  ;;  %v10463_v10 = vpop.eup %10462 }
0x10bf   : > { %6327 = vadd.xlane.f32.xlu1 %v15383_v58  ;;  %v15391_v16 = vmul.f32 %v10463_v10, %v12498_v45 }
0x10c0   : > { %10476 = vpow2.f32 %v6297_v34  ;;  %6329 = vadd.xlane.f32.xlu0 %v15386_v44 }
0x10c1   : > { %v10465_v51 = vpop.eup %10464 }
0x10c2   : > { %v15394_v41 = vmul.f32 %v10465_v51, %v12490_v14  ;;  %v10467_v35 = vpop.eup %10466 }
0x10c3   : > { %6331 = vadd.xlane.f32.xlu1 %v15391_v16  ;;  %v15399_v63 = vmul.f32 %v10467_v35, %v16578_v33 }
0x10c4   : > { %6333 = vadd.xlane.f32.xlu0 %v15394_v41 }
0x10c5   : > { %v10469_v52 = vpop.eup %10468 }
0x10c6   : > { %v15402_v48 = vmul.f32 %v10469_v52, %v16658_v17  ;;  %v10471_v4 = vpop.eup %10470 }
0x10c7   : > { %6335 = vadd.xlane.f32.xlu1 %v15399_v63  ;;  %v15407_v27 = vmul.f32 %v10471_v4, %v16593_v53 }
0x10c8   : > { %6337 = vadd.xlane.f32.xlu0 %v15402_v48 }
0x10c9   : > { %v10473_v15 = vpop.eup %10472  ;;  %16659 = vst [vmem:[#allocation58_spill] sm:$0xff] %v15407_v27 }
0x10ca   : > { %v15410_v20 = vmul.f32 %v10473_v15, %v16660_v6  ;;  %v10475_v59 = vpop.eup %10474 }
0x10cb   : > { %6339 = vadd.xlane.f32.xlu1 %v15407_v27  ;;  %v15418_v38 = vmul.f32 %v10475_v59, %v16598_v55 }
0x10cc   : > { %16661 = vst [vmem:[#allocation59_spill] sm:$0xff] %v15410_v20  ;;  %6341 = vadd.xlane.f32.xlu0 %v15410_v20 }
0x10cd   : > { %v10477_v18 = vpop.eup %10476  ;;  %16664 = vst [vmem:[#allocation56_spill] sm:$0xff] %v15418_v38 }
0x10ce   : > { %v15415_v60 = vmul.f32 %v10477_v18, %v16662_v54 }
0x10cf   : > { %6343 = vadd.xlane.f32.xlu1 %v15418_v38 }
0x10d0   : > { %16663 = vst [vmem:[#allocation57_spill] sm:$0xff] %v15415_v60  ;;  %6345 = vadd.xlane.f32.xlu0 %v15415_v60 }
0x10d8   : > { %v6864_v40 = vpop.xlane.xlu0 %6863 }
0x10d9   : > { %v6894_v34 = vsub.f32 %v15267_v0, %v6864_v40 }
0x10da   : > { %v6862_v10 = vpop.xlane.xlu1 %6861 }
0x10db   : > { %v6911_v51 = vmul.f32 1.442695, %v6894_v34  ;;  %v6893_v35 = vsub.f32 %v15270_v2, %v6862_v10 }
0x10dd   : > { %10478 = vpow2.f32 %v6911_v51  ;;  %v6909_v52 = vmul.f32 1.442695, %v6893_v35 }
0x10de   : > { %v6866_v4 = vpop.xlane.xlu1 %6865 }
0x10df   : > { %10480 = vpow2.f32 %v6909_v52  ;;  %v6895_v15 = vsub.f32 %v15278_v42, %v6866_v4 }
0x10e1   : > { %v6913_v18 = vmul.f32 1.442695, %v6895_v15 }
0x10e2   : > { %v6870_v59 = vpop.xlane.xlu1 %6869 }
0x10e3   : > { %10482 = vpow2.f32 %v6913_v18  ;;  %v6897_v38 = vsub.f32 %v15286_v23, %v6870_v59  ;;  %v6868_v59 = vpop.xlane.xlu0 %6867 }
0x10e5   : > { %v6917_v20 = vmul.f32 1.442695, %v6897_v38 }
0x10e6   : > { %v6874_v60 = vpop.xlane.xlu1 %6873 }
0x10e7   : > { %10484 = vpow2.f32 %v6917_v20  ;;  %v6899_v0 = vsub.f32 %v15294_v56, %v6874_v60 }
0x10e9   : > { %v6921_v40 = vmul.f32 1.442695, %v6899_v0 }
0x10ea   : > { %v10479_v34 = vpop.eup %10478  ;;  %v6878_v27 = vpop.xlane.xlu1 %6877 }
0x10eb   : > { %10486 = vpow2.f32 %v6921_v40  ;;  %v6901_v2 = vsub.f32 %v15302_v50, %v6878_v27  ;;  %v15429_v10 = vmul.f32 %v10479_v34, %v12071_v31  ;;  %v6872_v40 = vpop.xlane.xlu0 %6871 }
0x10ec   : > { %v10481_v42 = vpop.eup %10480 }
0x10ed   : > { %v6925_v51 = vmul.f32 1.442695, %v6901_v2  ;;  %6959 = vadd.xlane.f32.xlu0 %v15429_v10  ;;  %v15434_v20 = vmul.f32 %v10481_v42, %v12069_v37 }
0x10ee   : > { %v6882_v35 = vpop.xlane.xlu1 %6881 }
0x10ef   : > { %10488 = vpow2.f32 %v6925_v51  ;;  %v6903_v23 = vsub.f32 %v15310_v57, %v6882_v35  ;;  %v6876_v2 = vpop.xlane.xlu0 %6875 }
0x10f0   : > { %v10483_v56 = vpop.eup %10482 }
0x10f1   : > { %v6929_v60 = vmul.f32 1.442695, %v6903_v23  ;;  %6957 = vadd.xlane.f32.xlu0 %v15434_v20  ;;  %v15438_v50 = vmul.f32 %v10483_v56, %v12217_v13  ;;  %v6898_v23 = vsub.f32 %v15282_v49, %v6872_v40  ;;  %v6900_v56 = vsub.f32 %v15290_v62, %v6876_v2 }
0x10f2   : > { %v6886_v31 = vpop.xlane.xlu1 %6885 }
0x10f3   : > { %10490 = vpow2.f32 %v6929_v60  ;;  %v6905_v27 = vsub.f32 %v15318_v25, %v6886_v31  ;;  %6961 = vadd.xlane.f32.xlu1 %v15438_v50  ;;  %v6880_v51 = vpop.xlane.xlu0 %6879  ;;  %v6923_v31 = vmul.f32 1.442695, %v6900_v56 }
0x10f4   : > { %v10485_v38 = vpop.eup %10484 }
0x10f5   : > { %v6933_v52 = vmul.f32 1.442695, %v6905_v27  ;;  %v15443_v57 = vmul.f32 %v10485_v38, %v16575_v32  ;;  %v6902_v27 = vsub.f32 %v15298_v8, %v6880_v51 }
0x10f6   : > { %v6890_v37 = vpop.xlane.xlu1 %6889 }
0x10f7   : > { %10492 = vpow2.f32 %v6933_v52  ;;  %v6907_v4 = vsub.f32 %v15326_v3, %v6890_v37  ;;  %6965 = vadd.xlane.f32.xlu1 %v15443_v57  ;;  %v6884_v60 = vpop.xlane.xlu0 %6883 }
0x10f8   : > { %v10487_v15 = vpop.eup %10486  ;;  %v6904_v52 = vsub.f32 %v15306_v39, %v6884_v60 }
0x10f9   : > { %v6937_v13 = vmul.f32 1.442695, %v6907_v4  ;;  %v15448_v18 = vmul.f32 %v10487_v15, %v12396_v21 }
0x10fb   : > { %10494 = vpow2.f32 %v6937_v13  ;;  %6969 = vadd.xlane.f32.xlu1 %v15448_v18  ;;  %v6888_v38 = vpop.xlane.xlu0 %6887 }
0x10fc   : > { %v10489_v25 = vpop.eup %10488  ;;  %v6906_v49 = vsub.f32 %v15314_v7, %v6888_v38 }
0x10fd   : > { %v15452_v0 = vmul.f32 %v10489_v25, %v12498_v45 }
0x10fe   : > { %v6935_v4 = vmul.f32 1.442695, %v6906_v49 }
0x10ff   : > { %6973 = vadd.xlane.f32.xlu1 %v15452_v0  ;;  %v6892_v37 = vpop.xlane.xlu0 %6891 }
0x1100   : > { %v10491_v32 = vpop.eup %10490  ;;  %v6908_v8 = vsub.f32 %v15322_v11, %v6892_v37  ;;  %v16665_v11 = vld [vmem:[#allocation34_spill] sm:$0xff] }
0x1101   : > { %v15456_v3 = vmul.f32 %v10491_v32, %v16578_v33  ;;  %v6896_v33 = vsub.f32 %v15274_v12, %v6868_v59  ;;  %v6931_v12 = vmul.f32 1.442695, %v6904_v52 }
0x1102   : > { %v6939_v7 = vmul.f32 1.442695, %v6908_v8 }
0x1103   : > { %6977 = vadd.xlane.f32.xlu1 %v15456_v3  ;;  %v6915_v35 = vmul.f32 1.442695, %v6896_v33 }
0x1104   : > { %v10493_v34 = vpop.eup %10492 }
0x1105   : > { %v15460_v21 = vmul.f32 %v10493_v34, %v16593_v53  ;;  %10496 = vpow2.f32 %v6915_v35  ;;  %v6919_v53 = vmul.f32 1.442695, %v6898_v23 }
0x1107   : > { %6981 = vadd.xlane.f32.xlu1 %v15460_v21  ;;  %7071 = vrot.lane.b32.xlu0 %v14955_v30, %s16389_s24  ;;  %10498 = vpow2.f32 %v6919_v53 }
0x1108   : > { %v10495_v45 = vpop.eup %10494  ;;  %10500 = vpow2.f32 %v6923_v31 }
0x1109   : > { %v15466_v42 = vmul.f32 %v10495_v45, %v16598_v55  ;;  %v6927_v55 = vmul.f32 1.442695, %v6902_v27 }
0x110b   : > { %6985 = vadd.xlane.f32.xlu1 %v15466_v42  ;;  %10502 = vpow2.f32 %v6927_v55 }
0x110c   : > { %10504 = vpow2.f32 %v6931_v12 }
0x110d   : > { %10506 = vpow2.f32 %v6935_v4  ;;  %v16669_v4 = vld [vmem:[#allocation65_spill] sm:$0xff] }
0x110e   : > { %10508 = vpow2.f32 %v6939_v7 }
0x1112   : > { %v10497_v62 = vpop.eup %10496 }
0x1113   : > { %v15483_v39 = vmul.f32 %v10497_v62, %v12219_v28  ;;  %v16668_v62 = vld [vmem:[#allocation17_spill] sm:$0xff] }
0x1114   : > { %v10499_v15 = vpop.eup %10498 }
0x1115   : > { %v10501_v13 = vpop.eup %10500 }
0x1116   : > { %v15495_v28 = vmul.f32 %v10501_v13, %v16657_v22 }
0x111c   : > { %7069 = vrot.lane.b32.xlu1 %v14965_v43, %s16389_s24  ;;  %s8340_s24 = sshll.u32 %s10820_s18, 8  ;;  %s10694_s18 = smov [#allocation3]  }
0x111d   : > { %s16032_s19 = scalar_lea.hbm %s16694_s4, %s8340_s24  ;;  %s10618_s22 = sshll.u32 %s10694_s18, 4  ;;  %s10619_s22 = int_to_ptr.vmem [resolvable:$false] %s10618_s22 }
0x111e   : > { %s10620_s26 = scalar_lea.vmem %s10619_s22, 512 }
0x1120   : > { %7342 = vrot.lane.b32.xlu1 %v14965_v43, %s16384_s2  ;;  %v15489_v43 = vmul.f32 %v10499_v15, %v16576_v24 }
0x1124   : > { %7346 = vrot.lane.b32.xlu1 %v14945_v61, %s16384_s2  ;;  %v10503_v61 = vpop.eup %10502 }
0x1125   : > { %v10505_v24 = vpop.eup %10504 }
0x1126   : > { %6963 = vadd.xlane.f32.xlu0 %v15483_v39  ;;  %v10507_v22 = vpop.eup %10506 }
0x1127   : > { %v10509_v40 = vpop.eup %10508 }
0x1128   : > { %7360 = vrot.lane.b32.xlu1 %v14870_v5, %s16384_s2  ;;  %v15501_v5 = vmul.f32 %v10503_v61, %v12490_v14  ;;  %v15513_v14 = vmul.f32 %v10507_v22, %v16660_v6  ;;  %v15519_v2 = vmul.f32 %v10509_v40, %v16662_v54 }
0x112a   : > { %6967 = vadd.xlane.f32.xlu0 %v15489_v43 }
0x112c   : > { %7362 = vrot.lane.b32.xlu1 %v14862_v9, %s16384_s2  ;;  %v15507_v9 = vmul.f32 %v10505_v24, %v16658_v17  ;;  %v16667_v17 = vld [vmem:[#allocation26_spill] sm:$0xff]  ;;  %v16671_v24 = vld [vmem:[#allocation24_spill] sm:$0xff] }
0x112e   : > { %6971 = vadd.xlane.f32.xlu0 %v15495_v28 }
0x1130   : > { %7364 = vrot.lane.b32.xlu1 %v14850_v1, %s16384_s2  ;;  %v16666_v1 = vld [vmem:[#allocation37_spill] sm:$0xff] }
0x1132   : > { %6975 = vadd.xlane.f32.xlu0 %v15501_v5 }
0x1134   : > { %7366 = vrot.lane.b32.xlu1 %v16665_v11, %s16384_s2 }
0x1136   : > { %6979 = vadd.xlane.f32.xlu0 %v15507_v9  ;;  %v6318_v25 = vpop.xlane.xlu0 %6317 }
0x1137   : > { %vm6348_vm5 = vcmp.gt.f32.partialorder %v6318_v25, 0.0 }
0x1138   : > { %v6364_v59 = vsel %vm6348_vm5, %v6318_v25, 1.0  ;;  %v6316_v32 = vpop.xlane.xlu1 %6315  ;;  %7368 = vrot.lane.b32.xlu1 %v16666_v1, %s16384_s2 }
0x1139   : > { %vm6347_vm1 = vcmp.gt.f32.partialorder %v6316_v32, 0.0  ;;  %10510 = vrcp.f32 %v6364_v59 }
0x113a   : > { %v6363_v34 = vsel %vm6347_vm1, %v6316_v32, 1.0  ;;  %6983 = vadd.xlane.f32.xlu0 %v15513_v14  ;;  %v16672_v32 = vld [vmem:[#allocation64_spill] sm:$0xff] }
0x113b   : > { %10512 = vrcp.f32 %v6363_v34 }
0x113c   : > { %7356 = vrot.lane.b32.xlu1 %v16667_v17, %s16384_s2  ;;  %v6322_v45 = vpop.xlane.xlu0 %6321 }
0x113d   : > { %vm6350_vm8 = vcmp.gt.f32.partialorder %v6322_v45, 0.0 }
0x113e   : > { %6987 = vadd.xlane.f32.xlu0 %v15519_v2  ;;  %v6366_v33 = vsel %vm6350_vm8, %v6322_v45, 1.0 }
0x113f   : > { %10514 = vrcp.f32 %v6366_v33  ;;  %v16673_v33 = vld [vmem:[#allocation21_spill] sm:$0xff] }
0x1140   : > { %v6320_v6 = vpop.xlane.xlu1 %6319 }
0x1141   : > { %vm6349_vm7 = vcmp.gt.f32.partialorder %v6320_v6, 0.0 }
0x1142   : > { %v6365_v51 = vsel %vm6349_vm7, %v6320_v6, 1.0 }
0x1143   : > { %10516 = vrcp.f32 %v6365_v51  ;;  %v16674_v51 = vld [vmem:[#allocation62_spill] sm:$0xff] }
0x1144   : > { %v6324_v35 = vpop.xlane.xlu1 %6323  ;;  %v6326_v23 = vpop.xlane.xlu0 %6325 }
0x1145   : > { %vm6351_vm10 = vcmp.gt.f32.partialorder %v6324_v35, 0.0  ;;  %vm6352_vm11 = vcmp.gt.f32.partialorder %v6326_v23, 0.0 }
0x1146   : > { %v10511_v53 = vpop.eup %10510  ;;  %v6367_v56 = vsel %vm6351_vm10, %v6324_v35, 1.0  ;;  %v6368_v60 = vsel %vm6352_vm11, %v6326_v23, 1.0  ;;  %v16675_v23 = vld [vmem:[#allocation27_spill] sm:$0xff] }
0x1147   : > { %10518 = vrcp.f32 %v6367_v56  ;;  %v6396_v55 = vmul.f32 %v10511_v53, %v15352_v36  ;;  %v16670_v36 = vld [vmem:[#allocation48_spill] sm:$0xff] }
0x1148   : > { %v10513_v31 = vpop.eup %10512  ;;  %10520 = vrcp.f32 %v6368_v60  ;;  %v6328_v54 = vpop.xlane.xlu1 %6327 }
0x1149   : > { %v6330_v27 = vpop.xlane.xlu0 %6329  ;;  %v6395_v38 = vmul.f32 %v10513_v31, %v15356_v29  ;;  %vm6353_vm12 = vcmp.gt.f32.partialorder %v6328_v54, 0.0 }
0x114a   : > { %vm6354_vm13 = vcmp.gt.f32.partialorder %v6330_v27, 0.0  ;;  %v6369_v52 = vsel %vm6353_vm12, %v6328_v54, 1.0  ;;  %v16676_v54 = vld [vmem:[#allocation19_spill] sm:$0xff] }
0x114b   : > { %v6370_v12 = vsel %vm6354_vm13, %v6330_v27, 1.0  ;;  %9310 = vmatprep.mubr.f32.mxu0 %v6395_v38  ;;  %10522 = vrcp.f32 %v6369_v52  ;;  %v16677_v38 = vld [vmem:[#allocation20_spill] sm:$0xff]  ;;  %v16678_v52 = vld [vmem:[#allocation63_spill] sm:$0xff] }
0x114c   : > { %9311 = vmatmul.mubr.f32.vlgmr.msra.gmra.mxu0 %v6396_v55  ;;  %10524 = vrcp.f32 %v6370_v12  ;;  %v6332_v49 = vpop.xlane.xlu1 %6331  ;;  %v10515_v15 = vpop.eup %10514  ;;  %v16679_v12 = vld [vmem:[#allocation18_spill] sm:$0xff] }
0x114d   : > { %9391 = vmatpush3.msra.mxu0 %v16668_v62  ;;  %v6334_v37 = vpop.xlane.xlu0 %6333  ;;  %vm6355_vm14 = vcmp.gt.f32.partialorder %v6332_v49, 0.0  ;;  %v6398_v59 = vmul.f32 %v10515_v15, %v15362_v19  ;;  %v16680_v62 = vld [vmem:[#allocation25_spill] sm:$0xff]  ;;  %v16683_v15 = vld [vmem:[#allocation22_spill] sm:$0xff] }
0x114e   : > { %vm6356_vm15 = vcmp.gt.f32.partialorder %v6334_v37, 0.0  ;;  %9392 = vmatprep.subr.mxu0 %v16669_v4  ;;  %v6371_v8 = vsel %vm6355_vm14, %v6332_v49, 1.0 }
0x114f   : > { %v6372_v29 = vsel %vm6356_vm15, %v6334_v37, 1.0  ;;  %9393 = vmatpush3.msra.mxu0 %v16669_v4  ;;  %10526 = vrcp.f32 %v6371_v8  ;;  %v16681_v4 = vld [vmem:[#allocation61_spill] sm:$0xff] }
0x1150   : > { %9394 = vmatprep.subr.mxu0 %v16670_v36  ;;  %v10517_v7 = vpop.eup %10516  ;;  %10528 = vrcp.f32 %v6372_v29  ;;  %v6336_v13 = vpop.xlane.xlu1 %6335 }
0x1151   : > { %9395 = vmatpush3.msra.mxu0 %v16670_v36  ;;  %v6338_v61 = vpop.xlane.xlu0 %6337  ;;  %vm6357_vm0 = vcmp.gt.f32.partialorder %v6336_v13, 0.0  ;;  %v6397_v11 = vmul.f32 %v10517_v7, %v15368_v46  ;;  %v16684_v7 = vld [vmem:[#allocation60_spill] sm:$0xff] }
0x1152   : > { %vm6358_vm6 = vcmp.gt.f32.partialorder %v6338_v61, 0.0  ;;  %9396 = vmatprep.subr.mxu0 %v16671_v24  ;;  %v6373_v22 = vsel %vm6357_vm0, %v6336_v13, 1.0  ;;  %v16685_v13 = vld [vmem:[#allocation58_spill] sm:$0xff] }
0x1153   : > { %v6374_v25 = vsel %vm6358_vm6, %v6338_v61, 1.0  ;;  %9397 = vmatpush3.msra.mxu0 %v16671_v24  ;;  %10530 = vrcp.f32 %v6373_v22  ;;  %9313 = vmatprep.mubr.f32.mxu0 %v6397_v11  ;;  %v16688_v22 = vld [vmem:[#allocation23_spill] sm:$0xff] }
0x1154   : > { %9398 = vmatprep.subr.mxu0 %v16672_v32  ;;  %v10519_v1 = vpop.eup %10518  ;;  %10532 = vrcp.f32 %v6374_v25  ;;  %v6340_v40 = vpop.xlane.xlu1 %6339  ;;  %7344 = vrot.lane.b32.xlu0 %v14955_v30, %s16384_s2 }
0x1155   : > { %9314 = vmatmul.mubr.f32.gmra.mxu0 %v6398_v59  ;;  %v6342_v34 = vpop.xlane.xlu0 %6341  ;;  %v10521_v17 = vpop.eup %10520  ;;  %vm6359_vm3 = vcmp.gt.f32.partialorder %v6340_v40, 0.0  ;;  %v6399_v46 = vmul.f32 %v10519_v1, %v15374_v47  ;;  %v16689_v59 = vld [vmem:[#allocation56_spill] sm:$0xff]  ;;  %v16690_v1 = vld [vmem:[#allocation57_spill] sm:$0xff] }
0x1156   : > { %9399 = vmatpush3.msra.mxu0 %v16672_v32  ;;  %vm6360_vm4 = vcmp.gt.f32.partialorder %v6342_v34, 0.0  ;;  %v6375_v19 = vsel %vm6359_vm3, %v6340_v40, 1.0  ;;  %v6400_v6 = vmul.f32 %v10521_v17, %v15377_v26 }
0x1157   : > { %v6376_v45 = vsel %vm6360_vm4, %v6342_v34, 1.0  ;;  %9400 = vmatprep.subr.mxu0 %v16673_v33  ;;  %10534 = vrcp.f32 %v6375_v19  ;;  %9316 = vmatprep.mubr.f32.mxu0 %v6399_v46 }
0x1158   : > { %9401 = vmatpush3.msra.mxu0 %v16673_v33  ;;  %v10523_v30 = vpop.eup %10522  ;;  %10536 = vrcp.f32 %v6376_v45  ;;  %v6344_v35 = vpop.xlane.xlu1 %6343  ;;  %7358 = vrot.lane.b32.xlu0 %v16675_v23, %s16384_s2 }
0x1159   : > { %9402 = vmatprep.subr.mxu0 %v16674_v51  ;;  %v6346_v53 = vpop.xlane.xlu0 %6345  ;;  %v10525_v47 = vpop.eup %10524  ;;  %vm6361_vm5 = vcmp.gt.f32.partialorder %v6344_v35, 0.0  ;;  %9317 = vmatmul.mubr.f32.gmra.mxu0 %v6400_v6  ;;  %v6401_v56 = vmul.f32 %v10523_v30, %v15383_v58 }
0x115a   : > { %vm6362_vm1 = vcmp.gt.f32.partialorder %v6346_v53, 0.0  ;;  %v6377_v26 = vsel %vm6361_vm5, %v6344_v35, 1.0  ;;  %9403 = vmatpush3.msra.mxu0 %v16674_v51  ;;  %v6402_v31 = vmul.f32 %v10525_v47, %v15386_v44 }
0x115b   : > { %v6378_v60 = vsel %vm6362_vm1, %v6346_v53, 1.0  ;;  %10538 = vrcp.f32 %v6377_v26  ;;  %9404 = vmatprep.subr.mxu0 %v16676_v54  ;;  %9319 = vmatprep.mubr.f32.mxu0 %v6401_v56 }
0x115c   : > { %v10527_v27 = vpop.eup %10526  ;;  %10540 = vrcp.f32 %v6378_v60  ;;  %9405 = vmatpush3.msra.mxu0 %v16676_v54  ;;  %7348 = vrot.lane.b32.xlu0 %v16677_v38, %s16384_s2 }
0x115d   : > { %v10529_v55 = vpop.eup %10528  ;;  %9406 = vmatprep.subr.mxu0 %v16678_v52  ;;  %9320 = vmatmul.mubr.f32.gmra.mxu0 %v6402_v31  ;;  %v6403_v58 = vmul.f32 %v10527_v27, %v15391_v16 }
0x115e   : > { %9407 = vmatpush3.msra.mxu0 %v16678_v52  ;;  %v6404_v44 = vmul.f32 %v10529_v55, %v15394_v41  ;;  %v16682_v41 = vld [vmem:[#allocation52_spill] sm:$0xff] }
0x115f   : > { %9408 = vmatprep.subr.mxu0 %v16679_v12  ;;  %9322 = vmatprep.mubr.f32.mxu0 %v6403_v58 }
0x1160   : > { %v10531_v49 = vpop.eup %10530  ;;  %9409 = vmatpush3.msra.mxu0 %v16679_v12  ;;  %7350 = vrot.lane.b32.xlu0 %v16680_v62, %s16384_s2 }
0x1161   : > { %v10533_v37 = vpop.eup %10532  ;;  %9410 = vmatprep.subr.mxu0 %v16681_v4  ;;  %9323 = vmatmul.mubr.f32.gmra.mxu0 %v6404_v44  ;;  %v6405_v8 = vmul.f32 %v10531_v49, %v15399_v63  ;;  %v16686_v63 = vld [vmem:[#allocation59_spill] sm:$0xff] }
0x1162   : > { %9411 = vmatpush3.msra.mxu0 %v16681_v4  ;;  %v6406_v16 = vmul.f32 %v10533_v37, %v15402_v48  ;;  %v16687_v48 = vld [vmem:[#allocation16_spill] sm:$0xff] }
0x1163   : > { %9412 = vmatprep.subr.mxu0 %v16682_v41  ;;  %9325 = vmatprep.mubr.f32.mxu0 %v6405_v8 }
0x1164   : > { %v10535_v29 = vpop.eup %10534  ;;  %9413 = vmatpush3.msra.mxu0 %v16682_v41  ;;  %7352 = vrot.lane.b32.xlu0 %v16683_v15, %s16384_s2 }
0x1165   : > { %v10537_v36 = vpop.eup %10536  ;;  %9414 = vmatprep.subr.mxu0 %v16684_v7  ;;  %9326 = vmatmul.mubr.f32.gmra.mxu0 %v6406_v16  ;;  %v6407_v61 = vmul.f32 %v10535_v29, %v16685_v13 }
0x1166   : > { %9415 = vmatpush3.msra.mxu0 %v16684_v7  ;;  %v6408_v24 = vmul.f32 %v10537_v36, %v16686_v63 }
0x1167   : > { %9416 = vmatprep.subr.mxu0 %v16687_v48  ;;  %9328 = vmatprep.mubr.f32.mxu0 %v6407_v61 }
0x1168   : > { %v10539_v11 = vpop.eup %10538  ;;  %9417 = vmatpush3.msra.mxu0 %v16687_v48  ;;  %7354 = vrot.lane.b32.xlu0 %v16688_v22, %s16384_s2 }
0x1169   : > { %v10541_v25 = vpop.eup %10540  ;;  %9329 = vmatmul.mubr.f32.gmra.mxu0 %v6408_v24  ;;  %v6409_v32 = vmul.f32 %v10539_v11, %v16689_v59 }
0x116a   : > { %v6410_v40 = vmul.f32 %v10541_v25, %v16690_v1 }
0x116b   : > { %9331 = vmatprep.mubr.f32.mxu0 %v6409_v32 }
0x116d   : > { %9332 = vmatmul.mubr.f32.gmra.mxu0 %v6410_v40 }
0x1176   : > { %v6960_v34 = vpop.xlane.xlu0 %6959 }
0x1177   : > { %vm6990_vm7 = vcmp.gt.f32.partialorder %v6960_v34, 0.0 }
0x1178   : > { %v7006_v30 = vsel %vm6990_vm7, %v6960_v34, 1.0 }
0x117a   : > { %v6958_v17 = vpop.xlane.xlu0 %6957 }
0x117b   : > { %vm6989_vm8 = vcmp.gt.f32.partialorder %v6958_v17, 0.0 }
0x117c   : > { %v7005_v46 = vsel %vm6989_vm8, %v6958_v17, 1.0  ;;  %v6962_v19 = vpop.xlane.xlu1 %6961 }
0x117d   : > { %10542 = vrcp.f32 %v7005_v46  ;;  %vm6991_vm10 = vcmp.gt.f32.partialorder %v6962_v19, 0.0 }
0x117e   : > { %v7072_v45 = vpop.permute.xlu0 %7071  ;;  %v7007_v51 = vsel %vm6991_vm10, %v6962_v19, 1.0  ;;  %10544 = vrcp.f32 %v7006_v30  ;;  %vm7833_vm10 = vcmask 1041409  }
0x117f   : > { %9418 = vmatprep.subr.mxu0 %v7072_v45  ;;  %10546 = vrcp.f32 %v7007_v51 }
0x1180   : > { %v6966_v33 = vpop.xlane.xlu1 %6965  ;;  %9419 = vmatpush3.msra.mxu0 %v7072_v45 }
0x1181   : > { %vm6993_vm11 = vcmp.gt.f32.partialorder %v6966_v33, 0.0 }
0x1182   : > { %v7009_v55 = vsel %vm6993_vm11, %v6966_v33, 1.0  ;;  %vm7835_vm11 = vcmask 1042434  }
0x1183   : > { %10548 = vrcp.f32 %v7009_v55 }
0x1184   : > { %v6970_v6 = vpop.xlane.xlu1 %6969 }
0x1185   : > { %vm6995_vm12 = vcmp.gt.f32.partialorder %v6970_v6, 0.0 }
0x1186   : > { %v7011_v58 = vsel %vm6995_vm12, %v6970_v6, 1.0  ;;  %vm7837_vm12 = vcmask 1043459  }
0x1188   : > { %v6974_v35 = vpop.xlane.xlu1 %6973 }
0x1189   : > { %vm6997_vm14 = vcmp.gt.f32.partialorder %v6974_v35, 0.0 }
0x118a   : > { %v10543_v23 = vpop.eup %10542  ;;  %v7013_v12 = vsel %vm6997_vm14, %v6974_v35, 1.0  ;;  %vm7841_vm14 = vcmask 1045509  }
0x118b   : > { %v7037_v53 = vmul.f32 %v10543_v23, %v15434_v20  ;;  %v10545_v60 = vpop.eup %10544 }
0x118c   : > { %v6978_v47 = vpop.xlane.xlu1 %6977  ;;  %v10547_v31 = vpop.eup %10546  ;;  %v7038_v27 = vmul.f32 %v10545_v60, %v15429_v10 }
0x118d   : > { %9422 = vmatprep.mubr.f32.mxu0 %v7037_v53  ;;  %v7039_v38 = vmul.f32 %v10547_v31, %v15438_v50  ;;  %vm6999_vm0 = vcmp.gt.f32.partialorder %v6978_v47, 0.0 }
0x118e   : > { %v7015_v62 = vsel %vm6999_vm0, %v6978_v47, 1.0  ;;  %vm7845_vm0 = vcmask 1047559  }
0x1190   : > { %v6982_v56 = vpop.xlane.xlu1 %6981  ;;  %v10549_v8 = vpop.eup %10548 }
0x1191   : > { %vm7001_vm3 = vcmp.gt.f32.partialorder %v6982_v56, 0.0  ;;  %v7041_v7 = vmul.f32 %v10549_v8, %v15443_v57 }
0x1192   : > { %v7017_v16 = vsel %vm7001_vm3, %v6982_v56, 1.0 }
0x1194   : > { %v6986_v26 = vpop.xlane.xlu1 %6985 }
0x1195   : > { %vm7003_vm5 = vcmp.gt.f32.partialorder %v6986_v26, 0.0 }
0x1196   : > { %v7019_v61 = vsel %vm7003_vm5, %v6986_v26, 1.0 }
0x1198   : > { %v7070_v54 = vpop.permute.xlu1 %7069 }
0x1199   : > { %9420 = vmatprep.subr.mxu0 %v7070_v54 }
0x119a   : > { %9421 = vmatpush3.msra.mxu0 %v7070_v54 }
0x119b   : > { %9423 = vmatmul.mubr.f32.vlgmr.msra.gmra.mxu0 %v7038_v27 }
0x119c   : > { %9425 = vmatprep.mubr.f32.mxu0 %v7039_v38 }
0x11af   : > { %v6964_v52 = vpop.xlane.xlu0 %6963 }
0x11b0   : > { %vm6992_vm13 = vcmp.gt.f32.partialorder %v6964_v52, 0.0 }
0x11b1   : > { %v7008_v20 = vsel %vm6992_vm13, %v6964_v52, 1.0  ;;  %vm7839_vm13 = vcmask 1044484  }
0x11b2   : > { %10550 = vrcp.f32 %v7008_v20 }
0x11b3   : > { %v6968_v44 = vpop.xlane.xlu0 %6967  ;;  %10552 = vrcp.f32 %v7011_v58 }
0x11b4   : > { %vm6994_vm15 = vcmp.gt.f32.partialorder %v6968_v44, 0.0 }
0x11b5   : > { %v7010_v10 = vsel %vm6994_vm15, %v6968_v44, 1.0  ;;  %vm7843_vm15 = vcmask 1046534  }
0x11b6   : > { %10554 = vrcp.f32 %v7010_v10 }
0x11b7   : > { %v6972_v50 = vpop.xlane.xlu0 %6971  ;;  %10556 = vrcp.f32 %v7013_v12 }
0x11b8   : > { %vm6996_vm6 = vcmp.gt.f32.partialorder %v6972_v50, 0.0 }
0x11b9   : > { %v7012_v49 = vsel %vm6996_vm6, %v6972_v50, 1.0 }
0x11ba   : > { %10558 = vrcp.f32 %v7012_v49 }
0x11bb   : > { %v6976_v37 = vpop.xlane.xlu0 %6975  ;;  %10560 = vrcp.f32 %v7015_v62 }
0x11bc   : > { %vm6998_vm4 = vcmp.gt.f32.partialorder %v6976_v37, 0.0 }
0x11bd   : > { %v7014_v4 = vsel %vm6998_vm4, %v6976_v37, 1.0 }
0x11be   : > { %10562 = vrcp.f32 %v7014_v4 }
0x11bf   : > { %v10551_v41 = vpop.eup %10550  ;;  %v6980_v29 = vpop.xlane.xlu0 %6979  ;;  %10564 = vrcp.f32 %v7017_v16 }
0x11c0   : > { %vm7000_vm1 = vcmp.gt.f32.partialorder %v6980_v29, 0.0  ;;  %v7040_v15 = vmul.f32 %v10551_v41, %v15483_v39  ;;  %v10553_v13 = vpop.eup %10552  ;;  %v7343_v16 = vpop.permute.xlu1 %7342 }
0x11c1   : > { %v7016_v36 = vsel %vm7000_vm1, %v6980_v29, 1.0  ;;  %v7043_v22 = vmul.f32 %v10553_v13, %v15448_v18  ;;  %v16691_v29 = vld [vmem:[#allocation36_spill] sm:$0xff] }
0x11c2   : > { %10566 = vrcp.f32 %v7016_v36  ;;  %9426 = vmatmul.mubr.f32.gmra.mxu0 %v7040_v15  ;;  %v16692_v15 = vld [vmem:[#allocation15_spill] sm:$0xff] }
0x11c3   : > { %v10555_v63 = vpop.eup %10554  ;;  %9428 = vmatprep.mubr.f32.mxu0 %v7041_v7  ;;  %v6984_v24 = vpop.xlane.xlu0 %6983  ;;  %10568 = vrcp.f32 %v7019_v61 }
0x11c4   : > { %vm7002_vm8 = vcmp.gt.f32.partialorder %v6984_v24, 0.0  ;;  %v7042_v48 = vmul.f32 %v10555_v63, %v15489_v43  ;;  %v10557_v25 = vpop.eup %10556  ;;  %v7347_v36 = vpop.permute.xlu1 %7346 }
0x11c5   : > { %v7018_v11 = vsel %vm7002_vm8, %v6984_v24, 1.0  ;;  %v7045_v1 = vmul.f32 %v10557_v25, %v15452_v0 }
0x11c6   : > { %10570 = vrcp.f32 %v7018_v11  ;;  %9429 = vmatmul.mubr.f32.gmra.mxu0 %v7042_v48 }
0x11c7   : > { %v10559_v39 = vpop.eup %10558  ;;  %9431 = vmatprep.mubr.f32.mxu0 %v7043_v22  ;;  %v6988_v57 = vpop.xlane.xlu0 %6987 }
0x11c8   : > { %vm7004_vm7 = vcmp.gt.f32.partialorder %v6988_v57, 0.0  ;;  %v7044_v59 = vmul.f32 %v10559_v39, %v15495_v28  ;;  %v10561_v40 = vpop.eup %10560  ;;  %v15645_v7 = vpop.permute.xlu1 %7360 }
0x11c9   : > { %v7020_v32 = vsel %vm7004_vm7, %v6988_v57, 1.0  ;;  %v7047_v18 = vmul.f32 %v10561_v40, %v15456_v3 }
0x11ca   : > { %10572 = vrcp.f32 %v7020_v32  ;;  %9432 = vmatmul.mubr.f32.gmra.mxu0 %v7044_v59 }
0x11cb   : > { %v10563_v43 = vpop.eup %10562  ;;  %9434 = vmatprep.mubr.f32.mxu0 %v7045_v1  ;;  %v7345_v13 = vpop.permute.xlu0 %7344 }
0x11cc   : > { %v7046_v34 = vmul.f32 %v10563_v43, %v15501_v5  ;;  %v10565_v17 = vpop.eup %10564  ;;  %v15647_v61 = vpop.permute.xlu1 %7362 }
0x11cd   : > { %v7049_v28 = vmul.f32 %v10565_v17, %v15460_v21 }
0x11ce   : > { %9435 = vmatmul.mubr.f32.gmra.mxu0 %v7046_v34 }
0x11cf   : > { %v10567_v46 = vpop.eup %10566  ;;  %9437 = vmatprep.mubr.f32.mxu0 %v7047_v18  ;;  %v7359_v63 = vpop.permute.xlu0 %7358 }
0x11d0   : > { %v7048_v19 = vmul.f32 %v10567_v46, %v15507_v9  ;;  %v10569_v45 = vpop.eup %10568  ;;  %v7365_v24 = vpop.permute.xlu1 %7364 }
0x11d1   : > { %v7051_v6 = vmul.f32 %v10569_v45, %v15466_v42 }
0x11d2   : > { %9438 = vmatmul.mubr.f32.gmra.mxu0 %v7048_v19 }
0x11d3   : > { %v10571_v0 = vpop.eup %10570  ;;  %9440 = vmatprep.mubr.f32.mxu0 %v7049_v28  ;;  %v7349_v48 = vpop.permute.xlu0 %7348 }
0x11d4   : > { %v7050_v33 = vmul.f32 %v10571_v0, %v15513_v14  ;;  %v15649_v11 = vpop.permute.xlu1 %7366 }
0x11d6   : > { %9441 = vmatmul.mubr.f32.gmra.mxu0 %v7050_v33 }
0x11d7   : > { %v10573_v5 = vpop.eup %10572  ;;  %9443 = vmatprep.mubr.f32.mxu0 %v7051_v6  ;;  %v7351_v22 = vpop.permute.xlu0 %7350 }
0x11d8   : > { %v7052_v3 = vmul.f32 %v10573_v5, %v15519_v2  ;;  %v15651_v25 = vpop.permute.xlu1 %7368 }
0x11da   : > { %9444 = vmatmul.mubr.f32.gmra.mxu0 %v7052_v3 }
0x11db   : > { %v7353_v39 = vpop.permute.xlu0 %7352 }
0x11dc   : > { %v7357_v57 = vpop.permute.xlu1 %7356 }
0x11df   : > { %v7355_v59 = vpop.permute.xlu0 %7354 }
0x120c   : > { %v15593_v30 = vpop.f32.mrf.mxu0 }
0x120e   : > { %v15595_v51 = vpop.f32.mrf.mxu0 }
0x1215   : > { %v15597_v9 = vpop.f32.mrf.mxu0 }
0x1217   : > { %v15599_v21 = vpop.f32.mrf.mxu0 }
0x1219   : > { %v15601_v35 = vpop.f32.mrf.mxu0 }
0x121b   : > { %v15603_v23 = vpop.f32.mrf.mxu0 }
0x121d   : > { %v15605_v14 = vpop.f32.mrf.mxu0 }
0x121f   : > { %v15607_v42 = vpop.f32.mrf.mxu0 }
0x1221   : > { %v15609_v53 = vpop.f32.mrf.mxu0 }
0x1223   : > { %v15611_v2 = vpop.f32.mrf.mxu0 }
0x1225   : > { %v15613_v47 = vpop.f32.mrf.mxu0 }
0x1227   : > { %v15615_v56 = vpop.f32.mrf.mxu0 }
0x1229   : > { %v15617_v26 = vpop.f32.mrf.mxu0 }
0x122b   : > { %v15619_v60 = vpop.f32.mrf.mxu0 }
0x122d   : > { %v15621_v31 = vpop.f32.mrf.mxu0 }
0x122f   : > { %v15623_v54 = vpop.f32.mrf.mxu0 }
0x125b   : > { %v9424_v27 = vpop.f32.mrf.mxu0 }
0x125c   : > { %7280 = vrot.lane.b32.xlu1 %v9424_v27, %s16385_s29 }
0x125d   : > { %v7183_v38 = vpop.f32.mrf.mxu0 }
0x125e   : > { %7278 = vrot.lane.b32.xlu0 %v7183_v38, %s16385_s29 }
0x1282   : > { %v9427_v55 = vpop.f32.mrf.mxu0 }
0x1283   : > { %7284 = vrot.lane.b32.xlu1 %v9427_v55, %s16385_s29 }
0x1284   : > { %v7193_v52 = vpop.f32.mrf.mxu0 }
0x1286   : > { %v9430_v20 = vpop.f32.mrf.mxu0 }
0x1287   : > { %7282 = vrot.lane.b32.xlu1 %v7193_v52, %s16385_s29  ;;  %7288 = vrot.lane.b32.xlu0 %v9430_v20, %s16385_s29 }
0x1288   : > { %v7203_v58 = vpop.f32.mrf.mxu0 }
0x128a   : > { %v9433_v44 = vpop.f32.mrf.mxu0 }
0x128b   : > { %7286 = vrot.lane.b32.xlu0 %v7203_v58, %s16385_s29 }
0x128c   : > { %v7213_v10 = vpop.f32.mrf.mxu0 }
0x128e   : > { %v9436_v12 = vpop.f32.mrf.mxu0 }
0x128f   : > { %7292 = vrot.lane.b32.xlu0 %v9433_v44, %s16385_s29 }
0x1290   : > { %v7223_v50 = vpop.f32.mrf.mxu0 }
0x1291   : > { %7294 = vrot.lane.b32.xlu1 %v7223_v50, %s16385_s29 }
0x1292   : > { %v9439_v49 = vpop.f32.mrf.mxu0 }
0x1293   : > { %7290 = vrot.lane.b32.xlu0 %v7213_v10, %s16385_s29 }
0x1294   : > { %v7233_v62 = vpop.f32.mrf.mxu0 }
0x1295   : > { %7300 = vrot.lane.b32.xlu1 %v9439_v49, %s16385_s29 }
0x1296   : > { %v9442_v37 = vpop.f32.mrf.mxu0 }
0x1297   : > { %7296 = vrot.lane.b32.xlu0 %v9436_v12, %s16385_s29 }
0x1298   : > { %v7243_v4 = vpop.f32.mrf.mxu0 }
0x1299   : > { %7304 = vrot.lane.b32.xlu1 %v9442_v37, %s16385_s29 }
0x129a   : > { %v9445_v8 = vpop.f32.mrf.mxu0 }
0x129b   : > { %7298 = vrot.lane.b32.xlu0 %v7233_v62, %s16385_s29 }
0x129c   : > { %v7253_v41 = vpop.f32.mrf.mxu0 }
0x129d   : > { %7302 = vrot.lane.b32.xlu1 %v7243_v4, %s16385_s29 }
0x129f   : > { %7308 = vrot.lane.b32.xlu0 %v9445_v8, %s16385_s29 }
0x12a1   : > { %7306 = vrot.lane.b32.xlu1 %v7253_v41, %s16385_s29 }
0x12a3   : > { %7370 = vrot.lane.b32.xlu0 %v16691_v29, %s16384_s2 }
0x12a5   : > { %7372 = vrot.lane.b32.xlu1 %v16692_v15, %s16384_s2  ;;  %s7997_s2 = sshll.u32 %s614_s25, 4  ;;  %s16027_s2 = int_to_ptr.vmem [resolvable:$true] %s7997_s2 }
0x12a6   : > { %s10614_s1 = scalar_lea.vmem %s16027_s2, 256  ;;  %p10621_p0 = scmp.lt.s32.totalorder %s16027_s2, %s10619_s22 }
0x12a7   : > { %p10615_p11 = scmp.ne.s32.totalorder %s16027_s2, %s10614_s1  ;;  %p10622_p1 = scmp.lt.s32.totalorder %s10620_s26, %s10614_s1 }
0x12a9   : > { %p10616_p12 = pnand %p10615_p11, %p10837_p5  ;;  %p10623_p2 = por %p10622_p1, %p10621_p0 }
0x12ab   : > { %p10617_p13 = pneg %p10616_p12 }
0x12ad   : > { %p10624_p3 = pnand %p10623_p2, %p10617_p13 }
0x12ce   : > { %v7281_v32 = vpop.permute.xlu1 %7280 }
0x12cf   : > { %v7327_v1 = vsel %vm1463_vm2, %v15593_v30, %v7281_v32 }
0x12d0   : > { %v15655_v40 = vadd.f32 %v7345_v13, %v7327_v1  ;;  %v7279_v43 = vpop.permute.xlu0 %7278 }
0x12d1   : > { %v7326_v34 = vsel %vm1463_vm2, %v15595_v51, %v7279_v43 }
0x12d2   : > { %v7407_v18 = vmax.f32 %v15655_v40, 0.0  ;;  %v15660_v17 = vadd.f32 %v7343_v16, %v7326_v34 }
0x12d4   : > { %v7406_v46 = vmax.f32 %v15660_v17, 0.0  ;;  %v7425_v19 = vsel %vm1531_vm9, %v7407_v18, 0.0 }
0x12d5   : > { %7426 = vadd.xlane.f32.xlu1 %v7425_v19 }
0x12d6   : > { %v7422_v28 = vsel %vm1531_vm9, %v7406_v46, 0.0 }
0x12d7   : > { %7423 = vadd.xlane.f32.xlu0 %v7422_v28 }
0x12f5   : > { %v7285_v45 = vpop.permute.xlu1 %7284 }
0x12f6   : > { %v7329_v0 = vsel %vm1463_vm2, %v15597_v9, %v7285_v45 }
0x12f7   : > { %v15671_v33 = vadd.f32 %v7349_v48, %v7329_v0 }
0x12f9   : > { %v7409_v6 = vmax.f32 %v15671_v33, 0.0  ;;  %v7283_v5 = vpop.permute.xlu1 %7282  ;;  %v7289_v3 = vpop.permute.xlu0 %7288 }
0x12fa   : > { %v7328_v30 = vsel %vm1463_vm2, %v15599_v21, %v7283_v5  ;;  %v7331_v51 = vsel %vm1463_vm2, %v15601_v35, %v7289_v3 }
0x12fb   : > { %v15678_v27 = vadd.f32 %v7347_v36, %v7328_v30  ;;  %v15680_v38 = vadd.f32 %v7353_v39, %v7331_v51  ;;  %v7431_v9 = vsel %vm1531_vm9, %v7409_v6, 0.0 }
0x12fc   : > { %7432 = vadd.xlane.f32.xlu0 %v7431_v9 }
0x12fd   : > { %v7408_v55 = vmax.f32 %v15678_v27, 0.0  ;;  %v7287_v52 = vpop.permute.xlu0 %7286  ;;  %v7411_v21 = vmax.f32 %v15680_v38, 0.0 }
0x12fe   : > { %v7330_v20 = vsel %vm1463_vm2, %v15603_v23, %v7287_v52 }
0x12ff   : > { %v15689_v58 = vadd.f32 %v7351_v22, %v7330_v20  ;;  %v7428_v35 = vsel %vm1531_vm9, %v7408_v55, 0.0  ;;  %v7437_v50 = vsel %vm1531_vm9, %v7411_v21, 0.0 }
0x1300   : > { %7429 = vadd.xlane.f32.xlu0 %v7428_v35 }
0x1301   : > { %v7293_v44 = vpop.permute.xlu0 %7292  ;;  %v7410_v10 = vmax.f32 %v15689_v58, 0.0 }
0x1302   : > { %v7333_v37 = vsel %vm1463_vm2, %v15605_v14, %v7293_v44 }
0x1303   : > { %v7295_v12 = vpop.permute.xlu1 %7294  ;;  %v7434_v41 = vsel %vm1531_vm9, %v7410_v10, 0.0 }
0x1304   : > { %v7334_v23 = vsel %vm1463_vm2, %v15611_v2, %v7295_v12  ;;  %7438 = vadd.xlane.f32.xlu0 %v7437_v50 }
0x1305   : > { %v7291_v49 = vpop.permute.xlu0 %7290  ;;  %v15704_v4 = vadd.f32 %v7359_v63, %v7334_v23 }
0x1306   : > { %v7332_v62 = vsel %vm1463_vm2, %v15607_v42, %v7291_v49  ;;  %v15714_v42 = vadd.f32 %v7357_v57, %v7333_v37 }
0x1307   : > { %v15706_v8 = vadd.f32 %v7355_v59, %v7332_v62  ;;  %v7301_v16 = vpop.permute.xlu1 %7300  ;;  %v7414_v36 = vmax.f32 %v15704_v4, 0.0 }
0x1308   : > { %v7337_v2 = vsel %vm1463_vm2, %v15613_v47, %v7301_v16  ;;  %7435 = vadd.xlane.f32.xlu0 %v7434_v41  ;;  %v7413_v57 = vmax.f32 %v15714_v42, 0.0 }
0x1309   : > { %v7412_v29 = vmax.f32 %v15706_v8, 0.0  ;;  %v7297_v15 = vpop.permute.xlu0 %7296  ;;  %v15719_v13 = vadd.f32 %v7365_v24, %v7337_v2  ;;  %v7446_v32 = vsel %vm1531_vm9, %v7414_v36, 0.0 }
0x130a   : > { %v7335_v14 = vsel %vm1463_vm2, %v15609_v53, %v7297_v15  ;;  %v7443_v28 = vsel %vm1531_vm9, %v7413_v57, 0.0 }
0x130b   : > { %v15722_v63 = vadd.f32 %v15645_v7, %v7335_v14  ;;  %v7305_v48 = vpop.permute.xlu1 %7304  ;;  %v7440_v47 = vsel %vm1531_vm9, %v7412_v29, 0.0  ;;  %v7417_v24 = vmax.f32 %v15719_v13, 0.0 }
0x130c   : > { %7441 = vadd.xlane.f32.xlu0 %v7440_v47  ;;  %v7339_v43 = vsel %vm1463_vm2, %v15617_v26, %v7305_v48 }
0x130d   : > { %v7415_v22 = vmax.f32 %v15722_v63, 0.0  ;;  %v7299_v39 = vpop.permute.xlu0 %7298  ;;  %v15744_v34 = vadd.f32 %v15651_v25, %v7339_v43  ;;  %v7455_v45 = vsel %vm1531_vm9, %v7417_v24, 0.0 }
0x130e   : > { %v7336_v53 = vsel %vm1463_vm2, %v15615_v56, %v7299_v39 }
0x130f   : > { %v15733_v59 = vadd.f32 %v15647_v61, %v7336_v53  ;;  %v7303_v7 = vpop.permute.xlu1 %7302  ;;  %v7449_v1 = vsel %vm1531_vm9, %v7415_v22, 0.0  ;;  %v7419_v0 = vmax.f32 %v15744_v34, 0.0 }
0x1310   : > { %7447 = vadd.xlane.f32.xlu0 %v7446_v32  ;;  %7450 = vadd.xlane.f32.xlu1 %v7449_v1  ;;  %v7338_v26 = vsel %vm1463_vm2, %v15619_v60, %v7303_v7 }
0x1311   : > { %v7309_v56 = vpop.permute.xlu0 %7308  ;;  %v7416_v61 = vmax.f32 %v15733_v59, 0.0  ;;  %v15757_v25 = vadd.f32 %v15649_v11, %v7338_v26 }
0x1312   : > { %v7341_v3 = vsel %vm1463_vm2, %v15621_v31, %v7309_v56  ;;  %v7461_v31 = vsel %vm1531_vm9, %v7419_v0, 0.0 }
0x1313   : > { %v7307_v19 = vpop.permute.xlu1 %7306  ;;  %v7452_v30 = vsel %vm1531_vm9, %v7416_v61, 0.0  ;;  %v7418_v11 = vmax.f32 %v15757_v25, 0.0 }
0x1314   : > { %7444 = vadd.xlane.f32.xlu0 %v7443_v28  ;;  %7456 = vadd.xlane.f32.xlu1 %v7455_v45  ;;  %v7340_v51 = vsel %vm1463_vm2, %v15623_v54, %v7307_v19 }
0x1315   : > { %v7371_v9 = vpop.permute.xlu0 %7370  ;;  %v7458_v44 = vsel %vm1531_vm9, %v7418_v11, 0.0 }
0x1316   : > { %v15770_v20 = vadd.f32 %v7371_v9, %v7340_v51 }
0x1317   : > { %v7373_v5 = vpop.permute.xlu1 %7372 }
0x1318   : > { %v15766_v60 = vadd.f32 %v7373_v5, %v7341_v3  ;;  %7453 = vadd.xlane.f32.xlu1 %v7452_v30  ;;  %v7420_v54 = vmax.f32 %v15770_v20, 0.0  ;;  %v7807_v20 = vld [vmem:[%s16090_s15 + $0x28] sm:$0xff] }
0x131a   : > { %v7421_v52 = vmax.f32 %v15766_v60, 0.0  ;;  %v7464_v12 = vsel %vm1531_vm9, %v7420_v54, 0.0 }
0x131c   : > { %7462 = vadd.xlane.f32.xlu1 %v7461_v31  ;;  %v7467_v35 = vsel %vm1531_vm9, %v7421_v52, 0.0 }
0x131d   : > { %7468 = vadd.xlane.f32.xlu0 %v7467_v35 }
0x1320   : > { %7459 = vadd.xlane.f32.xlu1 %v7458_v44 }
0x1324   : > { %7465 = vadd.xlane.f32.xlu1 %v7464_v12 }
0x135e   : > { %v7427_v50 = vpop.xlane.xlu1 %7426 }
0x135f   : > { %v7471_v23 = vmul.f32 0.015625, %v7427_v50 }
0x1360   : > { %v7424_v49 = vpop.xlane.xlu0 %7423 }
0x1361   : > { %v15787_v62 = vsub.f32 %v7407_v18, %v7471_v23  ;;  %v7470_v37 = vmul.f32 0.015625, %v7424_v49 }
0x1363   : > { %v15791_v16 = vsub.f32 %v7406_v46, %v7470_v37  ;;  %v7503_v41 = vmul.f32 %v15787_v62, %v15787_v62 }
0x1365   : > { %v7521_v2 = vsel %vm1531_vm9, %v7503_v41, 0.0  ;;  %v7502_v15 = vmul.f32 %v15791_v16, %v15791_v16 }
0x1366   : > { %7522 = vadd.xlane.f32.xlu0 %v7521_v2 }
0x1367   : > { %v7518_v14 = vsel %vm1531_vm9, %v7502_v15, 0.0 }
0x1368   : > { %7519 = vadd.xlane.f32.xlu1 %v7518_v14 }
0x1385   : > { %v7433_v40 = vpop.xlane.xlu0 %7432 }
0x1386   : > { %v7473_v18 = vmul.f32 0.015625, %v7433_v40 }
0x1388   : > { %v15801_v48 = vsub.f32 %v7409_v6, %v7473_v18 }
0x1389   : > { %v7430_v17 = vpop.xlane.xlu0 %7429 }
0x138a   : > { %v7472_v46 = vmul.f32 0.015625, %v7430_v17  ;;  %v7505_v47 = vmul.f32 %v15801_v48, %v15801_v48 }
0x138c   : > { %v15807_v39 = vsub.f32 %v7408_v55, %v7472_v46  ;;  %v7527_v53 = vsel %vm1531_vm9, %v7505_v47, 0.0 }
0x138d   : > { %7528 = vadd.xlane.f32.xlu0 %v7527_v53  ;;  %v7439_v7 = vpop.xlane.xlu0 %7438 }
0x138e   : > { %v7475_v32 = vmul.f32 0.015625, %v7439_v7  ;;  %v7504_v1 = vmul.f32 %v15807_v39, %v15807_v39 }
0x1390   : > { %v15814_v33 = vsub.f32 %v7411_v21, %v7475_v32  ;;  %v7524_v6 = vsel %vm1531_vm9, %v7504_v1, 0.0 }
0x1391   : > { %7525 = vadd.xlane.f32.xlu1 %v7524_v6  ;;  %v7436_v43 = vpop.xlane.xlu0 %7435 }
0x1392   : > { %v7474_v56 = vmul.f32 0.015625, %v7436_v43  ;;  %v7507_v27 = vmul.f32 %v15814_v33, %v15814_v33  ;;  %v7809_v43 = vld [vmem:[%s16090_s15 + $0x38] sm:$0xff] }
0x1393   : > { %9446 = vmatprep.subr.mxu0 %v7809_v43 }
0x1394   : > { %v15821_v55 = vsub.f32 %v7410_v10, %v7474_v56  ;;  %v7533_v19 = vsel %vm1531_vm9, %v7507_v27, 0.0  ;;  %v7808_v56 = vld [vmem:[%s16090_s15 + $0x30] sm:$0xff]  ;;  %9447 = vmatpush3.msra.mxu0 %v7809_v43  ;;  %v7805_v27 = vld [vmem:[%s16090_s15 + $0x18] sm:$0xff] }
0x1395   : > { %7534 = vadd.xlane.f32.xlu0 %v7533_v19  ;;  %v7442_v28 = vpop.xlane.xlu0 %7441  ;;  %9448 = vmatprep.subr.mxu0 %v7808_v56  ;;  %v7804_v19 = vld [vmem:[%s16090_s15 + $0x10] sm:$0xff] }
0x1396   : > { %v7476_v45 = vmul.f32 0.015625, %v7442_v28  ;;  %v7506_v38 = vmul.f32 %v15821_v55, %v15821_v55  ;;  %9449 = vmatpush3.msra.mxu0 %v7808_v56  ;;  %v7803_v28 = vld [vmem:[%s16090_s15 + $0x8] sm:$0xff] }
0x1397   : > { %9450 = vmatprep.subr.mxu0 %v7807_v20 }
0x1398   : > { %v15828_v21 = vsub.f32 %v7412_v29, %v7476_v45  ;;  %v7530_v26 = vsel %vm1531_vm9, %v7506_v38, 0.0  ;;  %9451 = vmatpush3.msra.mxu0 %v7807_v20  ;;  %v7802_v45 = vld [vmem:[%s16090_s15] sm:$0xff] }
0x1399   : > { %v7451_v5 = vpop.xlane.xlu1 %7450  ;;  %7531 = vadd.xlane.f32.xlu0 %v7530_v26  ;;  %v7448_v3 = vpop.xlane.xlu0 %7447 }
0x139a   : > { %v7479_v58 = vmul.f32 0.015625, %v7451_v5  ;;  %v7478_v10 = vmul.f32 0.015625, %v7448_v3  ;;  %v7508_v30 = vmul.f32 %v15828_v21, %v15828_v21 }
0x139c   : > { %v15835_v51 = vsub.f32 %v7415_v22, %v7479_v58  ;;  %v15839_v9 = vsub.f32 %v7414_v36, %v7478_v10  ;;  %v7536_v8 = vsel %vm1531_vm9, %v7508_v30, 0.0 }
0x139d   : > { %v7457_v29 = vpop.xlane.xlu1 %7456  ;;  %7537 = vadd.xlane.f32.xlu0 %v7536_v8  ;;  %v7445_v31 = vpop.xlane.xlu0 %7444 }
0x139e   : > { %v7481_v35 = vmul.f32 0.015625, %v7457_v29  ;;  %v7477_v44 = vmul.f32 0.015625, %v7445_v31  ;;  %v7511_v12 = vmul.f32 %v15835_v51, %v15835_v51  ;;  %v7510_v50 = vmul.f32 %v15839_v9, %v15839_v9 }
0x13a0   : > { %v15848_v63 = vsub.f32 %v7417_v24, %v7481_v35  ;;  %v15852_v4 = vsub.f32 %v7413_v57, %v7477_v44  ;;  %v7545_v36 = vsel %vm1531_vm9, %v7511_v12, 0.0  ;;  %v7542_v22 = vsel %vm1531_vm9, %v7510_v50, 0.0  ;;  %v15926_v35 = vld [vmem:[%s16088_s13] ss:$0 sm:$0xff] }
0x13a1   : > { %v7454_v23 = vpop.xlane.xlu1 %7453  ;;  %7546 = vadd.xlane.f32.xlu1 %v7545_v36  ;;  %7543 = vadd.xlane.f32.xlu0 %v7542_v22 }
0x13a2   : > { %v7480_v49 = vmul.f32 0.015625, %v7454_v23  ;;  %v7513_v37 = vmul.f32 %v15848_v63, %v15848_v63  ;;  %v7509_v13 = vmul.f32 %v15852_v4, %v15852_v4  ;;  %v15933_v23 = vld [vmem:[%s16089_s14] ss:$0 sm:$0xff] }
0x13a4   : > { %v15862_v24 = vsub.f32 %v7416_v61, %v7480_v49  ;;  %v7551_v42 = vsel %vm1531_vm9, %v7513_v37, 0.0  ;;  %v7539_v57 = vsel %vm1531_vm9, %v7509_v13, 0.0 }
0x13a5   : > { %v7463_v41 = vpop.xlane.xlu1 %7462  ;;  %7552 = vadd.xlane.f32.xlu1 %v7551_v42  ;;  %7540 = vadd.xlane.f32.xlu0 %v7539_v57 }
0x13a6   : > { %v7483_v2 = vmul.f32 0.015625, %v7463_v41  ;;  %v7469_v15 = vpop.xlane.xlu0 %7468  ;;  %v7512_v14 = vmul.f32 %v15862_v24, %v15862_v24 }
0x13a7   : > { %v7485_v40 = vmul.f32 0.015625, %v7469_v15 }
0x13a8   : > { %v15870_v18 = vsub.f32 %v7419_v0, %v7483_v2  ;;  %v7548_v59 = vsel %vm1531_vm9, %v7512_v14, 0.0 }
0x13a9   : > { %v15875_v61 = vsub.f32 %v7421_v52, %v7485_v40  ;;  %v7460_v17 = vpop.xlane.xlu1 %7459  ;;  %7549 = vadd.xlane.f32.xlu1 %v7548_v59 }
0x13aa   : > { %v7482_v46 = vmul.f32 0.015625, %v7460_v17  ;;  %v7515_v47 = vmul.f32 %v15870_v18, %v15870_v18 }
0x13ab   : > { %v7517_v53 = vmul.f32 %v15875_v61, %v15875_v61 }
0x13ac   : > { %v15883_v34 = vsub.f32 %v7418_v11, %v7482_v46  ;;  %v7557_v0 = vsel %vm1531_vm9, %v7515_v47, 0.0 }
0x13ad   : > { %v7466_v7 = vpop.xlane.xlu1 %7465  ;;  %7558 = vadd.xlane.f32.xlu1 %v7557_v0  ;;  %v7563_v60 = vsel %vm1531_vm9, %v7517_v53, 0.0 }
0x13ae   : > { %v7484_v52 = vmul.f32 0.015625, %v7466_v7  ;;  %7564 = vadd.xlane.f32.xlu0 %v7563_v60  ;;  %v7514_v32 = vmul.f32 %v15883_v34, %v15883_v34 }
0x13b0   : > { %v15891_v1 = vsub.f32 %v7420_v54, %v7484_v52  ;;  %v7554_v6 = vsel %vm1531_vm9, %v7514_v32, 0.0  ;;  %v7806_v54 = vld [vmem:[%s16090_s15 + $0x20] sm:$0xff] }
0x13b1   : > { %7555 = vadd.xlane.f32.xlu1 %v7554_v6  ;;  %9452 = vmatprep.subr.mxu0 %v7806_v54 }
0x13b2   : > { %v7516_v25 = vmul.f32 %v15891_v1, %v15891_v1  ;;  %9453 = vmatpush3.msra.mxu0 %v7806_v54 }
0x13b3   : > { %9454 = vmatprep.subr.mxu0 %v7805_v27 }
0x13b4   : > { %v7560_v11 = vsel %vm1531_vm9, %v7516_v25, 0.0  ;;  %9455 = vmatpush3.msra.mxu0 %v7805_v27 }
0x13b5   : > { %7561 = vadd.xlane.f32.xlu1 %v7560_v11  ;;  %9456 = vmatprep.subr.mxu0 %v7804_v19 }
0x13b6   : > { %9457 = vmatpush3.msra.mxu0 %v7804_v19 }
0x13b7   : > { %9458 = vmatprep.subr.mxu0 %v7803_v28 }
0x13b8   : > { %9459 = vmatpush3.msra.mxu0 %v7803_v28 }
0x13b9   : > { %9460 = vmatprep.subr.mxu0 %v7802_v45 }
0x13ba   : > { %9461 = vmatpush3.msra.mxu0 %v7802_v45 }
0x13ef   : > { %v7523_v38 = vpop.xlane.xlu0 %7522 }
0x13f0   : > { %v7567_v5 = vmul.f32 0.015625, %v7523_v38 }
0x13f1   : > { %v7520_v26 = vpop.xlane.xlu1 %7519 }
0x13f2   : > { %v7566_v3 = vmul.f32 0.015625, %v7520_v26  ;;  %v7583_v58 = vadd.f32 1e-05, %v7567_v5 }
0x13f4   : > { %v7582_v10 = vadd.f32 1e-05, %v7566_v3  ;;  %10574 = vrsqrt.f32 %v7583_v58 }
0x13f6   : > { %10576 = vrsqrt.f32 %v7582_v10 }
0x1401   : > { %v10575_v30 = vpop.eup %10574 }
0x1402   : > { %v7615_v29 = vmul.f32 %v10575_v30, %v15787_v62 }
0x1403   : > { %v10577_v8 = vpop.eup %10576 }
0x1404   : > { %v7614_v31 = vmul.f32 %v10577_v8, %v15791_v16  ;;  %v7637_v50 = vmul.f32 %v15926_v35, %v7615_v29 }
0x1406   : > { %v7636_v36 = vmul.f32 %v15926_v35, %v7614_v31  ;;  %v7659_v49 = vadd.f32 %v15933_v23, %v7637_v50 }
0x1408   : > { %v7658_v37 = vadd.f32 %v15933_v23, %v7636_v36  ;;  %v7681_v41 = vsel %vm1531_vm9, %v7659_v49, 0.0 }
0x1409   : > { %v7682_v59 = vrot.slane %v7681_v41, 4 }
0x140a   : > { %v7674_v2 = vsel %vm1531_vm9, %v7658_v37, 0.0 }
0x140b   : > { %v7675_v17 = vrot.slane %v7674_v2, 4  ;;  %v7683_v7 = vadd.f32 %v7682_v59, %v7681_v41 }
0x140d   : > { %v7676_v60 = vadd.f32 %v7675_v17, %v7674_v2  ;;  %v7684_v54 = vrot.slane %v7683_v7, 2 }
0x140f   : > { %v7677_v27 = vrot.slane %v7676_v60, 2 }
0x1411   : > { %v7678_v29 = vadd.f32 %v7677_v27, %v7676_v60 }
0x1416   : > { %v7529_v44 = vpop.xlane.xlu0 %7528 }
0x1417   : > { %v7569_v12 = vmul.f32 0.015625, %v7529_v44 }
0x1419   : > { %v7585_v22 = vadd.f32 1e-05, %v7569_v12  ;;  %v7685_v12 = vadd.f32 %v7684_v54, %v7683_v7 }
0x141a   : > { %v7526_v62 = vpop.xlane.xlu1 %7525 }
0x141b   : > { %10578 = vrsqrt.f32 %v7585_v22  ;;  %v7568_v16 = vmul.f32 0.015625, %v7526_v62  ;;  %v7686_v2 = vrot.slane %v7685_v12, 1 }
0x141d   : > { %v7584_v13 = vadd.f32 1e-05, %v7568_v16 }
0x141e   : > { %v7535_v42 = vpop.xlane.xlu0 %7534 }
0x141f   : > { %10580 = vrsqrt.f32 %v7584_v13  ;;  %v7571_v57 = vmul.f32 0.015625, %v7535_v42  ;;  %v7679_v42 = vrot.slane %v7678_v29, 1 }
0x1421   : > { %v7587_v15 = vadd.f32 1e-05, %v7571_v57  ;;  %v7680_v7 = vadd.f32 %v7679_v42, %v7678_v29 }
0x1422   : > { %v7532_v14 = vpop.xlane.xlu0 %7531 }
0x1423   : > { %10582 = vrsqrt.f32 %v7587_v15  ;;  %v7570_v40 = vmul.f32 0.015625, %v7532_v14 }
0x1425   : > { %v7586_v46 = vadd.f32 1e-05, %v7570_v40 }
0x1426   : > { %v7538_v47 = vpop.xlane.xlu0 %7537 }
0x1427   : > { %10584 = vrsqrt.f32 %v7586_v46  ;;  %v7572_v53 = vmul.f32 0.015625, %v7538_v47 }
0x1428   : > { %v10579_v0 = vpop.eup %10578 }
0x1429   : > { %v7617_v52 = vmul.f32 %v10579_v0, %v15801_v48  ;;  %v7588_v32 = vadd.f32 1e-05, %v7572_v53 }
0x142a   : > { %v7547_v6 = vpop.xlane.xlu1 %7546  ;;  %v7544_v25 = vpop.xlane.xlu0 %7543 }
0x142b   : > { %v7639_v11 = vmul.f32 %v15926_v35, %v7617_v52  ;;  %10586 = vrsqrt.f32 %v7588_v32  ;;  %v7575_v43 = vmul.f32 0.015625, %v7547_v6  ;;  %v7574_v56 = vmul.f32 0.015625, %v7544_v25 }
0x142c   : > { %v10581_v20 = vpop.eup %10580  ;;  %v7687_v6 = vadd.f32 %v7686_v2, %v7685_v12 }
0x142d   : > { %v7661_v19 = vadd.f32 %v15933_v23, %v7639_v11  ;;  %v7616_v28 = vmul.f32 %v10581_v20, %v15807_v39  ;;  %v7591_v45 = vadd.f32 1e-05, %v7575_v43  ;;  %v7590_v38 = vadd.f32 1e-05, %v7574_v56 }
0x142e   : > { %v7553_v26 = vpop.xlane.xlu1 %7552  ;;  %v7541_v5 = vpop.xlane.xlu0 %7540 }
0x142f   : > { %v7695_v48 = vsel %vm1531_vm9, %v7661_v19, 0.0  ;;  %v7638_v3 = vmul.f32 %v15926_v35, %v7616_v28  ;;  %10588 = vrsqrt.f32 %v7591_v45  ;;  %v7577_v58 = vmul.f32 0.015625, %v7553_v26 }
0x1430   : > { %v10583_v10 = vpop.eup %10582  ;;  %v7696_v30 = vrot.slane %v7695_v48, 4  ;;  %10590 = vrsqrt.f32 %v7590_v38  ;;  %v7573_v8 = vmul.f32 0.015625, %v7541_v5  ;;  %v7786_v38 = vmul.f32 0.125, %v7680_v7 }
0x1431   : > { %v7660_v31 = vadd.f32 %v15933_v23, %v7638_v3  ;;  %v7619_v44 = vmul.f32 %v10583_v10, %v15814_v33  ;;  %v7593_v39 = vadd.f32 1e-05, %v7577_v58  ;;  %v7787_v3 = vmul.f32 0.125, %v7687_v6 }
0x1432   : > { %v7589_v50 = vadd.f32 1e-05, %v7573_v8  ;;  %v7550_v36 = vpop.xlane.xlu1 %7549  ;;  %v7697_v22 = vadd.f32 %v7696_v30, %v7695_v48 }
0x1433   : > { %v7688_v62 = vsel %vm1531_vm9, %v7660_v31, 0.0  ;;  %v7641_v16 = vmul.f32 %v15926_v35, %v7619_v44  ;;  %10592 = vrsqrt.f32 %v7593_v39  ;;  %v7576_v49 = vmul.f32 0.015625, %v7550_v36 }
0x1434   : > { %v10585_v37 = vpop.eup %10584  ;;  %v7689_v13 = vrot.slane %v7688_v62, 4  ;;  %10594 = vrsqrt.f32 %v7589_v50  ;;  %v7698_v40 = vrot.slane %v7697_v22, 2 }
0x1435   : > { %v7663_v57 = vadd.f32 %v15933_v23, %v7641_v16  ;;  %v7618_v41 = vmul.f32 %v10585_v37, %v15821_v55  ;;  %v7592_v33 = vadd.f32 1e-05, %v7576_v49 }
0x1436   : > { %v7690_v15 = vadd.f32 %v7689_v13, %v7688_v62  ;;  %v7559_v14 = vpop.xlane.xlu1 %7558  ;;  %v7699_v56 = vadd.f32 %v7698_v40, %v7697_v22  ;;  %v15964_v22 = vsel %vm7833_vm10, %v7787_v3, %v7786_v38 }
0x1437   : > { %v7640_v59 = vmul.f32 %v15926_v35, %v7618_v41  ;;  %10596 = vrsqrt.f32 %v7592_v33  ;;  %v7579_v17 = vmul.f32 0.015625, %v7559_v14  ;;  %v7565_v46 = vpop.xlane.xlu0 %7564  ;;  %v7709_v47 = vsel %vm1531_vm9, %v7663_v57, 0.0 }
0x1438   : > { %v10587_v53 = vpop.eup %10586  ;;  %v7581_v0 = vmul.f32 0.015625, %v7565_v46  ;;  %v7710_v60 = vrot.slane %v7709_v47, 4  ;;  %v7691_v43 = vrot.slane %v7690_v15, 2  ;;  %v7700_v8 = vrot.slane %v7699_v56, 1 }
0x1439   : > { %v7662_v52 = vadd.f32 %v15933_v23, %v7640_v59  ;;  %v7620_v55 = vmul.f32 %v10587_v53, %v15828_v21  ;;  %v7595_v32 = vadd.f32 1e-05, %v7579_v17 }
0x143a   : > { %v7597_v25 = vadd.f32 1e-05, %v7581_v0  ;;  %v7556_v11 = vpop.xlane.xlu1 %7555  ;;  %v7711_v45 = vadd.f32 %v7710_v60, %v7709_v47  ;;  %v7692_v30 = vadd.f32 %v7691_v43, %v7690_v15  ;;  %v7701_v41 = vadd.f32 %v7700_v8, %v7699_v56 }
0x143b   : > { %v7642_v20 = vmul.f32 %v15926_v35, %v7620_v55  ;;  %10598 = vrsqrt.f32 %v7595_v32  ;;  %v7578_v54 = vmul.f32 0.015625, %v7556_v11  ;;  %v7702_v27 = vsel %vm1531_vm9, %v7662_v52, 0.0 }
0x143c   : > { %v10589_v19 = vpop.eup %10588  ;;  %10600 = vrsqrt.f32 %v7597_v25  ;;  %v7703_v28 = vrot.slane %v7702_v27, 4  ;;  %v7693_v57 = vrot.slane %v7692_v30, 1  ;;  %v15977_v52 = vmul.f32 0.125, %v7701_v41 }
0x143d   : > { %v10591_v26 = vpop.eup %10590  ;;  %v7623_v21 = vmul.f32 %v10589_v19, %v15835_v51  ;;  %v7594_v5 = vadd.f32 1e-05, %v7578_v54  ;;  %v7664_v48 = vadd.f32 %v15933_v23, %v7642_v20  ;;  %v7712_v51 = vrot.slane %v7711_v45, 2 }
0x143e   : > { %v7622_v58 = vmul.f32 %v10591_v26, %v15839_v9  ;;  %v7562_v10 = vpop.xlane.xlu1 %7561  ;;  %v7704_v29 = vadd.f32 %v7703_v28, %v7702_v27  ;;  %v7694_v25 = vadd.f32 %v7693_v57, %v7692_v30 }
0x143f   : > { %v7645_v31 = vmul.f32 %v15926_v35, %v7623_v21  ;;  %10602 = vrsqrt.f32 %v7594_v5  ;;  %v7580_v44 = vmul.f32 0.015625, %v7562_v10  ;;  %v7716_v39 = vsel %vm1531_vm9, %v7664_v48, 0.0 }
0x1440   : > { %v10593_v12 = vpop.eup %10592  ;;  %v7644_v50 = vmul.f32 %v15926_v35, %v7622_v58  ;;  %v7717_v36 = vrot.slane %v7716_v39, 4  ;;  %v7705_v37 = vrot.slane %v7704_v29, 2  ;;  %v7713_v17 = vadd.f32 %v7712_v51, %v7711_v45 }
0x1441   : > { %v10595_v62 = vpop.eup %10594  ;;  %v7667_v9 = vadd.f32 %v15933_v23, %v7645_v31  ;;  %v7625_v16 = vmul.f32 %v10593_v12, %v15848_v63  ;;  %v7596_v49 = vadd.f32 1e-05, %v7580_v44  ;;  %v7788_v10 = vmul.f32 0.125, %v7694_v25 }
0x1442   : > { %v7666_v13 = vadd.f32 %v15933_v23, %v7644_v50  ;;  %v7621_v42 = vmul.f32 %v10595_v62, %v15852_v4  ;;  %v7718_v15 = vadd.f32 %v7717_v36, %v7716_v39  ;;  %v7706_v53 = vadd.f32 %v7705_v37, %v7704_v29 }
0x1443   : > { %v7737_v33 = vsel %vm1531_vm9, %v7667_v9, 0.0  ;;  %v7647_v2 = vmul.f32 %v15926_v35, %v7625_v16  ;;  %10604 = vrsqrt.f32 %v7596_v49  ;;  %v7714_v20 = vrot.slane %v7713_v17, 1 }
0x1444   : > { %v10597_v14 = vpop.eup %10596  ;;  %v7738_v40 = vrot.slane %v7737_v33, 4  ;;  %v7730_v59 = vsel %vm1531_vm9, %v7666_v13, 0.0  ;;  %v7643_v63 = vmul.f32 %v15926_v35, %v7621_v42  ;;  %v7719_v60 = vrot.slane %v7718_v15, 2 }
0x1445   : > { %v7731_v46 = vrot.slane %v7730_v59, 4  ;;  %v7669_v47 = vadd.f32 %v15933_v23, %v7647_v2  ;;  %v7624_v4 = vmul.f32 %v10597_v14, %v15862_v24  ;;  %v7707_v45 = vrot.slane %v7706_v53, 1 }
0x1446   : > { %v7739_v0 = vadd.f32 %v7738_v40, %v7737_v33  ;;  %v7665_v7 = vadd.f32 %v15933_v23, %v7643_v63  ;;  %v7720_v21 = vadd.f32 %v7719_v60, %v7718_v15  ;;  %v7715_v44 = vadd.f32 %v7714_v20, %v7713_v17 }
0x1447   : > { %v7732_v55 = vadd.f32 %v7731_v46, %v7730_v59  ;;  %v7751_v32 = vsel %vm1531_vm9, %v7669_v47, 0.0  ;;  %v7646_v6 = vmul.f32 %v15926_v35, %v7624_v4 }
0x1448   : > { %v10599_v11 = vpop.eup %10598  ;;  %v7740_v43 = vrot.slane %v7739_v0, 2  ;;  %v7752_v56 = vrot.slane %v7751_v32, 4  ;;  %v7723_v54 = vsel %vm1531_vm9, %v7665_v7, 0.0  ;;  %v7721_v62 = vrot.slane %v7720_v21, 1 }
0x1449   : > { %v10601_v24 = vpop.eup %10600  ;;  %v7733_v27 = vrot.slane %v7732_v55, 2  ;;  %v7668_v19 = vadd.f32 %v15933_v23, %v7646_v6  ;;  %v7627_v28 = vmul.f32 %v10599_v11, %v15870_v18  ;;  %v7724_v5 = vrot.slane %v7723_v54, 4 }
0x144a   : > { %v7753_v38 = vadd.f32 %v7752_v56, %v7751_v32  ;;  %v7629_v26 = vmul.f32 %v10601_v24, %v15875_v61  ;;  %v7741_v48 = vadd.f32 %v7740_v43, %v7739_v0  ;;  %v7708_v61 = vadd.f32 %v7707_v45, %v7706_v53 }
0x144b   : > { %v7744_v3 = vsel %vm1531_vm9, %v7668_v19, 0.0  ;;  %v7649_v58 = vmul.f32 %v15926_v35, %v7627_v28  ;;  %v7734_v8 = vadd.f32 %v7733_v27, %v7732_v55  ;;  %v7725_v12 = vadd.f32 %v7724_v5, %v7723_v54 }
0x144c   : > { %v10603_v30 = vpop.eup %10602  ;;  %v7745_v29 = vrot.slane %v7744_v3, 4  ;;  %v7651_v31 = vmul.f32 %v15926_v35, %v7629_v26  ;;  %v7754_v50 = vrot.slane %v7753_v38, 2  ;;  %v7742_v9 = vrot.slane %v7741_v48, 1 }
0x144d   : > { %v7671_v18 = vadd.f32 %v15933_v23, %v7649_v58  ;;  %v7626_v39 = vmul.f32 %v10603_v30, %v15883_v34  ;;  %v7726_v37 = vrot.slane %v7725_v12, 2  ;;  %v7735_v42 = vrot.slane %v7734_v8, 1 }
0x144e   : > { %v7746_v51 = vadd.f32 %v7745_v29, %v7744_v3  ;;  %v7673_v36 = vadd.f32 %v15933_v23, %v7651_v31  ;;  %v7722_v59 = vadd.f32 %v7721_v62, %v7720_v21  ;;  %v7755_v63 = vadd.f32 %v7754_v50, %v7753_v38 }
0x144f   : > { %v7765_v16 = vsel %vm1531_vm9, %v7671_v18, 0.0  ;;  %v7648_v49 = vmul.f32 %v15926_v35, %v7626_v39  ;;  %v7727_v15 = vadd.f32 %v7726_v37, %v7725_v12  ;;  %v7736_v7 = vadd.f32 %v7735_v42, %v7734_v8 }
0x1450   : > { %v10605_v13 = vpop.eup %10604  ;;  %v7747_v57 = vrot.slane %v7746_v51, 2  ;;  %v7766_v41 = vrot.slane %v7765_v16, 4  ;;  %v7779_v34 = vsel %vm1531_vm9, %v7673_v36, 0.0  ;;  %v7743_v6 = vadd.f32 %v7742_v9, %v7741_v48 }
0x1451   : > { %v7670_v33 = vadd.f32 %v15933_v23, %v7648_v49  ;;  %v7628_v2 = vmul.f32 %v10605_v13, %v15891_v1  ;;  %v7780_v14 = vrot.slane %v7779_v34, 4  ;;  %v7728_v4 = vrot.slane %v7727_v15, 1 }
0x1452   : > { %v7748_v40 = vadd.f32 %v7747_v57, %v7746_v51  ;;  %v7767_v17 = vadd.f32 %v7766_v41, %v7765_v16  ;;  %v7790_v56 = vmul.f32 0.125, %v7708_v61  ;;  %v7791_v20 = vmul.f32 0.125, %v7715_v44 }
0x1453   : > { %v7758_v46 = vsel %vm1531_vm9, %v7670_v33, 0.0  ;;  %v7650_v47 = vmul.f32 %v15926_v35, %v7628_v2  ;;  %v7781_v53 = vadd.f32 %v7780_v14, %v7779_v34  ;;  %v7729_v32 = vadd.f32 %v7728_v4, %v7727_v15  ;;  %v8328_v15 = vld [vmem:[%s16091_s16] ss:$0 sm:$0xff] }
0x1454   : > { %v7759_v0 = vrot.slane %v7758_v46, 4  ;;  %v7749_v60 = vrot.slane %v7748_v40, 1  ;;  %v7768_v55 = vrot.slane %v7767_v17, 2  ;;  %v7756_v54 = vrot.slane %v7755_v63, 1 }
0x1455   : > { %v7672_v1 = vadd.f32 %v15933_v23, %v7650_v47  ;;  %v7782_v25 = vrot.slane %v7781_v53, 2  ;;  %v7836_v35 = vsel %vm7835_vm11, %v7788_v10, %v15964_v22  ;;  %v7792_v45 = vmul.f32 0.125, %v7722_v59  ;;  %v8331_v59 = vld [vmem:[%s16092_s17] ss:$0 sm:$0xff] }
0x1456   : > { %v7760_v11 = vadd.f32 %v7759_v0, %v7758_v46  ;;  %v7750_v43 = vadd.f32 %v7749_v60, %v7748_v40  ;;  %v7769_v24 = vadd.f32 %v7768_v55, %v7767_v17  ;;  %v7794_v38 = vmul.f32 0.125, %v7736_v7  ;;  %v8332_v55 = vld [vmem:[#allocation2] ss:$0 sm:$0xff] }
0x1457   : > { %v7772_v27 = vsel %vm1531_vm9, %v7672_v1, 0.0  ;;  %v7783_v26 = vadd.f32 %v7782_v25, %v7781_v53  ;;  %v7793_v23 = vmul.f32 0.125, %v7729_v32  ;;  %v7795_v21 = vmul.f32 0.125, %v7743_v6 }
0x1458   : > { %v7761_v19 = vrot.slane %v7760_v11, 2  ;;  %v7773_v28 = vrot.slane %v7772_v27, 4  ;;  %v7838_v5 = vsel %vm7837_vm12, %v15977_v52, %v7836_v35  ;;  %v7796_v58 = vmul.f32 0.125, %v7750_v43 }
0x1459   : > { %v7840_v30 = vsel %vm7839_vm13, %v7790_v56, %v7838_v5  ;;  %v7757_v8 = vadd.f32 %v7756_v54, %v7755_v63  ;;  %v7770_v29 = vrot.slane %v7769_v24, 1  ;;  %v7784_v18 = vrot.slane %v7783_v26, 1 }
0x145a   : > { %v7762_v48 = vadd.f32 %v7761_v19, %v7760_v11  ;;  %v7774_v3 = vadd.f32 %v7773_v28, %v7772_v27  ;;  %v7842_v31 = vsel %vm7841_vm14, %v7791_v20, %v7840_v30  ;;  %v7847_v61 = vsel %vm7833_vm10, %v7795_v21, %v7794_v38 }
0x145b   : > { %v7844_v44 = vsel %vm7843_vm15, %v7792_v45, %v7842_v31  ;;  %v7848_v50 = vsel %vm7835_vm11, %v7796_v58, %v7847_v61  ;;  %v7771_v51 = vadd.f32 %v7770_v29, %v7769_v24  ;;  %v7797_v36 = vmul.f32 0.125, %v7757_v8 }
0x145c   : > { %v7763_v22 = vrot.slane %v7762_v48, 1  ;;  %v7775_v10 = vrot.slane %v7774_v3, 2  ;;  %v7846_v39 = vsel %vm7845_vm0, %v7793_v23, %v7844_v44  ;;  %v7785_v16 = vadd.f32 %v7784_v18, %v7783_v26 }
0x145d   : > { %9462 = vmatprep.mubr.msk.f32.mxu0 %vm1531_vm9, %v7846_v39  ;;  %v7849_v49 = vsel %vm7837_vm12, %v7797_v36, %v7848_v50  ;;  %v7799_v42 = vmul.f32 0.125, %v7771_v51  ;;  %v10693_v60 = vmov 0  }
0x145e   : > { %v7764_v12 = vadd.f32 %v7763_v22, %v7762_v48  ;;  %v7776_v52 = vadd.f32 %v7775_v10, %v7774_v3  ;;  %v7801_v41 = vmul.f32 0.125, %v7785_v16  ;;  %10124 = vset.pattern.permute.xlu0 %v10693_v60  ;;  %10123 = vset.pattern.permute.xlu1 %v10693_v60 }
0x1460   : > { %v7777_v62 = vrot.slane %v7776_v52, 1  ;;  %v7798_v9 = vmul.f32 0.125, %v7764_v12 }
0x1462   : > { %v7778_v37 = vadd.f32 %v7777_v62, %v7776_v52  ;;  %v7850_v13 = vsel %vm7839_vm13, %v7798_v9, %v7849_v49 }
0x1463   : > { %v7851_v34 = vsel %vm7841_vm14, %v7799_v42, %v7850_v13 }
0x1464   : > { %v7800_v57 = vmul.f32 0.125, %v7778_v37 }
0x1466   : > { %v7852_v33 = vsel %vm7843_vm15, %v7800_v57, %v7851_v34 }
0x1467   : > { %v7853_v2 = vsel %vm7845_vm0, %v7801_v41, %v7852_v33 }
0x1468   : > { %9463 = vmatmul.mubr.msk.f32.vlgmr.msra.gmra.mxu0 %vm1531_vm9, %v7853_v2 }
0x1528   : > { %v9464_v14 = vpop.f32.mrf.mxu0 }
0x1529   : > { %v7930_v40 = vadd.f32 %v9464_v14, %v8328_v15 }
0x152a   : > { %v7924_v63 = vpop.f32.mrf.mxu0 }
0x152b   : > { %v7934_v17 = vmax.f32 %v7930_v40, 0.0  ;;  %v7925_v46 = vadd.f32 %v8328_v15, %v7924_v63 }
0x152d   : > { %v7943_v47 = vmul.f32 %v8331_v59, %v7934_v17  ;;  %v7933_v4 = vmax.f32 %v7925_v46, 0.0 }
0x152f   : > { %v7942_v53 = vmul.f32 %v8331_v59, %v7933_v4  ;;  %v7947_v0 = vsel %vm1463_vm2, %v7943_v47, 0.0 }
0x1530   : > { %7948 = vadd.xlane.f32.xlu0 %v7947_v0 }
0x1531   : > { %v7944_v7 = vsel %vm1463_vm2, %v7942_v53, 0.0 }
0x1532   : > { %7945 = vadd.xlane.f32.xlu1 %v7944_v7 }
0x15b9   : > { %v7949_v1 = vpop.xlane.xlu0 %7948 }
0x15ba   : > { %v7958_v32 = vadd.f32 %v8332_v55, %v7949_v1 }
0x15bb   : > { %v7946_v6 = vpop.xlane.xlu1 %7945 }
0x15bc   : > { %v8334_v25 = vmul.f32 -1.442695, %v7958_v32  ;;  %v7957_v11 = vadd.f32 %v8332_v55, %v7946_v6 }
0x15be   : > { %10606 = vpow2.f32 %v8334_v25  ;;  %v8333_v43 = vmul.f32 -1.442695, %v7957_v11 }
0x15c0   : > { %10608 = vpow2.f32 %v8333_v43 }
0x15cb   : > { %v10607_v56 = vpop.eup %10606 }
0x15cc   : > { %v7966_v20 = vadd.f32 1.0, %v10607_v56 }
0x15cd   : > { %v10609_v54 = vpop.eup %10608 }
0x15ce   : > { %10610 = vrcp.f32 %v7966_v20  ;;  %v7965_v24 = vadd.f32 1.0, %v10609_v54 }
0x15d0   : > { %10612 = vrcp.f32 %v7965_v24 }
0x15db   : > { %v10611_v27 = vpop.eup %10610 }
0x15dc   : > { %7978 = vperm.xlu0 %10124, %v10611_v27  }
0x15dd   : > { %v10613_v35 = vpop.eup %10612 }
0x15de   : > { %7973 = vperm.xlu1 %10123, %v10613_v35  }
0x1657   : > { %v7979_v19 = vpop.permute.xlu0 %7978 }
0x1658   : > { %7982 = vst [vmem:[%s614_s25 + $0x8] sm:$0xff] %v7979_v19 }
0x1659   : > { %v7974_v28 = vpop.permute.xlu1 %7973 }
0x165a   : > { %7981 = vst [vmem:[%s614_s25] sm:$0xff] %v7974_v28 }
0x165b   : > { %10627 = shalt.err (!%p10624_p3)
}
0x165c   : > { %s10628_s0 = scalar_lea.hbm %s16032_s19, 256  ;;  %s10632_s24 = scalar_lea.hbm %s16694_s4, 512 }
0x165d   : > { %p10629_p4 = scmp.ne.s32.totalorder %s16032_s19, %s10628_s0  ;;  %p10633_p9 = scmp.lt.s32.totalorder %s16032_s19, %s16694_s4 }
0x165e   : > { %p10634_p10 = scmp.lt.s32.totalorder %s10632_s24, %s10628_s0 }
0x165f   : > { %p10630_p7 = pnand %p10629_p4, %p10837_p5 }
0x1660   : > { %p10635_p11 = por %p10634_p10, %p10633_p9 }
0x1661   : > { %p10631_p8 = pneg %p10630_p7 }
0x1663   : > { %p10636_p12 = pnand %p10635_p11, %p10631_p8 }
0x1665   : > { %10639 = shalt.err (!%p10636_p12)
}
0x1666   : > { %s10695_s1 = smov 128  }
0x1667   : > { %9465 = dma.vmem_to_hbm [thread:$0]  (%p10837_p5), %s16027_s2, 256, %s16032_s19, %s16034_s20, %s10695_s1, %s10695_s1, %s16391_s28  }
0x1668 PF: > { %s16695_s18 = sld [smem:[#allocation8_spill]] }
0x1669   : > { %s16696_s22 = sld [smem:[#allocation6_spill]] }
0x166e   : > { %p9471_p13 = scmp.ge.s32.totalorder %s16695_s18, 2 }
0x166f   : > { %s8012_s30 = sand.u32 1, %s16696_s22  }
0x1670   : > { %p9468_p0 = pnand %p9471_p13, %p10841_p6  ;;  %s8013_s0 = scalar_lea.sflag [#allocation4], %s8012_s30 }
0x1672   : > { %p9469_p1 = pneg %p9468_p0 }
0x1674   : > { %10657 = dma.done.wait (%p9469_p1), %s8013_s0, 256  }
0x1675   : > { %10659 = vsyncadd (%p9469_p1), %s8013_s0, 4294967040  ;;  %s16698_s22 = sld [smem:[#allocation9_spill]]  ;;  %s16701_s20 = smov %s10666_s21 }
0x1676   : > { %s16699_s27 = sld [smem:[#allocation7_spill]] }
0x1677   : > { %s16700_s1 = sld [smem:[#allocation10_spill]] }
0x167b   : > { %p31_p2 = scmp.ge.s32.totalorder %s16698_s22, 4  }
0x167c   : > { %s16702_s21 = smov %s16699_s27 }
0x167d   :  { %33 = sbr.rel (!%p31_p2) target bundleno = 10 (0xa), region = 134 }
0x1682   :  { %8018 = vsyncpa [#allocation4], 1 }
0x1683   :  { %8020 = vsyncpa [#allocation4 + $0x1], 1 }

</bundles_post_ra>
